<compile_context>
chip_gen: v7x
topology: tpu7x:2x2x1
jax: 0.10.0
libtpu: 0.0.40
codegen_flags: <defaults>
</compile_context>

<pallas_src>
import functools

import jax
import jax.numpy as jnp
from jax.experimental import pallas as pl
from jax.experimental.pallas import tpu as pltpu


def _inter_attention_kernel(x_ref, mask_ref, w1_ref, b1_ref, w2_ref, b2_ref,
                            o_ref, mid_ref, *, C, Nout, Wp, OFF):
    """One batch chunk (TBr sublane-stacked images) per grid step.

    x_ref   : (1, C, TBr, Lin)  VMEM  flattened zero-padded inputs
    mask_ref: (TBr, Nout)       VMEM  1.0 where the output lane is an interior pixel
    w*_ref  : (C*C*9,)          SMEM  conv weights with BN folded in, (co,ci,ky,kx)
    b*_ref  : (C,)              SMEM  conv bias with BN folded in
    o_ref   : (1, C, TBr, Nout) VMEM  flattened outputs (lane-dense)
    mid_ref : (C, TBr, Lmid)    VMEM  scratch: zero-padded conv1 intermediate
    """
    K = 3
    mask = mask_ref[...]                                   # (TBr, Nout)

    def conv3x3(read_view, w_ref):
        # One shifted view at a time; each view feeds all C output channels.
        accs = [jnp.zeros(mask.shape, jnp.float32) for _ in range(C)]
        for ci in range(C):
            for ky in range(K):
                for kx in range(K):
                    v = read_view(ci, ky * Wp + kx)        # (TBr, Nout) full vregs
                    base = ci * K * K + ky * K + kx
                    for co in range(C):
                        accs[co] = accs[co] + w_ref[co * C * K * K + base] * v
        return accs

    # ---- conv1 (+ folded BN1) + ReLU -> masked, zero-padded intermediate ----
    mid_ref[...] = jnp.zeros_like(mid_ref)                 # zero halo + tail lanes
    acc1 = conv3x3(lambda ci, s: x_ref[0, ci, :, s:s + Nout], w1_ref)
    for co in range(C):
        row = jnp.maximum(acc1[co] + b1_ref[co], 0.0) * mask
        mid_ref[co, :, OFF:OFF + Nout] = row               # 128-aligned store

    # ---- conv2 (+ folded BN2) + sigmoid (per-channel lane-dense stores) -----
    shift0 = OFF - (Wp + 1)
    acc2 = conv3x3(
        lambda ci, s: mid_ref[ci, :, shift0 + s:shift0 + s + Nout], w2_ref)
    for co in range(C):
        o_ref[0, co, :, :] = jax.nn.sigmoid(acc2[co] + b2_ref[co])


def _fold_bn(gamma, beta, mean, var, eps=1e-5):
    scale = gamma / jnp.sqrt(var + eps)
    shift = beta - mean * scale
    return scale, shift


def _round_up(v, m):
    return (v + m - 1) // m * m


def inter_attention(x, params, identity=False):
    """JAX wrapper reproducing InterAttention.forward (eval-mode BN)."""
    assert x.shape[1] == 3, "InterAttention Module get 3 channel image"
    if identity:
        return x

    (w1, b1, g1, be1, m1, v1, w2, b2, g2, be2, m2, v2) = params
    B, C, H, W = x.shape

    # Fold conv bias + eval-mode BatchNorm into the conv weights / bias.
    s1, t1 = _fold_bn(g1, be1, m1, v1)
    s2, t2 = _fold_bn(g2, be2, m2, v2)
    w1f = (w1.astype(jnp.float32) * s1[:, None, None, None]).reshape(-1)
    b1f = b1.astype(jnp.float32) * s1 + t1
    w2f = (w2.astype(jnp.float32) * s2[:, None, None, None]).reshape(-1)
    b2f = b2.astype(jnp.float32) * s2 + t2

    Hp, Wp = H + 2, W + 2
    A = Hp * Wp                           # flat size of one zero-padded image
    smax = 2 * Wp + 2                     # largest conv tap lane shift
    Nout = _round_up(A, 128)              # output lanes per image row
    Lin = _round_up(Nout + smax, 128)     # input lanes per image row (shift slack)
    OFF = _round_up(Wp + 1, 128)          # 128-aligned scratch store offset
    Lmid = _round_up(OFF + Nout + Wp + 2, 128)

    # Images per grid step: multiple of 8 (full sublanes), bounded so that the
    # 3 accumulators + 1 view stay well inside the 64-vreg file, and >= 2 grid
    # steps when B > 8 so v7x's second TensorCore gets work.
    rows_cap = max(8, ((10 * 1024) // Nout) // 8 * 8)
    TBr = min(rows_cap, max(8, _round_up(-(-B // 2), 8)))
    G = -(-B // TBr)
    Bpad = G * TBr

    # (B,C,H,W) -> (G, C, TBr, Lin): pad batch, zero-pad spatially, flatten.
    xp = jnp.pad(x.astype(jnp.float32),
                 ((0, Bpad - B), (0, 0), (1, 1), (1, 1)))            # (Bpad,C,Hp,Wp)
    xf = jnp.pad(xp.reshape(Bpad, C, A), ((0, 0), (0, 0), (0, Lin - A)))
    xf = xf.reshape(G, TBr, C, Lin).transpose(0, 2, 1, 3)            # (G,C,TBr,Lin)

    # Interior mask: output lane q corresponds to padded position q + Wp + 1.
    p = jnp.arange(Nout) + (Wp + 1)
    yy, xx = p // Wp, p % Wp
    interior = (yy >= 1) & (yy <= H) & (xx >= 1) & (xx <= W) & (p < A)
    mask = jnp.broadcast_to(interior.astype(jnp.float32)[None, :], (TBr, Nout))

    smem = pl.BlockSpec(memory_space=pltpu.MemorySpace.SMEM)

    out = pl.pallas_call(
        functools.partial(_inter_attention_kernel,
                          C=C, Nout=Nout, Wp=Wp, OFF=OFF),
        out_shape=jax.ShapeDtypeStruct((G, C, TBr, Nout), jnp.float32),
        grid_spec=pltpu.PrefetchScalarGridSpec(
            num_scalar_prefetch=0,
            grid=(G,),
            in_specs=[
                pl.BlockSpec((1, C, TBr, Lin), lambda g: (g, 0, 0, 0)),
                pl.BlockSpec((TBr, Nout), lambda g: (0, 0)),
                smem, smem,   # w1, b1
                smem, smem,   # w2, b2
            ],
            out_specs=pl.BlockSpec((1, C, TBr, Nout), lambda g: (g, 0, 0, 0)),
            scratch_shapes=[pltpu.VMEM((C, TBr, Lmid), jnp.float32)],
        ),
        compiler_params=pltpu.CompilerParams(
            dimension_semantics=("parallel",)),
    )(xf, mask, w1f, b1f, w2f, b2f)

    # (G, C, TBr, Nout) -> (B, C, H, W): drop lane padding, unflatten, crop.
    out = out[..., :A].reshape(G, C, TBr, Hp, Wp)[..., :H, :W]
    out = out.transpose(0, 2, 1, 3, 4).reshape(Bpad, C, H, W)
    return out[:B]


def _reference(x, params):
    """Pure-JAX reference (lax.conv) for correctness checking."""
    (w1, b1, g1, be1, m1, v1, w2, b2, g2, be2, m2, v2) = params
    eps = 1e-5

    def conv(y, w, b):
        y = jax.lax.conv_general_dilated(
            y, w, window_strides=(1, 1), padding="SAME",
            dimension_numbers=("NCHW", "OIHW", "NCHW"))
        return y + b[None, :, None, None]

    def bn(y, g, be, m, v):
        return ((y - m[None, :, None, None]) /
                jnp.sqrt(v[None, :, None, None] + eps)
                * g[None, :, None, None] + be[None, :, None, None])

    y = conv(x, w1, b1)
    y = bn(y, g1, be1, m1, v1)
    y = jnp.maximum(y, 0.0)
    y = conv(y, w2, b2)
    y = bn(y, g2, be2, m2, v2)
    return jax.nn.sigmoid(y)


def _make_params(key):
    k1, k2, k3, k4 = jax.random.split(key, 4)
    w1 = jax.random.normal(k1, (3, 3, 3, 3), dtype=jnp.float32) * 0.2
    b1 = jax.random.normal(k2, (3,), dtype=jnp.float32) * 0.1
    w2 = jax.random.normal(k3, (3, 3, 3, 3), dtype=jnp.float32) * 0.2
    b2 = jax.random.normal(k4, (3,), dtype=jnp.float32) * 0.1
    # BatchNorm default init: gamma=1, beta=0, running_mean=0, running_var=1.
    g1 = jnp.ones((3,), jnp.float32); be1 = jnp.zeros((3,), jnp.float32)
    m1 = jnp.zeros((3,), jnp.float32); v1 = jnp.ones((3,), jnp.float32)
    g2 = jnp.ones((3,), jnp.float32); be2 = jnp.zeros((3,), jnp.float32)
    m2 = jnp.zeros((3,), jnp.float32); v2 = jnp.ones((3,), jnp.float32)
    return (w1, b1, g1, be1, m1, v1, w2, b2, g2, be2, m2, v2)


if __name__ == "__main__":
    key = jax.random.PRNGKey(0)
    kp, kx1, kx2 = jax.random.split(key, 3)
    params = _make_params(kp)

    # Main check: B=2, 3 channels (module asserts 3), 16x16 image.
    B, C, H, W = 2, 3, 16, 16
    x = jax.random.normal(kx1, (B, C, H, W), dtype=jnp.float32)
    out = jax.block_until_ready(inter_attention(x, params, identity=False))
    ref = _reference(x, params)
    assert out.shape == (B, C, H, W)
    assert jnp.allclose(out, ref, atol=2e-5, rtol=2e-5), (
        float(jnp.max(jnp.abs(out - ref))))

    # Second check: non-square H/W, B not divisible by TBr, >1 grid step.
    B2, H2, W2 = 9, 8, 12
    x2 = jax.random.normal(kx2, (B2, C, H2, W2), dtype=jnp.float32)
    out2 = jax.block_until_ready(inter_attention(x2, params, identity=False))
    ref2 = _reference(x2, params)
    assert out2.shape == (B2, C, H2, W2)
    assert jnp.allclose(out2, ref2, atol=2e-5, rtol=2e-5), (
        float(jnp.max(jnp.abs(out2 - ref2))))

    # Identity path.
    ident = inter_attention(x, params, identity=True)
    assert jnp.array_equal(ident, x)

    print("KERNEL_OK")
</pallas_src>

<mosaic_0001>
module attributes {stable_mosaic.version = 11 : i64} {
  func.func @_inter_attention_kernel(%arg0: i32, %arg1: memref<1x3x8x512xf32, #tpu.memory_space<vmem>>, %arg2: memref<8x384xf32, #tpu.memory_space<vmem>>, %arg3: memref<81xf32, #tpu.memory_space<smem>>, %arg4: memref<3xf32, #tpu.memory_space<smem>>, %arg5: memref<81xf32, #tpu.memory_space<smem>>, %arg6: memref<3xf32, #tpu.memory_space<smem>>, %arg7: memref<1x3x8x384xf32, #tpu.memory_space<vmem>>, %arg8: memref<3x8x640xf32, #tpu.memory_space<vmem>>) attributes {dimension_semantics = [#tpu.dimension_semantics<parallel>], iteration_bounds = array<i64: 1>, scalar_prefetch = 0 : i64, scratch_operands = 1 : i64, tpu.core_type = #tpu.core_type<tc>, window_params = [{transform_indices = @transform_0, window_bounds = array<i64: 1, 3, 8, 512>}, {pipeline_mode = #tpu.pipeline_mode<synchronous>, transform_indices = @transform_1, window_bounds = array<i64: 8, 384>}, {transform_indices = @transform_2, window_bounds = array<i64: 81>}, {transform_indices = @transform_3, window_bounds = array<i64: 3>}, {transform_indices = @transform_4, window_bounds = array<i64: 81>}, {transform_indices = @transform_5, window_bounds = array<i64: 3>}, {transform_indices = @transform_6, window_bounds = array<i64: 1, 3, 8, 384>}]} {
    %c0 = arith.constant 0 : index
    %c0_0 = arith.constant 0 : index
    %0 = vector.load %arg2[%c0, %c0_0] : memref<8x384xf32, #tpu.memory_space<vmem>>, vector<8x384xf32>
    %cst = arith.constant 0.000000e+00 : f32
    %1 = vector.broadcast %cst : f32 to vector<3x8x640xf32>
    %c0_1 = arith.constant 0 : index
    %c0_2 = arith.constant 0 : index
    %c0_3 = arith.constant 0 : index
    %2 = vector.load %arg8[%c0_1, %c0_2, %c0_3] : memref<3x8x640xf32, #tpu.memory_space<vmem>>, vector<3x8x640xf32>
    tpu.vector_store %arg8[%c0_1, %c0_2, %c0_3], %1 {strides = array<i32>} : memref<3x8x640xf32, #tpu.memory_space<vmem>>, vector<3x8x640xf32>,
    %cst_4 = arith.constant 0.000000e+00 : f32
    %3 = vector.broadcast %cst_4 : f32 to vector<8x384xf32>
    %cst_5 = arith.constant 0.000000e+00 : f32
    %4 = vector.broadcast %cst_5 : f32 to vector<8x384xf32>
    %cst_6 = arith.constant 0.000000e+00 : f32
    %5 = vector.broadcast %cst_6 : f32 to vector<8x384xf32>
    %c0_7 = arith.constant 0 : index
    %c0_8 = arith.constant 0 : index
    %c0_9 = arith.constant 0 : index
    %c0_10 = arith.constant 0 : index
    %6 = vector.load %arg1[%c0_7, %c0_8, %c0_9, %c0_10] : memref<1x3x8x512xf32, #tpu.memory_space<vmem>>, vector<1x1x8x384xf32>
    %7 = vector.shape_cast %6 : vector<1x1x8x384xf32> to vector<8x384xf32>
    %c0_11 = arith.constant 0 : index
    %8 = memref.load %arg3[%c0_11] : memref<81xf32, #tpu.memory_space<smem>>
    %9 = vector.broadcast %8 : f32 to vector<8x384xf32>
    %10 = arith.mulf %9, %7 : vector<8x384xf32>
    %11 = arith.addf %3, %10 : vector<8x384xf32>
    %c27 = arith.constant 27 : index
    %12 = memref.load %arg3[%c27] : memref<81xf32, #tpu.memory_space<smem>>
    %13 = vector.broadcast %12 : f32 to vector<8x384xf32>
    %14 = arith.mulf %13, %7 : vector<8x384xf32>
    %15 = arith.addf %4, %14 : vector<8x384xf32>
    %c54 = arith.constant 54 : index
    %16 = memref.load %arg3[%c54] : memref<81xf32, #tpu.memory_space<smem>>
    %17 = vector.broadcast %16 : f32 to vector<8x384xf32>
    %18 = arith.mulf %17, %7 : vector<8x384xf32>
    %19 = arith.addf %5, %18 : vector<8x384xf32>
    %c0_12 = arith.constant 0 : index
    %c0_13 = arith.constant 0 : index
    %c0_14 = arith.constant 0 : index
    %c1 = arith.constant 1 : index
    %20 = vector.load %arg1[%c0_12, %c0_13, %c0_14, %c1] : memref<1x3x8x512xf32, #tpu.memory_space<vmem>>, vector<1x1x8x384xf32>
    %21 = vector.shape_cast %20 : vector<1x1x8x384xf32> to vector<8x384xf32>
    %c1_15 = arith.constant 1 : index
    %22 = memref.load %arg3[%c1_15] : memref<81xf32, #tpu.memory_space<smem>>
    %23 = vector.broadcast %22 : f32 to vector<8x384xf32>
    %24 = arith.mulf %23, %21 : vector<8x384xf32>
    %25 = arith.addf %11, %24 : vector<8x384xf32>
    %c28 = arith.constant 28 : index
    %26 = memref.load %arg3[%c28] : memref<81xf32, #tpu.memory_space<smem>>
    %27 = vector.broadcast %26 : f32 to vector<8x384xf32>
    %28 = arith.mulf %27, %21 : vector<8x384xf32>
    %29 = arith.addf %15, %28 : vector<8x384xf32>
    %c55 = arith.constant 55 : index
    %30 = memref.load %arg3[%c55] : memref<81xf32, #tpu.memory_space<smem>>
    %31 = vector.broadcast %30 : f32 to vector<8x384xf32>
    %32 = arith.mulf %31, %21 : vector<8x384xf32>
    %33 = arith.addf %19, %32 : vector<8x384xf32>
    %c0_16 = arith.constant 0 : index
    %c0_17 = arith.constant 0 : index
    %c0_18 = arith.constant 0 : index
    %c2 = arith.constant 2 : index
    %34 = vector.load %arg1[%c0_16, %c0_17, %c0_18, %c2] : memref<1x3x8x512xf32, #tpu.memory_space<vmem>>, vector<1x1x8x384xf32>
    %35 = vector.shape_cast %34 : vector<1x1x8x384xf32> to vector<8x384xf32>
    %c2_19 = arith.constant 2 : index
    %36 = memref.load %arg3[%c2_19] : memref<81xf32, #tpu.memory_space<smem>>
    %37 = vector.broadcast %36 : f32 to vector<8x384xf32>
    %38 = arith.mulf %37, %35 : vector<8x384xf32>
    %39 = arith.addf %25, %38 : vector<8x384xf32>
    %c29 = arith.constant 29 : index
    %40 = memref.load %arg3[%c29] : memref<81xf32, #tpu.memory_space<smem>>
    %41 = vector.broadcast %40 : f32 to vector<8x384xf32>
    %42 = arith.mulf %41, %35 : vector<8x384xf32>
    %43 = arith.addf %29, %42 : vector<8x384xf32>
    %c56 = arith.constant 56 : index
    %44 = memref.load %arg3[%c56] : memref<81xf32, #tpu.memory_space<smem>>
    %45 = vector.broadcast %44 : f32 to vector<8x384xf32>
    %46 = arith.mulf %45, %35 : vector<8x384xf32>
    %47 = arith.addf %33, %46 : vector<8x384xf32>
    %c0_20 = arith.constant 0 : index
    %c0_21 = arith.constant 0 : index
    %c0_22 = arith.constant 0 : index
    %c18 = arith.constant 18 : index
    %48 = vector.load %arg1[%c0_20, %c0_21, %c0_22, %c18] : memref<1x3x8x512xf32, #tpu.memory_space<vmem>>, vector<1x1x8x384xf32>
    %49 = vector.shape_cast %48 : vector<1x1x8x384xf32> to vector<8x384xf32>
    %c3 = arith.constant 3 : index
    %50 = memref.load %arg3[%c3] : memref<81xf32, #tpu.memory_space<smem>>
    %51 = vector.broadcast %50 : f32 to vector<8x384xf32>
    %52 = arith.mulf %51, %49 : vector<8x384xf32>
    %53 = arith.addf %39, %52 : vector<8x384xf32>
    %c30 = arith.constant 30 : index
    %54 = memref.load %arg3[%c30] : memref<81xf32, #tpu.memory_space<smem>>
    %55 = vector.broadcast %54 : f32 to vector<8x384xf32>
    %56 = arith.mulf %55, %49 : vector<8x384xf32>
    %57 = arith.addf %43, %56 : vector<8x384xf32>
    %c57 = arith.constant 57 : index
    %58 = memref.load %arg3[%c57] : memref<81xf32, #tpu.memory_space<smem>>
    %59 = vector.broadcast %58 : f32 to vector<8x384xf32>
    %60 = arith.mulf %59, %49 : vector<8x384xf32>
    %61 = arith.addf %47, %60 : vector<8x384xf32>
    %c0_23 = arith.constant 0 : index
    %c0_24 = arith.constant 0 : index
    %c0_25 = arith.constant 0 : index
    %c19 = arith.constant 19 : index
    %62 = vector.load %arg1[%c0_23, %c0_24, %c0_25, %c19] : memref<1x3x8x512xf32, #tpu.memory_space<vmem>>, vector<1x1x8x384xf32>
    %63 = vector.shape_cast %62 : vector<1x1x8x384xf32> to vector<8x384xf32>
    %c4 = arith.constant 4 : index
    %64 = memref.load %arg3[%c4] : memref<81xf32, #tpu.memory_space<smem>>
    %65 = vector.broadcast %64 : f32 to vector<8x384xf32>
    %66 = arith.mulf %65, %63 : vector<8x384xf32>
    %67 = arith.addf %53, %66 : vector<8x384xf32>
    %c31 = arith.constant 31 : index
    %68 = memref.load %arg3[%c31] : memref<81xf32, #tpu.memory_space<smem>>
    %69 = vector.broadcast %68 : f32 to vector<8x384xf32>
    %70 = arith.mulf %69, %63 : vector<8x384xf32>
    %71 = arith.addf %57, %70 : vector<8x384xf32>
    %c58 = arith.constant 58 : index
    %72 = memref.load %arg3[%c58] : memref<81xf32, #tpu.memory_space<smem>>
    %73 = vector.broadcast %72 : f32 to vector<8x384xf32>
    %74 = arith.mulf %73, %63 : vector<8x384xf32>
    %75 = arith.addf %61, %74 : vector<8x384xf32>
    %c0_26 = arith.constant 0 : index
    %c0_27 = arith.constant 0 : index
    %c0_28 = arith.constant 0 : index
    %c20 = arith.constant 20 : index
    %76 = vector.load %arg1[%c0_26, %c0_27, %c0_28, %c20] : memref<1x3x8x512xf32, #tpu.memory_space<vmem>>, vector<1x1x8x384xf32>
    %77 = vector.shape_cast %76 : vector<1x1x8x384xf32> to vector<8x384xf32>
    %c5 = arith.constant 5 : index
    %78 = memref.load %arg3[%c5] : memref<81xf32, #tpu.memory_space<smem>>
    %79 = vector.broadcast %78 : f32 to vector<8x384xf32>
    %80 = arith.mulf %79, %77 : vector<8x384xf32>
    %81 = arith.addf %67, %80 : vector<8x384xf32>
    %c32 = arith.constant 32 : index
    %82 = memref.load %arg3[%c32] : memref<81xf32, #tpu.memory_space<smem>>
    %83 = vector.broadcast %82 : f32 to vector<8x384xf32>
    %84 = arith.mulf %83, %77 : vector<8x384xf32>
    %85 = arith.addf %71, %84 : vector<8x384xf32>
    %c59 = arith.constant 59 : index
    %86 = memref.load %arg3[%c59] : memref<81xf32, #tpu.memory_space<smem>>
    %87 = vector.broadcast %86 : f32 to vector<8x384xf32>
    %88 = arith.mulf %87, %77 : vector<8x384xf32>
    %89 = arith.addf %75, %88 : vector<8x384xf32>
    %c0_29 = arith.constant 0 : index
    %c0_30 = arith.constant 0 : index
    %c0_31 = arith.constant 0 : index
    %c36 = arith.constant 36 : index
    %90 = vector.load %arg1[%c0_29, %c0_30, %c0_31, %c36] : memref<1x3x8x512xf32, #tpu.memory_space<vmem>>, vector<1x1x8x384xf32>
    %91 = vector.shape_cast %90 : vector<1x1x8x384xf32> to vector<8x384xf32>
    %c6 = arith.constant 6 : index
    %92 = memref.load %arg3[%c6] : memref<81xf32, #tpu.memory_space<smem>>
    %93 = vector.broadcast %92 : f32 to vector<8x384xf32>
    %94 = arith.mulf %93, %91 : vector<8x384xf32>
    %95 = arith.addf %81, %94 : vector<8x384xf32>
    %c33 = arith.constant 33 : index
    %96 = memref.load %arg3[%c33] : memref<81xf32, #tpu.memory_space<smem>>
    %97 = vector.broadcast %96 : f32 to vector<8x384xf32>
    %98 = arith.mulf %97, %91 : vector<8x384xf32>
    %99 = arith.addf %85, %98 : vector<8x384xf32>
    %c60 = arith.constant 60 : index
    %100 = memref.load %arg3[%c60] : memref<81xf32, #tpu.memory_space<smem>>
    %101 = vector.broadcast %100 : f32 to vector<8x384xf32>
    %102 = arith.mulf %101, %91 : vector<8x384xf32>
    %103 = arith.addf %89, %102 : vector<8x384xf32>
    %c0_32 = arith.constant 0 : index
    %c0_33 = arith.constant 0 : index
    %c0_34 = arith.constant 0 : index
    %c37 = arith.constant 37 : index
    %104 = vector.load %arg1[%c0_32, %c0_33, %c0_34, %c37] : memref<1x3x8x512xf32, #tpu.memory_space<vmem>>, vector<1x1x8x384xf32>
    %105 = vector.shape_cast %104 : vector<1x1x8x384xf32> to vector<8x384xf32>
    %c7 = arith.constant 7 : index
    %106 = memref.load %arg3[%c7] : memref<81xf32, #tpu.memory_space<smem>>
    %107 = vector.broadcast %106 : f32 to vector<8x384xf32>
    %108 = arith.mulf %107, %105 : vector<8x384xf32>
    %109 = arith.addf %95, %108 : vector<8x384xf32>
    %c34 = arith.constant 34 : index
    %110 = memref.load %arg3[%c34] : memref<81xf32, #tpu.memory_space<smem>>
    %111 = vector.broadcast %110 : f32 to vector<8x384xf32>
    %112 = arith.mulf %111, %105 : vector<8x384xf32>
    %113 = arith.addf %99, %112 : vector<8x384xf32>
    %c61 = arith.constant 61 : index
    %114 = memref.load %arg3[%c61] : memref<81xf32, #tpu.memory_space<smem>>
    %115 = vector.broadcast %114 : f32 to vector<8x384xf32>
    %116 = arith.mulf %115, %105 : vector<8x384xf32>
    %117 = arith.addf %103, %116 : vector<8x384xf32>
    %c0_35 = arith.constant 0 : index
    %c0_36 = arith.constant 0 : index
    %c0_37 = arith.constant 0 : index
    %c38 = arith.constant 38 : index
    %118 = vector.load %arg1[%c0_35, %c0_36, %c0_37, %c38] : memref<1x3x8x512xf32, #tpu.memory_space<vmem>>, vector<1x1x8x384xf32>
    %119 = vector.shape_cast %118 : vector<1x1x8x384xf32> to vector<8x384xf32>
    %c8 = arith.constant 8 : index
    %120 = memref.load %arg3[%c8] : memref<81xf32, #tpu.memory_space<smem>>
    %121 = vector.broadcast %120 : f32 to vector<8x384xf32>
    %122 = arith.mulf %121, %119 : vector<8x384xf32>
    %123 = arith.addf %109, %122 : vector<8x384xf32>
    %c35 = arith.constant 35 : index
    %124 = memref.load %arg3[%c35] : memref<81xf32, #tpu.memory_space<smem>>
    %125 = vector.broadcast %124 : f32 to vector<8x384xf32>
    %126 = arith.mulf %125, %119 : vector<8x384xf32>
    %127 = arith.addf %113, %126 : vector<8x384xf32>
    %c62 = arith.constant 62 : index
    %128 = memref.load %arg3[%c62] : memref<81xf32, #tpu.memory_space<smem>>
    %129 = vector.broadcast %128 : f32 to vector<8x384xf32>
    %130 = arith.mulf %129, %119 : vector<8x384xf32>
    %131 = arith.addf %117, %130 : vector<8x384xf32>
    %c0_38 = arith.constant 0 : index
    %c1_39 = arith.constant 1 : index
    %c0_40 = arith.constant 0 : index
    %c0_41 = arith.constant 0 : index
    %132 = vector.load %arg1[%c0_38, %c1_39, %c0_40, %c0_41] : memref<1x3x8x512xf32, #tpu.memory_space<vmem>>, vector<1x1x8x384xf32>
    %133 = vector.shape_cast %132 : vector<1x1x8x384xf32> to vector<8x384xf32>
    %c9 = arith.constant 9 : index
    %134 = memref.load %arg3[%c9] : memref<81xf32, #tpu.memory_space<smem>>
    %135 = vector.broadcast %134 : f32 to vector<8x384xf32>
    %136 = arith.mulf %135, %133 : vector<8x384xf32>
    %137 = arith.addf %123, %136 : vector<8x384xf32>
    %c36_42 = arith.constant 36 : index
    %138 = memref.load %arg3[%c36_42] : memref<81xf32, #tpu.memory_space<smem>>
    %139 = vector.broadcast %138 : f32 to vector<8x384xf32>
    %140 = arith.mulf %139, %133 : vector<8x384xf32>
    %141 = arith.addf %127, %140 : vector<8x384xf32>
    %c63 = arith.constant 63 : index
    %142 = memref.load %arg3[%c63] : memref<81xf32, #tpu.memory_space<smem>>
    %143 = vector.broadcast %142 : f32 to vector<8x384xf32>
    %144 = arith.mulf %143, %133 : vector<8x384xf32>
    %145 = arith.addf %131, %144 : vector<8x384xf32>
    %c0_43 = arith.constant 0 : index
    %c1_44 = arith.constant 1 : index
    %c0_45 = arith.constant 0 : index
    %c1_46 = arith.constant 1 : index
    %146 = vector.load %arg1[%c0_43, %c1_44, %c0_45, %c1_46] : memref<1x3x8x512xf32, #tpu.memory_space<vmem>>, vector<1x1x8x384xf32>
    %147 = vector.shape_cast %146 : vector<1x1x8x384xf32> to vector<8x384xf32>
    %c10 = arith.constant 10 : index
    %148 = memref.load %arg3[%c10] : memref<81xf32, #tpu.memory_space<smem>>
    %149 = vector.broadcast %148 : f32 to vector<8x384xf32>
    %150 = arith.mulf %149, %147 : vector<8x384xf32>
    %151 = arith.addf %137, %150 : vector<8x384xf32>
    %c37_47 = arith.constant 37 : index
    %152 = memref.load %arg3[%c37_47] : memref<81xf32, #tpu.memory_space<smem>>
    %153 = vector.broadcast %152 : f32 to vector<8x384xf32>
    %154 = arith.mulf %153, %147 : vector<8x384xf32>
    %155 = arith.addf %141, %154 : vector<8x384xf32>
    %c64 = arith.constant 64 : index
    %156 = memref.load %arg3[%c64] : memref<81xf32, #tpu.memory_space<smem>>
    %157 = vector.broadcast %156 : f32 to vector<8x384xf32>
    %158 = arith.mulf %157, %147 : vector<8x384xf32>
    %159 = arith.addf %145, %158 : vector<8x384xf32>
    %c0_48 = arith.constant 0 : index
    %c1_49 = arith.constant 1 : index
    %c0_50 = arith.constant 0 : index
    %c2_51 = arith.constant 2 : index
    %160 = vector.load %arg1[%c0_48, %c1_49, %c0_50, %c2_51] : memref<1x3x8x512xf32, #tpu.memory_space<vmem>>, vector<1x1x8x384xf32>
    %161 = vector.shape_cast %160 : vector<1x1x8x384xf32> to vector<8x384xf32>
    %c11 = arith.constant 11 : index
    %162 = memref.load %arg3[%c11] : memref<81xf32, #tpu.memory_space<smem>>
    %163 = vector.broadcast %162 : f32 to vector<8x384xf32>
    %164 = arith.mulf %163, %161 : vector<8x384xf32>
    %165 = arith.addf %151, %164 : vector<8x384xf32>
    %c38_52 = arith.constant 38 : index
    %166 = memref.load %arg3[%c38_52] : memref<81xf32, #tpu.memory_space<smem>>
    %167 = vector.broadcast %166 : f32 to vector<8x384xf32>
    %168 = arith.mulf %167, %161 : vector<8x384xf32>
    %169 = arith.addf %155, %168 : vector<8x384xf32>
    %c65 = arith.constant 65 : index
    %170 = memref.load %arg3[%c65] : memref<81xf32, #tpu.memory_space<smem>>
    %171 = vector.broadcast %170 : f32 to vector<8x384xf32>
    %172 = arith.mulf %171, %161 : vector<8x384xf32>
    %173 = arith.addf %159, %172 : vector<8x384xf32>
    %c0_53 = arith.constant 0 : index
    %c1_54 = arith.constant 1 : index
    %c0_55 = arith.constant 0 : index
    %c18_56 = arith.constant 18 : index
    %174 = vector.load %arg1[%c0_53, %c1_54, %c0_55, %c18_56] : memref<1x3x8x512xf32, #tpu.memory_space<vmem>>, vector<1x1x8x384xf32>
    %175 = vector.shape_cast %174 : vector<1x1x8x384xf32> to vector<8x384xf32>
    %c12 = arith.constant 12 : index
    %176 = memref.load %arg3[%c12] : memref<81xf32, #tpu.memory_space<smem>>
    %177 = vector.broadcast %176 : f32 to vector<8x384xf32>
    %178 = arith.mulf %177, %175 : vector<8x384xf32>
    %179 = arith.addf %165, %178 : vector<8x384xf32>
    %c39 = arith.constant 39 : index
    %180 = memref.load %arg3[%c39] : memref<81xf32, #tpu.memory_space<smem>>
    %181 = vector.broadcast %180 : f32 to vector<8x384xf32>
    %182 = arith.mulf %181, %175 : vector<8x384xf32>
    %183 = arith.addf %169, %182 : vector<8x384xf32>
    %c66 = arith.constant 66 : index
    %184 = memref.load %arg3[%c66] : memref<81xf32, #tpu.memory_space<smem>>
    %185 = vector.broadcast %184 : f32 to vector<8x384xf32>
    %186 = arith.mulf %185, %175 : vector<8x384xf32>
    %187 = arith.addf %173, %186 : vector<8x384xf32>
    %c0_57 = arith.constant 0 : index
    %c1_58 = arith.constant 1 : index
    %c0_59 = arith.constant 0 : index
    %c19_60 = arith.constant 19 : index
    %188 = vector.load %arg1[%c0_57, %c1_58, %c0_59, %c19_60] : memref<1x3x8x512xf32, #tpu.memory_space<vmem>>, vector<1x1x8x384xf32>
    %189 = vector.shape_cast %188 : vector<1x1x8x384xf32> to vector<8x384xf32>
    %c13 = arith.constant 13 : index
    %190 = memref.load %arg3[%c13] : memref<81xf32, #tpu.memory_space<smem>>
    %191 = vector.broadcast %190 : f32 to vector<8x384xf32>
    %192 = arith.mulf %191, %189 : vector<8x384xf32>
    %193 = arith.addf %179, %192 : vector<8x384xf32>
    %c40 = arith.constant 40 : index
    %194 = memref.load %arg3[%c40] : memref<81xf32, #tpu.memory_space<smem>>
    %195 = vector.broadcast %194 : f32 to vector<8x384xf32>
    %196 = arith.mulf %195, %189 : vector<8x384xf32>
    %197 = arith.addf %183, %196 : vector<8x384xf32>
    %c67 = arith.constant 67 : index
    %198 = memref.load %arg3[%c67] : memref<81xf32, #tpu.memory_space<smem>>
    %199 = vector.broadcast %198 : f32 to vector<8x384xf32>
    %200 = arith.mulf %199, %189 : vector<8x384xf32>
    %201 = arith.addf %187, %200 : vector<8x384xf32>
    %c0_61 = arith.constant 0 : index
    %c1_62 = arith.constant 1 : index
    %c0_63 = arith.constant 0 : index
    %c20_64 = arith.constant 20 : index
    %202 = vector.load %arg1[%c0_61, %c1_62, %c0_63, %c20_64] : memref<1x3x8x512xf32, #tpu.memory_space<vmem>>, vector<1x1x8x384xf32>
    %203 = vector.shape_cast %202 : vector<1x1x8x384xf32> to vector<8x384xf32>
    %c14 = arith.constant 14 : index
    %204 = memref.load %arg3[%c14] : memref<81xf32, #tpu.memory_space<smem>>
    %205 = vector.broadcast %204 : f32 to vector<8x384xf32>
    %206 = arith.mulf %205, %203 : vector<8x384xf32>
    %207 = arith.addf %193, %206 : vector<8x384xf32>
    %c41 = arith.constant 41 : index
    %208 = memref.load %arg3[%c41] : memref<81xf32, #tpu.memory_space<smem>>
    %209 = vector.broadcast %208 : f32 to vector<8x384xf32>
    %210 = arith.mulf %209, %203 : vector<8x384xf32>
    %211 = arith.addf %197, %210 : vector<8x384xf32>
    %c68 = arith.constant 68 : index
    %212 = memref.load %arg3[%c68] : memref<81xf32, #tpu.memory_space<smem>>
    %213 = vector.broadcast %212 : f32 to vector<8x384xf32>
    %214 = arith.mulf %213, %203 : vector<8x384xf32>
    %215 = arith.addf %201, %214 : vector<8x384xf32>
    %c0_65 = arith.constant 0 : index
    %c1_66 = arith.constant 1 : index
    %c0_67 = arith.constant 0 : index
    %c36_68 = arith.constant 36 : index
    %216 = vector.load %arg1[%c0_65, %c1_66, %c0_67, %c36_68] : memref<1x3x8x512xf32, #tpu.memory_space<vmem>>, vector<1x1x8x384xf32>
    %217 = vector.shape_cast %216 : vector<1x1x8x384xf32> to vector<8x384xf32>
    %c15 = arith.constant 15 : index
    %218 = memref.load %arg3[%c15] : memref<81xf32, #tpu.memory_space<smem>>
    %219 = vector.broadcast %218 : f32 to vector<8x384xf32>
    %220 = arith.mulf %219, %217 : vector<8x384xf32>
    %221 = arith.addf %207, %220 : vector<8x384xf32>
    %c42 = arith.constant 42 : index
    %222 = memref.load %arg3[%c42] : memref<81xf32, #tpu.memory_space<smem>>
    %223 = vector.broadcast %222 : f32 to vector<8x384xf32>
    %224 = arith.mulf %223, %217 : vector<8x384xf32>
    %225 = arith.addf %211, %224 : vector<8x384xf32>
    %c69 = arith.constant 69 : index
    %226 = memref.load %arg3[%c69] : memref<81xf32, #tpu.memory_space<smem>>
    %227 = vector.broadcast %226 : f32 to vector<8x384xf32>
    %228 = arith.mulf %227, %217 : vector<8x384xf32>
    %229 = arith.addf %215, %228 : vector<8x384xf32>
    %c0_69 = arith.constant 0 : index
    %c1_70 = arith.constant 1 : index
    %c0_71 = arith.constant 0 : index
    %c37_72 = arith.constant 37 : index
    %230 = vector.load %arg1[%c0_69, %c1_70, %c0_71, %c37_72] : memref<1x3x8x512xf32, #tpu.memory_space<vmem>>, vector<1x1x8x384xf32>
    %231 = vector.shape_cast %230 : vector<1x1x8x384xf32> to vector<8x384xf32>
    %c16 = arith.constant 16 : index
    %232 = memref.load %arg3[%c16] : memref<81xf32, #tpu.memory_space<smem>>
    %233 = vector.broadcast %232 : f32 to vector<8x384xf32>
    %234 = arith.mulf %233, %231 : vector<8x384xf32>
    %235 = arith.addf %221, %234 : vector<8x384xf32>
    %c43 = arith.constant 43 : index
    %236 = memref.load %arg3[%c43] : memref<81xf32, #tpu.memory_space<smem>>
    %237 = vector.broadcast %236 : f32 to vector<8x384xf32>
    %238 = arith.mulf %237, %231 : vector<8x384xf32>
    %239 = arith.addf %225, %238 : vector<8x384xf32>
    %c70 = arith.constant 70 : index
    %240 = memref.load %arg3[%c70] : memref<81xf32, #tpu.memory_space<smem>>
    %241 = vector.broadcast %240 : f32 to vector<8x384xf32>
    %242 = arith.mulf %241, %231 : vector<8x384xf32>
    %243 = arith.addf %229, %242 : vector<8x384xf32>
    %c0_73 = arith.constant 0 : index
    %c1_74 = arith.constant 1 : index
    %c0_75 = arith.constant 0 : index
    %c38_76 = arith.constant 38 : index
    %244 = vector.load %arg1[%c0_73, %c1_74, %c0_75, %c38_76] : memref<1x3x8x512xf32, #tpu.memory_space<vmem>>, vector<1x1x8x384xf32>
    %245 = vector.shape_cast %244 : vector<1x1x8x384xf32> to vector<8x384xf32>
    %c17 = arith.constant 17 : index
    %246 = memref.load %arg3[%c17] : memref<81xf32, #tpu.memory_space<smem>>
    %247 = vector.broadcast %246 : f32 to vector<8x384xf32>
    %248 = arith.mulf %247, %245 : vector<8x384xf32>
    %249 = arith.addf %235, %248 : vector<8x384xf32>
    %c44 = arith.constant 44 : index
    %250 = memref.load %arg3[%c44] : memref<81xf32, #tpu.memory_space<smem>>
    %251 = vector.broadcast %250 : f32 to vector<8x384xf32>
    %252 = arith.mulf %251, %245 : vector<8x384xf32>
    %253 = arith.addf %239, %252 : vector<8x384xf32>
    %c71 = arith.constant 71 : index
    %254 = memref.load %arg3[%c71] : memref<81xf32, #tpu.memory_space<smem>>
    %255 = vector.broadcast %254 : f32 to vector<8x384xf32>
    %256 = arith.mulf %255, %245 : vector<8x384xf32>
    %257 = arith.addf %243, %256 : vector<8x384xf32>
    %c0_77 = arith.constant 0 : index
    %c2_78 = arith.constant 2 : index
    %c0_79 = arith.constant 0 : index
    %c0_80 = arith.constant 0 : index
    %258 = vector.load %arg1[%c0_77, %c2_78, %c0_79, %c0_80] : memref<1x3x8x512xf32, #tpu.memory_space<vmem>>, vector<1x1x8x384xf32>
    %259 = vector.shape_cast %258 : vector<1x1x8x384xf32> to vector<8x384xf32>
    %c18_81 = arith.constant 18 : index
    %260 = memref.load %arg3[%c18_81] : memref<81xf32, #tpu.memory_space<smem>>
    %261 = vector.broadcast %260 : f32 to vector<8x384xf32>
    %262 = arith.mulf %261, %259 : vector<8x384xf32>
    %263 = arith.addf %249, %262 : vector<8x384xf32>
    %c45 = arith.constant 45 : index
    %264 = memref.load %arg3[%c45] : memref<81xf32, #tpu.memory_space<smem>>
    %265 = vector.broadcast %264 : f32 to vector<8x384xf32>
    %266 = arith.mulf %265, %259 : vector<8x384xf32>
    %267 = arith.addf %253, %266 : vector<8x384xf32>
    %c72 = arith.constant 72 : index
    %268 = memref.load %arg3[%c72] : memref<81xf32, #tpu.memory_space<smem>>
    %269 = vector.broadcast %268 : f32 to vector<8x384xf32>
    %270 = arith.mulf %269, %259 : vector<8x384xf32>
    %271 = arith.addf %257, %270 : vector<8x384xf32>
    %c0_82 = arith.constant 0 : index
    %c2_83 = arith.constant 2 : index
    %c0_84 = arith.constant 0 : index
    %c1_85 = arith.constant 1 : index
    %272 = vector.load %arg1[%c0_82, %c2_83, %c0_84, %c1_85] : memref<1x3x8x512xf32, #tpu.memory_space<vmem>>, vector<1x1x8x384xf32>
    %273 = vector.shape_cast %272 : vector<1x1x8x384xf32> to vector<8x384xf32>
    %c19_86 = arith.constant 19 : index
    %274 = memref.load %arg3[%c19_86] : memref<81xf32, #tpu.memory_space<smem>>
    %275 = vector.broadcast %274 : f32 to vector<8x384xf32>
    %276 = arith.mulf %275, %273 : vector<8x384xf32>
    %277 = arith.addf %263, %276 : vector<8x384xf32>
    %c46 = arith.constant 46 : index
    %278 = memref.load %arg3[%c46] : memref<81xf32, #tpu.memory_space<smem>>
    %279 = vector.broadcast %278 : f32 to vector<8x384xf32>
    %280 = arith.mulf %279, %273 : vector<8x384xf32>
    %281 = arith.addf %267, %280 : vector<8x384xf32>
    %c73 = arith.constant 73 : index
    %282 = memref.load %arg3[%c73] : memref<81xf32, #tpu.memory_space<smem>>
    %283 = vector.broadcast %282 : f32 to vector<8x384xf32>
    %284 = arith.mulf %283, %273 : vector<8x384xf32>
    %285 = arith.addf %271, %284 : vector<8x384xf32>
    %c0_87 = arith.constant 0 : index
    %c2_88 = arith.constant 2 : index
    %c0_89 = arith.constant 0 : index
    %c2_90 = arith.constant 2 : index
    %286 = vector.load %arg1[%c0_87, %c2_88, %c0_89, %c2_90] : memref<1x3x8x512xf32, #tpu.memory_space<vmem>>, vector<1x1x8x384xf32>
    %287 = vector.shape_cast %286 : vector<1x1x8x384xf32> to vector<8x384xf32>
    %c20_91 = arith.constant 20 : index
    %288 = memref.load %arg3[%c20_91] : memref<81xf32, #tpu.memory_space<smem>>
    %289 = vector.broadcast %288 : f32 to vector<8x384xf32>
    %290 = arith.mulf %289, %287 : vector<8x384xf32>
    %291 = arith.addf %277, %290 : vector<8x384xf32>
    %c47 = arith.constant 47 : index
    %292 = memref.load %arg3[%c47] : memref<81xf32, #tpu.memory_space<smem>>
    %293 = vector.broadcast %292 : f32 to vector<8x384xf32>
    %294 = arith.mulf %293, %287 : vector<8x384xf32>
    %295 = arith.addf %281, %294 : vector<8x384xf32>
    %c74 = arith.constant 74 : index
    %296 = memref.load %arg3[%c74] : memref<81xf32, #tpu.memory_space<smem>>
    %297 = vector.broadcast %296 : f32 to vector<8x384xf32>
    %298 = arith.mulf %297, %287 : vector<8x384xf32>
    %299 = arith.addf %285, %298 : vector<8x384xf32>
    %c0_92 = arith.constant 0 : index
    %c2_93 = arith.constant 2 : index
    %c0_94 = arith.constant 0 : index
    %c18_95 = arith.constant 18 : index
    %300 = vector.load %arg1[%c0_92, %c2_93, %c0_94, %c18_95] : memref<1x3x8x512xf32, #tpu.memory_space<vmem>>, vector<1x1x8x384xf32>
    %301 = vector.shape_cast %300 : vector<1x1x8x384xf32> to vector<8x384xf32>
    %c21 = arith.constant 21 : index
    %302 = memref.load %arg3[%c21] : memref<81xf32, #tpu.memory_space<smem>>
    %303 = vector.broadcast %302 : f32 to vector<8x384xf32>
    %304 = arith.mulf %303, %301 : vector<8x384xf32>
    %305 = arith.addf %291, %304 : vector<8x384xf32>
    %c48 = arith.constant 48 : index
    %306 = memref.load %arg3[%c48] : memref<81xf32, #tpu.memory_space<smem>>
    %307 = vector.broadcast %306 : f32 to vector<8x384xf32>
    %308 = arith.mulf %307, %301 : vector<8x384xf32>
    %309 = arith.addf %295, %308 : vector<8x384xf32>
    %c75 = arith.constant 75 : index
    %310 = memref.load %arg3[%c75] : memref<81xf32, #tpu.memory_space<smem>>
    %311 = vector.broadcast %310 : f32 to vector<8x384xf32>
    %312 = arith.mulf %311, %301 : vector<8x384xf32>
    %313 = arith.addf %299, %312 : vector<8x384xf32>
    %c0_96 = arith.constant 0 : index
    %c2_97 = arith.constant 2 : index
    %c0_98 = arith.constant 0 : index
    %c19_99 = arith.constant 19 : index
    %314 = vector.load %arg1[%c0_96, %c2_97, %c0_98, %c19_99] : memref<1x3x8x512xf32, #tpu.memory_space<vmem>>, vector<1x1x8x384xf32>
    %315 = vector.shape_cast %314 : vector<1x1x8x384xf32> to vector<8x384xf32>
    %c22 = arith.constant 22 : index
    %316 = memref.load %arg3[%c22] : memref<81xf32, #tpu.memory_space<smem>>
    %317 = vector.broadcast %316 : f32 to vector<8x384xf32>
    %318 = arith.mulf %317, %315 : vector<8x384xf32>
    %319 = arith.addf %305, %318 : vector<8x384xf32>
    %c49 = arith.constant 49 : index
    %320 = memref.load %arg3[%c49] : memref<81xf32, #tpu.memory_space<smem>>
    %321 = vector.broadcast %320 : f32 to vector<8x384xf32>
    %322 = arith.mulf %321, %315 : vector<8x384xf32>
    %323 = arith.addf %309, %322 : vector<8x384xf32>
    %c76 = arith.constant 76 : index
    %324 = memref.load %arg3[%c76] : memref<81xf32, #tpu.memory_space<smem>>
    %325 = vector.broadcast %324 : f32 to vector<8x384xf32>
    %326 = arith.mulf %325, %315 : vector<8x384xf32>
    %327 = arith.addf %313, %326 : vector<8x384xf32>
    %c0_100 = arith.constant 0 : index
    %c2_101 = arith.constant 2 : index
    %c0_102 = arith.constant 0 : index
    %c20_103 = arith.constant 20 : index
    %328 = vector.load %arg1[%c0_100, %c2_101, %c0_102, %c20_103] : memref<1x3x8x512xf32, #tpu.memory_space<vmem>>, vector<1x1x8x384xf32>
    %329 = vector.shape_cast %328 : vector<1x1x8x384xf32> to vector<8x384xf32>
    %c23 = arith.constant 23 : index
    %330 = memref.load %arg3[%c23] : memref<81xf32, #tpu.memory_space<smem>>
    %331 = vector.broadcast %330 : f32 to vector<8x384xf32>
    %332 = arith.mulf %331, %329 : vector<8x384xf32>
    %333 = arith.addf %319, %332 : vector<8x384xf32>
    %c50 = arith.constant 50 : index
    %334 = memref.load %arg3[%c50] : memref<81xf32, #tpu.memory_space<smem>>
    %335 = vector.broadcast %334 : f32 to vector<8x384xf32>
    %336 = arith.mulf %335, %329 : vector<8x384xf32>
    %337 = arith.addf %323, %336 : vector<8x384xf32>
    %c77 = arith.constant 77 : index
    %338 = memref.load %arg3[%c77] : memref<81xf32, #tpu.memory_space<smem>>
    %339 = vector.broadcast %338 : f32 to vector<8x384xf32>
    %340 = arith.mulf %339, %329 : vector<8x384xf32>
    %341 = arith.addf %327, %340 : vector<8x384xf32>
    %c0_104 = arith.constant 0 : index
    %c2_105 = arith.constant 2 : index
    %c0_106 = arith.constant 0 : index
    %c36_107 = arith.constant 36 : index
    %342 = vector.load %arg1[%c0_104, %c2_105, %c0_106, %c36_107] : memref<1x3x8x512xf32, #tpu.memory_space<vmem>>, vector<1x1x8x384xf32>
    %343 = vector.shape_cast %342 : vector<1x1x8x384xf32> to vector<8x384xf32>
    %c24 = arith.constant 24 : index
    %344 = memref.load %arg3[%c24] : memref<81xf32, #tpu.memory_space<smem>>
    %345 = vector.broadcast %344 : f32 to vector<8x384xf32>
    %346 = arith.mulf %345, %343 : vector<8x384xf32>
    %347 = arith.addf %333, %346 : vector<8x384xf32>
    %c51 = arith.constant 51 : index
    %348 = memref.load %arg3[%c51] : memref<81xf32, #tpu.memory_space<smem>>
    %349 = vector.broadcast %348 : f32 to vector<8x384xf32>
    %350 = arith.mulf %349, %343 : vector<8x384xf32>
    %351 = arith.addf %337, %350 : vector<8x384xf32>
    %c78 = arith.constant 78 : index
    %352 = memref.load %arg3[%c78] : memref<81xf32, #tpu.memory_space<smem>>
    %353 = vector.broadcast %352 : f32 to vector<8x384xf32>
    %354 = arith.mulf %353, %343 : vector<8x384xf32>
    %355 = arith.addf %341, %354 : vector<8x384xf32>
    %c0_108 = arith.constant 0 : index
    %c2_109 = arith.constant 2 : index
    %c0_110 = arith.constant 0 : index
    %c37_111 = arith.constant 37 : index
    %356 = vector.load %arg1[%c0_108, %c2_109, %c0_110, %c37_111] : memref<1x3x8x512xf32, #tpu.memory_space<vmem>>, vector<1x1x8x384xf32>
    %357 = vector.shape_cast %356 : vector<1x1x8x384xf32> to vector<8x384xf32>
    %c25 = arith.constant 25 : index
    %358 = memref.load %arg3[%c25] : memref<81xf32, #tpu.memory_space<smem>>
    %359 = vector.broadcast %358 : f32 to vector<8x384xf32>
    %360 = arith.mulf %359, %357 : vector<8x384xf32>
    %361 = arith.addf %347, %360 : vector<8x384xf32>
    %c52 = arith.constant 52 : index
    %362 = memref.load %arg3[%c52] : memref<81xf32, #tpu.memory_space<smem>>
    %363 = vector.broadcast %362 : f32 to vector<8x384xf32>
    %364 = arith.mulf %363, %357 : vector<8x384xf32>
    %365 = arith.addf %351, %364 : vector<8x384xf32>
    %c79 = arith.constant 79 : index
    %366 = memref.load %arg3[%c79] : memref<81xf32, #tpu.memory_space<smem>>
    %367 = vector.broadcast %366 : f32 to vector<8x384xf32>
    %368 = arith.mulf %367, %357 : vector<8x384xf32>
    %369 = arith.addf %355, %368 : vector<8x384xf32>
    %c0_112 = arith.constant 0 : index
    %c2_113 = arith.constant 2 : index
    %c0_114 = arith.constant 0 : index
    %c38_115 = arith.constant 38 : index
    %370 = vector.load %arg1[%c0_112, %c2_113, %c0_114, %c38_115] : memref<1x3x8x512xf32, #tpu.memory_space<vmem>>, vector<1x1x8x384xf32>
    %371 = vector.shape_cast %370 : vector<1x1x8x384xf32> to vector<8x384xf32>
    %c26 = arith.constant 26 : index
    %372 = memref.load %arg3[%c26] : memref<81xf32, #tpu.memory_space<smem>>
    %373 = vector.broadcast %372 : f32 to vector<8x384xf32>
    %374 = arith.mulf %373, %371 : vector<8x384xf32>
    %375 = arith.addf %361, %374 : vector<8x384xf32>
    %c53 = arith.constant 53 : index
    %376 = memref.load %arg3[%c53] : memref<81xf32, #tpu.memory_space<smem>>
    %377 = vector.broadcast %376 : f32 to vector<8x384xf32>
    %378 = arith.mulf %377, %371 : vector<8x384xf32>
    %379 = arith.addf %365, %378 : vector<8x384xf32>
    %c80 = arith.constant 80 : index
    %380 = memref.load %arg3[%c80] : memref<81xf32, #tpu.memory_space<smem>>
    %381 = vector.broadcast %380 : f32 to vector<8x384xf32>
    %382 = arith.mulf %381, %371 : vector<8x384xf32>
    %383 = arith.addf %369, %382 : vector<8x384xf32>
    %c0_116 = arith.constant 0 : index
    %384 = memref.load %arg4[%c0_116] : memref<3xf32, #tpu.memory_space<smem>>
    %385 = vector.broadcast %384 : f32 to vector<8x384xf32>
    %386 = arith.addf %375, %385 : vector<8x384xf32>
    %cst_117 = arith.constant 0.000000e+00 : f32
    %387 = vector.broadcast %cst_117 : f32 to vector<8x384xf32>
    %388 = arith.maximumf %386, %387 : vector<8x384xf32>
    %389 = arith.mulf %388, %0 : vector<8x384xf32>
    %c0_118 = arith.constant 0 : index
    %c0_119 = arith.constant 0 : index
    %c128 = arith.constant 128 : index
    %390 = vector.load %arg8[%c0_118, %c0_119, %c128] : memref<3x8x640xf32, #tpu.memory_space<vmem>>, vector<1x8x384xf32>
    %391 = vector.shape_cast %390 : vector<1x8x384xf32> to vector<8x384xf32>
    %392 = vector.shape_cast %389 : vector<8x384xf32> to vector<1x8x384xf32>
    tpu.vector_store %arg8[%c0_118, %c0_119, %c128], %392 {strides = array<i32>} : memref<3x8x640xf32, #tpu.memory_space<vmem>>, vector<1x8x384xf32>,
    %c1_120 = arith.constant 1 : index
    %393 = memref.load %arg4[%c1_120] : memref<3xf32, #tpu.memory_space<smem>>
    %394 = vector.broadcast %393 : f32 to vector<8x384xf32>
    %395 = arith.addf %379, %394 : vector<8x384xf32>
    %cst_121 = arith.constant 0.000000e+00 : f32
    %396 = vector.broadcast %cst_121 : f32 to vector<8x384xf32>
    %397 = arith.maximumf %395, %396 : vector<8x384xf32>
    %398 = arith.mulf %397, %0 : vector<8x384xf32>
    %c1_122 = arith.constant 1 : index
    %c0_123 = arith.constant 0 : index
    %c128_124 = arith.constant 128 : index
    %399 = vector.load %arg8[%c1_122, %c0_123, %c128_124] : memref<3x8x640xf32, #tpu.memory_space<vmem>>, vector<1x8x384xf32>
    %400 = vector.shape_cast %399 : vector<1x8x384xf32> to vector<8x384xf32>
    %401 = vector.shape_cast %398 : vector<8x384xf32> to vector<1x8x384xf32>
    tpu.vector_store %arg8[%c1_122, %c0_123, %c128_124], %401 {strides = array<i32>} : memref<3x8x640xf32, #tpu.memory_space<vmem>>, vector<1x8x384xf32>,
    %c2_125 = arith.constant 2 : index
    %402 = memref.load %arg4[%c2_125] : memref<3xf32, #tpu.memory_space<smem>>
    %403 = vector.broadcast %402 : f32 to vector<8x384xf32>
    %404 = arith.addf %383, %403 : vector<8x384xf32>
    %cst_126 = arith.constant 0.000000e+00 : f32
    %405 = vector.broadcast %cst_126 : f32 to vector<8x384xf32>
    %406 = arith.maximumf %404, %405 : vector<8x384xf32>
    %407 = arith.mulf %406, %0 : vector<8x384xf32>
    %c2_127 = arith.constant 2 : index
    %c0_128 = arith.constant 0 : index
    %c128_129 = arith.constant 128 : index
    %408 = vector.load %arg8[%c2_127, %c0_128, %c128_129] : memref<3x8x640xf32, #tpu.memory_space<vmem>>, vector<1x8x384xf32>
    %409 = vector.shape_cast %408 : vector<1x8x384xf32> to vector<8x384xf32>
    %410 = vector.shape_cast %407 : vector<8x384xf32> to vector<1x8x384xf32>
    tpu.vector_store %arg8[%c2_127, %c0_128, %c128_129], %410 {strides = array<i32>} : memref<3x8x640xf32, #tpu.memory_space<vmem>>, vector<1x8x384xf32>,
    %cst_130 = arith.constant 0.000000e+00 : f32
    %411 = vector.broadcast %cst_130 : f32 to vector<8x384xf32>
    %cst_131 = arith.constant 0.000000e+00 : f32
    %412 = vector.broadcast %cst_131 : f32 to vector<8x384xf32>
    %cst_132 = arith.constant 0.000000e+00 : f32
    %413 = vector.broadcast %cst_132 : f32 to vector<8x384xf32>
    %c0_133 = arith.constant 0 : index
    %c0_134 = arith.constant 0 : index
    %c109 = arith.constant 109 : index
    %414 = vector.load %arg8[%c0_133, %c0_134, %c109] : memref<3x8x640xf32, #tpu.memory_space<vmem>>, vector<1x8x384xf32>
    %415 = vector.shape_cast %414 : vector<1x8x384xf32> to vector<8x384xf32>
    %c0_135 = arith.constant 0 : index
    %416 = memref.load %arg5[%c0_135] : memref<81xf32, #tpu.memory_space<smem>>
    %417 = vector.broadcast %416 : f32 to vector<8x384xf32>
    %418 = arith.mulf %417, %415 : vector<8x384xf32>
    %419 = arith.addf %411, %418 : vector<8x384xf32>
    %c27_136 = arith.constant 27 : index
    %420 = memref.load %arg5[%c27_136] : memref<81xf32, #tpu.memory_space<smem>>
    %421 = vector.broadcast %420 : f32 to vector<8x384xf32>
    %422 = arith.mulf %421, %415 : vector<8x384xf32>
    %423 = arith.addf %412, %422 : vector<8x384xf32>
    %c54_137 = arith.constant 54 : index
    %424 = memref.load %arg5[%c54_137] : memref<81xf32, #tpu.memory_space<smem>>
    %425 = vector.broadcast %424 : f32 to vector<8x384xf32>
    %426 = arith.mulf %425, %415 : vector<8x384xf32>
    %427 = arith.addf %413, %426 : vector<8x384xf32>
    %c0_138 = arith.constant 0 : index
    %c0_139 = arith.constant 0 : index
    %c110 = arith.constant 110 : index
    %428 = vector.load %arg8[%c0_138, %c0_139, %c110] : memref<3x8x640xf32, #tpu.memory_space<vmem>>, vector<1x8x384xf32>
    %429 = vector.shape_cast %428 : vector<1x8x384xf32> to vector<8x384xf32>
    %c1_140 = arith.constant 1 : index
    %430 = memref.load %arg5[%c1_140] : memref<81xf32, #tpu.memory_space<smem>>
    %431 = vector.broadcast %430 : f32 to vector<8x384xf32>
    %432 = arith.mulf %431, %429 : vector<8x384xf32>
    %433 = arith.addf %419, %432 : vector<8x384xf32>
    %c28_141 = arith.constant 28 : index
    %434 = memref.load %arg5[%c28_141] : memref<81xf32, #tpu.memory_space<smem>>
    %435 = vector.broadcast %434 : f32 to vector<8x384xf32>
    %436 = arith.mulf %435, %429 : vector<8x384xf32>
    %437 = arith.addf %423, %436 : vector<8x384xf32>
    %c55_142 = arith.constant 55 : index
    %438 = memref.load %arg5[%c55_142] : memref<81xf32, #tpu.memory_space<smem>>
    %439 = vector.broadcast %438 : f32 to vector<8x384xf32>
    %440 = arith.mulf %439, %429 : vector<8x384xf32>
    %441 = arith.addf %427, %440 : vector<8x384xf32>
    %c0_143 = arith.constant 0 : index
    %c0_144 = arith.constant 0 : index
    %c111 = arith.constant 111 : index
    %442 = vector.load %arg8[%c0_143, %c0_144, %c111] : memref<3x8x640xf32, #tpu.memory_space<vmem>>, vector<1x8x384xf32>
    %443 = vector.shape_cast %442 : vector<1x8x384xf32> to vector<8x384xf32>
    %c2_145 = arith.constant 2 : index
    %444 = memref.load %arg5[%c2_145] : memref<81xf32, #tpu.memory_space<smem>>
    %445 = vector.broadcast %444 : f32 to vector<8x384xf32>
    %446 = arith.mulf %445, %443 : vector<8x384xf32>
    %447 = arith.addf %433, %446 : vector<8x384xf32>
    %c29_146 = arith.constant 29 : index
    %448 = memref.load %arg5[%c29_146] : memref<81xf32, #tpu.memory_space<smem>>
    %449 = vector.broadcast %448 : f32 to vector<8x384xf32>
    %450 = arith.mulf %449, %443 : vector<8x384xf32>
    %451 = arith.addf %437, %450 : vector<8x384xf32>
    %c56_147 = arith.constant 56 : index
    %452 = memref.load %arg5[%c56_147] : memref<81xf32, #tpu.memory_space<smem>>
    %453 = vector.broadcast %452 : f32 to vector<8x384xf32>
    %454 = arith.mulf %453, %443 : vector<8x384xf32>
    %455 = arith.addf %441, %454 : vector<8x384xf32>
    %c0_148 = arith.constant 0 : index
    %c0_149 = arith.constant 0 : index
    %c127 = arith.constant 127 : index
    %456 = vector.load %arg8[%c0_148, %c0_149, %c127] : memref<3x8x640xf32, #tpu.memory_space<vmem>>, vector<1x8x384xf32>
    %457 = vector.shape_cast %456 : vector<1x8x384xf32> to vector<8x384xf32>
    %c3_150 = arith.constant 3 : index
    %458 = memref.load %arg5[%c3_150] : memref<81xf32, #tpu.memory_space<smem>>
    %459 = vector.broadcast %458 : f32 to vector<8x384xf32>
    %460 = arith.mulf %459, %457 : vector<8x384xf32>
    %461 = arith.addf %447, %460 : vector<8x384xf32>
    %c30_151 = arith.constant 30 : index
    %462 = memref.load %arg5[%c30_151] : memref<81xf32, #tpu.memory_space<smem>>
    %463 = vector.broadcast %462 : f32 to vector<8x384xf32>
    %464 = arith.mulf %463, %457 : vector<8x384xf32>
    %465 = arith.addf %451, %464 : vector<8x384xf32>
    %c57_152 = arith.constant 57 : index
    %466 = memref.load %arg5[%c57_152] : memref<81xf32, #tpu.memory_space<smem>>
    %467 = vector.broadcast %466 : f32 to vector<8x384xf32>
    %468 = arith.mulf %467, %457 : vector<8x384xf32>
    %469 = arith.addf %455, %468 : vector<8x384xf32>
    %c0_153 = arith.constant 0 : index
    %c0_154 = arith.constant 0 : index
    %c128_155 = arith.constant 128 : index
    %470 = vector.load %arg8[%c0_153, %c0_154, %c128_155] : memref<3x8x640xf32, #tpu.memory_space<vmem>>, vector<1x8x384xf32>
    %471 = vector.shape_cast %470 : vector<1x8x384xf32> to vector<8x384xf32>
    %c4_156 = arith.constant 4 : index
    %472 = memref.load %arg5[%c4_156] : memref<81xf32, #tpu.memory_space<smem>>
    %473 = vector.broadcast %472 : f32 to vector<8x384xf32>
    %474 = arith.mulf %473, %471 : vector<8x384xf32>
    %475 = arith.addf %461, %474 : vector<8x384xf32>
    %c31_157 = arith.constant 31 : index
    %476 = memref.load %arg5[%c31_157] : memref<81xf32, #tpu.memory_space<smem>>
    %477 = vector.broadcast %476 : f32 to vector<8x384xf32>
    %478 = arith.mulf %477, %471 : vector<8x384xf32>
    %479 = arith.addf %465, %478 : vector<8x384xf32>
    %c58_158 = arith.constant 58 : index
    %480 = memref.load %arg5[%c58_158] : memref<81xf32, #tpu.memory_space<smem>>
    %481 = vector.broadcast %480 : f32 to vector<8x384xf32>
    %482 = arith.mulf %481, %471 : vector<8x384xf32>
    %483 = arith.addf %469, %482 : vector<8x384xf32>
    %c0_159 = arith.constant 0 : index
    %c0_160 = arith.constant 0 : index
    %c129 = arith.constant 129 : index
    %484 = vector.load %arg8[%c0_159, %c0_160, %c129] : memref<3x8x640xf32, #tpu.memory_space<vmem>>, vector<1x8x384xf32>
    %485 = vector.shape_cast %484 : vector<1x8x384xf32> to vector<8x384xf32>
    %c5_161 = arith.constant 5 : index
    %486 = memref.load %arg5[%c5_161] : memref<81xf32, #tpu.memory_space<smem>>
    %487 = vector.broadcast %486 : f32 to vector<8x384xf32>
    %488 = arith.mulf %487, %485 : vector<8x384xf32>
    %489 = arith.addf %475, %488 : vector<8x384xf32>
    %c32_162 = arith.constant 32 : index
    %490 = memref.load %arg5[%c32_162] : memref<81xf32, #tpu.memory_space<smem>>
    %491 = vector.broadcast %490 : f32 to vector<8x384xf32>
    %492 = arith.mulf %491, %485 : vector<8x384xf32>
    %493 = arith.addf %479, %492 : vector<8x384xf32>
    %c59_163 = arith.constant 59 : index
    %494 = memref.load %arg5[%c59_163] : memref<81xf32, #tpu.memory_space<smem>>
    %495 = vector.broadcast %494 : f32 to vector<8x384xf32>
    %496 = arith.mulf %495, %485 : vector<8x384xf32>
    %497 = arith.addf %483, %496 : vector<8x384xf32>
    %c0_164 = arith.constant 0 : index
    %c0_165 = arith.constant 0 : index
    %c145 = arith.constant 145 : index
    %498 = vector.load %arg8[%c0_164, %c0_165, %c145] : memref<3x8x640xf32, #tpu.memory_space<vmem>>, vector<1x8x384xf32>
    %499 = vector.shape_cast %498 : vector<1x8x384xf32> to vector<8x384xf32>
    %c6_166 = arith.constant 6 : index
    %500 = memref.load %arg5[%c6_166] : memref<81xf32, #tpu.memory_space<smem>>
    %501 = vector.broadcast %500 : f32 to vector<8x384xf32>
    %502 = arith.mulf %501, %499 : vector<8x384xf32>
    %503 = arith.addf %489, %502 : vector<8x384xf32>
    %c33_167 = arith.constant 33 : index
    %504 = memref.load %arg5[%c33_167] : memref<81xf32, #tpu.memory_space<smem>>
    %505 = vector.broadcast %504 : f32 to vector<8x384xf32>
    %506 = arith.mulf %505, %499 : vector<8x384xf32>
    %507 = arith.addf %493, %506 : vector<8x384xf32>
    %c60_168 = arith.constant 60 : index
    %508 = memref.load %arg5[%c60_168] : memref<81xf32, #tpu.memory_space<smem>>
    %509 = vector.broadcast %508 : f32 to vector<8x384xf32>
    %510 = arith.mulf %509, %499 : vector<8x384xf32>
    %511 = arith.addf %497, %510 : vector<8x384xf32>
    %c0_169 = arith.constant 0 : index
    %c0_170 = arith.constant 0 : index
    %c146 = arith.constant 146 : index
    %512 = vector.load %arg8[%c0_169, %c0_170, %c146] : memref<3x8x640xf32, #tpu.memory_space<vmem>>, vector<1x8x384xf32>
    %513 = vector.shape_cast %512 : vector<1x8x384xf32> to vector<8x384xf32>
    %c7_171 = arith.constant 7 : index
    %514 = memref.load %arg5[%c7_171] : memref<81xf32, #tpu.memory_space<smem>>
    %515 = vector.broadcast %514 : f32 to vector<8x384xf32>
    %516 = arith.mulf %515, %513 : vector<8x384xf32>
    %517 = arith.addf %503, %516 : vector<8x384xf32>
    %c34_172 = arith.constant 34 : index
    %518 = memref.load %arg5[%c34_172] : memref<81xf32, #tpu.memory_space<smem>>
    %519 = vector.broadcast %518 : f32 to vector<8x384xf32>
    %520 = arith.mulf %519, %513 : vector<8x384xf32>
    %521 = arith.addf %507, %520 : vector<8x384xf32>
    %c61_173 = arith.constant 61 : index
    %522 = memref.load %arg5[%c61_173] : memref<81xf32, #tpu.memory_space<smem>>
    %523 = vector.broadcast %522 : f32 to vector<8x384xf32>
    %524 = arith.mulf %523, %513 : vector<8x384xf32>
    %525 = arith.addf %511, %524 : vector<8x384xf32>
    %c0_174 = arith.constant 0 : index
    %c0_175 = arith.constant 0 : index
    %c147 = arith.constant 147 : index
    %526 = vector.load %arg8[%c0_174, %c0_175, %c147] : memref<3x8x640xf32, #tpu.memory_space<vmem>>, vector<1x8x384xf32>
    %527 = vector.shape_cast %526 : vector<1x8x384xf32> to vector<8x384xf32>
    %c8_176 = arith.constant 8 : index
    %528 = memref.load %arg5[%c8_176] : memref<81xf32, #tpu.memory_space<smem>>
    %529 = vector.broadcast %528 : f32 to vector<8x384xf32>
    %530 = arith.mulf %529, %527 : vector<8x384xf32>
    %531 = arith.addf %517, %530 : vector<8x384xf32>
    %c35_177 = arith.constant 35 : index
    %532 = memref.load %arg5[%c35_177] : memref<81xf32, #tpu.memory_space<smem>>
    %533 = vector.broadcast %532 : f32 to vector<8x384xf32>
    %534 = arith.mulf %533, %527 : vector<8x384xf32>
    %535 = arith.addf %521, %534 : vector<8x384xf32>
    %c62_178 = arith.constant 62 : index
    %536 = memref.load %arg5[%c62_178] : memref<81xf32, #tpu.memory_space<smem>>
    %537 = vector.broadcast %536 : f32 to vector<8x384xf32>
    %538 = arith.mulf %537, %527 : vector<8x384xf32>
    %539 = arith.addf %525, %538 : vector<8x384xf32>
    %c1_179 = arith.constant 1 : index
    %c0_180 = arith.constant 0 : index
    %c109_181 = arith.constant 109 : index
    %540 = vector.load %arg8[%c1_179, %c0_180, %c109_181] : memref<3x8x640xf32, #tpu.memory_space<vmem>>, vector<1x8x384xf32>
    %541 = vector.shape_cast %540 : vector<1x8x384xf32> to vector<8x384xf32>
    %c9_182 = arith.constant 9 : index
    %542 = memref.load %arg5[%c9_182] : memref<81xf32, #tpu.memory_space<smem>>
    %543 = vector.broadcast %542 : f32 to vector<8x384xf32>
    %544 = arith.mulf %543, %541 : vector<8x384xf32>
    %545 = arith.addf %531, %544 : vector<8x384xf32>
    %c36_183 = arith.constant 36 : index
    %546 = memref.load %arg5[%c36_183] : memref<81xf32, #tpu.memory_space<smem>>
    %547 = vector.broadcast %546 : f32 to vector<8x384xf32>
    %548 = arith.mulf %547, %541 : vector<8x384xf32>
    %549 = arith.addf %535, %548 : vector<8x384xf32>
    %c63_184 = arith.constant 63 : index
    %550 = memref.load %arg5[%c63_184] : memref<81xf32, #tpu.memory_space<smem>>
    %551 = vector.broadcast %550 : f32 to vector<8x384xf32>
    %552 = arith.mulf %551, %541 : vector<8x384xf32>
    %553 = arith.addf %539, %552 : vector<8x384xf32>
    %c1_185 = arith.constant 1 : index
    %c0_186 = arith.constant 0 : index
    %c110_187 = arith.constant 110 : index
    %554 = vector.load %arg8[%c1_185, %c0_186, %c110_187] : memref<3x8x640xf32, #tpu.memory_space<vmem>>, vector<1x8x384xf32>
    %555 = vector.shape_cast %554 : vector<1x8x384xf32> to vector<8x384xf32>
    %c10_188 = arith.constant 10 : index
    %556 = memref.load %arg5[%c10_188] : memref<81xf32, #tpu.memory_space<smem>>
    %557 = vector.broadcast %556 : f32 to vector<8x384xf32>
    %558 = arith.mulf %557, %555 : vector<8x384xf32>
    %559 = arith.addf %545, %558 : vector<8x384xf32>
    %c37_189 = arith.constant 37 : index
    %560 = memref.load %arg5[%c37_189] : memref<81xf32, #tpu.memory_space<smem>>
    %561 = vector.broadcast %560 : f32 to vector<8x384xf32>
    %562 = arith.mulf %561, %555 : vector<8x384xf32>
    %563 = arith.addf %549, %562 : vector<8x384xf32>
    %c64_190 = arith.constant 64 : index
    %564 = memref.load %arg5[%c64_190] : memref<81xf32, #tpu.memory_space<smem>>
    %565 = vector.broadcast %564 : f32 to vector<8x384xf32>
    %566 = arith.mulf %565, %555 : vector<8x384xf32>
    %567 = arith.addf %553, %566 : vector<8x384xf32>
    %c1_191 = arith.constant 1 : index
    %c0_192 = arith.constant 0 : index
    %c111_193 = arith.constant 111 : index
    %568 = vector.load %arg8[%c1_191, %c0_192, %c111_193] : memref<3x8x640xf32, #tpu.memory_space<vmem>>, vector<1x8x384xf32>
    %569 = vector.shape_cast %568 : vector<1x8x384xf32> to vector<8x384xf32>
    %c11_194 = arith.constant 11 : index
    %570 = memref.load %arg5[%c11_194] : memref<81xf32, #tpu.memory_space<smem>>
    %571 = vector.broadcast %570 : f32 to vector<8x384xf32>
    %572 = arith.mulf %571, %569 : vector<8x384xf32>
    %573 = arith.addf %559, %572 : vector<8x384xf32>
    %c38_195 = arith.constant 38 : index
    %574 = memref.load %arg5[%c38_195] : memref<81xf32, #tpu.memory_space<smem>>
    %575 = vector.broadcast %574 : f32 to vector<8x384xf32>
    %576 = arith.mulf %575, %569 : vector<8x384xf32>
    %577 = arith.addf %563, %576 : vector<8x384xf32>
    %c65_196 = arith.constant 65 : index
    %578 = memref.load %arg5[%c65_196] : memref<81xf32, #tpu.memory_space<smem>>
    %579 = vector.broadcast %578 : f32 to vector<8x384xf32>
    %580 = arith.mulf %579, %569 : vector<8x384xf32>
    %581 = arith.addf %567, %580 : vector<8x384xf32>
    %c1_197 = arith.constant 1 : index
    %c0_198 = arith.constant 0 : index
    %c127_199 = arith.constant 127 : index
    %582 = vector.load %arg8[%c1_197, %c0_198, %c127_199] : memref<3x8x640xf32, #tpu.memory_space<vmem>>, vector<1x8x384xf32>
    %583 = vector.shape_cast %582 : vector<1x8x384xf32> to vector<8x384xf32>
    %c12_200 = arith.constant 12 : index
    %584 = memref.load %arg5[%c12_200] : memref<81xf32, #tpu.memory_space<smem>>
    %585 = vector.broadcast %584 : f32 to vector<8x384xf32>
    %586 = arith.mulf %585, %583 : vector<8x384xf32>
    %587 = arith.addf %573, %586 : vector<8x384xf32>
    %c39_201 = arith.constant 39 : index
    %588 = memref.load %arg5[%c39_201] : memref<81xf32, #tpu.memory_space<smem>>
    %589 = vector.broadcast %588 : f32 to vector<8x384xf32>
    %590 = arith.mulf %589, %583 : vector<8x384xf32>
    %591 = arith.addf %577, %590 : vector<8x384xf32>
    %c66_202 = arith.constant 66 : index
    %592 = memref.load %arg5[%c66_202] : memref<81xf32, #tpu.memory_space<smem>>
    %593 = vector.broadcast %592 : f32 to vector<8x384xf32>
    %594 = arith.mulf %593, %583 : vector<8x384xf32>
    %595 = arith.addf %581, %594 : vector<8x384xf32>
    %c1_203 = arith.constant 1 : index
    %c0_204 = arith.constant 0 : index
    %c128_205 = arith.constant 128 : index
    %596 = vector.load %arg8[%c1_203, %c0_204, %c128_205] : memref<3x8x640xf32, #tpu.memory_space<vmem>>, vector<1x8x384xf32>
    %597 = vector.shape_cast %596 : vector<1x8x384xf32> to vector<8x384xf32>
    %c13_206 = arith.constant 13 : index
    %598 = memref.load %arg5[%c13_206] : memref<81xf32, #tpu.memory_space<smem>>
    %599 = vector.broadcast %598 : f32 to vector<8x384xf32>
    %600 = arith.mulf %599, %597 : vector<8x384xf32>
    %601 = arith.addf %587, %600 : vector<8x384xf32>
    %c40_207 = arith.constant 40 : index
    %602 = memref.load %arg5[%c40_207] : memref<81xf32, #tpu.memory_space<smem>>
    %603 = vector.broadcast %602 : f32 to vector<8x384xf32>
    %604 = arith.mulf %603, %597 : vector<8x384xf32>
    %605 = arith.addf %591, %604 : vector<8x384xf32>
    %c67_208 = arith.constant 67 : index
    %606 = memref.load %arg5[%c67_208] : memref<81xf32, #tpu.memory_space<smem>>
    %607 = vector.broadcast %606 : f32 to vector<8x384xf32>
    %608 = arith.mulf %607, %597 : vector<8x384xf32>
    %609 = arith.addf %595, %608 : vector<8x384xf32>
    %c1_209 = arith.constant 1 : index
    %c0_210 = arith.constant 0 : index
    %c129_211 = arith.constant 129 : index
    %610 = vector.load %arg8[%c1_209, %c0_210, %c129_211] : memref<3x8x640xf32, #tpu.memory_space<vmem>>, vector<1x8x384xf32>
    %611 = vector.shape_cast %610 : vector<1x8x384xf32> to vector<8x384xf32>
    %c14_212 = arith.constant 14 : index
    %612 = memref.load %arg5[%c14_212] : memref<81xf32, #tpu.memory_space<smem>>
    %613 = vector.broadcast %612 : f32 to vector<8x384xf32>
    %614 = arith.mulf %613, %611 : vector<8x384xf32>
    %615 = arith.addf %601, %614 : vector<8x384xf32>
    %c41_213 = arith.constant 41 : index
    %616 = memref.load %arg5[%c41_213] : memref<81xf32, #tpu.memory_space<smem>>
    %617 = vector.broadcast %616 : f32 to vector<8x384xf32>
    %618 = arith.mulf %617, %611 : vector<8x384xf32>
    %619 = arith.addf %605, %618 : vector<8x384xf32>
    %c68_214 = arith.constant 68 : index
    %620 = memref.load %arg5[%c68_214] : memref<81xf32, #tpu.memory_space<smem>>
    %621 = vector.broadcast %620 : f32 to vector<8x384xf32>
    %622 = arith.mulf %621, %611 : vector<8x384xf32>
    %623 = arith.addf %609, %622 : vector<8x384xf32>
    %c1_215 = arith.constant 1 : index
    %c0_216 = arith.constant 0 : index
    %c145_217 = arith.constant 145 : index
    %624 = vector.load %arg8[%c1_215, %c0_216, %c145_217] : memref<3x8x640xf32, #tpu.memory_space<vmem>>, vector<1x8x384xf32>
    %625 = vector.shape_cast %624 : vector<1x8x384xf32> to vector<8x384xf32>
    %c15_218 = arith.constant 15 : index
    %626 = memref.load %arg5[%c15_218] : memref<81xf32, #tpu.memory_space<smem>>
    %627 = vector.broadcast %626 : f32 to vector<8x384xf32>
    %628 = arith.mulf %627, %625 : vector<8x384xf32>
    %629 = arith.addf %615, %628 : vector<8x384xf32>
    %c42_219 = arith.constant 42 : index
    %630 = memref.load %arg5[%c42_219] : memref<81xf32, #tpu.memory_space<smem>>
    %631 = vector.broadcast %630 : f32 to vector<8x384xf32>
    %632 = arith.mulf %631, %625 : vector<8x384xf32>
    %633 = arith.addf %619, %632 : vector<8x384xf32>
    %c69_220 = arith.constant 69 : index
    %634 = memref.load %arg5[%c69_220] : memref<81xf32, #tpu.memory_space<smem>>
    %635 = vector.broadcast %634 : f32 to vector<8x384xf32>
    %636 = arith.mulf %635, %625 : vector<8x384xf32>
    %637 = arith.addf %623, %636 : vector<8x384xf32>
    %c1_221 = arith.constant 1 : index
    %c0_222 = arith.constant 0 : index
    %c146_223 = arith.constant 146 : index
    %638 = vector.load %arg8[%c1_221, %c0_222, %c146_223] : memref<3x8x640xf32, #tpu.memory_space<vmem>>, vector<1x8x384xf32>
    %639 = vector.shape_cast %638 : vector<1x8x384xf32> to vector<8x384xf32>
    %c16_224 = arith.constant 16 : index
    %640 = memref.load %arg5[%c16_224] : memref<81xf32, #tpu.memory_space<smem>>
    %641 = vector.broadcast %640 : f32 to vector<8x384xf32>
    %642 = arith.mulf %641, %639 : vector<8x384xf32>
    %643 = arith.addf %629, %642 : vector<8x384xf32>
    %c43_225 = arith.constant 43 : index
    %644 = memref.load %arg5[%c43_225] : memref<81xf32, #tpu.memory_space<smem>>
    %645 = vector.broadcast %644 : f32 to vector<8x384xf32>
    %646 = arith.mulf %645, %639 : vector<8x384xf32>
    %647 = arith.addf %633, %646 : vector<8x384xf32>
    %c70_226 = arith.constant 70 : index
    %648 = memref.load %arg5[%c70_226] : memref<81xf32, #tpu.memory_space<smem>>
    %649 = vector.broadcast %648 : f32 to vector<8x384xf32>
    %650 = arith.mulf %649, %639 : vector<8x384xf32>
    %651 = arith.addf %637, %650 : vector<8x384xf32>
    %c1_227 = arith.constant 1 : index
    %c0_228 = arith.constant 0 : index
    %c147_229 = arith.constant 147 : index
    %652 = vector.load %arg8[%c1_227, %c0_228, %c147_229] : memref<3x8x640xf32, #tpu.memory_space<vmem>>, vector<1x8x384xf32>
    %653 = vector.shape_cast %652 : vector<1x8x384xf32> to vector<8x384xf32>
    %c17_230 = arith.constant 17 : index
    %654 = memref.load %arg5[%c17_230] : memref<81xf32, #tpu.memory_space<smem>>
    %655 = vector.broadcast %654 : f32 to vector<8x384xf32>
    %656 = arith.mulf %655, %653 : vector<8x384xf32>
    %657 = arith.addf %643, %656 : vector<8x384xf32>
    %c44_231 = arith.constant 44 : index
    %658 = memref.load %arg5[%c44_231] : memref<81xf32, #tpu.memory_space<smem>>
    %659 = vector.broadcast %658 : f32 to vector<8x384xf32>
    %660 = arith.mulf %659, %653 : vector<8x384xf32>
    %661 = arith.addf %647, %660 : vector<8x384xf32>
    %c71_232 = arith.constant 71 : index
    %662 = memref.load %arg5[%c71_232] : memref<81xf32, #tpu.memory_space<smem>>
    %663 = vector.broadcast %662 : f32 to vector<8x384xf32>
    %664 = arith.mulf %663, %653 : vector<8x384xf32>
    %665 = arith.addf %651, %664 : vector<8x384xf32>
    %c2_233 = arith.constant 2 : index
    %c0_234 = arith.constant 0 : index
    %c109_235 = arith.constant 109 : index
    %666 = vector.load %arg8[%c2_233, %c0_234, %c109_235] : memref<3x8x640xf32, #tpu.memory_space<vmem>>, vector<1x8x384xf32>
    %667 = vector.shape_cast %666 : vector<1x8x384xf32> to vector<8x384xf32>
    %c18_236 = arith.constant 18 : index
    %668 = memref.load %arg5[%c18_236] : memref<81xf32, #tpu.memory_space<smem>>
    %669 = vector.broadcast %668 : f32 to vector<8x384xf32>
    %670 = arith.mulf %669, %667 : vector<8x384xf32>
    %671 = arith.addf %657, %670 : vector<8x384xf32>
    %c45_237 = arith.constant 45 : index
    %672 = memref.load %arg5[%c45_237] : memref<81xf32, #tpu.memory_space<smem>>
    %673 = vector.broadcast %672 : f32 to vector<8x384xf32>
    %674 = arith.mulf %673, %667 : vector<8x384xf32>
    %675 = arith.addf %661, %674 : vector<8x384xf32>
    %c72_238 = arith.constant 72 : index
    %676 = memref.load %arg5[%c72_238] : memref<81xf32, #tpu.memory_space<smem>>
    %677 = vector.broadcast %676 : f32 to vector<8x384xf32>
    %678 = arith.mulf %677, %667 : vector<8x384xf32>
    %679 = arith.addf %665, %678 : vector<8x384xf32>
    %c2_239 = arith.constant 2 : index
    %c0_240 = arith.constant 0 : index
    %c110_241 = arith.constant 110 : index
    %680 = vector.load %arg8[%c2_239, %c0_240, %c110_241] : memref<3x8x640xf32, #tpu.memory_space<vmem>>, vector<1x8x384xf32>
    %681 = vector.shape_cast %680 : vector<1x8x384xf32> to vector<8x384xf32>
    %c19_242 = arith.constant 19 : index
    %682 = memref.load %arg5[%c19_242] : memref<81xf32, #tpu.memory_space<smem>>
    %683 = vector.broadcast %682 : f32 to vector<8x384xf32>
    %684 = arith.mulf %683, %681 : vector<8x384xf32>
    %685 = arith.addf %671, %684 : vector<8x384xf32>
    %c46_243 = arith.constant 46 : index
    %686 = memref.load %arg5[%c46_243] : memref<81xf32, #tpu.memory_space<smem>>
    %687 = vector.broadcast %686 : f32 to vector<8x384xf32>
    %688 = arith.mulf %687, %681 : vector<8x384xf32>
    %689 = arith.addf %675, %688 : vector<8x384xf32>
    %c73_244 = arith.constant 73 : index
    %690 = memref.load %arg5[%c73_244] : memref<81xf32, #tpu.memory_space<smem>>
    %691 = vector.broadcast %690 : f32 to vector<8x384xf32>
    %692 = arith.mulf %691, %681 : vector<8x384xf32>
    %693 = arith.addf %679, %692 : vector<8x384xf32>
    %c2_245 = arith.constant 2 : index
    %c0_246 = arith.constant 0 : index
    %c111_247 = arith.constant 111 : index
    %694 = vector.load %arg8[%c2_245, %c0_246, %c111_247] : memref<3x8x640xf32, #tpu.memory_space<vmem>>, vector<1x8x384xf32>
    %695 = vector.shape_cast %694 : vector<1x8x384xf32> to vector<8x384xf32>
    %c20_248 = arith.constant 20 : index
    %696 = memref.load %arg5[%c20_248] : memref<81xf32, #tpu.memory_space<smem>>
    %697 = vector.broadcast %696 : f32 to vector<8x384xf32>
    %698 = arith.mulf %697, %695 : vector<8x384xf32>
    %699 = arith.addf %685, %698 : vector<8x384xf32>
    %c47_249 = arith.constant 47 : index
    %700 = memref.load %arg5[%c47_249] : memref<81xf32, #tpu.memory_space<smem>>
    %701 = vector.broadcast %700 : f32 to vector<8x384xf32>
    %702 = arith.mulf %701, %695 : vector<8x384xf32>
    %703 = arith.addf %689, %702 : vector<8x384xf32>
    %c74_250 = arith.constant 74 : index
    %704 = memref.load %arg5[%c74_250] : memref<81xf32, #tpu.memory_space<smem>>
    %705 = vector.broadcast %704 : f32 to vector<8x384xf32>
    %706 = arith.mulf %705, %695 : vector<8x384xf32>
    %707 = arith.addf %693, %706 : vector<8x384xf32>
    %c2_251 = arith.constant 2 : index
    %c0_252 = arith.constant 0 : index
    %c127_253 = arith.constant 127 : index
    %708 = vector.load %arg8[%c2_251, %c0_252, %c127_253] : memref<3x8x640xf32, #tpu.memory_space<vmem>>, vector<1x8x384xf32>
    %709 = vector.shape_cast %708 : vector<1x8x384xf32> to vector<8x384xf32>
    %c21_254 = arith.constant 21 : index
    %710 = memref.load %arg5[%c21_254] : memref<81xf32, #tpu.memory_space<smem>>
    %711 = vector.broadcast %710 : f32 to vector<8x384xf32>
    %712 = arith.mulf %711, %709 : vector<8x384xf32>
    %713 = arith.addf %699, %712 : vector<8x384xf32>
    %c48_255 = arith.constant 48 : index
    %714 = memref.load %arg5[%c48_255] : memref<81xf32, #tpu.memory_space<smem>>
    %715 = vector.broadcast %714 : f32 to vector<8x384xf32>
    %716 = arith.mulf %715, %709 : vector<8x384xf32>
    %717 = arith.addf %703, %716 : vector<8x384xf32>
    %c75_256 = arith.constant 75 : index
    %718 = memref.load %arg5[%c75_256] : memref<81xf32, #tpu.memory_space<smem>>
    %719 = vector.broadcast %718 : f32 to vector<8x384xf32>
    %720 = arith.mulf %719, %709 : vector<8x384xf32>
    %721 = arith.addf %707, %720 : vector<8x384xf32>
    %c2_257 = arith.constant 2 : index
    %c0_258 = arith.constant 0 : index
    %c128_259 = arith.constant 128 : index
    %722 = vector.load %arg8[%c2_257, %c0_258, %c128_259] : memref<3x8x640xf32, #tpu.memory_space<vmem>>, vector<1x8x384xf32>
    %723 = vector.shape_cast %722 : vector<1x8x384xf32> to vector<8x384xf32>
    %c22_260 = arith.constant 22 : index
    %724 = memref.load %arg5[%c22_260] : memref<81xf32, #tpu.memory_space<smem>>
    %725 = vector.broadcast %724 : f32 to vector<8x384xf32>
    %726 = arith.mulf %725, %723 : vector<8x384xf32>
    %727 = arith.addf %713, %726 : vector<8x384xf32>
    %c49_261 = arith.constant 49 : index
    %728 = memref.load %arg5[%c49_261] : memref<81xf32, #tpu.memory_space<smem>>
    %729 = vector.broadcast %728 : f32 to vector<8x384xf32>
    %730 = arith.mulf %729, %723 : vector<8x384xf32>
    %731 = arith.addf %717, %730 : vector<8x384xf32>
    %c76_262 = arith.constant 76 : index
    %732 = memref.load %arg5[%c76_262] : memref<81xf32, #tpu.memory_space<smem>>
    %733 = vector.broadcast %732 : f32 to vector<8x384xf32>
    %734 = arith.mulf %733, %723 : vector<8x384xf32>
    %735 = arith.addf %721, %734 : vector<8x384xf32>
    %c2_263 = arith.constant 2 : index
    %c0_264 = arith.constant 0 : index
    %c129_265 = arith.constant 129 : index
    %736 = vector.load %arg8[%c2_263, %c0_264, %c129_265] : memref<3x8x640xf32, #tpu.memory_space<vmem>>, vector<1x8x384xf32>
    %737 = vector.shape_cast %736 : vector<1x8x384xf32> to vector<8x384xf32>
    %c23_266 = arith.constant 23 : index
    %738 = memref.load %arg5[%c23_266] : memref<81xf32, #tpu.memory_space<smem>>
    %739 = vector.broadcast %738 : f32 to vector<8x384xf32>
    %740 = arith.mulf %739, %737 : vector<8x384xf32>
    %741 = arith.addf %727, %740 : vector<8x384xf32>
    %c50_267 = arith.constant 50 : index
    %742 = memref.load %arg5[%c50_267] : memref<81xf32, #tpu.memory_space<smem>>
    %743 = vector.broadcast %742 : f32 to vector<8x384xf32>
    %744 = arith.mulf %743, %737 : vector<8x384xf32>
    %745 = arith.addf %731, %744 : vector<8x384xf32>
    %c77_268 = arith.constant 77 : index
    %746 = memref.load %arg5[%c77_268] : memref<81xf32, #tpu.memory_space<smem>>
    %747 = vector.broadcast %746 : f32 to vector<8x384xf32>
    %748 = arith.mulf %747, %737 : vector<8x384xf32>
    %749 = arith.addf %735, %748 : vector<8x384xf32>
    %c2_269 = arith.constant 2 : index
    %c0_270 = arith.constant 0 : index
    %c145_271 = arith.constant 145 : index
    %750 = vector.load %arg8[%c2_269, %c0_270, %c145_271] : memref<3x8x640xf32, #tpu.memory_space<vmem>>, vector<1x8x384xf32>
    %751 = vector.shape_cast %750 : vector<1x8x384xf32> to vector<8x384xf32>
    %c24_272 = arith.constant 24 : index
    %752 = memref.load %arg5[%c24_272] : memref<81xf32, #tpu.memory_space<smem>>
    %753 = vector.broadcast %752 : f32 to vector<8x384xf32>
    %754 = arith.mulf %753, %751 : vector<8x384xf32>
    %755 = arith.addf %741, %754 : vector<8x384xf32>
    %c51_273 = arith.constant 51 : index
    %756 = memref.load %arg5[%c51_273] : memref<81xf32, #tpu.memory_space<smem>>
    %757 = vector.broadcast %756 : f32 to vector<8x384xf32>
    %758 = arith.mulf %757, %751 : vector<8x384xf32>
    %759 = arith.addf %745, %758 : vector<8x384xf32>
    %c78_274 = arith.constant 78 : index
    %760 = memref.load %arg5[%c78_274] : memref<81xf32, #tpu.memory_space<smem>>
    %761 = vector.broadcast %760 : f32 to vector<8x384xf32>
    %762 = arith.mulf %761, %751 : vector<8x384xf32>
    %763 = arith.addf %749, %762 : vector<8x384xf32>
    %c2_275 = arith.constant 2 : index
    %c0_276 = arith.constant 0 : index
    %c146_277 = arith.constant 146 : index
    %764 = vector.load %arg8[%c2_275, %c0_276, %c146_277] : memref<3x8x640xf32, #tpu.memory_space<vmem>>, vector<1x8x384xf32>
    %765 = vector.shape_cast %764 : vector<1x8x384xf32> to vector<8x384xf32>
    %c25_278 = arith.constant 25 : index
    %766 = memref.load %arg5[%c25_278] : memref<81xf32, #tpu.memory_space<smem>>
    %767 = vector.broadcast %766 : f32 to vector<8x384xf32>
    %768 = arith.mulf %767, %765 : vector<8x384xf32>
    %769 = arith.addf %755, %768 : vector<8x384xf32>
    %c52_279 = arith.constant 52 : index
    %770 = memref.load %arg5[%c52_279] : memref<81xf32, #tpu.memory_space<smem>>
    %771 = vector.broadcast %770 : f32 to vector<8x384xf32>
    %772 = arith.mulf %771, %765 : vector<8x384xf32>
    %773 = arith.addf %759, %772 : vector<8x384xf32>
    %c79_280 = arith.constant 79 : index
    %774 = memref.load %arg5[%c79_280] : memref<81xf32, #tpu.memory_space<smem>>
    %775 = vector.broadcast %774 : f32 to vector<8x384xf32>
    %776 = arith.mulf %775, %765 : vector<8x384xf32>
    %777 = arith.addf %763, %776 : vector<8x384xf32>
    %c2_281 = arith.constant 2 : index
    %c0_282 = arith.constant 0 : index
    %c147_283 = arith.constant 147 : index
    %778 = vector.load %arg8[%c2_281, %c0_282, %c147_283] : memref<3x8x640xf32, #tpu.memory_space<vmem>>, vector<1x8x384xf32>
    %779 = vector.shape_cast %778 : vector<1x8x384xf32> to vector<8x384xf32>
    %c26_284 = arith.constant 26 : index
    %780 = memref.load %arg5[%c26_284] : memref<81xf32, #tpu.memory_space<smem>>
    %781 = vector.broadcast %780 : f32 to vector<8x384xf32>
    %782 = arith.mulf %781, %779 : vector<8x384xf32>
    %783 = arith.addf %769, %782 : vector<8x384xf32>
    %c53_285 = arith.constant 53 : index
    %784 = memref.load %arg5[%c53_285] : memref<81xf32, #tpu.memory_space<smem>>
    %785 = vector.broadcast %784 : f32 to vector<8x384xf32>
    %786 = arith.mulf %785, %779 : vector<8x384xf32>
    %787 = arith.addf %773, %786 : vector<8x384xf32>
    %c80_286 = arith.constant 80 : index
    %788 = memref.load %arg5[%c80_286] : memref<81xf32, #tpu.memory_space<smem>>
    %789 = vector.broadcast %788 : f32 to vector<8x384xf32>
    %790 = arith.mulf %789, %779 : vector<8x384xf32>
    %791 = arith.addf %777, %790 : vector<8x384xf32>
    %c0_287 = arith.constant 0 : index
    %792 = memref.load %arg6[%c0_287] : memref<3xf32, #tpu.memory_space<smem>>
    %793 = vector.broadcast %792 : f32 to vector<8x384xf32>
    %794 = arith.addf %783, %793 : vector<8x384xf32>
    %795 = arith.negf %794 : vector<8x384xf32>
    %796 = math.exp %795 : vector<8x384xf32>
    %cst_288 = arith.constant 1.000000e+00 : f32
    %797 = vector.broadcast %cst_288 : f32 to vector<8x384xf32>
    %798 = arith.addf %797, %796 : vector<8x384xf32>
    %799 = arith.divf %797, %798 : vector<8x384xf32>
    %c0_289 = arith.constant 0 : index
    %c0_290 = arith.constant 0 : index
    %c0_291 = arith.constant 0 : index
    %c0_292 = arith.constant 0 : index
    %800 = vector.load %arg7[%c0_289, %c0_290, %c0_291, %c0_292] : memref<1x3x8x384xf32, #tpu.memory_space<vmem>>, vector<1x1x8x384xf32>
    %801 = vector.shape_cast %800 : vector<1x1x8x384xf32> to vector<8x384xf32>
    %802 = vector.shape_cast %799 : vector<8x384xf32> to vector<1x1x8x384xf32>
    tpu.vector_store %arg7[%c0_289, %c0_290, %c0_291, %c0_292], %802 {strides = array<i32>} : memref<1x3x8x384xf32, #tpu.memory_space<vmem>>, vector<1x1x8x384xf32>,
    %c1_293 = arith.constant 1 : index
    %803 = memref.load %arg6[%c1_293] : memref<3xf32, #tpu.memory_space<smem>>
    %804 = vector.broadcast %803 : f32 to vector<8x384xf32>
    %805 = arith.addf %787, %804 : vector<8x384xf32>
    %806 = arith.negf %805 : vector<8x384xf32>
    %807 = math.exp %806 : vector<8x384xf32>
    %cst_294 = arith.constant 1.000000e+00 : f32
    %808 = vector.broadcast %cst_294 : f32 to vector<8x384xf32>
    %809 = arith.addf %808, %807 : vector<8x384xf32>
    %810 = arith.divf %808, %809 : vector<8x384xf32>
    %c0_295 = arith.constant 0 : index
    %c1_296 = arith.constant 1 : index
    %c0_297 = arith.constant 0 : index
    %c0_298 = arith.constant 0 : index
    %811 = vector.load %arg7[%c0_295, %c1_296, %c0_297, %c0_298] : memref<1x3x8x384xf32, #tpu.memory_space<vmem>>, vector<1x1x8x384xf32>
    %812 = vector.shape_cast %811 : vector<1x1x8x384xf32> to vector<8x384xf32>
    %813 = vector.shape_cast %810 : vector<8x384xf32> to vector<1x1x8x384xf32>
    tpu.vector_store %arg7[%c0_295, %c1_296, %c0_297, %c0_298], %813 {strides = array<i32>} : memref<1x3x8x384xf32, #tpu.memory_space<vmem>>, vector<1x1x8x384xf32>,
    %c2_299 = arith.constant 2 : index
    %814 = memref.load %arg6[%c2_299] : memref<3xf32, #tpu.memory_space<smem>>
    %815 = vector.broadcast %814 : f32 to vector<8x384xf32>
    %816 = arith.addf %791, %815 : vector<8x384xf32>
    %817 = arith.negf %816 : vector<8x384xf32>
    %818 = math.exp %817 : vector<8x384xf32>
    %cst_300 = arith.constant 1.000000e+00 : f32
    %819 = vector.broadcast %cst_300 : f32 to vector<8x384xf32>
    %820 = arith.addf %819, %818 : vector<8x384xf32>
    %821 = arith.divf %819, %820 : vector<8x384xf32>
    %c0_301 = arith.constant 0 : index
    %c2_302 = arith.constant 2 : index
    %c0_303 = arith.constant 0 : index
    %c0_304 = arith.constant 0 : index
    %822 = vector.load %arg7[%c0_301, %c2_302, %c0_303, %c0_304] : memref<1x3x8x384xf32, #tpu.memory_space<vmem>>, vector<1x1x8x384xf32>
    %823 = vector.shape_cast %822 : vector<1x1x8x384xf32> to vector<8x384xf32>
    %824 = vector.shape_cast %821 : vector<8x384xf32> to vector<1x1x8x384xf32>
    tpu.vector_store %arg7[%c0_301, %c2_302, %c0_303, %c0_304], %824 {strides = array<i32>} : memref<1x3x8x384xf32, #tpu.memory_space<vmem>>, vector<1x1x8x384xf32>,
    return
  }
  func.func @transform_0(%arg0: i32) -> (i32, i32, i32, i32) {
    %c0_i32 = arith.constant 0 : i32
    %c0_i32_0 = arith.constant 0 : i32
    %c0_i32_1 = arith.constant 0 : i32
    %c0_i32_2 = arith.constant 0 : i32
    return %arg0, %c0_i32, %c0_i32_0, %c0_i32_1 : i32, i32, i32, i32
  }
  func.func @transform_1(%arg0: i32) -> (i32, i32) {
    %c0_i32 = arith.constant 0 : i32
    %c0_i32_0 = arith.constant 0 : i32
    %c0_i32_1 = arith.constant 0 : i32
    return %c0_i32, %c0_i32_0 : i32, i32
  }
  func.func @transform_2(%arg0: i32) -> i32 {
    %c0_i32 = arith.constant 0 : i32
    %c0_i32_0 = arith.constant 0 : i32
    return %c0_i32 : i32
  }
  func.func @transform_3(%arg0: i32) -> i32 {
    %c0_i32 = arith.constant 0 : i32
    %c0_i32_0 = arith.constant 0 : i32
    return %c0_i32 : i32
  }
  func.func @transform_4(%arg0: i32) -> i32 {
    %c0_i32 = arith.constant 0 : i32
    %c0_i32_0 = arith.constant 0 : i32
    return %c0_i32 : i32
  }
  func.func @transform_5(%arg0: i32) -> i32 {
    %c0_i32 = arith.constant 0 : i32
    %c0_i32_0 = arith.constant 0 : i32
    return %c0_i32 : i32
  }
  func.func @transform_6(%arg0: i32) -> (i32, i32, i32, i32) {
    %c0_i32 = arith.constant 0 : i32
    %c0_i32_0 = arith.constant 0 : i32
    %c0_i32_1 = arith.constant 0 : i32
    %c0_i32_2 = arith.constant 0 : i32
    return %arg0, %c0_i32, %c0_i32_0, %c0_i32_1 : i32, i32, i32, i32
  }
}

</mosaic_0001>

<bundles_post_ra>
// kernel: tpu_custom_call.1
= control target key start
LH: loop header
LB: loop body
LE: loop exit
PB: predicated region body
PF: predicated region fallthrough
CT: control target
= control target key end

     0   :  { %11 = vsyncpa [#allocation4], 0  ;;  %s8791_s0 = inlined_call_operand.hbm [shape: f32[1,3,8,512], index: 0, kind: input, shape index: {}]   ;;  %s8792_s1 = inlined_call_operand.hbm [shape: f32[8,384], index: 1, kind: input, shape index: {}]   ;;  %s8793_s2 = inlined_call_operand.vmem [shape: f32[81], index: 2, kind: input, shape index: {}]   ;;  %s8794_s3 = inlined_call_operand.vmem [shape: f32[3], index: 3, kind: input, shape index: {}]   ;;  %s8795_s4 = inlined_call_operand.vmem [shape: f32[81], index: 4, kind: input, shape index: {}]   ;;  %s8796_s5 = inlined_call_operand.vmem [shape: f32[3], index: 5, kind: input, shape index: {}]   ;;  %s8797_s6 = inlined_call_operand.hbm [shape: f32[1,3,8,384], index: 6, kind: output, shape index: {}]  }
   0x1   :  { %12 = vsyncpa [#allocation8], 0 }
   0x2   :  { %13 = vsyncpa [#allocation6], 0 }
   0x3   :  { %14 = vsyncpa [#allocation11], 0 }
   0x4   :  { %15 = vsyncpa [#allocation14], 0  ;;  %s55_s23 = sshll.u32 %s8794_s3, 4  ;;  %s56_s23 = int_to_ptr.vmem [resolvable:$true] %s55_s23 }
   0x5   :  { %16 = vsyncpa [#allocation5], 0  ;;  %s4794_s24 = scalar_lea.vmem %s56_s23, 16  ;;  %p4799_p1 = scmp.lt.s32.totalorder %s56_s23, %s56_s23 }
   0x6   :  { %p4795_p0 = scmp.ne.s32.totalorder %s56_s23, %s4794_s24  ;;  %p4800_p2 = scmp.lt.s32.totalorder %s4794_s24, %s4794_s24 }
   0x8   :  { %p4801_p3 = por %p4800_p2, %p4799_p1 }
   0xa   :  { %p4802_p4 = pnand %p4801_p3, %p4795_p0 }
   0xc   :  { %4805 = shalt.err (!%p4802_p4)
}
   0xd   :  { %s4920_s25 = smov [#allocation10]   ;;  %s4921_s26 = smov [#allocation3]  }
   0xe   :  { %58 = dma.vmem_to_smem %s56_s23, 16, %s4920_s25, [#allocation11]  }
   0xf   :  { %s22_s27 = sshll.u32 %s4921_s26, 4  ;;  %s4806_s30 = scalar_lea.hbm %s8791_s0, 1536  ;;  %s23_s27 = int_to_ptr.vmem [resolvable:$true] %s22_s27 }
  0x10   :  { %p4807_p5 = scmp.ne.s32.totalorder %s8791_s0, %s4806_s30  ;;  %p4810_p6 = scmp.lt.u32.totalorder %s4806_s30, %s8791_s0 }
  0x12   :  { %p4812_p7 = pnand %p4810_p6, %p4807_p5 }
  0x14   :  { %4815 = shalt.err (!%p4812_p7)
}
  0x15   :  { %s4816_s10 = scalar_lea.vmem %s23_s27, 1536  ;;  %p4821_p9 = scmp.lt.s32.totalorder %s23_s27, %s23_s27 }
  0x16   :  { %p4817_p8 = scmp.ne.s32.totalorder %s23_s27, %s4816_s10  ;;  %p4822_p10 = scmp.lt.s32.totalorder %s4816_s10, %s4816_s10 }
  0x18   :  { %p4823_p11 = por %p4822_p10, %p4821_p9 }
  0x1a   :  { %p4824_p12 = pnand %p4823_p11, %p4817_p8 }
  0x1c   :  { %4827 = shalt.err (!%p4824_p12)
}
  0x1d   :  { %s4922_s11 = smov 512   ;;  %s4923_s12 = smov 32  }
  0x1e   :  { %28 = dma.hbm_to_vmem [thread:$0]  %s8791_s0, 1536, %s23_s27, [#allocation4], %s4922_s11, %s4922_s11, %s4923_s12  }
  0x1f   :  { %s45_s17 = sshll.u32 %s8793_s2, 4  ;;  %s4924_s18 = smov [#allocation7]   ;;  %s46_s17 = int_to_ptr.vmem [resolvable:$true] %s45_s17 }
  0x20   :  { %s35_s19 = sshll.u32 %s4924_s18, 4  ;;  %s4828_s22 = scalar_lea.hbm %s8792_s1, 384  ;;  %s36_s19 = int_to_ptr.vmem [resolvable:$true] %s35_s19 }
  0x21   :  { %p4829_p13 = scmp.ne.s32.totalorder %s8792_s1, %s4828_s22  ;;  %p4832_p0 = scmp.lt.u32.totalorder %s4828_s22, %s8792_s1 }
  0x23   :  { %p4834_p1 = pnand %p4832_p0, %p4829_p13 }
  0x25   :  { %4837 = shalt.err (!%p4834_p1)
}
  0x26   :  { %s4838_s0 = scalar_lea.vmem %s36_s19, 384  ;;  %p4843_p3 = scmp.lt.s32.totalorder %s36_s19, %s36_s19 }
  0x27   :  { %p4839_p2 = scmp.ne.s32.totalorder %s36_s19, %s4838_s0  ;;  %p4844_p4 = scmp.lt.s32.totalorder %s4838_s0, %s4838_s0 }
  0x29   :  { %p4845_p5 = por %p4844_p4, %p4843_p3 }
  0x2b   :  { %p4846_p6 = pnand %p4845_p5, %p4839_p2 }
  0x2d   :  { %4849 = shalt.err (!%p4846_p6)
}
  0x2e   :  { %38 = dma.hbm_to_vmem [thread:$0]  %s8792_s1, 384, %s36_s19, [#allocation8]  }
  0x2f   :  { %s4850_s28 = scalar_lea.vmem %s46_s17, 16  ;;  %p4855_p8 = scmp.lt.s32.totalorder %s46_s17, %s46_s17 }
  0x30   :  { %p4851_p7 = scmp.ne.s32.totalorder %s46_s17, %s4850_s28  ;;  %p4856_p9 = scmp.lt.s32.totalorder %s4850_s28, %s4850_s28 }
  0x32   :  { %p4857_p10 = por %p4856_p9, %p4855_p8 }
  0x34   :  { %p4858_p11 = pnand %p4857_p10, %p4851_p7 }
  0x36   :  { %4861 = shalt.err (!%p4858_p11)
}
  0x37   :  { %s4925_s29 = smov [#allocation9]   ;;  %s65_s3 = sshll.u32 %s8795_s4, 4  ;;  %s66_s3 = int_to_ptr.vmem [resolvable:$true] %s65_s3 }
  0x38   :  { %48 = dma.vmem_to_smem %s46_s17, 16, %s4925_s29, [#allocation6]  }
  0x39   :  { %s75_s10 = sshll.u32 %s8796_s5, 4  ;;  %s4862_s11 = scalar_lea.vmem %s66_s3, 16  ;;  %s76_s10 = int_to_ptr.vmem [resolvable:$true] %s75_s10 }
  0x3a   :  { %p4863_p12 = scmp.ne.s32.totalorder %s66_s3, %s4862_s11  ;;  %p4867_p13 = scmp.lt.s32.totalorder %s66_s3, %s66_s3 }
  0x3b   :  { %p4868_p0 = scmp.lt.s32.totalorder %s4862_s11, %s4862_s11 }
  0x3d   :  { %p4869_p1 = por %p4868_p0, %p4867_p13 }
  0x3f   :  { %p4870_p2 = pnand %p4869_p1, %p4863_p12 }
  0x41   :  { %4873 = shalt.err (!%p4870_p2)
}
  0x42   :  { %s4926_s1 = smov [#allocation12]   ;;  %s4874_s12 = scalar_lea.vmem %s76_s10, 16 }
  0x43   :  { %68 = dma.vmem_to_smem %s66_s3, 16, %s4926_s1, [#allocation11]  }
  0x44   :  { %p4875_p3 = scmp.ne.s32.totalorder %s76_s10, %s4874_s12  ;;  %p4879_p4 = scmp.lt.s32.totalorder %s76_s10, %s76_s10 }
  0x45   :  { %p4880_p5 = scmp.lt.s32.totalorder %s4874_s12, %s4874_s12 }
  0x47   :  { %p4881_p6 = por %p4880_p5, %p4879_p4 }
  0x49   :  { %p4882_p7 = pnand %p4881_p6, %p4875_p3 }
  0x4b   :  { %4885 = shalt.err (!%p4882_p7)
}
  0x4c   :  { %s4927_s4 = smov [#allocation13]  }
  0x4d   :  { %78 = dma.vmem_to_smem %s76_s10, 16, %s4927_s4, [#allocation14]  }
  0x4e   :  { %4908 = dma.done.wait [#allocation4], 1536  }
  0x4f   :  { %4909 = vsyncadd [#allocation4], 4294965760 }
  0x50   :  { %4910 = dma.done.wait [#allocation8], 384  }
  0x51   :  { %4911 = vsyncadd [#allocation8], 4294966912 }
  0x52   :  { %4912 = dma.done.wait [#allocation6], 16  }
  0x53   :  { %4913 = vsyncadd [#allocation6], 4294967280 }
  0x54   :  { %4914 = dma.done.wait [#allocation11], 32  }
  0x55   :  { %4915 = vsyncadd [#allocation11], 4294967264 }
  0x56   :  { %4916 = dma.done.wait [#allocation14], 16  }
  0x57   :  { %4917 = vsyncadd [#allocation14], 4294967280 }
  0x58   :  { %97 = sfence }
  0x59   :  { %s4543_s5 = sld [smem:[#allocation9 + $0x1]]  ;;  %s4544_s13 = sld [smem:[#allocation9 + $0x1c]]  ;;  %v5011_v0 = vld [vmem:[#allocation3 + $0x10] sm:$0xff]  ;;  %v5013_v1 = vld [vmem:[#allocation3] sm:$0xff]  ;;  %v5015_v3 = vld [vmem:[#allocation3 + $0x18] sm:$0xff]  ;;  %vm165_vm0 = vcmask 1039360  }
  0x5a   :  { %v5017_v4 = vld [vmem:[#allocation3 + $0x8] sm:$0xff]  ;;  %s4928_s14 = smov 127   ;;  %s4545_s15 = sld [smem:[#allocation9 + $0x37]]  ;;  %vm247_vm1 = vcmask 1031168   ;;  %vm329_vm2 = vcmask 900096   ;;  %vm411_vm3 = vcmask 891904  }
  0x5b   :  { %s4546_s16 = sld [smem:[#allocation9 + $0x2]]  ;;  %s4547_s17 = sld [smem:[#allocation9 + $0x1d]]  ;;  %vm493_vm4 = vcmask 883712   ;;  %vm575_vm5 = vcmask 752640   ;;  %vm657_vm6 = vcmask 744448   ;;  %vm739_vm7 = vcmask 736256  }
  0x5c   :  { %s4929_s18 = smov 126   ;;  %s4548_s19 = sld [smem:[#allocation9 + $0x38]]  ;;  %vm4406_vm8 = vcmask 154624  }
  0x5d   :  { %s4549_s20 = sld [smem:[#allocation9 + $0x3]]  ;;  %s4550_s21 = sld [smem:[#allocation9 + $0x1e]] }
  0x5e   :  { %s4930_s22 = smov 110   ;;  %s4551_s23 = sld [smem:[#allocation9 + $0x39]] }
  0x5f   :  { %v148_v2 = vstv %s4543_s5  ;;  %v176_v9 = vstv %s4544_s13  ;;  %s4552_s24 = sld [smem:[#allocation9 + $0x4]]  ;;  %s4553_s25 = sld [smem:[#allocation9 + $0x1f]] }
  0x60   :  { %v151_v5 = vmul.f32 %v148_v2, %v5011_v0  ;;  %v149_v6 = vmul.f32 %v148_v2, %v5013_v1  ;;  %v152_v7 = vmul.f32 %v148_v2, %v5015_v3  ;;  %v150_v8 = vmul.f32 %v148_v2, %v5017_v4  ;;  %s4931_s26 = smov 109   ;;  %s4554_s0 = sld [smem:[#allocation9 + $0x3a]] }
  0x61   :  { %v178_v10 = vmul.f32 %v176_v9, %v5017_v4  ;;  %v177_v11 = vmul.f32 %v176_v9, %v5013_v1  ;;  %v180_v12 = vmul.f32 %v176_v9, %v5015_v3  ;;  %v179_v13 = vmul.f32 %v176_v9, %v5011_v0  ;;  %s4555_s2 = sld [smem:[#allocation9 + $0x5]]  ;;  %s4556_s27 = sld [smem:[#allocation9 + $0x20]] }
  0x62   :  { %161 = vrot.lane.b32.xlu1 %v151_v5, %s4928_s14  ;;  %157 = vrot.lane.b32.xlu0 %v149_v6, %s4928_s14  ;;  %v203_v14 = vstv %s4545_s15  ;;  %v230_v19 = vstv %s4546_s16  ;;  %s4932_s28 = smov 108   ;;  %s4557_s29 = sld [smem:[#allocation9 + $0x3b]] }
  0x63   :  { %v205_v15 = vmul.f32 %v203_v14, %v5017_v4  ;;  %v204_v16 = vmul.f32 %v203_v14, %v5013_v1  ;;  %v207_v17 = vmul.f32 %v203_v14, %v5015_v3  ;;  %v206_v18 = vmul.f32 %v203_v14, %v5011_v0  ;;  %s4558_s30 = sld [smem:[#allocation9 + $0x6]]  ;;  %s4559_s7 = sld [smem:[#allocation9 + $0x21]] }
  0x64   :  { %v232_v20 = vmul.f32 %v230_v19, %v5017_v4  ;;  %v231_v21 = vmul.f32 %v230_v19, %v5013_v1  ;;  %v234_v22 = vmul.f32 %v230_v19, %v5015_v3  ;;  %v233_v23 = vmul.f32 %v230_v19, %v5011_v0  ;;  %s4933_s3 = smov 92   ;;  %s4560_s8 = sld [smem:[#allocation9 + $0x3c]] }
  0x65   :  { %v258_v24 = vstv %s4547_s17  ;;  %v285_v29 = vstv %s4548_s19  ;;  %v312_v34 = vstv %s4549_s20  ;;  %v340_v39 = vstv %s4550_s21  ;;  %s4561_s9 = sld [smem:[#allocation9 + $0x7]]  ;;  %s4562_s10 = sld [smem:[#allocation9 + $0x22]] }
  0x66   :  { %163 = vrot.lane.b32.xlu1 %v152_v7, %s4928_s14  ;;  %159 = vrot.lane.b32.xlu0 %v150_v8, %s4928_s14  ;;  %v260_v25 = vmul.f32 %v258_v24, %v5017_v4  ;;  %v259_v26 = vmul.f32 %v258_v24, %v5013_v1  ;;  %v262_v27 = vmul.f32 %v258_v24, %v5015_v3  ;;  %v367_v44 = vstv %s4551_s23  ;;  %s4934_s11 = smov 91   ;;  %s4563_s1 = sld [smem:[#allocation9 + $0x3d]] }
  0x67   :  { %v261_v28 = vmul.f32 %v258_v24, %v5011_v0  ;;  %v287_v30 = vmul.f32 %v285_v29, %v5017_v4  ;;  %v286_v31 = vmul.f32 %v285_v29, %v5013_v1  ;;  %v289_v32 = vmul.f32 %v285_v29, %v5015_v3  ;;  %s4564_s12 = sld [smem:[#allocation9 + $0x8]]  ;;  %s4565_s4 = sld [smem:[#allocation9 + $0x23]] }
  0x68   :  { %v288_v33 = vmul.f32 %v285_v29, %v5011_v0  ;;  %v314_v35 = vmul.f32 %v312_v34, %v5017_v4  ;;  %v313_v36 = vmul.f32 %v312_v34, %v5013_v1  ;;  %v316_v37 = vmul.f32 %v312_v34, %v5015_v3  ;;  %s4935_s5 = smov 90   ;;  %s4566_s13 = sld [smem:[#allocation9 + $0x3e]] }
  0x69   :  { %v315_v38 = vmul.f32 %v312_v34, %v5011_v0  ;;  %v342_v40 = vmul.f32 %v340_v39, %v5017_v4  ;;  %v341_v41 = vmul.f32 %v340_v39, %v5013_v1  ;;  %v344_v42 = vmul.f32 %v340_v39, %v5015_v3  ;;  %s4570_s15 = sld [smem:[#allocation9 + $0xa]]  ;;  %s4571_s16 = sld [smem:[#allocation9 + $0x25]] }
  0x6a   :  { %187 = vrot.lane.b32.xlu1 %v178_v10, %s4928_s14  ;;  %185 = vrot.lane.b32.xlu0 %v177_v11, %s4928_s14  ;;  %v343_v43 = vmul.f32 %v340_v39, %v5011_v0  ;;  %v369_v45 = vmul.f32 %v367_v44, %v5017_v4  ;;  %v368_v46 = vmul.f32 %v367_v44, %v5013_v1  ;;  %v394_v49 = vstv %s4552_s24  ;;  %s4572_s17 = sld [smem:[#allocation9 + $0x40]]  ;;  %s4573_s19 = sld [smem:[#allocation9 + $0xb]] }
  0x6b   :  { %v371_v47 = vmul.f32 %v367_v44, %v5015_v3  ;;  %v370_v48 = vmul.f32 %v367_v44, %v5011_v0  ;;  %v396_v50 = vmul.f32 %v394_v49, %v5017_v4  ;;  %v395_v51 = vmul.f32 %v394_v49, %v5013_v1  ;;  %s4574_s20 = sld [smem:[#allocation9 + $0x26]]  ;;  %s4575_s21 = sld [smem:[#allocation9 + $0x41]] }
  0x6c   :  { %v398_v52 = vmul.f32 %v394_v49, %v5015_v3  ;;  %v397_v53 = vmul.f32 %v394_v49, %v5011_v0  ;;  %v422_v54 = vstv %s4553_s25  ;;  %v449_v59 = vstv %s4554_s0  ;;  %s4576_s23 = sld [smem:[#allocation9 + $0xc]]  ;;  %s4577_s24 = sld [smem:[#allocation9 + $0x27]] }
  0x6d   :  { %v424_v55 = vmul.f32 %v422_v54, %v5017_v4  ;;  %v423_v56 = vmul.f32 %v422_v54, %v5013_v1  ;;  %v426_v57 = vmul.f32 %v422_v54, %v5015_v3  ;;  %v425_v58 = vmul.f32 %v422_v54, %v5011_v0  ;;  %s4578_s25 = sld [smem:[#allocation9 + $0x42]]  ;;  %s4579_s0 = sld [smem:[#allocation9 + $0xd]] }
  0x6e   :  { %191 = vrot.lane.b32.xlu1 %v180_v12, %s4928_s14  ;;  %189 = vrot.lane.b32.xlu0 %v179_v13, %s4928_s14  ;;  %v451_v60 = vmul.f32 %v449_v59, %v5017_v4  ;;  %v450_v61 = vmul.f32 %v449_v59, %v5013_v1  ;;  %v453_v62 = vmul.f32 %v449_v59, %v5015_v3  ;;  %v476_v2 = vstv %s4555_s2  ;;  %s4580_s2 = sld [smem:[#allocation9 + $0x28]] }
  0x6f   :  { %v452_v63 = vmul.f32 %v449_v59, %v5011_v0  ;;  %v478_v5 = vmul.f32 %v476_v2, %v5017_v4  ;;  %v477_v6 = vmul.f32 %v476_v2, %v5013_v1  ;;  %v480_v7 = vmul.f32 %v476_v2, %v5015_v3 }
  0x70   :  { %v479_v8 = vmul.f32 %v476_v2, %v5011_v0  ;;  %v504_v9 = vstv %s4556_s27  ;;  %v531_v14 = vstv %s4557_s29  ;;  %v558_v19 = vstv %s4558_s30  ;;  %s4581_s27 = sld [smem:[#allocation9 + $0x43]]  ;;  %s4582_s29 = sld [smem:[#allocation9 + $0xe]] }
  0x71   :  { %v506_v10 = vmul.f32 %v504_v9, %v5017_v4  ;;  %v505_v11 = vmul.f32 %v504_v9, %v5013_v1  ;;  %v508_v12 = vmul.f32 %v504_v9, %v5015_v3  ;;  %v507_v13 = vmul.f32 %v504_v9, %v5011_v0  ;;  %s4583_s30 = sld [smem:[#allocation9 + $0x29]] }
  0x72   :  { %214 = vrot.lane.b32.xlu1 %v205_v15, %s4928_s14  ;;  %212 = vrot.lane.b32.xlu0 %v204_v16, %s4928_s14  ;;  %v533_v15 = vmul.f32 %v531_v14, %v5017_v4  ;;  %v532_v16 = vmul.f32 %v531_v14, %v5013_v1  ;;  %v695_v2 = vstv %s4563_s1  ;;  %s4588_s1 = sld [smem:[#allocation9 + $0x10]] }
  0x76   :  { %218 = vrot.lane.b32.xlu1 %v207_v17, %s4928_s14  ;;  %216 = vrot.lane.b32.xlu0 %v206_v18, %s4928_s14  ;;  %v535_v17 = vmul.f32 %v531_v14, %v5015_v3  ;;  %v534_v18 = vmul.f32 %v531_v14, %v5011_v0 }
  0x7a   :  { %241 = vrot.lane.b32.xlu1 %v232_v20, %s4929_s18  ;;  %239 = vrot.lane.b32.xlu0 %v231_v21, %s4929_s18 }
  0x7e   :  { %245 = vrot.lane.b32.xlu1 %v234_v22, %s4929_s18  ;;  %243 = vrot.lane.b32.xlu0 %v233_v23, %s4929_s18  ;;  %v560_v22 = vmul.f32 %v558_v19, %v5017_v4  ;;  %v559_v23 = vmul.f32 %v558_v19, %v5013_v1 }
  0x82   :  { %269 = vrot.lane.b32.xlu1 %v260_v25, %s4929_s18  ;;  %267 = vrot.lane.b32.xlu0 %v259_v26, %s4929_s18  ;;  %v562_v26 = vmul.f32 %v558_v19, %v5015_v3 }
  0x86   :  { %273 = vrot.lane.b32.xlu1 %v262_v27, %s4929_s18  ;;  %271 = vrot.lane.b32.xlu0 %v261_v28, %s4929_s18  ;;  %v561_v27 = vmul.f32 %v558_v19, %v5011_v0  ;;  %v586_v28 = vstv %s4559_s7  ;;  %s4584_s7 = sld [smem:[#allocation9 + $0x44]] }
  0x8a   :  { %296 = vrot.lane.b32.xlu1 %v287_v30, %s4929_s18  ;;  %294 = vrot.lane.b32.xlu0 %v286_v31, %s4929_s18  ;;  %v588_v31 = vmul.f32 %v586_v28, %v5017_v4 }
  0x8e   :  { %300 = vrot.lane.b32.xlu1 %v289_v32, %s4929_s18  ;;  %298 = vrot.lane.b32.xlu0 %v288_v33, %s4929_s18  ;;  %v587_v32 = vmul.f32 %v586_v28, %v5013_v1 }
  0x92   :  { %323 = vrot.lane.b32.xlu1 %v314_v35, %s4930_s22  ;;  %321 = vrot.lane.b32.xlu0 %v313_v36, %s4930_s22  ;;  %v590_v35 = vmul.f32 %v586_v28, %v5015_v3  ;;  %v589_v36 = vmul.f32 %v586_v28, %v5011_v0 }
  0x96   :  { %327 = vrot.lane.b32.xlu1 %v316_v37, %s4930_s22  ;;  %325 = vrot.lane.b32.xlu0 %v315_v38, %s4930_s22  ;;  %v613_v37 = vstv %s4560_s8  ;;  %s4585_s8 = sld [smem:[#allocation9 + $0xf]] }
  0x97   :  { %v617_v44 = vmul.f32 %v613_v37, %v5015_v3 }
  0x9a   :  { %351 = vrot.lane.b32.xlu1 %v342_v40, %s4930_s22  ;;  %349 = vrot.lane.b32.xlu0 %v341_v41, %s4930_s22  ;;  %v615_v40 = vmul.f32 %v613_v37, %v5017_v4  ;;  %v614_v41 = vmul.f32 %v613_v37, %v5013_v1 }
  0x9e   :  { %355 = vrot.lane.b32.xlu1 %v344_v42, %s4930_s22  ;;  %353 = vrot.lane.b32.xlu0 %v343_v43, %s4930_s22 }
  0xa2   :  { %378 = vrot.lane.b32.xlu1 %v369_v45, %s4930_s22  ;;  %376 = vrot.lane.b32.xlu0 %v368_v46, %s4930_s22  ;;  %v616_v45 = vmul.f32 %v613_v37, %v5011_v0  ;;  %v640_v46 = vstv %s4561_s9  ;;  %s4586_s9 = sld [smem:[#allocation9 + $0x2a]] }
  0xa3   :  { %v642_v49 = vmul.f32 %v640_v46, %v5017_v4  ;;  %v643_v54 = vmul.f32 %v640_v46, %v5011_v0 }
  0xa6   :  { %382 = vrot.lane.b32.xlu1 %v371_v47, %s4930_s22  ;;  %380 = vrot.lane.b32.xlu0 %v370_v48, %s4930_s22 }
  0xaa   :  { %405 = vrot.lane.b32.xlu1 %v396_v50, %s4931_s26  ;;  %403 = vrot.lane.b32.xlu0 %v395_v51, %s4931_s26  ;;  %v641_v50 = vmul.f32 %v640_v46, %v5013_v1 }
  0xae   :  { %409 = vrot.lane.b32.xlu1 %v398_v52, %s4931_s26  ;;  %407 = vrot.lane.b32.xlu0 %v397_v53, %s4931_s26  ;;  %v644_v53 = vmul.f32 %v640_v46, %v5015_v3 }
  0xb2   :  { %433 = vrot.lane.b32.xlu1 %v424_v55, %s4931_s26  ;;  %431 = vrot.lane.b32.xlu0 %v423_v56, %s4931_s26  ;;  %v668_v55 = vstv %s4562_s10  ;;  %s4587_s10 = sld [smem:[#allocation9 + $0x45]] }
  0xb3   :  { %v669_v59 = vmul.f32 %v668_v55, %v5013_v1 }
  0xb6   :  { %437 = vrot.lane.b32.xlu1 %v426_v57, %s4931_s26  ;;  %435 = vrot.lane.b32.xlu0 %v425_v58, %s4931_s26  ;;  %v670_v58 = vmul.f32 %v668_v55, %v5017_v4 }
  0xba   :  { %460 = vrot.lane.b32.xlu1 %v451_v60, %s4931_s26  ;;  %458 = vrot.lane.b32.xlu0 %v450_v61, %s4931_s26 }
  0xbe   :  { %464 = vrot.lane.b32.xlu1 %v453_v62, %s4931_s26  ;;  %462 = vrot.lane.b32.xlu0 %v452_v63, %s4931_s26  ;;  %v672_v62 = vmul.f32 %v668_v55, %v5015_v3  ;;  %v671_v63 = vmul.f32 %v668_v55, %v5011_v0 }
  0xc2   :  { %487 = vrot.lane.b32.xlu1 %v478_v5, %s4932_s28  ;;  %485 = vrot.lane.b32.xlu0 %v477_v6, %s4932_s28 }
  0xc6   :  { %491 = vrot.lane.b32.xlu1 %v480_v7, %s4932_s28  ;;  %489 = vrot.lane.b32.xlu0 %v479_v8, %s4932_s28  ;;  %v697_v7 = vmul.f32 %v695_v2, %v5017_v4  ;;  %v696_v8 = vmul.f32 %v695_v2, %v5013_v1 }
  0xca   :  { %515 = vrot.lane.b32.xlu1 %v506_v10, %s4932_s28  ;;  %513 = vrot.lane.b32.xlu0 %v505_v11, %s4932_s28  ;;  %v699_v11 = vmul.f32 %v695_v2, %v5015_v3 }
  0xce   :  { %519 = vrot.lane.b32.xlu1 %v508_v12, %s4932_s28  ;;  %517 = vrot.lane.b32.xlu0 %v507_v13, %s4932_s28  ;;  %v698_v12 = vmul.f32 %v695_v2, %v5011_v0  ;;  %v722_v13 = vstv %s4564_s12  ;;  %v5293_v2 = vld [vmem:[#allocation3 + $0x38] sm:$0xff]  ;;  %s4589_s12 = sld [smem:[#allocation9 + $0x2b]] }
  0xd2   :  { %542 = vrot.lane.b32.xlu1 %v533_v15, %s4932_s28  ;;  %540 = vrot.lane.b32.xlu0 %v532_v16, %s4932_s28  ;;  %v724_v16 = vmul.f32 %v722_v13, %v5017_v4 }
  0xd4   :  { %v5137_v20 = vpop.permute.xlu1 %161  ;;  %v5139_v21 = vpop.permute.xlu0 %157 }
  0xd6   :  { %546 = vrot.lane.b32.xlu1 %v535_v17, %s4932_s28  ;;  %544 = vrot.lane.b32.xlu0 %v534_v18, %s4932_s28  ;;  %v723_v17 = vmul.f32 %v722_v13, %v5013_v1 }
  0xd8   :  { %v5145_v24 = vpop.permute.xlu1 %163  ;;  %v5147_v25 = vpop.permute.xlu0 %159 }
  0xda   :  { %569 = vrot.lane.b32.xlu1 %v560_v22, %s4933_s3  ;;  %567 = vrot.lane.b32.xlu0 %v559_v23, %s4933_s3  ;;  %v726_v22 = vmul.f32 %v722_v13, %v5015_v3  ;;  %v725_v23 = vmul.f32 %v722_v13, %v5011_v0  ;;  %v863_v13 = vstv %s4571_s16  ;;  %s4593_s16 = sld [smem:[#allocation9 + $0x47]] }
  0xdc   :  { %v5153_v29 = vpop.permute.xlu1 %187  ;;  %v5155_v30 = vpop.permute.xlu0 %185 }
  0xde   :  { %573 = vrot.lane.b32.xlu1 %v562_v26, %s4933_s3  ;;  %571 = vrot.lane.b32.xlu0 %v561_v27, %s4933_s3  ;;  %v750_v26 = vstv %s4565_s4  ;;  %s4590_s4 = sld [smem:[#allocation9 + $0x46]] }
  0xdf   :  { %v754_v37 = vmul.f32 %v750_v26, %v5015_v3 }
  0xe0   :  { %v5161_v33 = vpop.permute.xlu1 %191  ;;  %v5163_v34 = vpop.permute.xlu0 %189 }
  0xe2   :  { %597 = vrot.lane.b32.xlu1 %v588_v31, %s4933_s3  ;;  %595 = vrot.lane.b32.xlu0 %v587_v32, %s4933_s3  ;;  %v752_v31 = vmul.f32 %v750_v26, %v5017_v4  ;;  %v751_v32 = vmul.f32 %v750_v26, %v5013_v1 }
  0xe4   :  { %v5169_v38 = vpop.permute.xlu1 %214  ;;  %v5171_v39 = vpop.permute.xlu0 %212 }
  0xe6   :  { %601 = vrot.lane.b32.xlu1 %v590_v35, %s4933_s3  ;;  %599 = vrot.lane.b32.xlu0 %v589_v36, %s4933_s3 }
  0xe8   :  { %v5177_v42 = vpop.permute.xlu1 %218  ;;  %v5179_v43 = vpop.permute.xlu0 %216 }
  0xea   :  { %624 = vrot.lane.b32.xlu1 %v615_v40, %s4933_s3  ;;  %622 = vrot.lane.b32.xlu0 %v614_v41, %s4933_s3  ;;  %v753_v40 = vmul.f32 %v750_v26, %v5011_v0  ;;  %v777_v41 = vstv %s4566_s13  ;;  %s4591_s13 = sld [smem:[#allocation9 + $0x11]] }
  0xeb   :  { %v779_v46 = vmul.f32 %v777_v41, %v5017_v4  ;;  %v780_v55 = vmul.f32 %v777_v41, %v5011_v0  ;;  %v5295_v0 = vld [vmem:[#allocation3 + $0x30] sm:$0xff] }
  0xec   :  { %v5185_v47 = vpop.permute.xlu1 %241  ;;  %v5187_v48 = vpop.permute.xlu0 %239 }
  0xee   :  { %628 = vrot.lane.b32.xlu1 %v617_v44, %s4933_s3  ;;  %626 = vrot.lane.b32.xlu0 %v616_v45, %s4933_s3 }
  0xf0   :  { %v5193_v51 = vpop.permute.xlu1 %245  ;;  %v5195_v52 = vpop.permute.xlu0 %243 }
  0xf2   :  { %651 = vrot.lane.b32.xlu1 %v642_v49, %s4934_s11  ;;  %649 = vrot.lane.b32.xlu0 %v641_v50, %s4934_s11  ;;  %v778_v49 = vmul.f32 %v777_v41, %v5013_v1 }
  0xf4   :  { %v5201_v56 = vpop.permute.xlu1 %269  ;;  %v5203_v57 = vpop.permute.xlu0 %267 }
  0xf6   :  { %655 = vrot.lane.b32.xlu1 %v644_v53, %s4934_s11  ;;  %653 = vrot.lane.b32.xlu0 %v643_v54, %s4934_s11  ;;  %v781_v54 = vmul.f32 %v777_v41, %v5015_v3 }
  0xf8   :  { %v5209_v60 = vpop.permute.xlu1 %273  ;;  %v5211_v61 = vpop.permute.xlu0 %271 }
  0xfa   :  { %679 = vrot.lane.b32.xlu1 %v670_v58, %s4934_s11  ;;  %677 = vrot.lane.b32.xlu0 %v669_v59, %s4934_s11  ;;  %v5281_v58 = vld [vmem:[#allocation3 + $0x28] sm:$0xff]  ;;  %v836_v59 = vstv %s4570_s15  ;;  %s4592_s15 = sld [smem:[#allocation9 + $0x2c]] }
  0xfc   :  { %v5217_v5 = vpop.permute.xlu1 %296  ;;  %v5219_v6 = vpop.permute.xlu0 %294 }
  0xfe   :  { %683 = vrot.lane.b32.xlu1 %v672_v62, %s4934_s11  ;;  %681 = vrot.lane.b32.xlu0 %v671_v63, %s4934_s11  ;;  %v5283_v62 = vld [vmem:[#allocation3 + $0x20] sm:$0xff]  ;;  %v838_v63 = vmul.f32 %v836_v59, %v5281_v58 }
  0xff   :  { %v837_v3 = vmul.f32 %v836_v59, %v5283_v62 }
 0x100   :  { %v5225_v9 = vpop.permute.xlu1 %300  ;;  %v5227_v10 = vpop.permute.xlu0 %298 }
 0x102   :  { %706 = vrot.lane.b32.xlu1 %v697_v7, %s4934_s11  ;;  %704 = vrot.lane.b32.xlu0 %v696_v8, %s4934_s11 }
 0x104   :  { %v5233_v14 = vpop.permute.xlu1 %323  ;;  %v5235_v15 = vpop.permute.xlu0 %321 }
 0x106   :  { %710 = vrot.lane.b32.xlu1 %v699_v11, %s4934_s11  ;;  %708 = vrot.lane.b32.xlu0 %v698_v12, %s4934_s11  ;;  %v840_v11 = vmul.f32 %v836_v59, %v5293_v2  ;;  %v839_v12 = vmul.f32 %v836_v59, %v5295_v0 }
 0x108   :  { %v5241_v18 = vpop.permute.xlu1 %327  ;;  %v5243_v19 = vpop.permute.xlu0 %325 }
 0x10a   :  { %733 = vrot.lane.b32.xlu1 %v724_v16, %s4935_s5  ;;  %731 = vrot.lane.b32.xlu0 %v723_v17, %s4935_s5 }
 0x10c   :  { %v5249_v27 = vpop.permute.xlu1 %351  ;;  %v5251_v28 = vpop.permute.xlu0 %349 }
 0x10e   :  { %737 = vrot.lane.b32.xlu1 %v726_v22, %s4935_s5  ;;  %735 = vrot.lane.b32.xlu0 %v725_v23, %s4935_s5  ;;  %v865_v22 = vmul.f32 %v863_v13, %v5281_v58  ;;  %v864_v23 = vmul.f32 %v863_v13, %v5283_v62 }
 0x110   :  { %v5257_v35 = vpop.permute.xlu1 %355  ;;  %v5259_v36 = vpop.permute.xlu0 %353 }
 0x112   :  { %761 = vrot.lane.b32.xlu1 %v752_v31, %s4935_s5  ;;  %759 = vrot.lane.b32.xlu0 %v751_v32, %s4935_s5  ;;  %v867_v32 = vmul.f32 %v863_v13, %v5293_v2 }
 0x114   :  { %v5265_v44 = vpop.permute.xlu1 %378  ;;  %v5267_v45 = vpop.permute.xlu0 %376 }
 0x116   :  { %765 = vrot.lane.b32.xlu1 %v754_v37, %s4935_s5  ;;  %763 = vrot.lane.b32.xlu0 %v753_v40, %s4935_s5  ;;  %v866_v37 = vmul.f32 %v863_v13, %v5295_v0  ;;  %v890_v40 = vstv %s4572_s17  ;;  %s4597_s17 = sld [smem:[#allocation9 + $0x13]] }
 0x118   :  { %v5273_v50 = vpop.permute.xlu1 %382  ;;  %v5275_v53 = vpop.permute.xlu0 %380 }
 0x11a   :  { %788 = vrot.lane.b32.xlu1 %v779_v46, %s4935_s5  ;;  %786 = vrot.lane.b32.xlu0 %v778_v49, %s4935_s5  ;;  %v892_v49 = vmul.f32 %v890_v40, %v5281_v58 }
 0x11c   :  { %v5285_v4 = vpop.permute.xlu1 %405  ;;  %v5287_v1 = vpop.permute.xlu0 %403 }
 0x11e   :  { %792 = vrot.lane.b32.xlu1 %v781_v54, %s4935_s5  ;;  %790 = vrot.lane.b32.xlu0 %v780_v55, %s4935_s5  ;;  %v891_v54 = vmul.f32 %v890_v40, %v5283_v62 }
 0x120   :  { %v5297_v7 = vpop.permute.xlu1 %409  ;;  %v5299_v8 = vpop.permute.xlu0 %407 }
 0x121   :  { %8989 = vst [vmem:[#allocation22_spill] sm:$0xff] %v5297_v7 }
 0x122   :  { %847 = vrot.lane.b32.xlu1 %v838_v63, %s4928_s14  ;;  %845 = vrot.lane.b32.xlu0 %v837_v3, %s4928_s14  ;;  %v894_v63 = vmul.f32 %v890_v40, %v5293_v2  ;;  %v893_v3 = vmul.f32 %v890_v40, %v5295_v0 }
 0x124   :  { %v5305_v16 = vpop.permute.xlu1 %433  ;;  %v5307_v17 = vpop.permute.xlu0 %431 }
 0x125   :  { %8990 = vst [vmem:[#allocation23_spill] sm:$0xff] %v5305_v16  ;;  %8991 = vst [vmem:[#allocation24_spill] sm:$0xff] %v5307_v17 }
 0x126   :  { %851 = vrot.lane.b32.xlu1 %v840_v11, %s4928_s14  ;;  %849 = vrot.lane.b32.xlu0 %v839_v12, %s4928_s14  ;;  %v917_v11 = vstv %s4573_s19  ;;  %s4598_s19 = sld [smem:[#allocation9 + $0x2e]] }
 0x127   :  { %v921_v40 = vmul.f32 %v917_v11, %v5293_v2 }
 0x128   :  { %v5313_v26 = vpop.permute.xlu1 %437  ;;  %v5315_v31 = vpop.permute.xlu0 %435 }
 0x129   :  { %8992 = vst [vmem:[#allocation25_spill] sm:$0xff] %v5313_v26  ;;  %8993 = vst [vmem:[#allocation26_spill] sm:$0xff] %v5315_v31 }
 0x12a   :  { %874 = vrot.lane.b32.xlu1 %v865_v22, %s4928_s14  ;;  %872 = vrot.lane.b32.xlu0 %v864_v23, %s4928_s14  ;;  %v919_v22 = vmul.f32 %v917_v11, %v5281_v58  ;;  %v918_v23 = vmul.f32 %v917_v11, %v5283_v62 }
 0x12c   :  { %v5321_v41 = vpop.permute.xlu1 %460  ;;  %v5323_v46 = vpop.permute.xlu0 %458 }
 0x12d   :  { %8994 = vst [vmem:[#allocation27_spill] sm:$0xff] %v5321_v41  ;;  %8995 = vst [vmem:[#allocation28_spill] sm:$0xff] %v5323_v46  ;;  %v4787_v46 = vld [vmem:[#allocation3 + $0x8] sm:$0xff] }
 0x12e   :  { %878 = vrot.lane.b32.xlu1 %v867_v32, %s4928_s14  ;;  %876 = vrot.lane.b32.xlu0 %v866_v37, %s4928_s14 }
 0x130   :  { %v5329_v55 = vpop.permute.xlu1 %464  ;;  %v5331_v59 = vpop.permute.xlu0 %462 }
 0x131   :  { %8996 = vst [vmem:[#allocation29_spill] sm:$0xff] %v5329_v55  ;;  %8997 = vst [vmem:[#allocation30_spill] sm:$0xff] %v5331_v59  ;;  %v4786_v59 = vld [vmem:[#allocation3] sm:$0xff] }
 0x132   :  { %901 = vrot.lane.b32.xlu1 %v892_v49, %s4928_s14  ;;  %899 = vrot.lane.b32.xlu0 %v891_v54, %s4928_s14  ;;  %v920_v49 = vmul.f32 %v917_v11, %v5295_v0  ;;  %v944_v54 = vstv %s4574_s20  ;;  %s4599_s20 = sld [smem:[#allocation9 + $0x49]] }
 0x133   :  { %v948_v11 = vmul.f32 %v944_v54, %v5293_v2 }
 0x134   :  { %v5337_v12 = vpop.permute.xlu1 %487  ;;  %v5339_v13 = vpop.permute.xlu0 %485 }
 0x135   :  { %8998 = vst [vmem:[#allocation31_spill] sm:$0xff] %v5337_v12  ;;  %8999 = vst [vmem:[#allocation32_spill] sm:$0xff] %v5339_v13 }
 0x136   :  { %905 = vrot.lane.b32.xlu1 %v894_v63, %s4928_s14  ;;  %903 = vrot.lane.b32.xlu0 %v893_v3, %s4928_s14 }
 0x138   :  { %v5345_v32 = vpop.permute.xlu1 %491  ;;  %v5347_v37 = vpop.permute.xlu0 %489 }
 0x139   :  { %9000 = vst [vmem:[#allocation33_spill] sm:$0xff] %v5345_v32  ;;  %9001 = vst [vmem:[#allocation34_spill] sm:$0xff] %v5347_v37  ;;  %v946_v32 = vmul.f32 %v944_v54, %v5281_v58 }
 0x13a   :  { %928 = vrot.lane.b32.xlu1 %v919_v22, %s4929_s18  ;;  %926 = vrot.lane.b32.xlu0 %v918_v23, %s4929_s18  ;;  %v945_v22 = vmul.f32 %v944_v54, %v5283_v62 }
 0x13c   :  { %v5353_v63 = vpop.permute.xlu1 %515  ;;  %v5355_v3 = vpop.permute.xlu0 %513 }
 0x13d   :  { %9002 = vst [vmem:[#allocation35_spill] sm:$0xff] %v5353_v63  ;;  %9003 = vst [vmem:[#allocation36_spill] sm:$0xff] %v5355_v3  ;;  %v947_v3 = vmul.f32 %v944_v54, %v5295_v0  ;;  %v971_v63 = vstv %s4575_s21  ;;  %s4600_s21 = sld [smem:[#allocation9 + $0x14]] }
 0x13e   :  { %932 = vrot.lane.b32.xlu1 %v921_v40, %s4929_s18  ;;  %930 = vrot.lane.b32.xlu0 %v920_v49, %s4929_s18  ;;  %v975_v54 = vmul.f32 %v971_v63, %v5293_v2 }
 0x140   :  { %v5361_v37 = vpop.permute.xlu1 %519  ;;  %v5363_v23 = vpop.permute.xlu0 %517 }
 0x141   :  { %9004 = vst [vmem:[#allocation37_spill] sm:$0xff] %v5361_v37  ;;  %9005 = vst [vmem:[#allocation38_spill] sm:$0xff] %v5363_v23  ;;  %v973_v37 = vmul.f32 %v971_v63, %v5281_v58 }
 0x142   :  { %955 = vrot.lane.b32.xlu1 %v946_v32, %s4929_s18  ;;  %953 = vrot.lane.b32.xlu0 %v945_v22, %s4929_s18  ;;  %v972_v32 = vmul.f32 %v971_v63, %v5283_v62 }
 0x144   :  { %v5369_v40 = vpop.permute.xlu1 %542  ;;  %v5371_v49 = vpop.permute.xlu0 %540 }
 0x145   :  { %9006 = vst [vmem:[#allocation39_spill] sm:$0xff] %v5369_v40  ;;  %9007 = vst [vmem:[#allocation40_spill] sm:$0xff] %v5371_v49  ;;  %v974_v49 = vmul.f32 %v971_v63, %v5295_v0  ;;  %v998_v40 = vstv %s4576_s23  ;;  %s4601_s23 = sld [smem:[#allocation9 + $0x2f]] }
 0x146   :  { %959 = vrot.lane.b32.xlu1 %v948_v11, %s4929_s18  ;;  %957 = vrot.lane.b32.xlu0 %v947_v3, %s4929_s18  ;;  %v1002_v63 = vmul.f32 %v998_v40, %v5293_v2 }
 0x148   :  { %v5377_v23 = vpop.permute.xlu1 %546  ;;  %v5379_v22 = vpop.permute.xlu0 %544 }
 0x149   :  { %9008 = vst [vmem:[#allocation41_spill] sm:$0xff] %v5377_v23  ;;  %9009 = vst [vmem:[#allocation42_spill] sm:$0xff] %v5379_v22  ;;  %v1000_v23 = vmul.f32 %v998_v40, %v5281_v58 }
 0x14a   :  { %982 = vrot.lane.b32.xlu1 %v973_v37, %s4929_s18  ;;  %980 = vrot.lane.b32.xlu0 %v972_v32, %s4929_s18  ;;  %v999_v37 = vmul.f32 %v998_v40, %v5283_v62 }
 0x14c   :  { %v5385_v11 = vpop.permute.xlu1 %569  ;;  %v5387_v3 = vpop.permute.xlu0 %567 }
 0x14d   :  { %9010 = vst [vmem:[#allocation43_spill] sm:$0xff] %v5385_v11  ;;  %9011 = vst [vmem:[#allocation44_spill] sm:$0xff] %v5387_v3  ;;  %v1001_v3 = vmul.f32 %v998_v40, %v5295_v0  ;;  %v1025_v11 = vstv %s4577_s24  ;;  %s4602_s24 = sld [smem:[#allocation9 + $0x4a]] }
 0x14e   :  { %986 = vrot.lane.b32.xlu1 %v975_v54, %s4929_s18  ;;  %984 = vrot.lane.b32.xlu0 %v974_v49, %s4929_s18  ;;  %v1029_v40 = vmul.f32 %v1025_v11, %v5293_v2 }
 0x150   :  { %v5393_v22 = vpop.permute.xlu1 %573  ;;  %v5395_v32 = vpop.permute.xlu0 %571 }
 0x151   :  { %9012 = vst [vmem:[#allocation45_spill] sm:$0xff] %v5393_v22  ;;  %9013 = vst [vmem:[#allocation46_spill] sm:$0xff] %v5395_v32  ;;  %v1027_v22 = vmul.f32 %v1025_v11, %v5281_v58 }
 0x152   :  { %1009 = vrot.lane.b32.xlu1 %v1000_v23, %s4930_s22  ;;  %1007 = vrot.lane.b32.xlu0 %v999_v37, %s4930_s22  ;;  %v1026_v23 = vmul.f32 %v1025_v11, %v5283_v62 }
 0x154   :  { %v5401_v54 = vpop.permute.xlu1 %597  ;;  %v5403_v49 = vpop.permute.xlu0 %595 }
 0x155   :  { %9014 = vst [vmem:[#allocation47_spill] sm:$0xff] %v5401_v54  ;;  %9015 = vst [vmem:[#allocation48_spill] sm:$0xff] %v5403_v49  ;;  %v1028_v49 = vmul.f32 %v1025_v11, %v5295_v0  ;;  %v1052_v54 = vstv %s4578_s25  ;;  %s4603_s25 = sld [smem:[#allocation9 + $0x15]] }
 0x156   :  { %1013 = vrot.lane.b32.xlu1 %v1002_v63, %s4930_s22  ;;  %1011 = vrot.lane.b32.xlu0 %v1001_v3, %s4930_s22  ;;  %v1056_v11 = vmul.f32 %v1052_v54, %v5293_v2 }
 0x158   :  { %v5409_v32 = vpop.permute.xlu1 %601  ;;  %v5411_v37 = vpop.permute.xlu0 %599 }
 0x159   :  { %9016 = vst [vmem:[#allocation49_spill] sm:$0xff] %v5409_v32  ;;  %9017 = vst [vmem:[#allocation50_spill] sm:$0xff] %v5411_v37  ;;  %v1054_v32 = vmul.f32 %v1052_v54, %v5281_v58 }
 0x15a   :  { %1036 = vrot.lane.b32.xlu1 %v1027_v22, %s4930_s22  ;;  %1034 = vrot.lane.b32.xlu0 %v1026_v23, %s4930_s22  ;;  %v1053_v22 = vmul.f32 %v1052_v54, %v5283_v62 }
 0x15c   :  { %v5417_v63 = vpop.permute.xlu1 %624  ;;  %v5419_v3 = vpop.permute.xlu0 %622 }
 0x15d   :  { %9018 = vst [vmem:[#allocation51_spill] sm:$0xff] %v5417_v63  ;;  %9019 = vst [vmem:[#allocation52_spill] sm:$0xff] %v5419_v3  ;;  %v1055_v3 = vmul.f32 %v1052_v54, %v5295_v0  ;;  %v1079_v63 = vstv %s4579_s0  ;;  %s4604_s0 = sld [smem:[#allocation9 + $0x30]] }
 0x15e   :  { %1040 = vrot.lane.b32.xlu1 %v1029_v40, %s4930_s22  ;;  %1038 = vrot.lane.b32.xlu0 %v1028_v49, %s4930_s22  ;;  %v1083_v54 = vmul.f32 %v1079_v63, %v5293_v2 }
 0x160   :  { %v5425_v37 = vpop.permute.xlu1 %628  ;;  %v5427_v23 = vpop.permute.xlu0 %626 }
 0x161   :  { %9020 = vst [vmem:[#allocation53_spill] sm:$0xff] %v5425_v37  ;;  %9021 = vst [vmem:[#allocation54_spill] sm:$0xff] %v5427_v23  ;;  %v1081_v37 = vmul.f32 %v1079_v63, %v5281_v58 }
 0x162   :  { %1063 = vrot.lane.b32.xlu1 %v1054_v32, %s4930_s22  ;;  %1061 = vrot.lane.b32.xlu0 %v1053_v22, %s4930_s22  ;;  %v1080_v32 = vmul.f32 %v1079_v63, %v5283_v62 }
 0x164   :  { %v5433_v40 = vpop.permute.xlu1 %651  ;;  %v5435_v49 = vpop.permute.xlu0 %649 }
 0x165   :  { %9022 = vst [vmem:[#allocation55_spill] sm:$0xff] %v5433_v40  ;;  %9023 = vst [vmem:[#allocation56_spill] sm:$0xff] %v5435_v49  ;;  %v1082_v49 = vmul.f32 %v1079_v63, %v5295_v0  ;;  %v1106_v40 = vstv %s4580_s2  ;;  %s4605_s2 = sld [smem:[#allocation9 + $0x4b]] }
 0x166   :  { %1067 = vrot.lane.b32.xlu1 %v1056_v11, %s4930_s22  ;;  %1065 = vrot.lane.b32.xlu0 %v1055_v3, %s4930_s22  ;;  %v1110_v63 = vmul.f32 %v1106_v40, %v5293_v2 }
 0x168   :  { %v5441_v23 = vpop.permute.xlu1 %655  ;;  %v5443_v22 = vpop.permute.xlu0 %653 }
 0x169   :  { %9024 = vst [vmem:[#allocation57_spill] sm:$0xff] %v5441_v23  ;;  %9025 = vst [vmem:[#allocation58_spill] sm:$0xff] %v5443_v22  ;;  %v1108_v23 = vmul.f32 %v1106_v40, %v5281_v58 }
 0x16a   :  { %1090 = vrot.lane.b32.xlu1 %v1081_v37, %s4931_s26  ;;  %1088 = vrot.lane.b32.xlu0 %v1080_v32, %s4931_s26  ;;  %v1107_v37 = vmul.f32 %v1106_v40, %v5283_v62 }
 0x16c   :  { %v5449_v11 = vpop.permute.xlu1 %679  ;;  %v5451_v3 = vpop.permute.xlu0 %677 }
 0x16d   :  { %9026 = vst [vmem:[#allocation59_spill] sm:$0xff] %v5449_v11  ;;  %9027 = vst [vmem:[#allocation60_spill] sm:$0xff] %v5451_v3  ;;  %v1109_v3 = vmul.f32 %v1106_v40, %v5295_v0  ;;  %v1133_v11 = vstv %s4581_s27  ;;  %s4606_s27 = sld [smem:[#allocation9 + $0x16]] }
 0x16e   :  { %1094 = vrot.lane.b32.xlu1 %v1083_v54, %s4931_s26  ;;  %1092 = vrot.lane.b32.xlu0 %v1082_v49, %s4931_s26  ;;  %v1137_v40 = vmul.f32 %v1133_v11, %v5293_v2 }
 0x170   :  { %v5457_v22 = vpop.permute.xlu1 %683  ;;  %v5459_v32 = vpop.permute.xlu0 %681 }
 0x171   :  { %9028 = vst [vmem:[#allocation61_spill] sm:$0xff] %v5457_v22  ;;  %9029 = vst [vmem:[#allocation62_spill] sm:$0xff] %v5459_v32  ;;  %v1135_v22 = vmul.f32 %v1133_v11, %v5281_v58 }
 0x172   :  { %1117 = vrot.lane.b32.xlu1 %v1108_v23, %s4931_s26  ;;  %1115 = vrot.lane.b32.xlu0 %v1107_v37, %s4931_s26  ;;  %v1134_v23 = vmul.f32 %v1133_v11, %v5283_v62 }
 0x174   :  { %v5465_v54 = vpop.permute.xlu1 %706  ;;  %v5467_v49 = vpop.permute.xlu0 %704 }
 0x175   :  { %9030 = vst [vmem:[#allocation63_spill] sm:$0xff] %v5465_v54  ;;  %9031 = vst [vmem:[#allocation64_spill] sm:$0xff] %v5467_v49  ;;  %v1136_v49 = vmul.f32 %v1133_v11, %v5295_v0  ;;  %v1160_v54 = vstv %s4582_s29  ;;  %s4607_s29 = sld [smem:[#allocation9 + $0x31]] }
 0x176   :  { %1121 = vrot.lane.b32.xlu1 %v1110_v63, %s4931_s26  ;;  %1119 = vrot.lane.b32.xlu0 %v1109_v3, %s4931_s26  ;;  %v1164_v11 = vmul.f32 %v1160_v54, %v5293_v2 }
 0x178   :  { %v5473_v32 = vpop.permute.xlu1 %710  ;;  %v5475_v37 = vpop.permute.xlu0 %708 }
 0x179   :  { %9032 = vst [vmem:[#allocation65_spill] sm:$0xff] %v5473_v32  ;;  %9033 = vst [vmem:[#allocation66_spill] sm:$0xff] %v5475_v37  ;;  %v1162_v32 = vmul.f32 %v1160_v54, %v5281_v58 }
 0x17a   :  { %1144 = vrot.lane.b32.xlu1 %v1135_v22, %s4931_s26  ;;  %1142 = vrot.lane.b32.xlu0 %v1134_v23, %s4931_s26  ;;  %v1161_v22 = vmul.f32 %v1160_v54, %v5283_v62 }
 0x17c   :  { %v5481_v63 = vpop.permute.xlu1 %733  ;;  %v5483_v3 = vpop.permute.xlu0 %731 }
 0x17d   :  { %9034 = vst [vmem:[#allocation67_spill] sm:$0xff] %v5481_v63  ;;  %9035 = vst [vmem:[#allocation68_spill] sm:$0xff] %v5483_v3  ;;  %v1163_v3 = vmul.f32 %v1160_v54, %v5295_v0  ;;  %v1187_v63 = vstv %s4583_s30  ;;  %s4608_s30 = sld [smem:[#allocation9 + $0x4c]] }
 0x17e   :  { %1148 = vrot.lane.b32.xlu1 %v1137_v40, %s4931_s26  ;;  %1146 = vrot.lane.b32.xlu0 %v1136_v49, %s4931_s26  ;;  %v1191_v54 = vmul.f32 %v1187_v63, %v5293_v2 }
 0x180   :  { %v5489_v37 = vpop.permute.xlu1 %737  ;;  %v5491_v23 = vpop.permute.xlu0 %735 }
 0x181   :  { %9036 = vst [vmem:[#allocation69_spill] sm:$0xff] %v5489_v37  ;;  %9037 = vst [vmem:[#allocation70_spill] sm:$0xff] %v5491_v23  ;;  %v1189_v37 = vmul.f32 %v1187_v63, %v5281_v58 }
 0x182   :  { %1171 = vrot.lane.b32.xlu1 %v1162_v32, %s4932_s28  ;;  %1169 = vrot.lane.b32.xlu0 %v1161_v22, %s4932_s28  ;;  %v1188_v32 = vmul.f32 %v1187_v63, %v5283_v62 }
 0x184   :  { %v5497_v40 = vpop.permute.xlu1 %761  ;;  %v5499_v49 = vpop.permute.xlu0 %759 }
 0x185   :  { %9038 = vst [vmem:[#allocation71_spill] sm:$0xff] %v5497_v40  ;;  %9039 = vst [vmem:[#allocation72_spill] sm:$0xff] %v5499_v49  ;;  %v1190_v49 = vmul.f32 %v1187_v63, %v5295_v0  ;;  %v1214_v40 = vstv %s4584_s7  ;;  %s4609_s7 = sld [smem:[#allocation9 + $0x17]] }
 0x186   :  { %1175 = vrot.lane.b32.xlu1 %v1164_v11, %s4932_s28  ;;  %1173 = vrot.lane.b32.xlu0 %v1163_v3, %s4932_s28  ;;  %v1218_v63 = vmul.f32 %v1214_v40, %v5293_v2 }
 0x188   :  { %v5505_v23 = vpop.permute.xlu1 %765  ;;  %v5507_v22 = vpop.permute.xlu0 %763 }
 0x189   :  { %9040 = vst [vmem:[#allocation73_spill] sm:$0xff] %v5505_v23  ;;  %9041 = vst [vmem:[#allocation74_spill] sm:$0xff] %v5507_v22  ;;  %v1216_v23 = vmul.f32 %v1214_v40, %v5281_v58 }
 0x18a   :  { %1198 = vrot.lane.b32.xlu1 %v1189_v37, %s4932_s28  ;;  %1196 = vrot.lane.b32.xlu0 %v1188_v32, %s4932_s28  ;;  %v1215_v37 = vmul.f32 %v1214_v40, %v5283_v62 }
 0x18c   :  { %v5513_v11 = vpop.permute.xlu1 %788  ;;  %v5515_v3 = vpop.permute.xlu0 %786 }
 0x18d   :  { %9042 = vst [vmem:[#allocation75_spill] sm:$0xff] %v5513_v11  ;;  %9043 = vst [vmem:[#allocation76_spill] sm:$0xff] %v5515_v3  ;;  %v1217_v3 = vmul.f32 %v1214_v40, %v5295_v0  ;;  %v1241_v11 = vstv %s4585_s8  ;;  %s4610_s8 = sld [smem:[#allocation9 + $0x32]] }
 0x18e   :  { %1202 = vrot.lane.b32.xlu1 %v1191_v54, %s4932_s28  ;;  %1200 = vrot.lane.b32.xlu0 %v1190_v49, %s4932_s28  ;;  %v1245_v40 = vmul.f32 %v1241_v11, %v5293_v2 }
 0x190   :  { %v5521_v22 = vpop.permute.xlu1 %792  ;;  %v5523_v32 = vpop.permute.xlu0 %790 }
 0x191   :  { %9044 = vst [vmem:[#allocation77_spill] sm:$0xff] %v5521_v22  ;;  %9045 = vst [vmem:[#allocation78_spill] sm:$0xff] %v5523_v32  ;;  %v1243_v22 = vmul.f32 %v1241_v11, %v5281_v58 }
 0x192   :  { %1225 = vrot.lane.b32.xlu1 %v1216_v23, %s4932_s28  ;;  %1223 = vrot.lane.b32.xlu0 %v1215_v37, %s4932_s28  ;;  %v1242_v23 = vmul.f32 %v1241_v11, %v5283_v62 }
 0x194   :  { %v5529_v54 = vpop.permute.xlu1 %847  ;;  %v5531_v49 = vpop.permute.xlu0 %845 }
 0x195   :  { %9046 = vst [vmem:[#allocation79_spill] sm:$0xff] %v5529_v54  ;;  %9047 = vst [vmem:[#allocation80_spill] sm:$0xff] %v5531_v49  ;;  %v1244_v49 = vmul.f32 %v1241_v11, %v5295_v0  ;;  %v1268_v54 = vstv %s4586_s9  ;;  %s4611_s9 = sld [smem:[#allocation9 + $0x4d]] }
 0x196   :  { %1229 = vrot.lane.b32.xlu1 %v1218_v63, %s4932_s28  ;;  %1227 = vrot.lane.b32.xlu0 %v1217_v3, %s4932_s28  ;;  %v1272_v11 = vmul.f32 %v1268_v54, %v5293_v2 }
 0x198   :  { %v5537_v32 = vpop.permute.xlu1 %851  ;;  %v5539_v37 = vpop.permute.xlu0 %849 }
 0x199   :  { %9048 = vst [vmem:[#allocation81_spill] sm:$0xff] %v5537_v32  ;;  %9049 = vst [vmem:[#allocation82_spill] sm:$0xff] %v5539_v37  ;;  %v1270_v32 = vmul.f32 %v1268_v54, %v5281_v58 }
 0x19a   :  { %1252 = vrot.lane.b32.xlu1 %v1243_v22, %s4933_s3  ;;  %1250 = vrot.lane.b32.xlu0 %v1242_v23, %s4933_s3  ;;  %v1269_v22 = vmul.f32 %v1268_v54, %v5283_v62 }
 0x19c   :  { %v5545_v63 = vpop.permute.xlu1 %874  ;;  %v5547_v3 = vpop.permute.xlu0 %872 }
 0x19d   :  { %9050 = vst [vmem:[#allocation83_spill] sm:$0xff] %v5545_v63  ;;  %9051 = vst [vmem:[#allocation84_spill] sm:$0xff] %v5547_v3  ;;  %v1271_v3 = vmul.f32 %v1268_v54, %v5295_v0  ;;  %v1295_v63 = vstv %s4587_s10  ;;  %s4612_s10 = sld [smem:[#allocation9 + $0x18]] }
 0x19e   :  { %1256 = vrot.lane.b32.xlu1 %v1245_v40, %s4933_s3  ;;  %1254 = vrot.lane.b32.xlu0 %v1244_v49, %s4933_s3  ;;  %v1299_v54 = vmul.f32 %v1295_v63, %v5293_v2 }
 0x1a0   :  { %v5553_v37 = vpop.permute.xlu1 %878  ;;  %v5555_v23 = vpop.permute.xlu0 %876 }
 0x1a1   :  { %9052 = vst [vmem:[#allocation85_spill] sm:$0xff] %v5553_v37  ;;  %9053 = vst [vmem:[#allocation86_spill] sm:$0xff] %v5555_v23  ;;  %v1297_v37 = vmul.f32 %v1295_v63, %v5281_v58 }
 0x1a2   :  { %1279 = vrot.lane.b32.xlu1 %v1270_v32, %s4933_s3  ;;  %1277 = vrot.lane.b32.xlu0 %v1269_v22, %s4933_s3  ;;  %v1296_v32 = vmul.f32 %v1295_v63, %v5283_v62 }
 0x1a4   :  { %v5561_v40 = vpop.permute.xlu1 %901  ;;  %v5563_v49 = vpop.permute.xlu0 %899 }
 0x1a5   :  { %9054 = vst [vmem:[#allocation87_spill] sm:$0xff] %v5561_v40  ;;  %9055 = vst [vmem:[#allocation88_spill] sm:$0xff] %v5563_v49  ;;  %v1298_v49 = vmul.f32 %v1295_v63, %v5295_v0  ;;  %v1322_v40 = vstv %s4588_s1  ;;  %s4613_s1 = sld [smem:[#allocation9 + $0x33]] }
 0x1a6   :  { %1283 = vrot.lane.b32.xlu1 %v1272_v11, %s4933_s3  ;;  %1281 = vrot.lane.b32.xlu0 %v1271_v3, %s4933_s3  ;;  %v1326_v63 = vmul.f32 %v1322_v40, %v5293_v2 }
 0x1a8   :  { %v5569_v23 = vpop.permute.xlu1 %905  ;;  %v5571_v22 = vpop.permute.xlu0 %903 }
 0x1a9   :  { %9056 = vst [vmem:[#allocation89_spill] sm:$0xff] %v5569_v23  ;;  %9057 = vst [vmem:[#allocation90_spill] sm:$0xff] %v5571_v22  ;;  %v1324_v23 = vmul.f32 %v1322_v40, %v5281_v58 }
 0x1aa   :  { %1306 = vrot.lane.b32.xlu1 %v1297_v37, %s4933_s3  ;;  %1304 = vrot.lane.b32.xlu0 %v1296_v32, %s4933_s3  ;;  %v1323_v37 = vmul.f32 %v1322_v40, %v5283_v62 }
 0x1ac   :  { %v5577_v11 = vpop.permute.xlu1 %928  ;;  %v5579_v3 = vpop.permute.xlu0 %926 }
 0x1ad   :  { %9058 = vst [vmem:[#allocation91_spill] sm:$0xff] %v5577_v11  ;;  %9059 = vst [vmem:[#allocation92_spill] sm:$0xff] %v5579_v3  ;;  %v1325_v3 = vmul.f32 %v1322_v40, %v5295_v0  ;;  %v1349_v11 = vstv %s4589_s12  ;;  %s4614_s12 = sld [smem:[#allocation9 + $0x4e]] }
 0x1ae   :  { %1310 = vrot.lane.b32.xlu1 %v1299_v54, %s4933_s3  ;;  %1308 = vrot.lane.b32.xlu0 %v1298_v49, %s4933_s3  ;;  %v1353_v40 = vmul.f32 %v1349_v11, %v5293_v2 }
 0x1b0   :  { %v5585_v22 = vpop.permute.xlu1 %932  ;;  %v5587_v32 = vpop.permute.xlu0 %930 }
 0x1b1   :  { %9060 = vst [vmem:[#allocation93_spill] sm:$0xff] %v5585_v22  ;;  %9061 = vst [vmem:[#allocation94_spill] sm:$0xff] %v5587_v32  ;;  %v1351_v22 = vmul.f32 %v1349_v11, %v5281_v58 }
 0x1b2   :  { %1333 = vrot.lane.b32.xlu1 %v1324_v23, %s4934_s11  ;;  %1331 = vrot.lane.b32.xlu0 %v1323_v37, %s4934_s11  ;;  %v1350_v23 = vmul.f32 %v1349_v11, %v5283_v62 }
 0x1b4   :  { %v5593_v54 = vpop.permute.xlu1 %955  ;;  %v5595_v49 = vpop.permute.xlu0 %953 }
 0x1b5   :  { %9062 = vst [vmem:[#allocation95_spill] sm:$0xff] %v5593_v54  ;;  %9063 = vst [vmem:[#allocation96_spill] sm:$0xff] %v5595_v49  ;;  %v1352_v49 = vmul.f32 %v1349_v11, %v5295_v0  ;;  %v1376_v54 = vstv %s4590_s4  ;;  %s4615_s4 = sld [smem:[#allocation9 + $0x19]] }
 0x1b6   :  { %1337 = vrot.lane.b32.xlu1 %v1326_v63, %s4934_s11  ;;  %1335 = vrot.lane.b32.xlu0 %v1325_v3, %s4934_s11  ;;  %v1380_v11 = vmul.f32 %v1376_v54, %v5293_v2 }
 0x1b8   :  { %v5601_v32 = vpop.permute.xlu1 %959  ;;  %v5603_v37 = vpop.permute.xlu0 %957 }
 0x1b9   :  { %9064 = vst [vmem:[#allocation97_spill] sm:$0xff] %v5601_v32  ;;  %9065 = vst [vmem:[#allocation98_spill] sm:$0xff] %v5603_v37  ;;  %v1378_v32 = vmul.f32 %v1376_v54, %v5281_v58 }
 0x1ba   :  { %1360 = vrot.lane.b32.xlu1 %v1351_v22, %s4934_s11  ;;  %1358 = vrot.lane.b32.xlu0 %v1350_v23, %s4934_s11  ;;  %v1377_v22 = vmul.f32 %v1376_v54, %v5283_v62 }
 0x1bc   :  { %v5609_v63 = vpop.permute.xlu1 %982  ;;  %v5611_v3 = vpop.permute.xlu0 %980 }
 0x1bd   :  { %9066 = vst [vmem:[#allocation99_spill] sm:$0xff] %v5609_v63  ;;  %9067 = vst [vmem:[#allocation100_spill] sm:$0xff] %v5611_v3  ;;  %v1379_v3 = vmul.f32 %v1376_v54, %v5295_v0  ;;  %v1403_v63 = vstv %s4591_s13  ;;  %s4616_s13 = sld [smem:[#allocation9 + $0x34]] }
 0x1be   :  { %1364 = vrot.lane.b32.xlu1 %v1353_v40, %s4934_s11  ;;  %1362 = vrot.lane.b32.xlu0 %v1352_v49, %s4934_s11  ;;  %v1407_v54 = vmul.f32 %v1403_v63, %v5293_v2 }
 0x1c0   :  { %v5617_v37 = vpop.permute.xlu1 %986  ;;  %v5619_v23 = vpop.permute.xlu0 %984 }
 0x1c1   :  { %9068 = vst [vmem:[#allocation101_spill] sm:$0xff] %v5617_v37  ;;  %9069 = vst [vmem:[#allocation102_spill] sm:$0xff] %v5619_v23  ;;  %v1405_v37 = vmul.f32 %v1403_v63, %v5281_v58 }
 0x1c2   :  { %1387 = vrot.lane.b32.xlu1 %v1378_v32, %s4934_s11  ;;  %1385 = vrot.lane.b32.xlu0 %v1377_v22, %s4934_s11  ;;  %v1404_v32 = vmul.f32 %v1403_v63, %v5283_v62 }
 0x1c4   :  { %v5625_v40 = vpop.permute.xlu1 %1009  ;;  %v5627_v49 = vpop.permute.xlu0 %1007 }
 0x1c5   :  { %9070 = vst [vmem:[#allocation103_spill] sm:$0xff] %v5625_v40  ;;  %9071 = vst [vmem:[#allocation104_spill] sm:$0xff] %v5627_v49  ;;  %v1406_v49 = vmul.f32 %v1403_v63, %v5295_v0  ;;  %v1430_v40 = vstv %s4592_s15  ;;  %s4617_s15 = sld [smem:[#allocation9 + $0x4f]] }
 0x1c6   :  { %1391 = vrot.lane.b32.xlu1 %v1380_v11, %s4934_s11  ;;  %1389 = vrot.lane.b32.xlu0 %v1379_v3, %s4934_s11  ;;  %v1434_v63 = vmul.f32 %v1430_v40, %v5293_v2 }
 0x1c8   :  { %v5633_v23 = vpop.permute.xlu1 %1013  ;;  %v5635_v22 = vpop.permute.xlu0 %1011 }
 0x1c9   :  { %9072 = vst [vmem:[#allocation105_spill] sm:$0xff] %v5633_v23  ;;  %9073 = vst [vmem:[#allocation106_spill] sm:$0xff] %v5635_v22  ;;  %v1432_v23 = vmul.f32 %v1430_v40, %v5281_v58 }
 0x1ca   :  { %1414 = vrot.lane.b32.xlu1 %v1405_v37, %s4935_s5  ;;  %1412 = vrot.lane.b32.xlu0 %v1404_v32, %s4935_s5  ;;  %v1431_v37 = vmul.f32 %v1430_v40, %v5283_v62 }
 0x1cc   :  { %v5641_v11 = vpop.permute.xlu1 %1036  ;;  %v5643_v3 = vpop.permute.xlu0 %1034 }
 0x1cd   :  { %9074 = vst [vmem:[#allocation107_spill] sm:$0xff] %v5641_v11  ;;  %9075 = vst [vmem:[#allocation108_spill] sm:$0xff] %v5643_v3  ;;  %v1433_v3 = vmul.f32 %v1430_v40, %v5295_v0  ;;  %v1457_v11 = vstv %s4593_s16  ;;  %s4618_s16 = sld [smem:[#allocation9 + $0x1a]] }
 0x1ce   :  { %1418 = vrot.lane.b32.xlu1 %v1407_v54, %s4935_s5  ;;  %1416 = vrot.lane.b32.xlu0 %v1406_v49, %s4935_s5  ;;  %v1461_v40 = vmul.f32 %v1457_v11, %v5293_v2 }
 0x1d0   :  { %v5649_v22 = vpop.permute.xlu1 %1040  ;;  %v5651_v32 = vpop.permute.xlu0 %1038 }
 0x1d1   :  { %9076 = vst [vmem:[#allocation109_spill] sm:$0xff] %v5649_v22  ;;  %9077 = vst [vmem:[#allocation110_spill] sm:$0xff] %v5651_v32  ;;  %v1459_v22 = vmul.f32 %v1457_v11, %v5281_v58 }
 0x1d2   :  { %1441 = vrot.lane.b32.xlu1 %v1432_v23, %s4935_s5  ;;  %1439 = vrot.lane.b32.xlu0 %v1431_v37, %s4935_s5  ;;  %v1458_v23 = vmul.f32 %v1457_v11, %v5283_v62 }
 0x1d4   :  { %v5657_v54 = vpop.permute.xlu1 %1063  ;;  %v5659_v49 = vpop.permute.xlu0 %1061 }
 0x1d5   :  { %9078 = vst [vmem:[#allocation111_spill] sm:$0xff] %v5657_v54  ;;  %9079 = vst [vmem:[#allocation112_spill] sm:$0xff] %v5659_v49  ;;  %v1460_v49 = vmul.f32 %v1457_v11, %v5295_v0  ;;  %v5673_v54 = vld [vmem:[#allocation3 + $0x48] sm:$0xff]  ;;  %v5687_v0 = vld [vmem:[#allocation3 + $0x50] sm:$0xff] }
 0x1d6   :  { %1445 = vrot.lane.b32.xlu1 %v1434_v63, %s4935_s5  ;;  %1443 = vrot.lane.b32.xlu0 %v1433_v3, %s4935_s5  ;;  %v1516_v63 = vstv %s4597_s17  ;;  %v5675_v3 = vld [vmem:[#allocation3 + $0x40] sm:$0xff]  ;;  %s119_s17 = sld [smem:[#allocation9]] }
 0x1d7   :  { %v1517_v2 = vmul.f32 %v1516_v63, %v5675_v3 }
 0x1d8   :  { %v5665_v32 = vpop.permute.xlu1 %1067  ;;  %v5667_v37 = vpop.permute.xlu0 %1065 }
 0x1d9   :  { %9080 = vst [vmem:[#allocation113_spill] sm:$0xff] %v5665_v32  ;;  %9081 = vst [vmem:[#allocation114_spill] sm:$0xff] %v5667_v37 }
 0x1da   :  { %1468 = vrot.lane.b32.xlu1 %v1459_v22, %s4935_s5  ;;  %1466 = vrot.lane.b32.xlu0 %v1458_v23, %s4935_s5  ;;  %v1518_v22 = vmul.f32 %v1516_v63, %v5673_v54  ;;  %v5685_v23 = vld [vmem:[#allocation3 + $0x58] sm:$0xff] }
 0x1dc   :  { %v5677_v58 = vpop.permute.xlu1 %1090  ;;  %v5679_v62 = vpop.permute.xlu0 %1088 }
 0x1dd   :  { %9082 = vst [vmem:[#allocation115_spill] sm:$0xff] %v5677_v58  ;;  %9083 = vst [vmem:[#allocation116_spill] sm:$0xff] %v5679_v62  ;;  %v1543_v62 = vstv %s4598_s19  ;;  %s4619_s19 = sld [smem:[#allocation9 + $0x35]] }
 0x1de   :  { %1472 = vrot.lane.b32.xlu1 %v1461_v40, %s4935_s5  ;;  %1470 = vrot.lane.b32.xlu0 %v1460_v49, %s4935_s5  ;;  %v1520_v40 = vmul.f32 %v1516_v63, %v5685_v23  ;;  %v1519_v49 = vmul.f32 %v1516_v63, %v5687_v0  ;;  %v1547_v63 = vmul.f32 %v1543_v62, %v5685_v23 }
 0x1e0   :  { %v5689_v11 = vpop.permute.xlu1 %1094  ;;  %v5691_v32 = vpop.permute.xlu0 %1092 }
 0x1e1   :  { %9084 = vst [vmem:[#allocation117_spill] sm:$0xff] %v5689_v11  ;;  %9085 = vst [vmem:[#allocation118_spill] sm:$0xff] %v5691_v32  ;;  %v1545_v11 = vmul.f32 %v1543_v62, %v5673_v54 }
 0x1e2   :  { %1527 = vrot.lane.b32.xlu1 %v1518_v22, %s4928_s14  ;;  %1525 = vrot.lane.b32.xlu0 %v1517_v2, %s4928_s14  ;;  %v1544_v22 = vmul.f32 %v1543_v62, %v5675_v3 }
 0x1e4   :  { %v5697_v58 = vpop.permute.xlu1 %1117  ;;  %v5699_v37 = vpop.permute.xlu0 %1115 }
 0x1e5   :  { %9086 = vst [vmem:[#allocation119_spill] sm:$0xff] %v5697_v58  ;;  %9087 = vst [vmem:[#allocation120_spill] sm:$0xff] %v5699_v37  ;;  %v1546_v37 = vmul.f32 %v1543_v62, %v5687_v0  ;;  %v1570_v58 = vstv %s4599_s20  ;;  %s4541_s20 = sld [smem:[#allocation9 + $0x1b]] }
 0x1e6   :  { %1531 = vrot.lane.b32.xlu1 %v1520_v40, %s4928_s14  ;;  %1529 = vrot.lane.b32.xlu0 %v1519_v49, %s4928_s14  ;;  %v1574_v62 = vmul.f32 %v1570_v58, %v5685_v23 }
 0x1e8   :  { %v5705_v32 = vpop.permute.xlu1 %1121  ;;  %v5707_v2 = vpop.permute.xlu0 %1119 }
 0x1e9   :  { %9088 = vst [vmem:[#allocation121_spill] sm:$0xff] %v5705_v32  ;;  %9089 = vst [vmem:[#allocation122_spill] sm:$0xff] %v5707_v2  ;;  %v1572_v32 = vmul.f32 %v1570_v58, %v5673_v54 }
 0x1ea   :  { %1554 = vrot.lane.b32.xlu1 %v1545_v11, %s4928_s14  ;;  %1552 = vrot.lane.b32.xlu0 %v1544_v22, %s4928_s14  ;;  %v1571_v11 = vmul.f32 %v1570_v58, %v5675_v3 }
 0x1ec   :  { %v5713_v40 = vpop.permute.xlu1 %1144  ;;  %v5715_v49 = vpop.permute.xlu0 %1142 }
 0x1ed   :  { %9090 = vst [vmem:[#allocation123_spill] sm:$0xff] %v5713_v40  ;;  %9091 = vst [vmem:[#allocation124_spill] sm:$0xff] %v5715_v49  ;;  %v1573_v49 = vmul.f32 %v1570_v58, %v5687_v0  ;;  %v1597_v40 = vstv %s4600_s21  ;;  %s4542_s21 = sld [smem:[#allocation9 + $0x36]] }
 0x1ee   :  { %1558 = vrot.lane.b32.xlu1 %v1547_v63, %s4928_s14  ;;  %1556 = vrot.lane.b32.xlu0 %v1546_v37, %s4928_s14  ;;  %v1601_v58 = vmul.f32 %v1597_v40, %v5685_v23 }
 0x1f0   :  { %v5721_v2 = vpop.permute.xlu1 %1148  ;;  %v5723_v22 = vpop.permute.xlu0 %1146 }
 0x1f1   :  { %9092 = vst [vmem:[#allocation125_spill] sm:$0xff] %v5721_v2  ;;  %9093 = vst [vmem:[#allocation126_spill] sm:$0xff] %v5723_v22  ;;  %v1599_v2 = vmul.f32 %v1597_v40, %v5673_v54 }
 0x1f2   :  { %1581 = vrot.lane.b32.xlu1 %v1572_v32, %s4928_s14  ;;  %1579 = vrot.lane.b32.xlu0 %v1571_v11, %s4928_s14  ;;  %v1598_v32 = vmul.f32 %v1597_v40, %v5675_v3 }
 0x1f3   :  { %v136_v13 = vstv %s4542_s21  ;;  %s4636_s21 = sld [smem:[#allocation12 + $0x3a]] }
 0x1f4   :  { %v5729_v63 = vpop.permute.xlu1 %1171  ;;  %v5731_v37 = vpop.permute.xlu0 %1169  ;;  %v137_v17 = vmul.f32 %v4786_v59, %v136_v13 }
 0x1f5   :  { %9094 = vst [vmem:[#allocation127_spill] sm:$0xff] %v5729_v63  ;;  %9095 = vst [vmem:[#allocation128_spill] sm:$0xff] %v5731_v37  ;;  %v1600_v37 = vmul.f32 %v1597_v40, %v5687_v0  ;;  %v1624_v63 = vstv %s4601_s23  ;;  %s6033_s23 = sld [smem:[#allocation9 + $0x50]] }
 0x1f6   :  { %1585 = vrot.lane.b32.xlu1 %v1574_v62, %s4928_s14  ;;  %1583 = vrot.lane.b32.xlu0 %v1573_v49, %s4928_s14  ;;  %v1628_v40 = vmul.f32 %v1624_v63, %v5685_v23 }
 0x1f8   :  { %v5737_v22 = vpop.permute.xlu1 %1175  ;;  %v5739_v11 = vpop.permute.xlu0 %1173 }
 0x1f9   :  { %9096 = vst [vmem:[#allocation129_spill] sm:$0xff] %v5737_v22  ;;  %9097 = vst [vmem:[#allocation130_spill] sm:$0xff] %v5739_v11  ;;  %v1626_v22 = vmul.f32 %v1624_v63, %v5673_v54 }
 0x1fa   :  { %1608 = vrot.lane.b32.xlu1 %v1599_v2, %s4929_s18  ;;  %1606 = vrot.lane.b32.xlu0 %v1598_v32, %s4929_s18  ;;  %v1625_v2 = vmul.f32 %v1624_v63, %v5675_v3 }
 0x1fc   :  { %v5745_v62 = vpop.permute.xlu1 %1198  ;;  %v5747_v49 = vpop.permute.xlu0 %1196 }
 0x1fd   :  { %9098 = vst [vmem:[#allocation131_spill] sm:$0xff] %v5745_v62  ;;  %9099 = vst [vmem:[#allocation132_spill] sm:$0xff] %v5747_v49  ;;  %v1627_v49 = vmul.f32 %v1624_v63, %v5687_v0  ;;  %v1651_v62 = vstv %s4602_s24  ;;  %s6062_s24 = sld [smem:[#allocation9 + $0x9]] }
 0x1fe   :  { %1612 = vrot.lane.b32.xlu1 %v1601_v58, %s4929_s18  ;;  %1610 = vrot.lane.b32.xlu0 %v1600_v37, %s4929_s18  ;;  %v1655_v63 = vmul.f32 %v1651_v62, %v5685_v23 }
 0x200   :  { %v5753_v11 = vpop.permute.xlu1 %1202  ;;  %v5755_v32 = vpop.permute.xlu0 %1200 }
 0x201   :  { %9100 = vst [vmem:[#allocation133_spill] sm:$0xff] %v5753_v11  ;;  %9101 = vst [vmem:[#allocation134_spill] sm:$0xff] %v5755_v32  ;;  %v1653_v11 = vmul.f32 %v1651_v62, %v5673_v54 }
 0x202   :  { %1635 = vrot.lane.b32.xlu1 %v1626_v22, %s4929_s18  ;;  %1633 = vrot.lane.b32.xlu0 %v1625_v2, %s4929_s18  ;;  %v1652_v22 = vmul.f32 %v1651_v62, %v5675_v3 }
 0x204   :  { %v5761_v58 = vpop.permute.xlu1 %1225  ;;  %v5763_v37 = vpop.permute.xlu0 %1223 }
 0x205   :  { %9102 = vst [vmem:[#allocation135_spill] sm:$0xff] %v5761_v58  ;;  %9103 = vst [vmem:[#allocation136_spill] sm:$0xff] %v5763_v37  ;;  %v1654_v37 = vmul.f32 %v1651_v62, %v5687_v0  ;;  %v1678_v58 = vstv %s4603_s25  ;;  %s6072_s25 = sld [smem:[#allocation12 + $0x1]] }
 0x206   :  { %1639 = vrot.lane.b32.xlu1 %v1628_v40, %s4929_s18  ;;  %1637 = vrot.lane.b32.xlu0 %v1627_v49, %s4929_s18  ;;  %v1682_v62 = vmul.f32 %v1678_v58, %v5685_v23 }
 0x208   :  { %v5769_v32 = vpop.permute.xlu1 %1229  ;;  %v5771_v2 = vpop.permute.xlu0 %1227 }
 0x209   :  { %9104 = vst [vmem:[#allocation137_spill] sm:$0xff] %v5769_v32  ;;  %9105 = vst [vmem:[#allocation138_spill] sm:$0xff] %v5771_v2  ;;  %v1680_v32 = vmul.f32 %v1678_v58, %v5673_v54 }
 0x20a   :  { %1662 = vrot.lane.b32.xlu1 %v1653_v11, %s4929_s18  ;;  %1660 = vrot.lane.b32.xlu0 %v1652_v22, %s4929_s18  ;;  %v1679_v11 = vmul.f32 %v1678_v58, %v5675_v3 }
 0x20c   :  { %v5777_v40 = vpop.permute.xlu1 %1252  ;;  %v5779_v49 = vpop.permute.xlu0 %1250 }
 0x20d   :  { %9106 = vst [vmem:[#allocation139_spill] sm:$0xff] %v5777_v40  ;;  %9107 = vst [vmem:[#allocation140_spill] sm:$0xff] %v5779_v49  ;;  %v1681_v49 = vmul.f32 %v1678_v58, %v5687_v0  ;;  %v1705_v40 = vstv %s4604_s0  ;;  %s6086_s0 = sld [smem:[#allocation9 + $0x24]] }
 0x20e   :  { %1666 = vrot.lane.b32.xlu1 %v1655_v63, %s4929_s18  ;;  %1664 = vrot.lane.b32.xlu0 %v1654_v37, %s4929_s18  ;;  %v1709_v58 = vmul.f32 %v1705_v40, %v5685_v23 }
 0x210   :  { %v5785_v2 = vpop.permute.xlu1 %1256  ;;  %v5787_v22 = vpop.permute.xlu0 %1254 }
 0x211   :  { %9108 = vst [vmem:[#allocation141_spill] sm:$0xff] %v5785_v2  ;;  %9109 = vst [vmem:[#allocation142_spill] sm:$0xff] %v5787_v22  ;;  %v1707_v2 = vmul.f32 %v1705_v40, %v5673_v54 }
 0x212   :  { %1689 = vrot.lane.b32.xlu1 %v1680_v32, %s4930_s22  ;;  %1687 = vrot.lane.b32.xlu0 %v1679_v11, %s4930_s22  ;;  %v1706_v32 = vmul.f32 %v1705_v40, %v5675_v3 }
 0x214   :  { %v5793_v63 = vpop.permute.xlu1 %1279  ;;  %v5795_v37 = vpop.permute.xlu0 %1277 }
 0x215   :  { %9110 = vst [vmem:[#allocation143_spill] sm:$0xff] %v5793_v63  ;;  %9111 = vst [vmem:[#allocation144_spill] sm:$0xff] %v5795_v37  ;;  %v1708_v37 = vmul.f32 %v1705_v40, %v5687_v0  ;;  %v1732_v63 = vstv %s4605_s2  ;;  %s6122_s2 = sld [smem:[#allocation9 + $0x3f]] }
 0x216   :  { %1693 = vrot.lane.b32.xlu1 %v1682_v62, %s4930_s22  ;;  %1691 = vrot.lane.b32.xlu0 %v1681_v49, %s4930_s22  ;;  %v1736_v40 = vmul.f32 %v1732_v63, %v5685_v23 }
 0x218   :  { %v5801_v22 = vpop.permute.xlu1 %1283  ;;  %v5803_v11 = vpop.permute.xlu0 %1281 }
 0x219   :  { %9112 = vst [vmem:[#allocation145_spill] sm:$0xff] %v5801_v22  ;;  %9113 = vst [vmem:[#allocation146_spill] sm:$0xff] %v5803_v11  ;;  %v1734_v22 = vmul.f32 %v1732_v63, %v5673_v54 }
 0x21a   :  { %1716 = vrot.lane.b32.xlu1 %v1707_v2, %s4930_s22  ;;  %1714 = vrot.lane.b32.xlu0 %v1706_v32, %s4930_s22  ;;  %v1733_v2 = vmul.f32 %v1732_v63, %v5675_v3 }
 0x21c   :  { %v5809_v62 = vpop.permute.xlu1 %1306  ;;  %v5811_v49 = vpop.permute.xlu0 %1304 }
 0x21d   :  { %9114 = vst [vmem:[#allocation147_spill] sm:$0xff] %v5809_v62  ;;  %9115 = vst [vmem:[#allocation148_spill] sm:$0xff] %v5811_v49  ;;  %v1735_v49 = vmul.f32 %v1732_v63, %v5687_v0  ;;  %v1759_v62 = vstv %s4606_s27  ;;  %s6383_s27 = sld [smem:[#allocation9 + $0x12]] }
 0x21e   :  { %1720 = vrot.lane.b32.xlu1 %v1709_v58, %s4930_s22  ;;  %1718 = vrot.lane.b32.xlu0 %v1708_v37, %s4930_s22  ;;  %v1763_v63 = vmul.f32 %v1759_v62, %v5685_v23 }
 0x220   :  { %v5817_v11 = vpop.permute.xlu1 %1310  ;;  %v5819_v32 = vpop.permute.xlu0 %1308 }
 0x221   :  { %9116 = vst [vmem:[#allocation149_spill] sm:$0xff] %v5817_v11  ;;  %9117 = vst [vmem:[#allocation150_spill] sm:$0xff] %v5819_v32  ;;  %v1761_v11 = vmul.f32 %v1759_v62, %v5673_v54 }
 0x222   :  { %1743 = vrot.lane.b32.xlu1 %v1734_v22, %s4930_s22  ;;  %1741 = vrot.lane.b32.xlu0 %v1733_v2, %s4930_s22  ;;  %v1760_v22 = vmul.f32 %v1759_v62, %v5675_v3 }
 0x224   :  { %v5825_v58 = vpop.permute.xlu1 %1333  ;;  %v5827_v37 = vpop.permute.xlu0 %1331 }
 0x225   :  { %9118 = vst [vmem:[#allocation151_spill] sm:$0xff] %v5825_v58  ;;  %9119 = vst [vmem:[#allocation152_spill] sm:$0xff] %v5827_v37  ;;  %v1762_v37 = vmul.f32 %v1759_v62, %v5687_v0  ;;  %v1786_v58 = vstv %s4607_s29  ;;  %s6401_s29 = sld [smem:[#allocation9 + $0x2d]] }
 0x226   :  { %1747 = vrot.lane.b32.xlu1 %v1736_v40, %s4930_s22  ;;  %1745 = vrot.lane.b32.xlu0 %v1735_v49, %s4930_s22  ;;  %v1790_v62 = vmul.f32 %v1786_v58, %v5685_v23 }
 0x228   :  { %v5833_v32 = vpop.permute.xlu1 %1337  ;;  %v5835_v2 = vpop.permute.xlu0 %1335 }
 0x229   :  { %9120 = vst [vmem:[#allocation153_spill] sm:$0xff] %v5833_v32  ;;  %9121 = vst [vmem:[#allocation154_spill] sm:$0xff] %v5835_v2  ;;  %v1788_v32 = vmul.f32 %v1786_v58, %v5673_v54 }
 0x22a   :  { %1770 = vrot.lane.b32.xlu1 %v1761_v11, %s4931_s26  ;;  %1768 = vrot.lane.b32.xlu0 %v1760_v22, %s4931_s26  ;;  %v1787_v11 = vmul.f32 %v1786_v58, %v5675_v3 }
 0x22c   :  { %v5841_v40 = vpop.permute.xlu1 %1360  ;;  %v5843_v49 = vpop.permute.xlu0 %1358 }
 0x22d   :  { %9122 = vst [vmem:[#allocation155_spill] sm:$0xff] %v5841_v40  ;;  %9123 = vst [vmem:[#allocation156_spill] sm:$0xff] %v5843_v49  ;;  %v1789_v49 = vmul.f32 %v1786_v58, %v5687_v0  ;;  %v1813_v40 = vstv %s4608_s30  ;;  %s6431_s30 = sld [smem:[#allocation9 + $0x48]] }
 0x22e   :  { %1774 = vrot.lane.b32.xlu1 %v1763_v63, %s4931_s26  ;;  %1772 = vrot.lane.b32.xlu0 %v1762_v37, %s4931_s26  ;;  %v1817_v58 = vmul.f32 %v1813_v40, %v5685_v23 }
 0x230   :  { %v5849_v2 = vpop.permute.xlu1 %1364  ;;  %v5851_v22 = vpop.permute.xlu0 %1362 }
 0x231   :  { %9124 = vst [vmem:[#allocation157_spill] sm:$0xff] %v5849_v2  ;;  %9125 = vst [vmem:[#allocation158_spill] sm:$0xff] %v5851_v22  ;;  %v1815_v2 = vmul.f32 %v1813_v40, %v5673_v54 }
 0x232   :  { %1797 = vrot.lane.b32.xlu1 %v1788_v32, %s4931_s26  ;;  %1795 = vrot.lane.b32.xlu0 %v1787_v11, %s4931_s26  ;;  %v1814_v32 = vmul.f32 %v1813_v40, %v5675_v3 }
 0x234   :  { %v5857_v63 = vpop.permute.xlu1 %1387  ;;  %v5859_v37 = vpop.permute.xlu0 %1385 }
 0x235   :  { %9126 = vst [vmem:[#allocation159_spill] sm:$0xff] %v5857_v63  ;;  %9127 = vst [vmem:[#allocation160_spill] sm:$0xff] %v5859_v37  ;;  %v1816_v37 = vmul.f32 %v1813_v40, %v5687_v0  ;;  %v1840_v63 = vstv %s4609_s7  ;;  %s6702_s7 = sld [smem:[#allocation10]] }
 0x236   :  { %1801 = vrot.lane.b32.xlu1 %v1790_v62, %s4931_s26  ;;  %1799 = vrot.lane.b32.xlu0 %v1789_v49, %s4931_s26  ;;  %v1844_v40 = vmul.f32 %v1840_v63, %v5685_v23 }
 0x238   :  { %v5865_v22 = vpop.permute.xlu1 %1391  ;;  %v5867_v11 = vpop.permute.xlu0 %1389 }
 0x239   :  { %9128 = vst [vmem:[#allocation161_spill] sm:$0xff] %v5865_v22  ;;  %9129 = vst [vmem:[#allocation162_spill] sm:$0xff] %v5867_v11  ;;  %v1842_v22 = vmul.f32 %v1840_v63, %v5673_v54 }
 0x23a   :  { %1824 = vrot.lane.b32.xlu1 %v1815_v2, %s4931_s26  ;;  %1822 = vrot.lane.b32.xlu0 %v1814_v32, %s4931_s26  ;;  %v1841_v2 = vmul.f32 %v1840_v63, %v5675_v3 }
 0x23c   :  { %v5873_v62 = vpop.permute.xlu1 %1414  ;;  %v5875_v49 = vpop.permute.xlu0 %1412 }
 0x23d   :  { %9130 = vst [vmem:[#allocation163_spill] sm:$0xff] %v5873_v62  ;;  %9131 = vst [vmem:[#allocation164_spill] sm:$0xff] %v5875_v49  ;;  %v1843_v49 = vmul.f32 %v1840_v63, %v5687_v0  ;;  %v1867_v62 = vstv %s4610_s8  ;;  %s6714_s8 = sld [smem:[#allocation12 + $0x1c]] }
 0x23e   :  { %1828 = vrot.lane.b32.xlu1 %v1817_v58, %s4931_s26  ;;  %1826 = vrot.lane.b32.xlu0 %v1816_v37, %s4931_s26  ;;  %v1871_v63 = vmul.f32 %v1867_v62, %v5685_v23 }
 0x240   :  { %v5881_v11 = vpop.permute.xlu1 %1418  ;;  %v5883_v32 = vpop.permute.xlu0 %1416 }
 0x241   :  { %9132 = vst [vmem:[#allocation165_spill] sm:$0xff] %v5881_v11  ;;  %9133 = vst [vmem:[#allocation166_spill] sm:$0xff] %v5883_v32  ;;  %v1869_v11 = vmul.f32 %v1867_v62, %v5673_v54 }
 0x242   :  { %1851 = vrot.lane.b32.xlu1 %v1842_v22, %s4932_s28  ;;  %1849 = vrot.lane.b32.xlu0 %v1841_v2, %s4932_s28  ;;  %v1868_v22 = vmul.f32 %v1867_v62, %v5675_v3 }
 0x244   :  { %v5889_v58 = vpop.permute.xlu1 %1441  ;;  %v5891_v37 = vpop.permute.xlu0 %1439 }
 0x245   :  { %9134 = vst [vmem:[#allocation167_spill] sm:$0xff] %v5889_v58  ;;  %9135 = vst [vmem:[#allocation168_spill] sm:$0xff] %v5891_v37  ;;  %v1870_v37 = vmul.f32 %v1867_v62, %v5687_v0  ;;  %v1894_v58 = vstv %s4611_s9  ;;  %s6722_s9 = sld [smem:[#allocation10 + $0x1]] }
 0x246   :  { %1855 = vrot.lane.b32.xlu1 %v1844_v40, %s4932_s28  ;;  %1853 = vrot.lane.b32.xlu0 %v1843_v49, %s4932_s28  ;;  %v1898_v62 = vmul.f32 %v1894_v58, %v5685_v23 }
 0x248   :  { %v5897_v32 = vpop.permute.xlu1 %1445  ;;  %v5899_v2 = vpop.permute.xlu0 %1443 }
 0x249   :  { %9136 = vst [vmem:[#allocation169_spill] sm:$0xff] %v5897_v32  ;;  %9137 = vst [vmem:[#allocation170_spill] sm:$0xff] %v5899_v2  ;;  %v1896_v32 = vmul.f32 %v1894_v58, %v5673_v54 }
 0x24a   :  { %1878 = vrot.lane.b32.xlu1 %v1869_v11, %s4932_s28  ;;  %1876 = vrot.lane.b32.xlu0 %v1868_v22, %s4932_s28  ;;  %v1895_v11 = vmul.f32 %v1894_v58, %v5675_v3 }
 0x24c   :  { %v5905_v40 = vpop.permute.xlu1 %1468  ;;  %v5907_v49 = vpop.permute.xlu0 %1466 }
 0x24d   :  { %9138 = vst [vmem:[#allocation171_spill] sm:$0xff] %v5905_v40  ;;  %9139 = vst [vmem:[#allocation172_spill] sm:$0xff] %v5907_v49  ;;  %v1897_v49 = vmul.f32 %v1894_v58, %v5687_v0  ;;  %v1921_v40 = vstv %s4612_s10  ;;  %s6908_s10 = sld [smem:[#allocation10 + $0x2]] }
 0x24e   :  { %1882 = vrot.lane.b32.xlu1 %v1871_v63, %s4932_s28  ;;  %1880 = vrot.lane.b32.xlu0 %v1870_v37, %s4932_s28  ;;  %v1925_v58 = vmul.f32 %v1921_v40, %v5685_v23 }
 0x250   :  { %v5913_v2 = vpop.permute.xlu1 %1472  ;;  %v5915_v22 = vpop.permute.xlu0 %1470 }
 0x251   :  { %9140 = vst [vmem:[#allocation173_spill] sm:$0xff] %v5913_v2  ;;  %9141 = vst [vmem:[#allocation174_spill] sm:$0xff] %v5915_v22  ;;  %v1923_v2 = vmul.f32 %v1921_v40, %v5673_v54 }
 0x252   :  { %1905 = vrot.lane.b32.xlu1 %v1896_v32, %s4932_s28  ;;  %1903 = vrot.lane.b32.xlu0 %v1895_v11, %s4932_s28  ;;  %v1922_v32 = vmul.f32 %v1921_v40, %v5675_v3 }
 0x254   :  { %v5921_v63 = vpop.permute.xlu1 %1527  ;;  %v5923_v37 = vpop.permute.xlu0 %1525 }
 0x255   :  { %9142 = vst [vmem:[#allocation175_spill] sm:$0xff] %v5921_v63  ;;  %9143 = vst [vmem:[#allocation176_spill] sm:$0xff] %v5923_v37  ;;  %v1924_v37 = vmul.f32 %v1921_v40, %v5687_v0  ;;  %v1948_v63 = vstv %s4613_s1  ;;  %s6939_s1 = sld [smem:[#allocation12 + $0x37]] }
 0x256   :  { %1909 = vrot.lane.b32.xlu1 %v1898_v62, %s4932_s28  ;;  %1907 = vrot.lane.b32.xlu0 %v1897_v49, %s4932_s28  ;;  %v1952_v40 = vmul.f32 %v1948_v63, %v5685_v23 }
 0x258   :  { %v5929_v22 = vpop.permute.xlu1 %1531  ;;  %v5931_v11 = vpop.permute.xlu0 %1529 }
 0x259   :  { %9144 = vst [vmem:[#allocation177_spill] sm:$0xff] %v5929_v22  ;;  %9145 = vst [vmem:[#allocation178_spill] sm:$0xff] %v5931_v11  ;;  %v1950_v22 = vmul.f32 %v1948_v63, %v5673_v54 }
 0x25a   :  { %1932 = vrot.lane.b32.xlu1 %v1923_v2, %s4933_s3  ;;  %1930 = vrot.lane.b32.xlu0 %v1922_v32, %s4933_s3  ;;  %v1949_v2 = vmul.f32 %v1948_v63, %v5675_v3 }
 0x25c   :  { %v5937_v62 = vpop.permute.xlu1 %1554  ;;  %v5939_v49 = vpop.permute.xlu0 %1552 }
 0x25d   :  { %9146 = vst [vmem:[#allocation179_spill] sm:$0xff] %v5937_v62  ;;  %9147 = vst [vmem:[#allocation180_spill] sm:$0xff] %v5939_v49  ;;  %v1951_v49 = vmul.f32 %v1948_v63, %v5687_v0  ;;  %v1975_v62 = vstv %s4614_s12  ;;  %s4628_s12 = sld [smem:[#allocation12 + $0x2]] }
 0x25e   :  { %1936 = vrot.lane.b32.xlu1 %v1925_v58, %s4933_s3  ;;  %1934 = vrot.lane.b32.xlu0 %v1924_v37, %s4933_s3  ;;  %v1979_v63 = vmul.f32 %v1975_v62, %v5685_v23 }
 0x260   :  { %v5945_v11 = vpop.permute.xlu1 %1558  ;;  %v5947_v32 = vpop.permute.xlu0 %1556 }
 0x261   :  { %9148 = vst [vmem:[#allocation181_spill] sm:$0xff] %v5945_v11  ;;  %9149 = vst [vmem:[#allocation182_spill] sm:$0xff] %v5947_v32  ;;  %v1977_v11 = vmul.f32 %v1975_v62, %v5673_v54 }
 0x262   :  { %1959 = vrot.lane.b32.xlu1 %v1950_v22, %s4933_s3  ;;  %1957 = vrot.lane.b32.xlu0 %v1949_v2, %s4933_s3  ;;  %v1976_v22 = vmul.f32 %v1975_v62, %v5675_v3 }
 0x264   :  { %v5953_v58 = vpop.permute.xlu1 %1581  ;;  %v5955_v37 = vpop.permute.xlu0 %1579 }
 0x265   :  { %9150 = vst [vmem:[#allocation183_spill] sm:$0xff] %v5953_v58  ;;  %9151 = vst [vmem:[#allocation184_spill] sm:$0xff] %v5955_v37  ;;  %v1978_v37 = vmul.f32 %v1975_v62, %v5687_v0  ;;  %v2002_v58 = vstv %s4615_s4  ;;  %s4629_s4 = sld [smem:[#allocation12 + $0x1d]] }
 0x266   :  { %1963 = vrot.lane.b32.xlu1 %v1952_v40, %s4933_s3  ;;  %1961 = vrot.lane.b32.xlu0 %v1951_v49, %s4933_s3  ;;  %v2006_v62 = vmul.f32 %v2002_v58, %v5685_v23 }
 0x268   :  { %v5961_v32 = vpop.permute.xlu1 %1585  ;;  %v5963_v2 = vpop.permute.xlu0 %1583 }
 0x269   :  { %9152 = vst [vmem:[#allocation185_spill] sm:$0xff] %v5961_v32  ;;  %9153 = vst [vmem:[#allocation186_spill] sm:$0xff] %v5963_v2  ;;  %v2004_v32 = vmul.f32 %v2002_v58, %v5673_v54 }
 0x26a   :  { %1986 = vrot.lane.b32.xlu1 %v1977_v11, %s4933_s3  ;;  %1984 = vrot.lane.b32.xlu0 %v1976_v22, %s4933_s3  ;;  %v2003_v11 = vmul.f32 %v2002_v58, %v5675_v3 }
 0x26c   :  { %v5969_v40 = vpop.permute.xlu1 %1608  ;;  %v5971_v49 = vpop.permute.xlu0 %1606 }
 0x26d   :  { %9154 = vst [vmem:[#allocation187_spill] sm:$0xff] %v5969_v40  ;;  %9155 = vst [vmem:[#allocation188_spill] sm:$0xff] %v5971_v49  ;;  %v2005_v49 = vmul.f32 %v2002_v58, %v5687_v0  ;;  %v2029_v40 = vstv %s4616_s13  ;;  %s4630_s13 = sld [smem:[#allocation12 + $0x38]] }
 0x26e   :  { %1990 = vrot.lane.b32.xlu1 %v1979_v63, %s4933_s3  ;;  %1988 = vrot.lane.b32.xlu0 %v1978_v37, %s4933_s3  ;;  %v2033_v58 = vmul.f32 %v2029_v40, %v5685_v23 }
 0x270   :  { %v5977_v2 = vpop.permute.xlu1 %1612  ;;  %v5979_v22 = vpop.permute.xlu0 %1610 }
 0x271   :  { %9156 = vst [vmem:[#allocation189_spill] sm:$0xff] %v5977_v2  ;;  %9157 = vst [vmem:[#allocation190_spill] sm:$0xff] %v5979_v22  ;;  %v2031_v2 = vmul.f32 %v2029_v40, %v5673_v54 }
 0x272   :  { %2013 = vrot.lane.b32.xlu1 %v2004_v32, %s4934_s11  ;;  %2011 = vrot.lane.b32.xlu0 %v2003_v11, %s4934_s11  ;;  %v2030_v32 = vmul.f32 %v2029_v40, %v5675_v3 }
 0x274   :  { %v5985_v63 = vpop.permute.xlu1 %1635  ;;  %v5987_v37 = vpop.permute.xlu0 %1633 }
 0x275   :  { %9158 = vst [vmem:[#allocation191_spill] sm:$0xff] %v5985_v63  ;;  %9159 = vst [vmem:[#allocation192_spill] sm:$0xff] %v5987_v37  ;;  %v2032_v37 = vmul.f32 %v2029_v40, %v5687_v0  ;;  %v2056_v63 = vstv %s4617_s15  ;;  %s4631_s15 = sld [smem:[#allocation12 + $0x3]] }
 0x276   :  { %2017 = vrot.lane.b32.xlu1 %v2006_v62, %s4934_s11  ;;  %2015 = vrot.lane.b32.xlu0 %v2005_v49, %s4934_s11  ;;  %v2060_v40 = vmul.f32 %v2056_v63, %v5685_v23 }
 0x278   :  { %v5993_v22 = vpop.permute.xlu1 %1639  ;;  %v5995_v11 = vpop.permute.xlu0 %1637 }
 0x279   :  { %9160 = vst [vmem:[#allocation193_spill] sm:$0xff] %v5993_v22  ;;  %9161 = vst [vmem:[#allocation194_spill] sm:$0xff] %v5995_v11  ;;  %v2058_v22 = vmul.f32 %v2056_v63, %v5673_v54 }
 0x27a   :  { %2040 = vrot.lane.b32.xlu1 %v2031_v2, %s4934_s11  ;;  %2038 = vrot.lane.b32.xlu0 %v2030_v32, %s4934_s11  ;;  %v2057_v2 = vmul.f32 %v2056_v63, %v5675_v3 }
 0x27c   :  { %v6001_v62 = vpop.permute.xlu1 %1662  ;;  %v6003_v49 = vpop.permute.xlu0 %1660 }
 0x27d   :  { %9162 = vst [vmem:[#allocation195_spill] sm:$0xff] %v6001_v62  ;;  %9163 = vst [vmem:[#allocation196_spill] sm:$0xff] %v6003_v49  ;;  %v2059_v49 = vmul.f32 %v2056_v63, %v5687_v0  ;;  %v120_v63 = vstv %s119_s17  ;;  %s4633_s17 = sld [smem:[#allocation12 + $0x39]] }
 0x27e   :  { %2044 = vrot.lane.b32.xlu1 %v2033_v58, %s4934_s11  ;;  %2042 = vrot.lane.b32.xlu0 %v2032_v37, %s4934_s11  ;;  %v2083_v58 = vstv %s4618_s16  ;;  %s4632_s16 = sld [smem:[#allocation12 + $0x1e]] }
 0x280   :  { %v6009_v11 = vpop.permute.xlu1 %1666  ;;  %v6011_v32 = vpop.permute.xlu0 %1664 }
 0x281   :  { %9164 = vst [vmem:[#allocation197_spill] sm:$0xff] %v6009_v11  ;;  %9165 = vst [vmem:[#allocation198_spill] sm:$0xff] %v6011_v32 }
 0x282   :  { %2067 = vrot.lane.b32.xlu1 %v2058_v22, %s4934_s11  ;;  %2065 = vrot.lane.b32.xlu0 %v2057_v2, %s4934_s11  ;;  %v2085_v22 = vmul.f32 %v2083_v58, %v5673_v54  ;;  %v2084_v2 = vmul.f32 %v2083_v58, %v5675_v3 }
 0x284   :  { %v6017_v37 = vpop.permute.xlu1 %1689  ;;  %v6019_v62 = vpop.permute.xlu0 %1687 }
 0x285   :  { %9166 = vst [vmem:[#allocation199_spill] sm:$0xff] %v6017_v37  ;;  %9167 = vst [vmem:[#allocation200_spill] sm:$0xff] %v6019_v62  ;;  %v2087_v37 = vmul.f32 %v2083_v58, %v5685_v23  ;;  %v2086_v62 = vmul.f32 %v2083_v58, %v5687_v0  ;;  %v168_v58 = vsel %vm165_vm0, %v5137_v20, %v5145_v24 }
 0x286   :  { %2071 = vrot.lane.b32.xlu1 %v2060_v40, %s4934_s11  ;;  %2069 = vrot.lane.b32.xlu0 %v2059_v49, %s4934_s11  ;;  %v2110_v40 = vstv %s4619_s19  ;;  %v128_v49 = vstv %s4541_s20  ;;  %v167_v24 = vsel %vm165_vm0, %v5147_v25, %v5137_v20  ;;  %v195_v20 = vsel %vm165_vm0, %v5163_v34, %v5161_v33  ;;  %s4634_s19 = sld [smem:[#allocation12 + $0x4]]  ;;  %s4635_s20 = sld [smem:[#allocation12 + $0x1f]] }
 0x287   :  { %v2112_v41 = vmul.f32 %v2110_v40, %v5673_v54  ;;  %v129_v26 = vmul.f32 %v4786_v59, %v128_v49  ;;  %v221_v33 = vsel %vm165_vm0, %v5169_v38, %v5179_v43 }
 0x288   :  { %v6025_v11 = vpop.permute.xlu1 %1693  ;;  %v6027_v32 = vpop.permute.xlu0 %1691 }
 0x289   :  { %9168 = vst [vmem:[#allocation201_spill] sm:$0xff] %v6025_v11  ;;  %9169 = vst [vmem:[#allocation202_spill] sm:$0xff] %v6027_v32  ;;  %v4785_v32 = vld [vmem:[#allocation3 + $0x10] sm:$0xff] }
 0x28a   :  { %2094 = vrot.lane.b32.xlu1 %v2085_v22, %s4935_s5  ;;  %2092 = vrot.lane.b32.xlu0 %v2084_v2, %s4935_s5  ;;  %v123_v55 = vmul.f32 %v4785_v32, %v120_v63  ;;  %v121_v22 = vmul.f32 %v4786_v59, %v120_v63  ;;  %v122_v2 = vmul.f32 %v4787_v46, %v120_v63 }
 0x28b   :  { %v131_v31 = vmul.f32 %v4785_v32, %v128_v49  ;;  %v166_v63 = vsel %vm165_vm0, %v5139_v21, %v5147_v25  ;;  %v194_v59 = vsel %vm165_vm0, %v5153_v29, %v5163_v34  ;;  %v139_v21 = vmul.f32 %v4785_v32, %v136_v13 }
 0x28c   :  { %v6035_v12 = vpop.permute.xlu1 %1716  ;;  %v6037_v11 = vpop.permute.xlu0 %1714  ;;  %v2114_v25 = vmul.f32 %v2110_v40, %v5685_v23  ;;  %v222_v34 = vsel %vm165_vm0, %v5179_v43, %v5177_v42  ;;  %v250_v42 = vsel %vm247_vm1, %v5195_v52, %v5193_v51  ;;  %v275_v43 = vsel %vm247_vm1, %v5203_v57, %v5201_v56 }
 0x28d   :  { %9170 = vst [vmem:[#allocation203_spill] sm:$0xff] %v6035_v12  ;;  %9171 = vst [vmem:[#allocation204_spill] sm:$0xff] %v6037_v11  ;;  %v2111_v12 = vmul.f32 %v2110_v40, %v5675_v3  ;;  %v130_v11 = vmul.f32 %v4787_v46, %v128_v49  ;;  %v174_v49 = vadd.f32 %v168_v58, %v123_v55 }
 0x28e   :  { %2098 = vrot.lane.b32.xlu1 %v2087_v37, %s4935_s5  ;;  %2096 = vrot.lane.b32.xlu0 %v2086_v62, %s4935_s5  ;;  %v193_v62 = vsel %vm165_vm0, %v5155_v30, %v5153_v29  ;;  %v138_v37 = vmul.f32 %v4787_v46, %v136_v13  ;;  %v2113_v30 = vmul.f32 %v2110_v40, %v5687_v0  ;;  %v2137_v29 = vstv %s6033_s23  ;;  %s4637_s23 = sld [smem:[#allocation12 + $0x5]] }
 0x28f   :  { %v172_v46 = vadd.f32 %v166_v63, %v121_v22  ;;  %v173_v55 = vadd.f32 %v167_v24, %v122_v2  ;;  %v199_v58 = vadd.f32 %v193_v62, %v129_v26  ;;  %v220_v13 = vsel %vm165_vm0, %v5171_v39, %v5169_v38 }
 0x290   :  { %v6055_v16 = vpop.permute.xlu1 %1720  ;;  %v6057_v7 = vpop.permute.xlu0 %1718  ;;  %v200_v32 = vadd.f32 %v194_v59, %v130_v11  ;;  %v201_v39 = vadd.f32 %v195_v20, %v131_v31  ;;  %v249_v38 = vsel %vm247_vm1, %v5185_v47, %v5195_v52  ;;  %v2138_v31 = vmul.f32 %v2137_v29, %v5675_v3 }
 0x291   :  { %v226_v11 = vadd.f32 %v220_v13, %v137_v17  ;;  %v228_v40 = vadd.f32 %v222_v34, %v139_v21  ;;  %v255_v2 = vadd.f32 %v249_v38, %v173_v55  ;;  %v276_v51 = vsel %vm247_vm1, %v5201_v56, %v5211_v61 }
 0x292   :  { %2121 = vrot.lane.b32.xlu1 %v2112_v41, %s4935_s5  ;;  %2119 = vrot.lane.b32.xlu0 %v2111_v12, %s4935_s5  ;;  %v248_v41 = vsel %vm247_vm1, %v5187_v48, %v5185_v47  ;;  %v2139_v48 = vmul.f32 %v2137_v29, %v5673_v54  ;;  %v227_v47 = vadd.f32 %v221_v33, %v138_v37  ;;  %v808_v56 = vstv %s6062_s24  ;;  %s4638_s24 = sld [smem:[#allocation12 + $0x20]] }
 0x293   :  { %v254_v22 = vadd.f32 %v248_v41, %v172_v46  ;;  %v277_v52 = vsel %vm247_vm1, %v5211_v61, %v5209_v60  ;;  %v302_v57 = vsel %vm247_vm1, %v5219_v6, %v5217_v5  ;;  %v256_v17 = vadd.f32 %v250_v42, %v174_v49  ;;  %v6155_v46 = vld [vmem:[#allocation3 + $0x28] sm:$0xff] }
 0x294   :  { %v6088_v26 = vpop.permute.xlu1 %1743  ;;  %v6090_v12 = vpop.permute.xlu0 %1741  ;;  %v281_v63 = vadd.f32 %v275_v43, %v199_v58  ;;  %v303_v24 = vsel %vm247_vm1, %v5217_v5, %v5227_v10  ;;  %v304_v60 = vsel %vm247_vm1, %v5227_v10, %v5225_v9  ;;  %v2141_v61 = vmul.f32 %v2137_v29, %v5685_v23  ;;  %v6140_v10 = vld [vmem:[#allocation3 + $0x20] sm:$0xff] }
 0x295   :  { %v2140_v6 = vmul.f32 %v2137_v29, %v5687_v0  ;;  %v282_v62 = vadd.f32 %v276_v51, %v200_v32  ;;  %v283_v37 = vadd.f32 %v277_v52, %v201_v39  ;;  %v308_v5 = vadd.f32 %v302_v57, %v226_v11  ;;  %v6166_v29 = vld [vmem:[#allocation3 + $0x30] sm:$0xff]  ;;  %v9173_v11 = vld [vmem:[#allocation22_spill] sm:$0xff]  ;;  %v9177_v57 = vld [vmem:[#allocation25_spill] sm:$0xff] }
 0x296   :  { %2125 = vrot.lane.b32.xlu1 %v2114_v25, %s4935_s5  ;;  %2123 = vrot.lane.b32.xlu0 %v2113_v30, %s4935_s5  ;;  %v6132_v49 = vstv %s6072_s25  ;;  %v330_v59 = vsel %vm329_vm2, %v5235_v15, %v5233_v14  ;;  %v331_v9 = vsel %vm329_vm2, %v5233_v14, %v5243_v19  ;;  %v6143_v23 = vmul.f32 %v6140_v10, %v808_v56  ;;  %v9176_v51 = vld [vmem:[#allocation26_spill] sm:$0xff]  ;;  %s4639_s25 = sld [smem:[#allocation12 + $0x3b]] }
 0x297   :  { %9172 = vst [vmem:[#allocation205_spill] sm:$0xff] %v6132_v49  ;;  %v6146_v0 = vstv %s6086_s0  ;;  %v309_v25 = vadd.f32 %v303_v24, %v227_v47  ;;  %v310_v30 = vadd.f32 %v304_v60, %v228_v40  ;;  %v332_v15 = vsel %vm329_vm2, %v5243_v19, %v5241_v18  ;;  %v9180_v24 = vld [vmem:[#allocation30_spill] sm:$0xff]  ;;  %s4640_s0 = sld [smem:[#allocation12 + $0x6]] }
 0x298   :  { %v6114_v54 = vpop.permute.xlu1 %1747  ;;  %v6116_v3 = vpop.permute.xlu0 %1745  ;;  %v6158_v14 = vmul.f32 %v6155_v46, %v808_v56  ;;  %v357_v55 = vsel %vm329_vm2, %v5251_v28, %v5249_v27  ;;  %v358_v58 = vsel %vm329_vm2, %v5249_v27, %v5259_v36  ;;  %v6169_v13 = vmul.f32 %v6166_v29, %v808_v56 }
 0x299   :  { %v2243_v18 = vmul.f32 0.0, %v6132_v49  ;;  %v336_v19 = vadd.f32 %v330_v59, %v254_v22  ;;  %v337_v33 = vadd.f32 %v331_v9, %v255_v2  ;;  %v359_v28 = vsel %vm329_vm2, %v5259_v36, %v5257_v35 }
 0x29a   :  { %2148 = vrot.lane.b32.xlu1 %v2139_v48, %s4935_s5  ;;  %2146 = vrot.lane.b32.xlu0 %v2138_v31, %s4935_s5  ;;  %v6179_v27 = vmul.f32 %v6140_v10, %v6146_v0  ;;  %v338_v34 = vadd.f32 %v332_v15, %v256_v17  ;;  %v384_v41 = vsel %vm329_vm2, %v5267_v45, %v5265_v44  ;;  %v6199_v48 = vstv %s6122_s2  ;;  %v9178_v17 = vld [vmem:[#allocation27_spill] sm:$0xff]  ;;  %v9183_v15 = vld [vmem:[#allocation32_spill] sm:$0xff]  ;;  %s4641_s2 = sld [smem:[#allocation12 + $0x21]] }
 0x29b   :  { %v385_v32 = vsel %vm329_vm2, %v5265_v44, %v5275_v53  ;;  %v6189_v39 = vmul.f32 %v6155_v46, %v6146_v0  ;;  %v363_v36 = vadd.f32 %v357_v55, %v281_v63  ;;  %v364_v42 = vadd.f32 %v358_v58, %v282_v62  ;;  %v9179_v63 = vld [vmem:[#allocation28_spill] sm:$0xff]  ;;  %v9184_v58 = vld [vmem:[#allocation34_spill] sm:$0xff] }
 0x29c   :  { %v6148_v21 = vpop.permute.xlu1 %1770  ;;  %v6150_v20 = vpop.permute.xlu0 %1768  ;;  %v386_v43 = vsel %vm329_vm2, %v5275_v53, %v5273_v50  ;;  %v365_v45 = vadd.f32 %v359_v28, %v283_v37  ;;  %v412_v44 = vsel %vm411_vm3, %v5287_v1, %v5285_v4  ;;  %v413_v31 = vsel %vm411_vm3, %v5285_v4, %v5299_v8  ;;  %v9174_v50 = vld [vmem:[#allocation23_spill] sm:$0xff]  ;;  %v9175_v53 = vld [vmem:[#allocation24_spill] sm:$0xff] }
 0x29d   :  { %v414_v47 = vsel %vm411_vm3, %v5299_v8, %v9173_v11  ;;  %v390_v40 = vadd.f32 %v384_v41, %v308_v5  ;;  %v391_v22 = vadd.f32 %v385_v32, %v309_v25  ;;  %v439_v2 = vsel %vm411_vm3, %v9175_v53, %v9174_v50  ;;  %v9181_v5 = vld [vmem:[#allocation29_spill] sm:$0xff]  ;;  %v9190_v53 = vld [vmem:[#allocation39_spill] sm:$0xff] }
 0x29e   :  { %2152 = vrot.lane.b32.xlu1 %v2141_v61, %s4935_s5  ;;  %2150 = vrot.lane.b32.xlu0 %v2140_v6, %s4935_s5  ;;  %v440_v1 = vsel %vm411_vm3, %v9174_v50, %v9176_v51  ;;  %v392_v52 = vadd.f32 %v386_v43, %v310_v30  ;;  %v441_v4 = vsel %vm411_vm3, %v9176_v51, %v9177_v57  ;;  %v9182_v30 = vld [vmem:[#allocation31_spill] sm:$0xff]  ;;  %v9189_v11 = vld [vmem:[#allocation37_spill] sm:$0xff] }
 0x29f   :  { %v466_v8 = vsel %vm411_vm3, %v9179_v63, %v9178_v17  ;;  %v467_v56 = vsel %vm411_vm3, %v9178_v17, %v9180_v24  ;;  %v418_v6 = vadd.f32 %v412_v44, %v336_v19  ;;  %v419_v62 = vadd.f32 %v413_v31, %v337_v33  ;;  %v9185_v19 = vld [vmem:[#allocation33_spill] sm:$0xff]  ;;  %v9186_v43 = vld [vmem:[#allocation35_spill] sm:$0xff]  ;;  %v9187_v44 = vld [vmem:[#allocation36_spill] sm:$0xff] }
 0x2a0   :  { %v6191_v38 = vpop.permute.xlu1 %1774  ;;  %v6193_v35 = vpop.permute.xlu0 %1772  ;;  %v420_v37 = vadd.f32 %v414_v47, %v338_v34  ;;  %v468_v59 = vsel %vm411_vm3, %v9180_v24, %v9181_v5  ;;  %v445_v9 = vadd.f32 %v439_v2, %v363_v36  ;;  %v446_v25 = vadd.f32 %v440_v1, %v364_v42  ;;  %v9188_v42 = vld [vmem:[#allocation38_spill] sm:$0xff]  ;;  %v9191_v2 = vld [vmem:[#allocation40_spill] sm:$0xff]  ;;  %v9194_v63 = vld [vmem:[#allocation43_spill] sm:$0xff] }
 0x2a1   :  { %v494_v55 = vsel %vm493_vm4, %v9183_v15, %v9182_v30  ;;  %v447_v28 = vadd.f32 %v441_v4, %v365_v45  ;;  %v472_v41 = vadd.f32 %v466_v8, %v390_v40  ;;  %v473_v32 = vadd.f32 %v467_v56, %v391_v22  ;;  %v9192_v1 = vld [vmem:[#allocation42_spill] sm:$0xff]  ;;  %v9193_v4 = vld [vmem:[#allocation41_spill] sm:$0xff]  ;;  %v9195_v8 = vld [vmem:[#allocation44_spill] sm:$0xff] }
 0x2a2   :  { %2251 = vrot.lane.b32.xlu0 %v2243_v18, %s4928_s14  ;;  %v495_v18 = vsel %vm493_vm4, %v9182_v30, %v9184_v58  ;;  %v496_v33 = vsel %vm493_vm4, %v9184_v58, %v9185_v19  ;;  %v474_v34 = vadd.f32 %v468_v59, %v392_v52  ;;  %v521_v36 = vsel %vm493_vm4, %v9187_v44, %v9186_v43  ;;  %v9196_v56 = vld [vmem:[#allocation46_spill] sm:$0xff]  ;;  %v9197_v30 = vld [vmem:[#allocation45_spill] sm:$0xff]  ;;  %v9198_v58 = vld [vmem:[#allocation47_spill] sm:$0xff] }
 0x2a3   :  { %v522_v31 = vsel %vm493_vm4, %v9186_v43, %v9188_v42  ;;  %v523_v47 = vsel %vm493_vm4, %v9188_v42, %v9189_v11  ;;  %v500_v22 = vadd.f32 %v494_v55, %v418_v6  ;;  %v501_v50 = vadd.f32 %v495_v18, %v419_v62  ;;  %v9199_v18 = vld [vmem:[#allocation48_spill] sm:$0xff] }
 0x2a4   :  { %v6226_v60 = vpop.permute.xlu1 %1797  ;;  %v6228_v61 = vpop.permute.xlu0 %1795  ;;  %v548_v51 = vsel %vm493_vm4, %v9191_v2, %v9190_v53  ;;  %v549_v52 = vsel %vm493_vm4, %v9190_v53, %v9192_v1  ;;  %v502_v57 = vadd.f32 %v496_v33, %v420_v37  ;;  %v550_v17 = vsel %vm493_vm4, %v9192_v1, %v9193_v4  ;;  %v9200_v33 = vld [vmem:[#allocation50_spill] sm:$0xff]  ;;  %v9203_v11 = vld [vmem:[#allocation52_spill] sm:$0xff] }
 0x2a5   :  { %v576_v24 = vsel %vm575_vm5, %v9195_v8, %v9194_v63  ;;  %v577_v6 = vsel %vm575_vm5, %v9194_v63, %v9196_v56  ;;  %v527_v62 = vadd.f32 %v521_v36, %v445_v9  ;;  %v528_v5 = vadd.f32 %v522_v31, %v446_v25  ;;  %v9201_v36 = vld [vmem:[#allocation49_spill] sm:$0xff]  ;;  %v9202_v31 = vld [vmem:[#allocation51_spill] sm:$0xff]  ;;  %v9204_v53 = vld [vmem:[#allocation54_spill] sm:$0xff] }
 0x2a6   :  { %v529_v59 = vadd.f32 %v523_v47, %v447_v28  ;;  %v578_v15 = vsel %vm575_vm5, %v9196_v56, %v9197_v30  ;;  %v554_v37 = vadd.f32 %v548_v51, %v472_v41  ;;  %v555_v55 = vadd.f32 %v549_v52, %v473_v32  ;;  %v9205_v51 = vld [vmem:[#allocation53_spill] sm:$0xff]  ;;  %v9207_v52 = vld [vmem:[#allocation56_spill] sm:$0xff]  ;;  %v9210_v56 = vld [vmem:[#allocation59_spill] sm:$0xff] }
 0x2a7   :  { %v603_v19 = vsel %vm575_vm5, %v9199_v18, %v9198_v58  ;;  %v604_v43 = vsel %vm575_vm5, %v9198_v58, %v9200_v33  ;;  %v556_v9 = vadd.f32 %v550_v17, %v474_v34  ;;  %v582_v25 = vadd.f32 %v576_v24, %v500_v22  ;;  %v9208_v17 = vld [vmem:[#allocation58_spill] sm:$0xff]  ;;  %v9209_v8 = vld [vmem:[#allocation57_spill] sm:$0xff] }
 0x2a8   :  { %v6251_v45 = vpop.permute.xlu1 %1801  ;;  %v6253_v40 = vpop.permute.xlu0 %1799  ;;  %v583_v28 = vadd.f32 %v577_v6, %v501_v50  ;;  %v605_v41 = vsel %vm575_vm5, %v9200_v33, %v9201_v36  ;;  %v584_v32 = vadd.f32 %v578_v15, %v502_v57  ;;  %v630_v47 = vsel %vm575_vm5, %v9203_v11, %v9202_v31  ;;  %v9206_v50 = vld [vmem:[#allocation55_spill] sm:$0xff]  ;;  %v9211_v6 = vld [vmem:[#allocation60_spill] sm:$0xff]  ;;  %v9212_v15 = vld [vmem:[#allocation62_spill] sm:$0xff] }
 0x2a9   :  { %v631_v2 = vsel %vm575_vm5, %v9202_v31, %v9204_v53  ;;  %v632_v1 = vsel %vm575_vm5, %v9204_v53, %v9205_v51  ;;  %v609_v34 = vadd.f32 %v603_v19, %v527_v62  ;;  %v610_v22 = vadd.f32 %v604_v43, %v528_v5  ;;  %v9215_v31 = vld [vmem:[#allocation63_spill] sm:$0xff]  ;;  %v9216_v11 = vld [vmem:[#allocation64_spill] sm:$0xff]  ;;  %v9217_v51 = vld [vmem:[#allocation66_spill] sm:$0xff] }
 0x2aa   :  { %v658_v4 = vsel %vm657_vm6, %v9207_v52, %v9206_v50  ;;  %v659_v57 = vsel %vm657_vm6, %v9206_v50, %v9208_v17  ;;  %v611_v63 = vadd.f32 %v605_v41, %v529_v59  ;;  %v660_v24 = vsel %vm657_vm6, %v9208_v17, %v9209_v8  ;;  %v9214_v59 = vld [vmem:[#allocation61_spill] sm:$0xff] }
 0x2ab   :  { %v685_v30 = vsel %vm657_vm6, %v9211_v6, %v9210_v56  ;;  %v686_v62 = vsel %vm657_vm6, %v9210_v56, %v9212_v15  ;;  %v636_v18 = vadd.f32 %v630_v47, %v554_v37  ;;  %v637_v19 = vadd.f32 %v631_v2, %v555_v55  ;;  %v9218_v37 = vld [vmem:[#allocation67_spill] sm:$0xff]  ;;  %v9219_v55 = vld [vmem:[#allocation68_spill] sm:$0xff]  ;;  %v9220_v2 = vld [vmem:[#allocation70_spill] sm:$0xff] }
 0x2ac   :  { %v6279_v44 = vpop.permute.xlu1 %1824  ;;  %v6281_v42 = vpop.permute.xlu0 %1822  ;;  %v638_v33 = vadd.f32 %v632_v1, %v556_v9  ;;  %v687_v43 = vsel %vm657_vm6, %v9212_v15, %v9214_v59  ;;  %v664_v36 = vadd.f32 %v658_v4, %v582_v25  ;;  %v665_v41 = vadd.f32 %v659_v57, %v583_v28  ;;  %v9221_v28 = vld [vmem:[#allocation69_spill] sm:$0xff]  ;;  %v9222_v4 = vld [vmem:[#allocation71_spill] sm:$0xff]  ;;  %v9223_v57 = vld [vmem:[#allocation72_spill] sm:$0xff] }
 0x2ad   :  { %v712_v53 = vsel %vm657_vm6, %v9216_v11, %v9215_v31  ;;  %v713_v50 = vsel %vm657_vm6, %v9215_v31, %v9217_v51  ;;  %v666_v52 = vadd.f32 %v660_v24, %v584_v32  ;;  %v691_v17 = vadd.f32 %v685_v30, %v609_v34  ;;  %v9224_v24 = vld [vmem:[#allocation65_spill] sm:$0xff]  ;;  %v9225_v30 = vld [vmem:[#allocation74_spill] sm:$0xff]  ;;  %v9227_v31 = vld [vmem:[#allocation75_spill] sm:$0xff] }
 0x2ae   :  { %v692_v8 = vadd.f32 %v686_v62, %v610_v22  ;;  %v740_v9 = vsel %vm739_vm7, %v9219_v55, %v9218_v37  ;;  %v693_v47 = vadd.f32 %v687_v43, %v611_v63  ;;  %v741_v25 = vsel %vm739_vm7, %v9218_v37, %v9220_v2  ;;  %v9226_v59 = vld [vmem:[#allocation73_spill] sm:$0xff]  ;;  %v9228_v11 = vld [vmem:[#allocation76_spill] sm:$0xff]  ;;  %v9229_v55 = vld [vmem:[#allocation78_spill] sm:$0xff] }
 0x2af   :  { %v742_v1 = vsel %vm739_vm7, %v9220_v2, %v9221_v28  ;;  %v767_v56 = vsel %vm739_vm7, %v9223_v57, %v9222_v4  ;;  %v718_v22 = vadd.f32 %v712_v53, %v636_v18  ;;  %v714_v63 = vsel %vm657_vm6, %v9217_v51, %v9224_v24 }
 0x2b0   :  { %v6310_v5 = vpop.permute.xlu1 %1828  ;;  %v6312_v58 = vpop.permute.xlu0 %1826  ;;  %v719_v6 = vadd.f32 %v713_v50, %v637_v19  ;;  %v768_v15 = vsel %vm739_vm7, %v9222_v4, %v9225_v30  ;;  %v746_v62 = vadd.f32 %v740_v9, %v664_v36  ;;  %v769_v43 = vsel %vm739_vm7, %v9225_v30, %v9226_v59  ;;  %v9230_v50 = vld [vmem:[#allocation77_spill] sm:$0xff] }
 0x2b1   :  { %9213 = vst [vmem:[#allocation22_spill] sm:$0xff] %v6310_v5  ;;  %v794_v37 = vsel %vm739_vm7, %v9228_v11, %v9227_v31  ;;  %v795_v18 = vsel %vm739_vm7, %v9227_v31, %v9229_v55  ;;  %v747_v53 = vadd.f32 %v741_v25, %v665_v41  ;;  %v748_v51 = vadd.f32 %v742_v1, %v666_v52  ;;  %v9241_v31 = vld [vmem:[#allocation86_spill] sm:$0xff]  ;;  %v9289_v5 = vld [vmem:[#allocation125_spill] sm:$0xff] }
 0x2b2   :  { %v773_v19 = vadd.f32 %v767_v56, %v691_v17  ;;  %v796_v2 = vsel %vm739_vm7, %v9229_v55, %v9230_v50  ;;  %v720_v36 = vadd.f32 %v714_v63, %v638_v33  ;;  %v774_v9 = vadd.f32 %v768_v15, %v692_v8  ;;  %v9233_v56 = vld [vmem:[#allocation79_spill] sm:$0xff]  ;;  %v9234_v63 = vld [vmem:[#allocation80_spill] sm:$0xff] }
 0x2b3   :  { %v819_v28 = vmul.f32 %v6166_v29, %v6146_v0  ;;  %v825_v4 = vmul.f32 %v6140_v10, %v6199_v48  ;;  %v775_v30 = vadd.f32 %v769_v43, %v693_v47  ;;  %v800_v41 = vadd.f32 %v794_v37, %v718_v22  ;;  %v9235_v22 = vld [vmem:[#allocation82_spill] sm:$0xff]  ;;  %v9242_v37 = vld [vmem:[#allocation85_spill] sm:$0xff]  ;;  %v9243_v55 = vld [vmem:[#allocation87_spill] sm:$0xff] }
 0x2b4   :  { %v6335_v32 = vpop.permute.xlu1 %1851  ;;  %v6337_v34 = vpop.permute.xlu0 %1849  ;;  %v801_v52 = vadd.f32 %v795_v18, %v719_v6  ;;  %v826_v17 = vmul.f32 %v6155_v46, %v6199_v48  ;;  %v802_v25 = vadd.f32 %v796_v2, %v720_v36  ;;  %v827_v33 = vmul.f32 %v6166_v29, %v6199_v48  ;;  %v9236_v6 = vld [vmem:[#allocation81_spill] sm:$0xff]  ;;  %v9240_v48 = vld [vmem:[#allocation84_spill] sm:$0xff]  ;;  %v9245_v36 = vld [vmem:[#allocation90_spill] sm:$0xff] }
 0x2b5   :  { %v812_v8 = vadd.f32 %v6143_v23, %v746_v62  ;;  %v813_v0 = vadd.f32 %v6158_v14, %v747_v53  ;;  %v814_v10 = vadd.f32 %v6169_v13, %v748_v51  ;;  %v820_v1 = vadd.f32 %v6179_v27, %v773_v19  ;;  %v9239_v27 = vld [vmem:[#allocation83_spill] sm:$0xff]  ;;  %v9244_v18 = vld [vmem:[#allocation88_spill] sm:$0xff] }
 0x2b6   :  { %v853_v47 = vsel %vm165_vm0, %v9234_v63, %v9233_v56  ;;  %v854_v46 = vsel %vm165_vm0, %v9233_v56, %v9235_v22  ;;  %v855_v29 = vsel %vm165_vm0, %v9235_v22, %v9236_v6  ;;  %v821_v23 = vadd.f32 %v6189_v39, %v774_v9  ;;  %v9249_v56 = vld [vmem:[#allocation94_spill] sm:$0xff]  ;;  %v9252_v63 = vld [vmem:[#allocation93_spill] sm:$0xff]  ;;  %v9254_v6 = vld [vmem:[#allocation96_spill] sm:$0xff] }
 0x2b7   :  { %v880_v15 = vsel %vm165_vm0, %v9240_v48, %v9239_v27  ;;  %v822_v62 = vadd.f32 %v819_v28, %v775_v30  ;;  %v828_v59 = vadd.f32 %v825_v4, %v800_v41  ;;  %v829_v43 = vadd.f32 %v826_v17, %v801_v52  ;;  %v9246_v4 = vld [vmem:[#allocation89_spill] sm:$0xff]  ;;  %v9247_v41 = vld [vmem:[#allocation91_spill] sm:$0xff]  ;;  %v9248_v52 = vld [vmem:[#allocation92_spill] sm:$0xff] }
 0x2b8   :  { %v6361_v57 = vpop.permute.xlu1 %1855  ;;  %v6363_v24 = vpop.permute.xlu0 %1853  ;;  %v881_v11 = vsel %vm165_vm0, %v9239_v27, %v9241_v31  ;;  %v882_v39 = vsel %vm165_vm0, %v9241_v31, %v9242_v37  ;;  %v907_v53 = vsel %vm165_vm0, %v9244_v18, %v9243_v55  ;;  %v830_v51 = vadd.f32 %v827_v33, %v802_v25  ;;  %v9255_v27 = vld [vmem:[#allocation98_spill] sm:$0xff] }
 0x2b9   :  { %9231 = vst [vmem:[#allocation23_spill] sm:$0xff] %v6361_v57  ;;  %9232 = vst [vmem:[#allocation24_spill] sm:$0xff] %v6363_v24  ;;  %v859_v19 = vadd.f32 %v853_v47, %v812_v8  ;;  %v860_v50 = vadd.f32 %v854_v46, %v813_v0  ;;  %v861_v2 = vadd.f32 %v855_v29, %v814_v10  ;;  %v9253_v46 = vld [vmem:[#allocation95_spill] sm:$0xff] }
 0x2ba   :  { %v908_v9 = vsel %vm165_vm0, %v9243_v55, %v9245_v36  ;;  %v886_v28 = vadd.f32 %v880_v15, %v820_v1  ;;  %v909_v30 = vsel %vm165_vm0, %v9245_v36, %v9246_v4  ;;  %v934_v17 = vsel %vm247_vm1, %v9248_v52, %v9247_v41  ;;  %v9256_v15 = vld [vmem:[#allocation97_spill] sm:$0xff]  ;;  %v9259_v55 = vld [vmem:[#allocation102_spill] sm:$0xff]  ;;  %v9264_v52 = vld [vmem:[#allocation104_spill] sm:$0xff] }
 0x2bb   :  { %v935_v25 = vsel %vm247_vm1, %v9247_v41, %v9249_v56  ;;  %v887_v0 = vadd.f32 %v881_v11, %v821_v23  ;;  %v888_v10 = vadd.f32 %v882_v39, %v822_v62  ;;  %v913_v1 = vadd.f32 %v907_v53, %v828_v59  ;;  %v9257_v11 = vld [vmem:[#allocation99_spill] sm:$0xff]  ;;  %v9260_v53 = vld [vmem:[#allocation101_spill] sm:$0xff] }
 0x2bc   :  { %v6385_v14 = vpop.permute.xlu1 %1878  ;;  %v6387_v13 = vpop.permute.xlu0 %1876  ;;  %v936_v47 = vsel %vm247_vm1, %v9249_v56, %v9252_v63  ;;  %v914_v22 = vadd.f32 %v908_v9, %v829_v43  ;;  %v961_v29 = vsel %vm247_vm1, %v9254_v6, %v9253_v46  ;;  %v962_v48 = vsel %vm247_vm1, %v9253_v46, %v9255_v27  ;;  %v9258_v43 = vld [vmem:[#allocation100_spill] sm:$0xff]  ;;  %v9263_v41 = vld [vmem:[#allocation103_spill] sm:$0xff]  ;;  %v9265_v56 = vld [vmem:[#allocation106_spill] sm:$0xff] }
 0x2bd   :  { %9237 = vst [vmem:[#allocation26_spill] sm:$0xff] %v6385_v14  ;;  %9238 = vst [vmem:[#allocation25_spill] sm:$0xff] %v6387_v13  ;;  %v963_v23 = vsel %vm247_vm1, %v9255_v27, %v9256_v15  ;;  %v915_v62 = vadd.f32 %v909_v30, %v830_v51  ;;  %v940_v59 = vadd.f32 %v934_v17, %v859_v19  ;;  %v1488_v9 = vstv %s6383_s27  ;;  %v9266_v63 = vld [vmem:[#allocation105_spill] sm:$0xff]  ;;  %v6457_v15 = vld [vmem:[#allocation3 + $0x40] sm:$0xff]  ;;  %s4642_s27 = sld [smem:[#allocation12 + $0x3c]] }
 0x2be   :  { %v941_v31 = vadd.f32 %v935_v25, %v860_v50  ;;  %v988_v37 = vsel %vm247_vm1, %v9258_v43, %v9257_v11  ;;  %v942_v39 = vadd.f32 %v936_v47, %v861_v2  ;;  %v989_v18 = vsel %vm247_vm1, %v9257_v11, %v9259_v55  ;;  %v9269_v11 = vld [vmem:[#allocation110_spill] sm:$0xff] }
 0x2bf   :  { %v990_v36 = vsel %vm247_vm1, %v9259_v55, %v9260_v53  ;;  %v967_v19 = vadd.f32 %v961_v29, %v886_v28  ;;  %v968_v50 = vadd.f32 %v962_v48, %v887_v0  ;;  %v969_v30 = vadd.f32 %v963_v23, %v888_v10  ;;  %v6462_v0 = vld [vmem:[#allocation3 + $0x48] sm:$0xff]  ;;  %v9268_v48 = vld [vmem:[#allocation108_spill] sm:$0xff]  ;;  %v9288_v13 = vld [vmem:[#allocation126_spill] sm:$0xff] }
 0x2c0   :  { %v6415_v33 = vpop.permute.xlu1 %1882  ;;  %v6417_v8 = vpop.permute.xlu0 %1880  ;;  %v1015_v2 = vsel %vm329_vm2, %v9264_v52, %v9263_v41  ;;  %v994_v17 = vadd.f32 %v988_v37, %v913_v1  ;;  %v1016_v25 = vsel %vm329_vm2, %v9263_v41, %v9265_v56  ;;  %v1017_v47 = vsel %vm329_vm2, %v9265_v56, %v9266_v63  ;;  %v9267_v29 = vld [vmem:[#allocation107_spill] sm:$0xff] }
 0x2c1   :  { %9250 = vst [vmem:[#allocation27_spill] sm:$0xff] %v6415_v33  ;;  %9251 = vst [vmem:[#allocation28_spill] sm:$0xff] %v6417_v8  ;;  %v1496_v46 = vstv %s6401_s29  ;;  %v995_v6 = vadd.f32 %v989_v18, %v914_v22  ;;  %v996_v27 = vadd.f32 %v990_v36, %v915_v62  ;;  %v6460_v28 = vmul.f32 %v6457_v15, %v1488_v9  ;;  %v6473_v62 = vld [vmem:[#allocation3 + $0x50] sm:$0xff]  ;;  %v9273_v52 = vld [vmem:[#allocation111_spill] sm:$0xff]  ;;  %s4643_s29 = sld [smem:[#allocation12 + $0x7]] }
 0x2c2   :  { %v6465_v10 = vmul.f32 %v6462_v0, %v1488_v9  ;;  %v1021_v1 = vadd.f32 %v1015_v2, %v940_v59  ;;  %v1042_v23 = vsel %vm329_vm2, %v9268_v48, %v9267_v29  ;;  %v1043_v22 = vsel %vm329_vm2, %v9267_v29, %v9269_v11  ;;  %v9272_v59 = vld [vmem:[#allocation109_spill] sm:$0xff]  ;;  %v9274_v2 = vld [vmem:[#allocation112_spill] sm:$0xff] }
 0x2c3   :  { %v6476_v43 = vmul.f32 %v6473_v62, %v1488_v9  ;;  %v1022_v18 = vadd.f32 %v1016_v25, %v941_v31  ;;  %v1023_v53 = vadd.f32 %v1017_v47, %v942_v39  ;;  %v1044_v36 = vsel %vm329_vm2, %v9269_v11, %v9272_v59  ;;  %v9275_v25 = vld [vmem:[#allocation114_spill] sm:$0xff]  ;;  %v9276_v48 = vld [vmem:[#allocation113_spill] sm:$0xff] }
 0x2c4   :  { %v6443_v4 = vpop.permute.xlu1 %1905  ;;  %v6445_v51 = vpop.permute.xlu0 %1903  ;;  %v6486_v41 = vmul.f32 %v6457_v15, %v1496_v46  ;;  %v1069_v56 = vsel %vm329_vm2, %v9274_v2, %v9273_v52  ;;  %v6492_v9 = vmul.f32 %v6462_v0, %v1496_v46  ;;  %v6495_v63 = vmul.f32 %v6473_v62, %v1496_v46  ;;  %v9277_v2 = vld [vmem:[#allocation115_spill] sm:$0xff] }
 0x2c5   :  { %9261 = vst [vmem:[#allocation30_spill] sm:$0xff] %v6443_v4  ;;  %9262 = vst [vmem:[#allocation29_spill] sm:$0xff] %v6445_v51  ;;  %v6498_v29 = vstv %s6431_s30  ;;  %v1048_v31 = vadd.f32 %v1042_v23, %v967_v19  ;;  %v1049_v39 = vadd.f32 %v1043_v22, %v968_v50  ;;  %v1070_v47 = vsel %vm329_vm2, %v9273_v52, %v9275_v25  ;;  %v9280_v51 = vld [vmem:[#allocation117_spill] sm:$0xff]  ;;  %v9282_v52 = vld [vmem:[#allocation119_spill] sm:$0xff]  ;;  %s4644_s30 = sld [smem:[#allocation12 + $0x22]] }
 0x2c6   :  { %v1071_v11 = vsel %vm329_vm2, %v9275_v25, %v9276_v48  ;;  %v1050_v59 = vadd.f32 %v1044_v36, %v969_v30  ;;  %v1075_v22 = vadd.f32 %v1069_v56, %v994_v17  ;;  %v9283_v25 = vld [vmem:[#allocation120_spill] sm:$0xff]  ;;  %v9284_v36 = vld [vmem:[#allocation122_spill] sm:$0xff]  ;;  %v9285_v48 = vld [vmem:[#allocation121_spill] sm:$0xff]  ;;  %v1076_v4 = vadd.f32 %v1070_v47, %v995_v6 }
 0x2c7   :  { %v1123_v30 = vsel %vm411_vm3, %v9283_v25, %v9282_v52  ;;  %v1077_v33 = vadd.f32 %v1071_v11, %v996_v27  ;;  %v9290_v6 = vld [vmem:[#allocation127_spill] sm:$0xff]  ;;  %v9291_v27 = vld [vmem:[#allocation128_spill] sm:$0xff] }
 0x2c8   :  { %v6478_v37 = vpop.permute.xlu1 %1909  ;;  %v6480_v55 = vpop.permute.xlu0 %1907  ;;  %v1129_v57 = vadd.f32 %v1123_v30, %v1048_v31  ;;  %v1177_v47 = vsel %vm493_vm4, %v9291_v27, %v9290_v6  ;;  %v9297_v31 = vld [vmem:[#allocation132_spill] sm:$0xff] }
 0x2c9   :  { %9270 = vst [vmem:[#allocation31_spill] sm:$0xff] %v6478_v37  ;;  %9271 = vst [vmem:[#allocation32_spill] sm:$0xff] %v6480_v55  ;;  %v9278_v37 = vld [vmem:[#allocation116_spill] sm:$0xff]  ;;  %v9279_v55 = vld [vmem:[#allocation118_spill] sm:$0xff] }
 0x2ca   :  { %v1096_v49 = vsel %vm411_vm3, %v9278_v37, %v9277_v2  ;;  %v1097_v46 = vsel %vm411_vm3, %v9277_v2, %v9279_v55  ;;  %v1098_v19 = vsel %vm411_vm3, %v9279_v55, %v9280_v51  ;;  %v1124_v37 = vsel %vm411_vm3, %v9282_v52, %v9284_v36  ;;  %v9286_v51 = vld [vmem:[#allocation123_spill] sm:$0xff]  ;;  %v9287_v55 = vld [vmem:[#allocation124_spill] sm:$0xff] }
 0x2cb   :  { %v1125_v2 = vsel %vm411_vm3, %v9284_v36, %v9285_v48  ;;  %v1150_v8 = vsel %vm411_vm3, %v9287_v55, %v9286_v51  ;;  %v1151_v17 = vsel %vm411_vm3, %v9286_v51, %v9288_v13  ;;  %v1102_v56 = vadd.f32 %v1096_v49, %v1021_v1  ;;  %v9294_v49 = vld [vmem:[#allocation130_spill] sm:$0xff]  ;;  %v9301_v30 = vld [vmem:[#allocation136_spill] sm:$0xff] }
 0x2cc   :  { %v6515_v50 = vpop.permute.xlu1 %1932  ;;  %v6517_v23 = vpop.permute.xlu0 %1930  ;;  %v1103_v25 = vadd.f32 %v1097_v46, %v1022_v18  ;;  %v1104_v14 = vadd.f32 %v1098_v19, %v1023_v53  ;;  %v1152_v52 = vsel %vm411_vm3, %v9288_v13, %v9289_v5  ;;  %v1130_v24 = vadd.f32 %v1124_v37, %v1049_v39  ;;  %v9295_v18 = vld [vmem:[#allocation129_spill] sm:$0xff]  ;;  %v9296_v53 = vld [vmem:[#allocation131_spill] sm:$0xff] }
 0x2cd   :  { %9281 = vst [vmem:[#allocation34_spill] sm:$0xff] %v6517_v23  ;;  %v1131_v36 = vadd.f32 %v1125_v2, %v1050_v59  ;;  %v1156_v55 = vadd.f32 %v1150_v8, %v1075_v22  ;;  %v1157_v51 = vadd.f32 %v1151_v17, %v1076_v4  ;;  %v1178_v1 = vsel %vm493_vm4, %v9290_v6, %v9294_v49  ;;  %v9298_v59 = vld [vmem:[#allocation134_spill] sm:$0xff]  ;;  %v9299_v19 = vld [vmem:[#allocation133_spill] sm:$0xff]  ;;  %v9300_v22 = vld [vmem:[#allocation135_spill] sm:$0xff] }
 0x2ce   :  { %v1179_v5 = vsel %vm493_vm4, %v9294_v49, %v9295_v18  ;;  %v1158_v13 = vadd.f32 %v1152_v52, %v1077_v33  ;;  %v1204_v39 = vsel %vm493_vm4, %v9297_v31, %v9296_v53  ;;  %v1205_v46 = vsel %vm493_vm4, %v9296_v53, %v9298_v59  ;;  %v9302_v2 = vld [vmem:[#allocation138_spill] sm:$0xff]  ;;  %v9303_v17 = vld [vmem:[#allocation137_spill] sm:$0xff]  ;;  %v9304_v49 = vld [vmem:[#allocation139_spill] sm:$0xff] }
 0x2cf   :  { %v1206_v8 = vsel %vm493_vm4, %v9298_v59, %v9299_v19  ;;  %v1183_v4 = vadd.f32 %v1177_v47, %v1102_v56  ;;  %v1231_v37 = vsel %vm493_vm4, %v9301_v30, %v9300_v22  ;;  %v1232_v33 = vsel %vm493_vm4, %v9300_v22, %v9302_v2  ;;  %v9305_v18 = vld [vmem:[#allocation140_spill] sm:$0xff]  ;;  %v9306_v31 = vld [vmem:[#allocation142_spill] sm:$0xff] }
 0x2d0   :  { %v6540_v11 = vpop.permute.xlu1 %1936  ;;  %v6542_v48 = vpop.permute.xlu0 %1934  ;;  %v1233_v52 = vsel %vm493_vm4, %v9302_v2, %v9303_v17  ;;  %v1184_v6 = vadd.f32 %v1178_v1, %v1103_v25  ;;  %v1185_v27 = vadd.f32 %v1179_v5, %v1104_v14  ;;  %v1258_v53 = vsel %vm575_vm5, %v9305_v18, %v9304_v49  ;;  %v9309_v2 = vld [vmem:[#allocation143_spill] sm:$0xff]  ;;  %v9310_v17 = vld [vmem:[#allocation144_spill] sm:$0xff]  ;;  %v9311_v23 = vld [vmem:[#allocation146_spill] sm:$0xff] }
 0x2d1   :  { %9292 = vst [vmem:[#allocation33_spill] sm:$0xff] %v6540_v11  ;;  %9293 = vst [vmem:[#allocation35_spill] sm:$0xff] %v6542_v48  ;;  %v1259_v56 = vsel %vm575_vm5, %v9304_v49, %v9306_v31  ;;  %v1210_v19 = vadd.f32 %v1204_v39, %v1129_v57  ;;  %v1211_v22 = vadd.f32 %v1205_v46, %v1130_v24  ;;  %v9308_v11 = vld [vmem:[#allocation141_spill] sm:$0xff]  ;;  %v9313_v39 = vld [vmem:[#allocation147_spill] sm:$0xff] }
 0x2d2   :  { %v1212_v30 = vadd.f32 %v1206_v8, %v1131_v36  ;;  %v1260_v25 = vsel %vm575_vm5, %v9306_v31, %v9308_v11  ;;  %v1237_v14 = vadd.f32 %v1231_v37, %v1156_v55  ;;  %v1238_v1 = vadd.f32 %v1232_v33, %v1157_v51  ;;  %v9312_v57 = vld [vmem:[#allocation145_spill] sm:$0xff]  ;;  %v9314_v11 = vld [vmem:[#allocation148_spill] sm:$0xff]  ;;  %v9315_v51 = vld [vmem:[#allocation150_spill] sm:$0xff] }
 0x2d3   :  { %v1239_v5 = vadd.f32 %v1233_v52, %v1158_v13  ;;  %v1285_v18 = vsel %vm575_vm5, %v9310_v17, %v9309_v2  ;;  %v1264_v48 = vadd.f32 %v1258_v53, %v1183_v4  ;;  %v1265_v49 = vadd.f32 %v1259_v56, %v1184_v6  ;;  %v9316_v46 = vld [vmem:[#allocation149_spill] sm:$0xff]  ;;  %v9319_v52 = vld [vmem:[#allocation151_spill] sm:$0xff] }
 0x2d4   :  { %v6574_v47 = vpop.permute.xlu1 %1959  ;;  %v6576_v59 = vpop.permute.xlu0 %1957  ;;  %v1287_v24 = vsel %vm575_vm5, %v9311_v23, %v9312_v57  ;;  %v1266_v36 = vadd.f32 %v1260_v25, %v1185_v27  ;;  %v1312_v55 = vsel %vm575_vm5, %v9314_v11, %v9313_v39  ;;  %v1313_v13 = vsel %vm575_vm5, %v9313_v39, %v9315_v51  ;;  %v9321_v27 = vld [vmem:[#allocation154_spill] sm:$0xff]  ;;  %v9322_v31 = vld [vmem:[#allocation153_spill] sm:$0xff]  ;;  %v9323_v17 = vld [vmem:[#allocation155_spill] sm:$0xff] }
 0x2d5   :  { %9307 = vst [vmem:[#allocation36_spill] sm:$0xff] %v6576_v59  ;;  %v1286_v59 = vsel %vm575_vm5, %v9309_v2, %v9311_v23  ;;  %v1314_v8 = vsel %vm575_vm5, %v9315_v51, %v9316_v46  ;;  %v1291_v33 = vadd.f32 %v1285_v18, %v1210_v19  ;;  %v9320_v23 = vld [vmem:[#allocation152_spill] sm:$0xff]  ;;  %v1340_v53 = vsel %vm657_vm6, %v9319_v52, %v9321_v27  ;;  %v9325_v11 = vld [vmem:[#allocation158_spill] sm:$0xff] }
 0x2d6   :  { %v1339_v6 = vsel %vm657_vm6, %v9320_v23, %v9319_v52  ;;  %v1341_v56 = vsel %vm657_vm6, %v9321_v27, %v9322_v31  ;;  %v1292_v25 = vadd.f32 %v1286_v59, %v1211_v22  ;;  %v1293_v2 = vadd.f32 %v1287_v24, %v1212_v30  ;;  %v9324_v57 = vld [vmem:[#allocation156_spill] sm:$0xff]  ;;  %v9326_v23 = vld [vmem:[#allocation157_spill] sm:$0xff]  ;;  %v9327_v59 = vld [vmem:[#allocation163_spill] sm:$0xff] }
 0x2d7   :  { %v1366_v39 = vsel %vm657_vm6, %v9324_v57, %v9323_v17  ;;  %v1367_v19 = vsel %vm657_vm6, %v9323_v17, %v9325_v11  ;;  %v1318_v18 = vadd.f32 %v1312_v55, %v1237_v14  ;;  %v1319_v51 = vadd.f32 %v1313_v13, %v1238_v1  ;;  %v9328_v22 = vld [vmem:[#allocation164_spill] sm:$0xff]  ;;  %v9330_v14 = vld [vmem:[#allocation166_spill] sm:$0xff] }
 0x2d8   :  { %v6599_v4 = vpop.permute.xlu1 %1963  ;;  %v6601_v37 = vpop.permute.xlu0 %1961  ;;  %v1320_v46 = vadd.f32 %v1314_v8, %v1239_v5  ;;  %v1368_v52 = vsel %vm657_vm6, %v9325_v11, %v9326_v23  ;;  %v1347_v27 = vadd.f32 %v1341_v56, %v1266_v36  ;;  %v1420_v30 = vsel %vm739_vm7, %v9328_v22, %v9327_v59  ;;  %v9331_v5 = vld [vmem:[#allocation165_spill] sm:$0xff]  ;;  %v9332_v36 = vld [vmem:[#allocation159_spill] sm:$0xff]  ;;  %v9333_v55 = vld [vmem:[#allocation160_spill] sm:$0xff] }
 0x2d9   :  { %9317 = vst [vmem:[#allocation38_spill] sm:$0xff] %v6599_v4  ;;  %9318 = vst [vmem:[#allocation37_spill] sm:$0xff] %v6601_v37  ;;  %v1345_v4 = vadd.f32 %v1339_v6, %v1264_v48  ;;  %v1346_v37 = vadd.f32 %v1340_v53, %v1265_v49  ;;  %v1372_v57 = vadd.f32 %v1366_v39, %v1291_v33  ;;  %v9334_v8 = vld [vmem:[#allocation162_spill] sm:$0xff]  ;;  %v9335_v53 = vld [vmem:[#allocation167_spill] sm:$0xff] }
 0x2da   :  { %v1373_v17 = vadd.f32 %v1367_v19, %v1292_v25  ;;  %v1421_v1 = vsel %vm739_vm7, %v9327_v59, %v9330_v14  ;;  %v1422_v48 = vsel %vm739_vm7, %v9330_v14, %v9331_v5  ;;  %v1374_v49 = vadd.f32 %v1368_v52, %v1293_v2  ;;  %v9336_v33 = vld [vmem:[#allocation168_spill] sm:$0xff]  ;;  %v9337_v25 = vld [vmem:[#allocation161_spill] sm:$0xff]  ;;  %v9338_v19 = vld [vmem:[#allocation170_spill] sm:$0xff] }
 0x2db   :  { %v1393_v13 = vsel %vm657_vm6, %v9333_v55, %v9332_v36  ;;  %v1394_v6 = vsel %vm657_vm6, %v9332_v36, %v9334_v8  ;;  %v1447_v56 = vsel %vm739_vm7, %v9336_v33, %v9335_v53  ;;  %v1395_v39 = vsel %vm657_vm6, %v9334_v8, %v9337_v25  ;;  %v9339_v23 = vld [vmem:[#allocation169_spill] sm:$0xff]  ;;  %v9340_v14 = vld [vmem:[#allocation171_spill] sm:$0xff]  ;;  %v9341_v5 = vld [vmem:[#allocation172_spill] sm:$0xff] }
 0x2dc   :  { %v6624_v24 = vpop.permute.xlu1 %1986  ;;  %v6626_v31 = vpop.permute.xlu0 %1984  ;;  %v1426_v11 = vadd.f32 %v1420_v30, %v1345_v4  ;;  %v1448_v2 = vsel %vm739_vm7, %v9335_v53, %v9338_v19  ;;  %v1449_v52 = vsel %vm739_vm7, %v9338_v19, %v9339_v23  ;;  %v1427_v59 = vadd.f32 %v1421_v1, %v1346_v37  ;;  %v9342_v55 = vld [vmem:[#allocation174_spill] sm:$0xff] }
 0x2dd   :  { %9329 = vst [vmem:[#allocation39_spill] sm:$0xff] %v6626_v31  ;;  %v1428_v22 = vadd.f32 %v1422_v48, %v1347_v27  ;;  %v1474_v36 = vsel %vm739_vm7, %v9341_v5, %v9340_v14  ;;  %v1475_v33 = vsel %vm739_vm7, %v9340_v14, %v9342_v55  ;;  %v1399_v30 = vadd.f32 %v1393_v13, %v1318_v18  ;;  %v9343_v31 = vld [vmem:[#allocation173_spill] sm:$0xff] }
 0x2de   :  { %v1400_v53 = vadd.f32 %v1394_v6, %v1319_v51  ;;  %v1453_v25 = vadd.f32 %v1447_v56, %v1372_v57  ;;  %v1476_v37 = vsel %vm739_vm7, %v9342_v55, %v9343_v31  ;;  %v1401_v27 = vadd.f32 %v1395_v39, %v1320_v46  ;;  %v9346_v56 = vld [vmem:[#allocation178_spill] sm:$0xff] }
 0x2df   :  { %v1454_v1 = vadd.f32 %v1448_v2, %v1373_v17  ;;  %v1455_v48 = vadd.f32 %v1449_v52, %v1374_v49  ;;  %v1505_v19 = vmul.f32 %v6457_v15, %v6498_v29  ;;  %v1480_v23 = vadd.f32 %v1474_v36, %v1399_v30  ;;  %v9344_v15 = vld [vmem:[#allocation175_spill] sm:$0xff]  ;;  %v9345_v49 = vld [vmem:[#allocation176_spill] sm:$0xff]  ;;  %v9350_v52 = vld [vmem:[#allocation182_spill] sm:$0xff] }
 0x2e0   :  { %v6658_v8 = vpop.permute.xlu1 %1990  ;;  %v6660_v4 = vpop.permute.xlu0 %1988  ;;  %v1481_v5 = vadd.f32 %v1475_v33, %v1400_v53  ;;  %v1506_v14 = vmul.f32 %v6462_v0, %v6498_v29  ;;  %v1507_v18 = vmul.f32 %v6473_v62, %v6498_v29  ;;  %v1482_v51 = vadd.f32 %v1476_v37, %v1401_v27  ;;  %v9347_v62 = vld [vmem:[#allocation177_spill] sm:$0xff]  ;;  %v9348_v29 = vld [vmem:[#allocation179_spill] sm:$0xff]  ;;  %v9353_v30 = vld [vmem:[#allocation184_spill] sm:$0xff] }
 0x2e1   :  { %v1492_v57 = vadd.f32 %v6460_v28, %v1426_v11  ;;  %v1493_v13 = vadd.f32 %v6465_v10, %v1427_v59  ;;  %v1494_v46 = vadd.f32 %v6476_v43, %v1428_v22  ;;  %v1533_v6 = vsel %vm165_vm0, %v9345_v49, %v9344_v15  ;;  %v9349_v43 = vld [vmem:[#allocation180_spill] sm:$0xff]  ;;  %v9351_v22 = vld [vmem:[#allocation181_spill] sm:$0xff]  ;;  %v9352_v33 = vld [vmem:[#allocation183_spill] sm:$0xff] }
 0x2e2   :  { %v1534_v0 = vsel %vm165_vm0, %v9344_v15, %v9346_v56  ;;  %v1535_v28 = vsel %vm165_vm0, %v9346_v56, %v9347_v62  ;;  %v1500_v10 = vadd.f32 %v6486_v41, %v1453_v25  ;;  %v1560_v39 = vsel %vm165_vm0, %v9349_v43, %v9348_v29  ;;  %v9354_v49 = vld [vmem:[#allocation186_spill] sm:$0xff]  ;;  %v9359_v56 = vld [vmem:[#allocation189_spill] sm:$0xff]  ;;  %v9360_v62 = vld [vmem:[#allocation191_spill] sm:$0xff] }
 0x2e3   :  { %v1501_v11 = vadd.f32 %v6492_v9, %v1454_v1  ;;  %v1502_v2 = vadd.f32 %v6495_v63, %v1455_v48  ;;  %v1561_v59 = vsel %vm165_vm0, %v9348_v29, %v9350_v52  ;;  %v1562_v36 = vsel %vm165_vm0, %v9350_v52, %v9351_v22  ;;  %v9362_v29 = vld [vmem:[#allocation194_spill] sm:$0xff]  ;;  %v9365_v22 = vld [vmem:[#allocation196_spill] sm:$0xff] }
 0x2e4   :  { %v6674_v31 = vpop.permute.xlu1 %2013  ;;  %v6676_v17 = vpop.permute.xlu0 %2011  ;;  %v1508_v55 = vadd.f32 %v1505_v19, %v1480_v23  ;;  %v1587_v41 = vsel %vm165_vm0, %v9353_v30, %v9352_v33  ;;  %v1509_v53 = vadd.f32 %v1506_v14, %v1481_v5  ;;  %v1539_v25 = vadd.f32 %v1533_v6, %v1492_v57  ;;  %v9355_v23 = vld [vmem:[#allocation185_spill] sm:$0xff] }
 0x2e5   :  { %v1540_v9 = vadd.f32 %v1534_v0, %v1493_v13  ;;  %v1541_v37 = vadd.f32 %v1535_v28, %v1494_v46  ;;  %v1510_v63 = vadd.f32 %v1507_v18, %v1482_v51  ;;  %v1566_v48 = vadd.f32 %v1560_v39, %v1500_v10  ;;  %v9356_v13 = vld [vmem:[#allocation187_spill] sm:$0xff]  ;;  %v9357_v18 = vld [vmem:[#allocation188_spill] sm:$0xff]  ;;  %v9358_v46 = vld [vmem:[#allocation190_spill] sm:$0xff] }
 0x2e6   :  { %v1567_v15 = vadd.f32 %v1561_v59, %v1501_v11  ;;  %v1588_v19 = vsel %vm165_vm0, %v9352_v33, %v9354_v49  ;;  %v1589_v5 = vsel %vm165_vm0, %v9354_v49, %v9355_v23  ;;  %v1568_v14 = vadd.f32 %v1562_v36, %v1502_v2  ;;  %v9361_v28 = vld [vmem:[#allocation192_spill] sm:$0xff]  ;;  %v9363_v39 = vld [vmem:[#allocation193_spill] sm:$0xff]  ;;  %v9364_v59 = vld [vmem:[#allocation195_spill] sm:$0xff] }
 0x2e7   :  { %v1593_v57 = vadd.f32 %v1587_v41, %v1508_v55  ;;  %v1614_v51 = vsel %vm247_vm1, %v9357_v18, %v9356_v13  ;;  %v1615_v6 = vsel %vm247_vm1, %v9356_v13, %v9358_v46  ;;  %v1616_v0 = vsel %vm247_vm1, %v9358_v46, %v9359_v56  ;;  %v9366_v55 = vld [vmem:[#allocation198_spill] sm:$0xff]  ;;  %v9367_v13 = vld [vmem:[#allocation197_spill] sm:$0xff] }
 0x2e8   :  { %v6704_v27 = vpop.permute.xlu1 %2017  ;;  %v6706_v1 = vpop.permute.xlu0 %2015  ;;  %v1641_v10 = vsel %vm247_vm1, %v9361_v28, %v9360_v62  ;;  %v1642_v43 = vsel %vm247_vm1, %v9360_v62, %v9362_v29  ;;  %v1643_v11 = vsel %vm247_vm1, %v9362_v29, %v9363_v39  ;;  %v1594_v2 = vadd.f32 %v1588_v19, %v1509_v53  ;;  %v9369_v19 = vld [vmem:[#allocation200_spill] sm:$0xff]  ;;  %v9370_v39 = vld [vmem:[#allocation202_spill] sm:$0xff] }
 0x2e9   :  { %v1595_v52 = vadd.f32 %v1589_v5, %v1510_v63  ;;  %v1668_v36 = vsel %vm247_vm1, %v9365_v22, %v9364_v59  ;;  %v1669_v33 = vsel %vm247_vm1, %v9364_v59, %v9366_v55  ;;  %v1620_v49 = vadd.f32 %v1614_v51, %v1539_v25  ;;  %v9368_v63 = vld [vmem:[#allocation199_spill] sm:$0xff]  ;;  %v9371_v59 = vld [vmem:[#allocation201_spill] sm:$0xff] }
 0x2ea   :  { %v1621_v23 = vadd.f32 %v1615_v6, %v1540_v9  ;;  %v1670_v53 = vsel %vm247_vm1, %v9366_v55, %v9367_v13  ;;  %v1695_v5 = vsel %vm329_vm2, %v9369_v19, %v9368_v63  ;;  %v1622_v18 = vadd.f32 %v1616_v0, %v1541_v37  ;;  %v9372_v37 = vld [vmem:[#allocation203_spill] sm:$0xff] }
 0x2eb   :  { %v1647_v46 = vadd.f32 %v1641_v10, %v1566_v48  ;;  %v1648_v56 = vadd.f32 %v1642_v43, %v1567_v15  ;;  %v1649_v62 = vadd.f32 %v1643_v11, %v1568_v14  ;;  %v1674_v28 = vadd.f32 %v1668_v36, %v1593_v57  ;;  %v9373_v48 = vld [vmem:[#allocation204_spill] sm:$0xff] }
 0x2ec   :  { %v6742_v30 = vpop.permute.xlu1 %2040  ;;  %v6744_v41 = vpop.permute.xlu0 %2038  ;;  %v1675_v29 = vadd.f32 %v1669_v33, %v1594_v2  ;;  %v1696_v25 = vsel %vm329_vm2, %v9368_v63, %v9370_v39  ;;  %v6756_v9 = vstv %s6702_s7  ;;  %v1676_v51 = vadd.f32 %v1670_v53, %v1595_v52  ;;  %s4645_s7 = sld [smem:[#allocation12 + $0x3d]] }
 0x2ed   :  { %v1701_v6 = vadd.f32 %v1695_v5, %v1620_v49  ;;  %v1697_v22 = vsel %vm329_vm2, %v9370_v39, %v9371_v59  ;;  %v1722_v15 = vsel %vm329_vm2, %v9373_v48, %v9372_v37  ;;  %v1723_v0 = vsel %vm329_vm2, %v9372_v37, %v6057_v7 }
 0x2ee   :  { %v1724_v10 = vsel %vm329_vm2, %v6057_v7, %v6055_v16  ;;  %v1749_v43 = vsel %vm329_vm2, %v6090_v12, %v6088_v26  ;;  %v6778_v11 = vstv %s6714_s8  ;;  %v1702_v2 = vadd.f32 %v1696_v25, %v1621_v23  ;;  %s4646_s8 = sld [smem:[#allocation12 + $0x8]] }
 0x2ef   :  { %v1750_v52 = vsel %vm329_vm2, %v6088_v26, %v6116_v3  ;;  %v1751_v36 = vsel %vm329_vm2, %v6116_v3, %v6114_v54  ;;  %v6787_v55 = vstv %s6722_s9  ;;  %v1703_v33 = vadd.f32 %v1697_v22, %v1622_v18  ;;  %v9377_v22 = vld [vmem:[#allocation22_spill] sm:$0xff]  ;;  %s4647_s9 = sld [smem:[#allocation12 + $0x23]] }
 0x2f0   :  { %v6764_v14 = vpop.permute.xlu1 %2044  ;;  %v6766_v57 = vpop.permute.xlu0 %2042  ;;  %v1728_v49 = vadd.f32 %v1722_v15, %v1647_v46  ;;  %v1776_v7 = vsel %vm411_vm3, %v6150_v20, %v6148_v21  ;;  %v6793_v16 = vmul.f32 0.0, %v6778_v11  ;;  %v1729_v12 = vadd.f32 %v1723_v0, %v1648_v56 }
 0x2f1   :  { %v1730_v23 = vadd.f32 %v1724_v10, %v1649_v62  ;;  %v1755_v13 = vadd.f32 %v1749_v43, %v1674_v28  ;;  %v1777_v26 = vsel %vm411_vm3, %v6148_v21, %v6193_v35  ;;  %v1756_v3 = vadd.f32 %v1750_v52, %v1675_v29  ;;  %v9378_v10 = vld [vmem:[#allocation35_spill] sm:$0xff] }
 0x2f2   :  { %v1757_v63 = vadd.f32 %v1751_v36, %v1676_v51  ;;  %v1778_v20 = vsel %vm411_vm3, %v6193_v35, %v6191_v38  ;;  %v1857_v19 = vsel %vm493_vm4, %v6337_v34, %v6335_v32  ;;  %v1782_v5 = vadd.f32 %v1776_v7, %v1701_v6  ;;  %v9374_v34 = vld [vmem:[#allocation34_spill] sm:$0xff]  ;;  %v9383_v7 = vld [vmem:[#allocation27_spill] sm:$0xff] }
 0x2f3   :  { %v1803_v18 = vsel %vm411_vm3, %v6228_v61, %v6226_v60  ;;  %v1804_v21 = vsel %vm411_vm3, %v6226_v60, %v6253_v40  ;;  %v1805_v46 = vsel %vm411_vm3, %v6253_v40, %v6251_v45  ;;  %v1783_v56 = vadd.f32 %v1777_v26, %v1702_v2  ;;  %v9375_v60 = vld [vmem:[#allocation24_spill] sm:$0xff]  ;;  %v9376_v45 = vld [vmem:[#allocation23_spill] sm:$0xff]  ;;  %v9379_v2 = vld [vmem:[#allocation33_spill] sm:$0xff] }
 0x2f4   :  { %v6798_v53 = vpop.permute.xlu1 %2067  ;;  %v6800_v54 = vpop.permute.xlu0 %2065  ;;  %v1830_v38 = vsel %vm411_vm3, %v6281_v42, %v6279_v44  ;;  %v1831_v35 = vsel %vm411_vm3, %v6279_v44, %v6312_v58  ;;  %v1938_v61 = vsel %vm575_vm5, %v9374_v34, %v6515_v50  ;;  %v1784_v62 = vadd.f32 %v1778_v20, %v1703_v33  ;;  %v9380_v36 = vld [vmem:[#allocation26_spill] sm:$0xff]  ;;  %v9381_v33 = vld [vmem:[#allocation25_spill] sm:$0xff] }
 0x2f5   :  { %v1863_v28 = vadd.f32 %v1857_v19, %v1782_v5  ;;  %v1858_v29 = vsel %vm493_vm4, %v6335_v32, %v9375_v60  ;;  %v1859_v40 = vsel %vm493_vm4, %v9375_v60, %v9376_v45  ;;  %v1809_v25 = vadd.f32 %v1803_v18, %v1728_v49  ;;  %v9382_v49 = vld [vmem:[#allocation28_spill] sm:$0xff]  ;;  %v9385_v34 = vld [vmem:[#allocation30_spill] sm:$0xff] }
 0x2f6   :  { %v1810_v44 = vadd.f32 %v1804_v21, %v1729_v12  ;;  %v1811_v51 = vadd.f32 %v1805_v46, %v1730_v23  ;;  %v2019_v6 = vsel %vm657_vm6, %v6676_v17, %v6674_v31  ;;  %v1836_v59 = vadd.f32 %v1830_v38, %v1755_v13  ;;  %v9384_v21 = vld [vmem:[#allocation36_spill] sm:$0xff] }
 0x2f7   :  { %v1832_v32 = vsel %vm411_vm3, %v6312_v58, %v9377_v22  ;;  %v1837_v37 = vadd.f32 %v1831_v35, %v1756_v3  ;;  %v1944_v48 = vadd.f32 %v1938_v61, %v1863_v28  ;;  %v1864_v15 = vadd.f32 %v1858_v29, %v1783_v56  ;;  %v9386_v61 = vld [vmem:[#allocation29_spill] sm:$0xff]  ;;  %v9388_v22 = vld [vmem:[#allocation38_spill] sm:$0xff] }
 0x2f8   :  { %v6832_v39 = vpop.permute.xlu1 %2071  ;;  %v6834_v42 = vpop.permute.xlu0 %2069  ;;  %v1865_v0 = vadd.f32 %v1859_v40, %v1784_v62  ;;  %v1939_v43 = vsel %vm575_vm5, %v6515_v50, %v9378_v10  ;;  %v1940_v52 = vsel %vm575_vm5, %v9378_v10, %v9379_v2  ;;  %v1884_v17 = vsel %vm493_vm4, %v9381_v33, %v9380_v36  ;;  %v9387_v40 = vld [vmem:[#allocation37_spill] sm:$0xff]  ;;  %v9389_v10 = vld [vmem:[#allocation32_spill] sm:$0xff] }
 0x2f9   :  { %v1885_v58 = vsel %vm493_vm4, %v9380_v36, %v9382_v49  ;;  %v1886_v12 = vsel %vm493_vm4, %v9382_v49, %v9383_v7  ;;  %v2025_v23 = vadd.f32 %v2019_v6, %v1944_v48  ;;  %v6857_v50 = vadd.f32 %v1832_v32, %v1757_v63 }
 0x2fa   :  { %v2020_v3 = vsel %vm657_vm6, %v6674_v31, %v6706_v1  ;;  %v2021_v20 = vsel %vm657_vm6, %v6706_v1, %v6704_v27  ;;  %v1945_v5 = vadd.f32 %v1939_v43, %v1864_v15  ;;  %v1946_v18 = vadd.f32 %v1940_v52, %v1865_v0 }
 0x2fb   :  { %v1965_v46 = vsel %vm575_vm5, %v9384_v21, %v6574_v47  ;;  %v1890_v38 = vadd.f32 %v1884_v17, %v1809_v25  ;;  %v1891_v63 = vadd.f32 %v1885_v58, %v1810_v44  ;;  %v1892_v35 = vadd.f32 %v1886_v12, %v1811_v51  ;;  %v6879_v44 = vld [vmem:[#allocation7] sm:$0xff]  ;;  %v9390_v12 = vld [vmem:[#allocation39_spill] sm:$0xff] }
 0x2fc   :  { %v2095_v13 = vpop.permute.xlu1 %2094  ;;  %v2093_v26 = vpop.permute.xlu0 %2092  ;;  %v1911_v31 = vsel %vm493_vm4, %v9386_v61, %v9385_v34  ;;  %v2026_v62 = vadd.f32 %v2020_v3, %v1945_v5  ;;  %v2027_v28 = vadd.f32 %v2021_v20, %v1946_v18  ;;  %v2046_v27 = vsel %vm657_vm6, %v6744_v41, %v6742_v30 }
 0x2fd   :  { %v2100_v19 = vsel %vm739_vm7, %v2093_v26, %v2095_v13  ;;  %v1971_v45 = vadd.f32 %v1965_v46, %v1890_v38  ;;  %v1966_v25 = vsel %vm575_vm5, %v6574_v47, %v9387_v40  ;;  %v1967_v32 = vsel %vm575_vm5, %v9387_v40, %v9388_v22 }
 0x2fe   :  { %v2106_v56 = vadd.f32 %v2100_v19, %v2025_v23  ;;  %v1917_v0 = vadd.f32 %v1911_v31, %v1836_v59  ;;  %v1912_v43 = vsel %vm493_vm4, %v9385_v34, %v9389_v10  ;;  %v2047_v47 = vsel %vm657_vm6, %v6742_v30, %v6766_v57  ;;  %v6903_v30 = vld [vmem:[#allocation7 + $0x8] sm:$0xff] }
 0x2ff   :  { %v2052_v2 = vadd.f32 %v2046_v27, %v1971_v45  ;;  %v2048_v52 = vsel %vm657_vm6, %v6766_v57, %v6764_v14  ;;  %v1972_v58 = vadd.f32 %v1966_v25, %v1891_v63  ;;  %v1973_v7 = vadd.f32 %v1967_v32, %v1892_v35  ;;  %v9392_v19 = vld [vmem:[#allocation31_spill] sm:$0xff] }
 0x300   :  { %v2165_v1 = vadd.f32 %v6756_v9, %v2106_v56  ;;  %v2099_v60 = vpop.permute.xlu1 %2098  ;;  %v2097_v29 = vpop.permute.xlu0 %2096  ;;  %v1992_v23 = vsel %vm575_vm5, %v9390_v12, %v6624_v24  ;;  %v1913_v5 = vsel %vm493_vm4, %v9389_v10, %v9392_v19  ;;  %v1918_v18 = vadd.f32 %v1912_v43, %v1837_v37 }
 0x301   :  { %v2101_v51 = vsel %vm739_vm7, %v2095_v13, %v2097_v29  ;;  %v2102_v6 = vsel %vm739_vm7, %v2097_v29, %v2099_v60  ;;  %v6905_v13 = vld [vmem:[#allocation7 + $0x10] sm:$0xff]  ;;  %v2053_v21 = vadd.f32 %v2047_v47, %v1972_v58  ;;  %v2054_v46 = vadd.f32 %v2048_v52, %v1973_v7 }
 0x302   :  { %v2168_v41 = vmax.f32 %v2165_v1, 0.0  ;;  %v2107_v48 = vadd.f32 %v2101_v51, %v2026_v62  ;;  %v2108_v15 = vadd.f32 %v2102_v6, %v2027_v28  ;;  %v2073_v56 = vsel %vm657_vm6, %v6800_v54, %v6798_v53 }
 0x303   :  { %v1998_v31 = vadd.f32 %v1992_v23, %v1917_v0  ;;  %v1993_v37 = vsel %vm575_vm5, %v6624_v24, %v6660_v4  ;;  %v1919_v29 = vadd.f32 %v1913_v5, %v6857_v50  ;;  %v1994_v45 = vsel %vm575_vm5, %v6660_v4, %v6658_v8 }
 0x304   :  { %v6896_v36 = vmul.f32 %v2168_v41, %v6879_v44  ;;  %v2166_v33 = vadd.f32 %v6756_v9, %v2107_v48  ;;  %v2167_v59 = vadd.f32 %v6756_v9, %v2108_v15  ;;  %v2122_v17 = vpop.permute.xlu1 %2121  ;;  %v2120_v49 = vpop.permute.xlu0 %2119  ;;  %v9391_v9 = vld [vmem:[#allocation205_spill] sm:$0xff]  ;;  %v2074_v25 = vsel %vm657_vm6, %v6798_v53, %v6834_v42 }
 0x305   :  { %v2127_v14 = vsel %vm739_vm7, %v2120_v49, %v2122_v17  ;;  %v2079_v40 = vadd.f32 %v2073_v56, %v1998_v31  ;;  %v1999_v8 = vadd.f32 %v1993_v37, %v1918_v18  ;;  %v2075_v4 = vsel %vm657_vm6, %v6834_v42, %v6832_v39 }
 0x306   :  { %v2169_v57 = vmax.f32 %v2166_v33, 0.0  ;;  %v2170_v26 = vmax.f32 %v2167_v59, 0.0  ;;  %v2133_v3 = vadd.f32 %v2127_v14, %v2052_v2  ;;  %v2244_v20 = vmul.f32 %v9391_v9, %v6896_v36 }
 0x307   :  { %v2193_v41 = vstv %s6908_s10  ;;  %v2000_v53 = vadd.f32 %v1994_v45, %v1919_v29  ;;  %v2080_v43 = vadd.f32 %v2074_v25, %v1999_v8  ;;  %v2300_v14 = vstv %s6939_s1  ;;  %s4648_s10 = sld [smem:[#allocation12 + $0x3e]]  ;;  %s4652_s1 = sld [smem:[#allocation12 + $0xa]] }
 0x308   :  { %v6919_v38 = vmul.f32 %v2169_v57, %v6903_v30  ;;  %v6922_v63 = vmul.f32 %v2170_v26, %v6905_v13  ;;  %v2179_v35 = vadd.f32 %v6787_v55, %v2133_v3  ;;  %v2126_v34 = vpop.permute.xlu1 %2125  ;;  %v2124_v61 = vpop.permute.xlu0 %2123  ;;  %2253 = vrot.lane.b32.xlu1 %v2244_v20, %s4928_s14  ;;  %v2301_v3 = vmul.f32 0.0, %v2300_v14 }
 0x309   :  { %v2128_v62 = vsel %vm739_vm7, %v2122_v17, %v2124_v61  ;;  %v2129_v54 = vsel %vm739_vm7, %v2124_v61, %v2126_v34  ;;  %v2081_v2 = vadd.f32 %v2075_v4, %v2000_v53  ;;  %v2302_v19 = vmul.f32 %v2300_v14, %v6896_v36 }
 0x30a   :  { %v2182_v28 = vmax.f32 %v2179_v35, 0.0  ;;  %v2134_v27 = vadd.f32 %v2128_v62, %v2053_v21  ;;  %v2135_v1 = vadd.f32 %v2129_v54, %v2054_v46  ;;  %v2245_v60 = vmul.f32 %v9391_v9, %v6919_v38 }
 0x30b   :  { %v2246_v24 = vmul.f32 %v9391_v9, %v6922_v63  ;;  %v2274_v12 = vmul.f32 %v6778_v11, %v6919_v38  ;;  %v2275_v23 = vmul.f32 %v6778_v11, %v6922_v63  ;;  %v2304_v18 = vmul.f32 %v2300_v14, %v6922_v63 }
 0x30c   :  { %v6945_v51 = vmul.f32 %v2182_v28, %v6879_v44  ;;  %v2180_v6 = vadd.f32 %v6787_v55, %v2134_v27  ;;  %v2181_v50 = vadd.f32 %v6787_v55, %v2135_v1  ;;  %v2149_v22 = vpop.permute.xlu1 %2148  ;;  %v2147_v32 = vpop.permute.xlu0 %2146  ;;  %2255 = vrot.lane.b32.xlu0 %v2245_v60, %s4928_s14  ;;  %v2273_v55 = vmul.f32 %v6778_v11, %v6896_v36 }
 0x30d   :  { %v2154_v48 = vsel %vm739_vm7, %v2147_v32, %v2149_v22  ;;  %2257 = vrot.lane.b32.xlu1 %v2246_v24, %s4928_s14  ;;  %v2329_v21 = vstv %s4628_s12  ;;  %v2358_v35 = vstv %s4629_s4  ;;  %v2387_v62 = vstv %s4630_s13  ;;  %s4653_s12 = sld [smem:[#allocation12 + $0x25]]  ;;  %s4654_s4 = sld [smem:[#allocation12 + $0x40]] }
 0x30e   :  { %9393 = vst [vmem:[#allocation40_spill] sm:$0xff] %v6945_v51  ;;  %v2183_v15 = vmax.f32 %v2180_v6, 0.0  ;;  %v2184_v0 = vmax.f32 %v2181_v50, 0.0  ;;  %v2160_v10 = vadd.f32 %v2154_v48, %v2079_v40  ;;  %v2330_v46 = vmul.f32 0.0, %v2329_v21  ;;  %s4655_s13 = sld [smem:[#allocation12 + $0xb]] }
 0x30f   :  { %v2333_v56 = vmul.f32 %v2329_v21, %v6922_v63  ;;  %v2359_v34 = vmul.f32 0.0, %v2358_v35  ;;  %v2360_v61 = vmul.f32 %v2358_v35, %v6896_v36  ;;  %v2361_v31 = vmul.f32 %v2358_v35, %v6919_v38 }
 0x310   :  { %v6959_v47 = vmul.f32 %v2183_v15, %v6903_v30  ;;  %v6962_v39 = vmul.f32 %v2184_v0, %v6905_v13  ;;  %v2194_v42 = vadd.f32 %v2193_v41, %v2160_v10  ;;  %v2153_v52 = vpop.permute.xlu1 %2152  ;;  %v2151_v33 = vpop.permute.xlu0 %2150  ;;  %2280 = vrot.lane.b32.xlu0 %v6793_v16, %s4928_s14  ;;  %v2362_v37 = vmul.f32 %v2358_v35, %v6922_v63 }
 0x311   :  { %v2155_v59 = vsel %vm739_vm7, %v2149_v22, %v2151_v33  ;;  %v2156_v17 = vsel %vm739_vm7, %v2151_v33, %v2153_v52  ;;  %2282 = vrot.lane.b32.xlu1 %v2273_v55, %s4928_s14  ;;  %v2388_v54 = vmul.f32 0.0, %v2387_v62  ;;  %v2389_v28 = vmul.f32 %v2387_v62, %v6896_v36 }
 0x312   :  { %9394 = vst [vmem:[#allocation42_spill] sm:$0xff] %v6962_v39  ;;  %v2197_v49 = vmax.f32 %v2194_v42, 0.0  ;;  %v2161_v58 = vadd.f32 %v2155_v59, %v2080_v43  ;;  %v2162_v7 = vadd.f32 %v2156_v17, %v2081_v2  ;;  %v2390_v27 = vmul.f32 %v2387_v62, %v6919_v38 }
 0x313   :  { %v2391_v1 = vmul.f32 %v2387_v62, %v6922_v63  ;;  %v2416_v60 = vstv %s4631_s15  ;;  %v2445_v25 = vstv %s4632_s16  ;;  %v2474_v8 = vstv %s4633_s17  ;;  %s4656_s15 = sld [smem:[#allocation12 + $0x26]]  ;;  %s4657_s16 = sld [smem:[#allocation12 + $0x41]] }
 0x314   :  { %v6975_v57 = vmul.f32 %v2197_v49, %v6879_v44  ;;  %v2195_v16 = vadd.f32 %v2193_v41, %v2161_v58  ;;  %v2196_v26 = vadd.f32 %v2193_v41, %v2162_v7  ;;  %2284 = vrot.lane.b32.xlu0 %v2274_v12, %s4928_s14  ;;  %v2303_v44 = vmul.f32 %v2300_v14, %v6919_v38  ;;  %s4658_s17 = sld [smem:[#allocation12 + $0xc]] }
 0x315   :  { %2286 = vrot.lane.b32.xlu1 %v2275_v23, %s4928_s14  ;;  %v2417_v29 = vmul.f32 0.0, %v2416_v60  ;;  %v2418_v45 = vmul.f32 %v2416_v60, %v6896_v36  ;;  %v2419_v40 = vmul.f32 %v2416_v60, %v6919_v38  ;;  %v2420_v24 = vmul.f32 %v2416_v60, %v6922_v63 }
 0x316   :  { %9395 = vst [vmem:[#allocation41_spill] sm:$0xff] %v6975_v57  ;;  %v2198_v9 = vmax.f32 %v2195_v16, 0.0  ;;  %v2199_v20 = vmax.f32 %v2196_v26, 0.0  ;;  %v2446_v6 = vmul.f32 0.0, %v2445_v25  ;;  %v2447_v50 = vmul.f32 %v2445_v25, %v6896_v36 }
 0x317   :  { %v2448_v22 = vmul.f32 %v2445_v25, %v6919_v38  ;;  %v2449_v32 = vmul.f32 %v2445_v25, %v6922_v63  ;;  %v2475_v4 = vmul.f32 0.0, %v2474_v8  ;;  %v2476_v41 = vmul.f32 %v2474_v8, %v6896_v36 }
 0x318   :  { %v6981_v5 = vmul.f32 %v2198_v9, %v6903_v30  ;;  %v6984_v11 = vmul.f32 %v2199_v20, %v6905_v13  ;;  %2309 = vrot.lane.b32.xlu0 %v2301_v3, %s4928_s14  ;;  %v2331_v30 = vmul.f32 %v2329_v21, %v6896_v36  ;;  %v2332_v13 = vmul.f32 %v2329_v21, %v6919_v38 }
 0x319   :  { %2311 = vrot.lane.b32.xlu1 %v2302_v19, %s4928_s14  ;;  %v2477_v48 = vmul.f32 %v2474_v8, %v6919_v38  ;;  %v2478_v53 = vmul.f32 %v2474_v8, %v6922_v63  ;;  %v2503_v15 = vstv %s4634_s19  ;;  %v2527_v43 = vstv %s4635_s20  ;;  %s4659_s19 = sld [smem:[#allocation12 + $0x27]]  ;;  %s4660_s20 = sld [smem:[#allocation12 + $0x42]] }
 0x31a   :  { %9396 = vst [vmem:[#allocation43_spill] sm:$0xff] %v6981_v5  ;;  %9397 = vst [vmem:[#allocation44_spill] sm:$0xff] %v6984_v11  ;;  %v2504_v0 = vmul.f32 %v2503_v15, %v6896_v36  ;;  %v2505_v10 = vmul.f32 %v2503_v15, %v6919_v38  ;;  %v2506_v55 = vmul.f32 %v2503_v15, %v6922_v63  ;;  %v2551_v33 = vstv %s4636_s21  ;;  %s2211_s21 = sld [smem:[#allocation12]] }
 0x31b   :  { %v2528_v2 = vmul.f32 %v2527_v43, %v6896_v36  ;;  %v2529_v42 = vmul.f32 %v2527_v43, %v6919_v38  ;;  %v2530_v52 = vmul.f32 %v2527_v43, %v6922_v63  ;;  %v2552_v59 = vmul.f32 %v2551_v33, %v6896_v36 }
 0x31c   :  { %2313 = vrot.lane.b32.xlu0 %v2303_v44, %s4928_s14  ;;  %v2553_v17 = vmul.f32 %v2551_v33, %v6919_v38  ;;  %v2579_v49 = vstv %s4637_s23  ;;  %v2554_v58 = vmul.f32 %v2551_v33, %v6922_v63  ;;  %v2608_v16 = vstv %s4638_s24  ;;  %s4623_s23 = sld [smem:[#allocation12 + $0x1b]]  ;;  %s4624_s24 = sld [smem:[#allocation12 + $0x36]] }
 0x31d   :  { %2315 = vrot.lane.b32.xlu1 %v2304_v18, %s4928_s14  ;;  %v2580_v7 = vmul.f32 %v2579_v49, %v6896_v36  ;;  %v2581_v12 = vmul.f32 %v2579_v49, %v6919_v38  ;;  %v2582_v23 = vmul.f32 %v2579_v49, %v6922_v63  ;;  %v2583_v14 = vmul.f32 0.0, %v2579_v49 }
 0x31e   :  { %v2609_v26 = vmul.f32 %v2608_v16, %v6896_v36  ;;  %v2610_v3 = vmul.f32 %v2608_v16, %v6919_v38  ;;  %v2611_v9 = vmul.f32 %v2608_v16, %v6922_v63  ;;  %v2612_v20 = vmul.f32 0.0, %v2608_v16 }
 0x31f   :  { %v2637_v19 = vstv %s4639_s25  ;;  %s4661_s25 = sld [smem:[#allocation12 + $0xd]] }
 0x320   :  { %2338 = vrot.lane.b32.xlu0 %v2330_v46, %s4929_s18  ;;  %v2638_v44 = vmul.f32 %v2637_v19, %v6896_v36  ;;  %v2639_v18 = vmul.f32 %v2637_v19, %v6919_v38  ;;  %v2640_v21 = vmul.f32 %v2637_v19, %v6922_v63  ;;  %v2641_v46 = vmul.f32 0.0, %v2637_v19 }
 0x321   :  { %2340 = vrot.lane.b32.xlu1 %v2331_v30, %s4929_s18  ;;  %v2666_v30 = vstv %s4640_s0  ;;  %s4662_s0 = sld [smem:[#allocation12 + $0x28]] }
 0x324   :  { %2342 = vrot.lane.b32.xlu0 %v2332_v13, %s4929_s18  ;;  %v2667_v13 = vmul.f32 %v2666_v30, %v6896_v36 }
 0x325   :  { %2344 = vrot.lane.b32.xlu1 %v2333_v56, %s4929_s18  ;;  %v7074_v56 = vpop.permute.xlu0 %2251 }
 0x326   :  { %9398 = vst [vmem:[#allocation46_spill] sm:$0xff] %v7074_v56 }
 0x328   :  { %2367 = vrot.lane.b32.xlu0 %v2359_v34, %s4929_s18  ;;  %v2668_v34 = vmul.f32 %v2666_v30, %v6919_v38 }
 0x329   :  { %2369 = vrot.lane.b32.xlu1 %v2360_v61, %s4929_s18  ;;  %v2669_v61 = vmul.f32 %v2666_v30, %v6922_v63 }
 0x32c   :  { %2371 = vrot.lane.b32.xlu0 %v2361_v31, %s4929_s18  ;;  %v2670_v31 = vmul.f32 0.0, %v2666_v30 }
 0x32d   :  { %2373 = vrot.lane.b32.xlu1 %v2362_v37, %s4929_s18  ;;  %v2695_v37 = vstv %s4641_s2  ;;  %s4663_s2 = sld [smem:[#allocation12 + $0x43]] }
 0x330   :  { %2396 = vrot.lane.b32.xlu0 %v2388_v54, %s4929_s18 }
 0x331   :  { %2398 = vrot.lane.b32.xlu1 %v2389_v28, %s4929_s18  ;;  %v2696_v28 = vmul.f32 %v2695_v37, %v6896_v36 }
 0x334   :  { %2400 = vrot.lane.b32.xlu0 %v2390_v27, %s4929_s18 }
 0x335   :  { %2402 = vrot.lane.b32.xlu1 %v2391_v1, %s4929_s18  ;;  %v2697_v1 = vmul.f32 %v2695_v37, %v6919_v38 }
 0x338   :  { %2425 = vrot.lane.b32.xlu0 %v2417_v29, %s4930_s22  ;;  %v2698_v29 = vmul.f32 %v2695_v37, %v6922_v63 }
 0x339   :  { %2427 = vrot.lane.b32.xlu1 %v2418_v45, %s4930_s22  ;;  %v2699_v45 = vmul.f32 0.0, %v2695_v37 }
 0x33c   :  { %2429 = vrot.lane.b32.xlu0 %v2419_v40, %s4930_s22  ;;  %v2724_v40 = vstv %s4642_s27  ;;  %s4649_s27 = sld [smem:[#allocation12 + $0x9]] }
 0x33d   :  { %2431 = vrot.lane.b32.xlu1 %v2420_v24, %s4930_s22  ;;  %v2727_v8 = vmul.f32 %v2724_v40, %v6922_v63 }
 0x340   :  { %2454 = vrot.lane.b32.xlu0 %v2446_v6, %s4930_s22  ;;  %v2725_v6 = vmul.f32 %v2724_v40, %v6896_v36 }
 0x341   :  { %2456 = vrot.lane.b32.xlu1 %v2447_v50, %s4930_s22 }
 0x344   :  { %2458 = vrot.lane.b32.xlu0 %v2448_v22, %s4930_s22  ;;  %v2726_v22 = vmul.f32 %v2724_v40, %v6919_v38 }
 0x345   :  { %2460 = vrot.lane.b32.xlu1 %v2449_v32, %s4930_s22 }
 0x348   :  { %2483 = vrot.lane.b32.xlu0 %v2475_v4, %s4930_s22  ;;  %v2728_v4 = vmul.f32 0.0, %v2724_v40 }
 0x349   :  { %2485 = vrot.lane.b32.xlu1 %v2476_v41, %s4930_s22  ;;  %v2753_v41 = vstv %s4643_s29  ;;  %s4664_s29 = sld [smem:[#allocation12 + $0xe]] }
 0x34a   :  { %v2754_v15 = vmul.f32 %v2753_v41, %v6896_v36 }
 0x34c   :  { %2487 = vrot.lane.b32.xlu0 %v2477_v48, %s4930_s22 }
 0x34d   :  { %2489 = vrot.lane.b32.xlu1 %v2478_v53, %s4930_s22 }
 0x350   :  { %2510 = vrot.lane.b32.xlu0 %v2504_v0, %s4931_s26 }
 0x351   :  { %2512 = vrot.lane.b32.xlu1 %v2505_v10, %s4931_s26  ;;  %v2755_v10 = vmul.f32 %v2753_v41, %v6919_v38 }
 0x354   :  { %2514 = vrot.lane.b32.xlu0 %v2506_v55, %s4931_s26  ;;  %v2756_v55 = vmul.f32 %v2753_v41, %v6922_v63 }
 0x355   :  { %2534 = vrot.lane.b32.xlu1 %v2528_v2, %s4931_s26  ;;  %v2757_v2 = vmul.f32 0.0, %v2753_v41  ;;  %v2898_v41 = vstv %s4648_s10  ;;  %s7655_s10 = sld [smem:[#allocation12 + $0xf]] }
 0x358   :  { %2536 = vrot.lane.b32.xlu0 %v2529_v42, %s4931_s26  ;;  %v2782_v42 = vstv %s4644_s30  ;;  %s4650_s30 = sld [smem:[#allocation12 + $0x24]] }
 0x359   :  { %2538 = vrot.lane.b32.xlu1 %v2530_v52, %s4931_s26  ;;  %v2784_v49 = vmul.f32 %v2782_v42, %v6919_v38 }
 0x35c   :  { %2558 = vrot.lane.b32.xlu0 %v2552_v59, %s4931_s26  ;;  %v2783_v59 = vmul.f32 %v2782_v42, %v6896_v36 }
 0x35d   :  { %2560 = vrot.lane.b32.xlu1 %v2553_v17, %s4931_s26 }
 0x360   :  { %2562 = vrot.lane.b32.xlu0 %v2554_v58, %s4931_s26 }
 0x361   :  { %2588 = vrot.lane.b32.xlu1 %v2580_v7, %s4932_s28  ;;  %v2785_v7 = vmul.f32 %v2782_v42, %v6922_v63 }
 0x364   :  { %2590 = vrot.lane.b32.xlu0 %v2581_v12, %s4932_s28  ;;  %v2786_v12 = vmul.f32 0.0, %v2782_v42  ;;  %v2900_v42 = vmul.f32 %v2898_v41, %v6919_v38 }
 0x365   :  { %2592 = vrot.lane.b32.xlu1 %v2582_v23, %s4932_s28  ;;  %v2811_v23 = vstv %s4645_s7  ;;  %s4665_s7 = sld [smem:[#allocation12 + $0x29]] }
 0x366   :  { %v2814_v19 = vmul.f32 %v2811_v23, %v6922_v63 }
 0x368   :  { %2594 = vrot.lane.b32.xlu0 %v2583_v14, %s4932_s28 }
 0x369   :  { %2617 = vrot.lane.b32.xlu1 %v2609_v26, %s4932_s28  ;;  %v2812_v26 = vmul.f32 %v2811_v23, %v6896_v36 }
 0x36c   :  { %2619 = vrot.lane.b32.xlu0 %v2610_v3, %s4932_s28 }
 0x36d   :  { %2621 = vrot.lane.b32.xlu1 %v2611_v9, %s4932_s28  ;;  %v2813_v9 = vmul.f32 %v2811_v23, %v6919_v38 }
 0x370   :  { %2623 = vrot.lane.b32.xlu0 %v2612_v20, %s4932_s28 }
 0x371   :  { %2646 = vrot.lane.b32.xlu1 %v2638_v44, %s4932_s28  ;;  %v2815_v44 = vmul.f32 0.0, %v2811_v23 }
 0x374   :  { %2648 = vrot.lane.b32.xlu0 %v2639_v18, %s4932_s28  ;;  %v2840_v18 = vstv %s4646_s8  ;;  %s4666_s8 = sld [smem:[#allocation12 + $0x44]] }
 0x375   :  { %2650 = vrot.lane.b32.xlu1 %v2640_v21, %s4932_s28  ;;  %v2841_v30 = vmul.f32 %v2840_v18, %v6896_v36  ;;  %v2844_v37 = vmul.f32 0.0, %v2840_v18 }
 0x378   :  { %2652 = vrot.lane.b32.xlu0 %v2641_v46, %s4932_s28 }
 0x379   :  { %2675 = vrot.lane.b32.xlu1 %v2667_v13, %s4933_s3 }
 0x37a   :  { %v7077_v35 = vpop.permute.xlu1 %2253 }
 0x37b   :  { %9399 = vst [vmem:[#allocation45_spill] sm:$0xff] %v7077_v35 }
 0x37c   :  { %2677 = vrot.lane.b32.xlu0 %v2668_v34, %s4933_s3  ;;  %v2842_v34 = vmul.f32 %v2840_v18, %v6919_v38 }
 0x37d   :  { %2679 = vrot.lane.b32.xlu1 %v2669_v61, %s4933_s3 }
 0x37e   :  { %v7083_v62 = vpop.permute.xlu0 %2255 }
 0x37f   :  { %v7085_v54 = vpop.permute.xlu1 %2257 }
 0x380   :  { %2681 = vrot.lane.b32.xlu0 %v2670_v31, %s4933_s3  ;;  %v2843_v31 = vmul.f32 %v2840_v18, %v6922_v63 }
 0x381   :  { %2704 = vrot.lane.b32.xlu1 %v2696_v28, %s4933_s3  ;;  %v2869_v28 = vstv %s4647_s9  ;;  %s7639_s9 = sld [smem:[#allocation12 + $0x3f]] }
 0x382   :  { %v7090_v27 = vpop.permute.xlu0 %2280 }
 0x383   :  { %9400 = vst [vmem:[#allocation47_spill] sm:$0xff] %v7090_v27  ;;  %v7093_v60 = vpop.permute.xlu1 %2282 }
 0x384   :  { %9401 = vst [vmem:[#allocation48_spill] sm:$0xff] %v7093_v60  ;;  %2706 = vrot.lane.b32.xlu0 %v2697_v1, %s4933_s3 }
 0x385   :  { %2708 = vrot.lane.b32.xlu1 %v2698_v29, %s4933_s3 }
 0x386   :  { %v7098_v24 = vpop.permute.xlu0 %2284 }
 0x387   :  { %v7100_v25 = vpop.permute.xlu1 %2286 }
 0x388   :  { %2710 = vrot.lane.b32.xlu0 %v2699_v45, %s4933_s3  ;;  %v2870_v45 = vmul.f32 %v2869_v28, %v6896_v36 }
 0x389   :  { %2733 = vrot.lane.b32.xlu1 %v2725_v6, %s4933_s3  ;;  %v2871_v6 = vmul.f32 %v2869_v28, %v6919_v38 }
 0x38a   :  { %v7105_v50 = vpop.permute.xlu0 %2309 }
 0x38b   :  { %9402 = vst [vmem:[#allocation50_spill] sm:$0xff] %v7105_v50  ;;  %v7108_v32 = vpop.permute.xlu1 %2311 }
 0x38c   :  { %9403 = vst [vmem:[#allocation49_spill] sm:$0xff] %v7108_v32  ;;  %2735 = vrot.lane.b32.xlu0 %v2726_v22, %s4933_s3 }
 0x38d   :  { %2737 = vrot.lane.b32.xlu1 %v2727_v8, %s4933_s3  ;;  %v2872_v8 = vmul.f32 %v2869_v28, %v6922_v63 }
 0x38e   :  { %v7113_v48 = vpop.permute.xlu0 %2313 }
 0x38f   :  { %v7115_v53 = vpop.permute.xlu1 %2315 }
 0x390   :  { %2739 = vrot.lane.b32.xlu0 %v2728_v4, %s4933_s3  ;;  %v2873_v4 = vmul.f32 0.0, %v2869_v28 }
 0x391   :  { %2762 = vrot.lane.b32.xlu1 %v2754_v15, %s4934_s11 }
 0x392   :  { %v7120_v0 = vpop.permute.xlu0 %2338 }
 0x393   :  { %9404 = vst [vmem:[#allocation51_spill] sm:$0xff] %v7120_v0  ;;  %v7123_v43 = vpop.permute.xlu1 %2340 }
 0x394   :  { %9405 = vst [vmem:[#allocation52_spill] sm:$0xff] %v7123_v43  ;;  %2764 = vrot.lane.b32.xlu0 %v2755_v10, %s4934_s11 }
 0x395   :  { %2766 = vrot.lane.b32.xlu1 %v2756_v55, %s4934_s11  ;;  %v2899_v55 = vmul.f32 %v2898_v41, %v6896_v36 }
 0x396   :  { %v7128_v52 = vpop.permute.xlu0 %2342 }
 0x397   :  { %v7130_v33 = vpop.permute.xlu1 %2344 }
 0x398   :  { %2768 = vrot.lane.b32.xlu0 %v2757_v2, %s4934_s11 }
 0x399   :  { %2791 = vrot.lane.b32.xlu1 %v2783_v59, %s4934_s11 }
 0x39a   :  { %v7135_v17 = vpop.permute.xlu0 %2367 }
 0x39b   :  { %9406 = vst [vmem:[#allocation54_spill] sm:$0xff] %v7135_v17  ;;  %v7138_v58 = vpop.permute.xlu1 %2369 }
 0x39c   :  { %9407 = vst [vmem:[#allocation53_spill] sm:$0xff] %v7138_v58  ;;  %2793 = vrot.lane.b32.xlu0 %v2784_v49, %s4934_s11  ;;  %v2901_v49 = vmul.f32 %v2898_v41, %v6922_v63 }
 0x39d   :  { %2795 = vrot.lane.b32.xlu1 %v2785_v7, %s4934_s11  ;;  %v2902_v7 = vmul.f32 0.0, %v2898_v41 }
 0x39e   :  { %v7143_v14 = vpop.permute.xlu0 %2371 }
 0x39f   :  { %v7145_v16 = vpop.permute.xlu1 %2373 }
 0x3a0   :  { %2797 = vrot.lane.b32.xlu0 %v2786_v12, %s4934_s11  ;;  %v2961_v12 = vstv %s4652_s1  ;;  %s4668_s1 = sld [smem:[#allocation12 + $0x2a]] }
 0x3a1   :  { %2820 = vrot.lane.b32.xlu1 %v2812_v26, %s4934_s11  ;;  %v2962_v23 = vmul.f32 0.0, %v2961_v12  ;;  %v2965_v28 = vmul.f32 %v2961_v12, %v6962_v39 }
 0x3a2   :  { %v7150_v3 = vpop.permute.xlu0 %2396 }
 0x3a3   :  { %9408 = vst [vmem:[#allocation55_spill] sm:$0xff] %v7150_v3  ;;  %v7153_v20 = vpop.permute.xlu1 %2398 }
 0x3a4   :  { %9409 = vst [vmem:[#allocation56_spill] sm:$0xff] %v7153_v20  ;;  %2822 = vrot.lane.b32.xlu0 %v2813_v9, %s4934_s11 }
 0x3a5   :  { %2824 = vrot.lane.b32.xlu1 %v2814_v19, %s4934_s11 }
 0x3a6   :  { %v7158_v21 = vpop.permute.xlu0 %2400 }
 0x3a7   :  { %v7160_v46 = vpop.permute.xlu1 %2402 }
 0x3a8   :  { %2826 = vrot.lane.b32.xlu0 %v2815_v44, %s4934_s11  ;;  %v2963_v44 = vmul.f32 %v2961_v12, %v6945_v51 }
 0x3a9   :  { %2849 = vrot.lane.b32.xlu1 %v2841_v30, %s4935_s5  ;;  %v2964_v30 = vmul.f32 %v2961_v12, %v6959_v47 }
 0x3aa   :  { %v7165_v13 = vpop.permute.xlu0 %2425 }
 0x3ab   :  { %9410 = vst [vmem:[#allocation58_spill] sm:$0xff] %v7165_v13  ;;  %v7168_v61 = vpop.permute.xlu1 %2427 }
 0x3ac   :  { %9411 = vst [vmem:[#allocation57_spill] sm:$0xff] %v7168_v61  ;;  %2851 = vrot.lane.b32.xlu0 %v2842_v34, %s4935_s5  ;;  %v2990_v34 = vstv %s4653_s12  ;;  %s4669_s12 = sld [smem:[#allocation12 + $0x45]] }
 0x3ad   :  { %2853 = vrot.lane.b32.xlu1 %v2843_v31, %s4935_s5  ;;  %v2991_v31 = vmul.f32 0.0, %v2990_v34  ;;  %v2993_v41 = vmul.f32 %v2990_v34, %v6959_v47 }
 0x3ae   :  { %v7173_v1 = vpop.permute.xlu0 %2429 }
 0x3af   :  { %v7175_v29 = vpop.permute.xlu1 %2431 }
 0x3b0   :  { %2855 = vrot.lane.b32.xlu0 %v2844_v37, %s4935_s5 }
 0x3b1   :  { %2878 = vrot.lane.b32.xlu1 %v2870_v45, %s4935_s5 }
 0x3b2   :  { %v7180_v40 = vpop.permute.xlu0 %2454 }
 0x3b3   :  { %9412 = vst [vmem:[#allocation59_spill] sm:$0xff] %v7180_v40  ;;  %v7183_v22 = vpop.permute.xlu1 %2456 }
 0x3b4   :  { %9413 = vst [vmem:[#allocation60_spill] sm:$0xff] %v7183_v22  ;;  %2880 = vrot.lane.b32.xlu0 %v2871_v6, %s4935_s5 }
 0x3b5   :  { %2882 = vrot.lane.b32.xlu1 %v2872_v8, %s4935_s5  ;;  %v2992_v8 = vmul.f32 %v2990_v34, %v6945_v51 }
 0x3b6   :  { %v7188_v15 = vpop.permute.xlu0 %2458 }
 0x3b7   :  { %v7190_v10 = vpop.permute.xlu1 %2460 }
 0x3b8   :  { %2884 = vrot.lane.b32.xlu0 %v2873_v4, %s4935_s5 }
 0x3b9   :  { %2907 = vrot.lane.b32.xlu1 %v2899_v55, %s4935_s5  ;;  %v3019_v55 = vstv %s4654_s4  ;;  %s4670_s4 = sld [smem:[#allocation12 + $0x10]] }
 0x3ba   :  { %v7195_v2 = vpop.permute.xlu0 %2483 }
 0x3bb   :  { %9414 = vst [vmem:[#allocation62_spill] sm:$0xff] %v7195_v2  ;;  %v7198_v59 = vpop.permute.xlu1 %2485 }
 0x3bc   :  { %9415 = vst [vmem:[#allocation61_spill] sm:$0xff] %v7198_v59  ;;  %2909 = vrot.lane.b32.xlu0 %v2900_v42, %s4935_s5  ;;  %v3020_v42 = vmul.f32 0.0, %v3019_v55 }
 0x3bd   :  { %2911 = vrot.lane.b32.xlu1 %v2901_v49, %s4935_s5 }
 0x3be   :  { %v7203_v26 = vpop.permute.xlu0 %2487 }
 0x3bf   :  { %v7205_v9 = vpop.permute.xlu1 %2489 }
 0x3c0   :  { %9416 = vst [vmem:[#allocation63_spill] sm:$0xff] %v7205_v9  ;;  %2913 = vrot.lane.b32.xlu0 %v2902_v7, %s4935_s5  ;;  %v2994_v7 = vmul.f32 %v2990_v34, %v6962_v39 }
 0x3c1   :  { %2970 = vrot.lane.b32.xlu1 %v2962_v23, %s4928_s14 }
 0x3c2   :  { %v7209_v19 = vpop.permute.xlu0 %2510 }
 0x3c3   :  { %9417 = vst [vmem:[#allocation64_spill] sm:$0xff] %v7209_v19  ;;  %v7212_v18 = vpop.permute.xlu1 %2512 }
 0x3c4   :  { %2972 = vrot.lane.b32.xlu0 %v2963_v44, %s4928_s14  ;;  %v3021_v44 = vmul.f32 %v3019_v55, %v6945_v51 }
 0x3c5   :  { %2974 = vrot.lane.b32.xlu1 %v2964_v30, %s4928_s14 }
 0x3c6   :  { %v7217_v37 = vpop.permute.xlu0 %2514 }
 0x3c7   :  { %v7220_v45 = vpop.permute.xlu1 %2534 }
 0x3c8   :  { %9418 = vst [vmem:[#allocation66_spill] sm:$0xff] %v7220_v45  ;;  %2976 = vrot.lane.b32.xlu0 %v2965_v28, %s4928_s14  ;;  %v3048_v28 = vstv %s4655_s13  ;;  %s4671_s13 = sld [smem:[#allocation12 + $0x2b]] }
 0x3c9   :  { %2999 = vrot.lane.b32.xlu1 %v2991_v31, %s4928_s14  ;;  %v3022_v31 = vmul.f32 %v3019_v55, %v6959_v47  ;;  %v3049_v34 = vmul.f32 0.0, %v3048_v28  ;;  %v3050_v40 = vmul.f32 %v3048_v28, %v6945_v51  ;;  %v3051_v17 = vmul.f32 %v3048_v28, %v6959_v47 }
 0x3ca   :  { %v7224_v6 = vpop.permute.xlu0 %2536 }
 0x3cb   :  { %9419 = vst [vmem:[#allocation67_spill] sm:$0xff] %v7224_v6  ;;  %v7227_v4 = vpop.permute.xlu1 %2538 }
 0x3cc   :  { %9420 = vst [vmem:[#allocation68_spill] sm:$0xff] %v7227_v4  ;;  %3001 = vrot.lane.b32.xlu0 %v2992_v8, %s4928_s14 }
 0x3cd   :  { %3003 = vrot.lane.b32.xlu1 %v2993_v41, %s4928_s14  ;;  %v3023_v41 = vmul.f32 %v3019_v55, %v6962_v39 }
 0x3ce   :  { %v7232_v49 = vpop.permute.xlu0 %2558 }
 0x3cf   :  { %9421 = vst [vmem:[#allocation70_spill] sm:$0xff] %v7232_v49  ;;  %v7235_v12 = vpop.permute.xlu1 %2560  ;;  %v3270_v49 = vstv %s4663_s2  ;;  %s4686_s2 = sld [smem:[#allocation12 + $0x30]] }
 0x3d0   :  { %9422 = vst [vmem:[#allocation69_spill] sm:$0xff] %v7235_v12  ;;  %3005 = vrot.lane.b32.xlu0 %v2994_v7, %s4928_s14  ;;  %v7346_v12 = vstv %s4650_s30  ;;  %s4690_s30 = sld [smem:[#allocation12 + $0x4c]] }
 0x3d1   :  { %3028 = vrot.lane.b32.xlu1 %v3020_v42, %s4928_s14  ;;  %9450 = vst [vmem:[#allocation98_spill] sm:$0xff] %v7346_v12 }
 0x3d2   :  { %v7239_v23 = vpop.permute.xlu0 %2562 }
 0x3d3   :  { %9423 = vst [vmem:[#allocation71_spill] sm:$0xff] %v7239_v23  ;;  %v7242_v30 = vpop.permute.xlu1 %2588 }
 0x3d4   :  { %9424 = vst [vmem:[#allocation72_spill] sm:$0xff] %v7242_v30  ;;  %3030 = vrot.lane.b32.xlu0 %v3021_v44, %s4928_s14 }
 0x3d5   :  { %3032 = vrot.lane.b32.xlu1 %v3022_v31, %s4928_s14  ;;  %v3077_v31 = vstv %s4656_s15  ;;  %s4672_s15 = sld [smem:[#allocation12 + $0x46]] }
 0x3d6   :  { %v7247_v8 = vpop.permute.xlu0 %2590  ;;  %v3078_v55 = vmul.f32 0.0, %v3077_v31  ;;  %v3079_v0 = vmul.f32 %v3077_v31, %v6945_v51  ;;  %v3080_v56 = vmul.f32 %v3077_v31, %v6959_v47 }
 0x3d7   :  { %v7250_v42 = vpop.permute.xlu1 %2592 }
 0x3d8   :  { %3034 = vrot.lane.b32.xlu0 %v3023_v41, %s4928_s14  ;;  %v3052_v41 = vmul.f32 %v3048_v28, %v6962_v39 }
 0x3d9   :  { %3057 = vrot.lane.b32.xlu1 %v3049_v34, %s4929_s18 }
 0x3da   :  { %v7254_v7 = vpop.permute.xlu0 %2594 }
 0x3db   :  { %9425 = vst [vmem:[#allocation65_spill] sm:$0xff] %v7254_v7  ;;  %v7257_v44 = vpop.permute.xlu1 %2617 }
 0x3dc   :  { %9426 = vst [vmem:[#allocation74_spill] sm:$0xff] %v7257_v44  ;;  %3059 = vrot.lane.b32.xlu0 %v3050_v40, %s4929_s18  ;;  %v7353_v44 = vstv %s4665_s7  ;;  %s4691_s7 = sld [smem:[#allocation12 + $0x17]] }
 0x3dd   :  { %3061 = vrot.lane.b32.xlu1 %v3051_v17, %s4929_s18  ;;  %v3106_v17 = vstv %s4657_s16  ;;  %s4673_s16 = sld [smem:[#allocation12 + $0x11]] }
 0x3de   :  { %v7262_v27 = vpop.permute.xlu0 %2619  ;;  %v3107_v28 = vmul.f32 0.0, %v3106_v17  ;;  %v3108_v50 = vmul.f32 %v3106_v17, %v6945_v51  ;;  %v3109_v11 = vmul.f32 %v3106_v17, %v6959_v47 }
 0x3df   :  { %9427 = vst [vmem:[#allocation73_spill] sm:$0xff] %v7262_v27  ;;  %v7265_v34 = vpop.permute.xlu1 %2621  ;;  %v7355_v27 = vstv %s4666_s8  ;;  %s4676_s8 = sld [smem:[#allocation12 + $0x12]] }
 0x3e0   :  { %9428 = vst [vmem:[#allocation75_spill] sm:$0xff] %v7265_v34  ;;  %3063 = vrot.lane.b32.xlu0 %v3052_v41, %s4929_s18  ;;  %v3081_v41 = vmul.f32 %v3077_v31, %v6962_v39  ;;  %9451 = vst [vmem:[#allocation97_spill] sm:$0xff] %v7355_v27 }
 0x3e1   :  { %3086 = vrot.lane.b32.xlu1 %v3078_v55, %s4929_s18 }
 0x3e2   :  { %v7269_v13 = vpop.permute.xlu0 %2623 }
 0x3e3   :  { %9429 = vst [vmem:[#allocation76_spill] sm:$0xff] %v7269_v13  ;;  %v7272_v40 = vpop.permute.xlu1 %2646 }
 0x3e4   :  { %9430 = vst [vmem:[#allocation78_spill] sm:$0xff] %v7272_v40  ;;  %3088 = vrot.lane.b32.xlu0 %v3079_v0, %s4929_s18 }
 0x3e5   :  { %3090 = vrot.lane.b32.xlu1 %v3080_v56, %s4929_s18  ;;  %v3135_v56 = vstv %s4658_s17  ;;  %s4674_s17 = sld [smem:[#allocation12 + $0x2c]] }
 0x3e6   :  { %v7277_v2 = vpop.permute.xlu0 %2648  ;;  %v3136_v31 = vmul.f32 0.0, %v3135_v56 }
 0x3e7   :  { %9431 = vst [vmem:[#allocation77_spill] sm:$0xff] %v7277_v2  ;;  %v7280_v55 = vpop.permute.xlu1 %2650 }
 0x3e8   :  { %9432 = vst [vmem:[#allocation79_spill] sm:$0xff] %v7280_v55  ;;  %3092 = vrot.lane.b32.xlu0 %v3081_v41, %s4929_s18  ;;  %v3110_v41 = vmul.f32 %v3106_v17, %v6962_v39  ;;  %v3138_v55 = vmul.f32 %v3135_v56, %v6959_v47 }
 0x3e9   :  { %3115 = vrot.lane.b32.xlu1 %v3107_v28, %s4929_s18 }
 0x3ea   :  { %v7284_v3 = vpop.permute.xlu0 %2652 }
 0x3eb   :  { %9433 = vst [vmem:[#allocation80_spill] sm:$0xff] %v7284_v3  ;;  %v7287_v0 = vpop.permute.xlu1 %2675  ;;  %v3137_v3 = vmul.f32 %v3135_v56, %v6945_v51 }
 0x3ec   :  { %9434 = vst [vmem:[#allocation82_spill] sm:$0xff] %v7287_v0  ;;  %3117 = vrot.lane.b32.xlu0 %v3108_v50, %s4929_s18  ;;  %v7386_v0 = vmul.f32 %v3270_v49, %v6959_v47 }
 0x3ed   :  { %3119 = vrot.lane.b32.xlu1 %v3109_v11, %s4929_s18  ;;  %v3164_v11 = vstv %s4659_s19  ;;  %s4675_s19 = sld [smem:[#allocation12 + $0x47]] }
 0x3ee   :  { %v7292_v5 = vpop.permute.xlu0 %2677  ;;  %v3165_v17 = vmul.f32 0.0, %v3164_v11  ;;  %v3167_v23 = vmul.f32 %v3164_v11, %v6959_v47 }
 0x3ef   :  { %v7295_v28 = vpop.permute.xlu1 %2679 }
 0x3f0   :  { %9435 = vst [vmem:[#allocation81_spill] sm:$0xff] %v7295_v28  ;;  %3121 = vrot.lane.b32.xlu0 %v3110_v41, %s4929_s18  ;;  %v3139_v41 = vmul.f32 %v3135_v56, %v6962_v39  ;;  %v3193_v56 = vstv %s4660_s20  ;;  %s4679_s20 = sld [smem:[#allocation12 + $0x13]] }
 0x3f1   :  { %3144 = vrot.lane.b32.xlu1 %v3136_v31, %s4930_s22  ;;  %v3197_v7 = vmul.f32 %v3193_v56, %v6962_v39 }
 0x3f2   :  { %v7299_v57 = vpop.permute.xlu0 %2681 }
 0x3f3   :  { %9436 = vst [vmem:[#allocation83_spill] sm:$0xff] %v7299_v57  ;;  %v7302_v50 = vpop.permute.xlu1 %2704 }
 0x3f4   :  { %9437 = vst [vmem:[#allocation84_spill] sm:$0xff] %v7302_v50  ;;  %3146 = vrot.lane.b32.xlu0 %v3137_v3, %s4930_s22  ;;  %v3166_v3 = vmul.f32 %v3164_v11, %v6945_v51  ;;  %v3195_v50 = vmul.f32 %v3193_v56, %v6945_v51 }
 0x3f5   :  { %3148 = vrot.lane.b32.xlu1 %v3138_v55, %s4930_s22 }
 0x3f6   :  { %v7307_v40 = vpop.permute.xlu0 %2706 }
 0x3f7   :  { %9438 = vst [vmem:[#allocation86_spill] sm:$0xff] %v7307_v40  ;;  %v7310_v31 = vpop.permute.xlu1 %2708 }
 0x3f8   :  { %9439 = vst [vmem:[#allocation85_spill] sm:$0xff] %v7310_v31  ;;  %3150 = vrot.lane.b32.xlu0 %v3139_v41, %s4930_s22  ;;  %v7333_v31 = vstv %s4624_s24  ;;  %s4682_s24 = sld [smem:[#allocation12 + $0x14]] }
 0x3f9   :  { %3173 = vrot.lane.b32.xlu1 %v3165_v17, %s4930_s22  ;;  %v3194_v17 = vmul.f32 0.0, %v3193_v56  ;;  %9446 = vst [vmem:[#allocation94_spill] sm:$0xff] %v7333_v31  ;;  %v2234_v45 = vmul.f32 %v7333_v31, %v6896_v36  ;;  %v2235_v6 = vmul.f32 %v7333_v31, %v6919_v38  ;;  %v2236_v9 = vmul.f32 %v7333_v31, %v6922_v63 }
 0x3fa   :  { %v7314_v2 = vpop.permute.xlu0 %2710 }
 0x3fb   :  { %9440 = vst [vmem:[#allocation87_spill] sm:$0xff] %v7314_v2  ;;  %v7317_v55 = vpop.permute.xlu1 %2733  ;;  %v3168_v2 = vmul.f32 %v3164_v11, %v6962_v39  ;;  %v3196_v11 = vmul.f32 %v3193_v56, %v6959_v47 }
 0x3fc   :  { %9441 = vst [vmem:[#allocation88_spill] sm:$0xff] %v7317_v55  ;;  %3175 = vrot.lane.b32.xlu0 %v3166_v3, %s4930_s22  ;;  %v7329_v55 = vstv %s2211_s21  ;;  %v7331_v3 = vstv %s4623_s23  ;;  %s4680_s21 = sld [smem:[#allocation12 + $0x2e]]  ;;  %s4681_s23 = sld [smem:[#allocation12 + $0x49]] }
 0x3fd   :  { %3177 = vrot.lane.b32.xlu1 %v3167_v23, %s4930_s22  ;;  %9444 = vst [vmem:[#allocation91_spill] sm:$0xff] %v7329_v55  ;;  %9445 = vst [vmem:[#allocation92_spill] sm:$0xff] %v7331_v3  ;;  %v2215_v34 = vmul.f32 %v7329_v55, %v6919_v38  ;;  %v2224_v57 = vmul.f32 %v7331_v3, %v6896_v36  ;;  %v2225_v4 = vmul.f32 %v7331_v3, %v6919_v38 }
 0x3fe   :  { %v7322_v41 = vpop.permute.xlu0 %2735 }
 0x3ff   :  { %9442 = vst [vmem:[#allocation90_spill] sm:$0xff] %v7322_v41  ;;  %v7325_v13 = vpop.permute.xlu1 %2737  ;;  %v3222_v41 = vstv %s4661_s25  ;;  %s4683_s25 = sld [smem:[#allocation12 + $0x2f]] }
 0x400   :  { %9443 = vst [vmem:[#allocation89_spill] sm:$0xff] %v7325_v13  ;;  %3179 = vrot.lane.b32.xlu0 %v3168_v2, %s4930_s22  ;;  %v3246_v13 = vstv %s4662_s0  ;;  %v7342_v2 = vstv %s4649_s27  ;;  %v3223_v28 = vmul.f32 %v3222_v41, %v6945_v51  ;;  %v3224_v56 = vmul.f32 %v3222_v41, %v6959_v47  ;;  %s4685_s0 = sld [smem:[#allocation12 + $0x15]]  ;;  %s4688_s27 = sld [smem:[#allocation12 + $0x16]] }
 0x401   :  { %3202 = vrot.lane.b32.xlu1 %v3194_v17, %s4930_s22  ;;  %9449 = vst [vmem:[#allocation96_spill] sm:$0xff] %v7342_v2  ;;  %v7344_v17 = vstv %s4664_s29  ;;  %v3249_v38 = vmul.f32 %v3246_v13, %v6962_v39  ;;  %s4689_s29 = sld [smem:[#allocation12 + $0x31]] }
 0x402   :  { %v7335_v23 = vpop.permute.xlu0 %2739 }
 0x403   :  { %9447 = vst [vmem:[#allocation93_spill] sm:$0xff] %v7335_v23  ;;  %v7338_v40 = vpop.permute.xlu1 %2762  ;;  %v2214_v23 = vmul.f32 %v7329_v55, %v6896_v36  ;;  %v3248_v36 = vmul.f32 %v3246_v13, %v6959_v47 }
 0x404   :  { %9448 = vst [vmem:[#allocation95_spill] sm:$0xff] %v7338_v40  ;;  %3204 = vrot.lane.b32.xlu0 %v3195_v50, %s4930_s22  ;;  %v2216_v50 = vmul.f32 %v7329_v55, %v6922_v63 }
 0x405   :  { %3206 = vrot.lane.b32.xlu1 %v3196_v11, %s4930_s22  ;;  %v2226_v11 = vmul.f32 %v7331_v3, %v6922_v63  ;;  %v3247_v3 = vmul.f32 %v3246_v13, %v6945_v51  ;;  %v7403_v13 = vmul.f32 %v7344_v17, %v6962_v39 }
 0x406   :  { %v7363_v40 = vpop.permute.xlu0 %2764 }
 0x407   :  { %9452 = vst [vmem:[#allocation99_spill] sm:$0xff] %v7363_v40  ;;  %v7372_v55 = vpop.permute.xlu1 %2766  ;;  %v3225_v40 = vmul.f32 %v3222_v41, %v6962_v39  ;;  %v7395_v41 = vmul.f32 %v7344_v17, %v6945_v51 }
 0x408   :  { %9453 = vst [vmem:[#allocation100_spill] sm:$0xff] %v7372_v55  ;;  %3208 = vrot.lane.b32.xlu0 %v3197_v7, %s4930_s22  ;;  %v3271_v55 = vmul.f32 %v3270_v49, %v6945_v51  ;;  %v7391_v7 = vmul.f32 %v3270_v49, %v6962_v39  ;;  %v7413_v49 = vmul.f32 %v7353_v44, %v6945_v51 }
 0x409   :  { %3229 = vrot.lane.b32.xlu1 %v3223_v28, %s4931_s26  ;;  %9455 = vst [vmem:[#allocation101_spill] sm:$0xff] %v7395_v41  ;;  %v7399_v28 = vmul.f32 %v7344_v17, %v6959_v47  ;;  %v7417_v41 = vmul.f32 %v7353_v44, %v6959_v47 }
 0x40a   :  { %v7388_v63 = vpop.permute.xlu0 %2768  ;;  %9459 = vst [vmem:[#allocation105_spill] sm:$0xff] %v7413_v49  ;;  %v7433_v49 = vmul.f32 %v7355_v27, %v6945_v51 }
 0x40b   :  { %9454 = vst [vmem:[#allocation102_spill] sm:$0xff] %v7388_v63  ;;  %9456 = vst [vmem:[#allocation103_spill] sm:$0xff] %v7399_v28  ;;  %v7405_v31 = vpop.permute.xlu1 %2791  ;;  %v7409_v63 = vmul.f32 %v7342_v2, %v6962_v39  ;;  %v7421_v28 = vmul.f32 %v7353_v44, %v6962_v39 }
 0x40c   :  { %9457 = vst [vmem:[#allocation104_spill] sm:$0xff] %v7405_v31  ;;  %9460 = vst [vmem:[#allocation107_spill] sm:$0xff] %v7417_v41  ;;  %v2260_v31 = vsel %vm165_vm0, %v7077_v35, %v7083_v62  ;;  %3231 = vrot.lane.b32.xlu0 %v3224_v56, %s4931_s26  ;;  %v7437_v41 = vmul.f32 %v7355_v27, %v6959_v47  ;;  %v2289_v56 = vsel %vm165_vm0, %v7093_v60, %v7098_v24 }
 0x40d   :  { %9458 = vst [vmem:[#allocation106_spill] sm:$0xff] %v7409_v63  ;;  %9461 = vst [vmem:[#allocation108_spill] sm:$0xff] %v7421_v28  ;;  %v7429_v63 = vmul.f32 %v7346_v12, %v6962_v39  ;;  %v2261_v28 = vsel %vm165_vm0, %v7083_v62, %v7085_v54  ;;  %3233 = vrot.lane.b32.xlu1 %v3225_v40, %s4931_s26  ;;  %v7448_v35 = vmul.f32 %v7342_v2, %v6945_v51 }
 0x40e   :  { %9463 = vst [vmem:[#allocation109_spill] sm:$0xff] %v7433_v49  ;;  %9464 = vst [vmem:[#allocation111_spill] sm:$0xff] %v7437_v41  ;;  %v7452_v39 = vmul.f32 %v7342_v2, %v6959_v47  ;;  %v2318_v62 = vsel %vm165_vm0, %v7108_v32, %v7113_v48  ;;  %v7460_v27 = vpop.permute.xlu0 %2793  ;;  %v7464_v40 = vmul.f32 %v7346_v12, %v6945_v51 }
 0x40f   :  { %9462 = vst [vmem:[#allocation110_spill] sm:$0xff] %v7429_v63  ;;  %v2290_v63 = vsel %vm165_vm0, %v7098_v24, %v7100_v25  ;;  %v7468_v60 = vmul.f32 %v7346_v12, %v6959_v47  ;;  %v2267_v2 = vadd.f32 %v2260_v31, %v2214_v23  ;;  %v2269_v41 = vadd.f32 %v7085_v54, %v2216_v50  ;;  %v7477_v49 = vpop.permute.xlu1 %2795 }
 0x410   :  { %9465 = vst [vmem:[#allocation112_spill] sm:$0xff] %v7452_v39  ;;  %9466 = vst [vmem:[#allocation114_spill] sm:$0xff] %v7464_v40  ;;  %v2319_v24 = vsel %vm165_vm0, %v7113_v48, %v7115_v53  ;;  %v2347_v32 = vsel %vm247_vm1, %v7123_v43, %v7128_v52  ;;  %v2268_v39 = vadd.f32 %v2261_v28, %v2215_v34  ;;  %3253 = vrot.lane.b32.xlu0 %v3247_v3, %s4931_s26 }
 0x411   :  { %v2296_v51 = vadd.f32 %v2289_v56, %v2224_v57  ;;  %v2298_v40 = vadd.f32 %v7100_v25, %v2226_v11  ;;  %v2348_v31 = vsel %vm247_vm1, %v7128_v52, %v7130_v33  ;;  %v2297_v54 = vadd.f32 %v2290_v63, %v2225_v4  ;;  %3255 = vrot.lane.b32.xlu1 %v3248_v36, %s4931_s26 }
 0x412   :  { %v2325_v23 = vadd.f32 %v2318_v62, %v2234_v45  ;;  %v2376_v48 = vsel %vm247_vm1, %v7138_v58, %v7143_v14  ;;  %v2377_v50 = vsel %vm247_vm1, %v7143_v14, %v7145_v16  ;;  %v2326_v57 = vadd.f32 %v2319_v24, %v2235_v6  ;;  %v7495_v4 = vpop.permute.xlu0 %2797 }
 0x413   :  { %v2327_v25 = vadd.f32 %v7115_v53, %v2236_v9  ;;  %v2354_v34 = vadd.f32 %v2347_v32, %v2267_v2  ;;  %v2405_v52 = vsel %vm247_vm1, %v7153_v20, %v7158_v21  ;;  %v2355_v45 = vadd.f32 %v2348_v31, %v2268_v39  ;;  %v7504_v6 = vpop.permute.xlu1 %2820 }
 0x414   :  { %v2356_v3 = vadd.f32 %v7130_v33, %v2269_v41  ;;  %v2406_v11 = vsel %vm247_vm1, %v7158_v21, %v7160_v46  ;;  %v2434_v14 = vsel %vm329_vm2, %v7168_v61, %v7173_v1  ;;  %9467 = vst [vmem:[#allocation113_spill] sm:$0xff] %v7504_v6  ;;  %v2383_v32 = vadd.f32 %v2376_v48, %v2296_v51  ;;  %v9470_v48 = vld [vmem:[#allocation81_spill] sm:$0xff] }
 0x415   :  { %v2384_v53 = vadd.f32 %v2377_v50, %v2297_v54  ;;  %v2385_v9 = vadd.f32 %v7145_v16, %v2298_v40  ;;  %v2435_v39 = vsel %vm329_vm2, %v7173_v1, %v7175_v29  ;;  %3257 = vrot.lane.b32.xlu0 %v3249_v38, %s4931_s26  ;;  %v2412_v33 = vadd.f32 %v2405_v52, %v2325_v23  ;;  %v9469_v23 = vld [vmem:[#allocation63_spill] sm:$0xff] }
 0x416   :  { %v2463_v21 = vsel %vm329_vm2, %v7183_v22, %v7188_v15  ;;  %v2516_v2 = vsel %vm411_vm3, %v7209_v19, %v7212_v18  ;;  %3277 = vrot.lane.b32.xlu1 %v3271_v55, %s4931_s26  ;;  %v3302_v51 = vmul.f32 0.0, %v7344_v17  ;;  %v2413_v16 = vadd.f32 %v2406_v11, %v2326_v57  ;;  %v7525_v63 = vpop.permute.xlu0 %2822  ;;  %v9471_v57 = vld [vmem:[#allocation67_spill] sm:$0xff] }
 0x417   :  { %v7520_v36 = vadd.f32 %v7160_v46, %v2327_v25  ;;  %v2441_v1 = vadd.f32 %v2434_v14, %v2354_v34  ;;  %v2517_v38 = vsel %vm411_vm3, %v7212_v18, %v7217_v37  ;;  %v2442_v41 = vadd.f32 %v2435_v39, %v2355_v45  ;;  %v7533_v17 = vpop.permute.xlu1 %2824  ;;  %v9472_v25 = vld [vmem:[#allocation66_spill] sm:$0xff]  ;;  %v9473_v45 = vld [vmem:[#allocation65_spill] sm:$0xff]  ;;  %v9475_v11 = vld [vmem:[#allocation95_spill] sm:$0xff] }
 0x418   :  { %v2464_v28 = vsel %vm329_vm2, %v7188_v15, %v7190_v10  ;;  %v2596_v55 = vsel %vm493_vm4, %v7242_v30, %v7247_v8  ;;  %v7536_v46 = vmul.f32 0.0, %v7353_v44  ;;  %v2443_v56 = vadd.f32 %v7175_v29, %v2356_v3  ;;  %v9468_v44 = vld [vmem:[#allocation82_spill] sm:$0xff]  ;;  %v9474_v3 = vld [vmem:[#allocation99_spill] sm:$0xff] }
 0x419   :  { %v2470_v62 = vadd.f32 %v2463_v21, %v2383_v32  ;;  %v2523_v18 = vadd.f32 %v2516_v2, %v2441_v1  ;;  %v2597_v40 = vsel %vm493_vm4, %v7247_v8, %v7250_v42  ;;  %3279 = vrot.lane.b32.xlu0 %v7386_v0, %s4931_s26  ;;  %v2472_v15 = vadd.f32 %v7190_v10, %v2385_v9  ;;  %v9477_v9 = vld [vmem:[#allocation100_spill] sm:$0xff]  ;;  %v9478_v21 = vld [vmem:[#allocation101_spill] sm:$0xff] }
 0x41a   :  { %v2492_v24 = vsel %vm329_vm2, %v7198_v59, %v7203_v26  ;;  %v2524_v31 = vadd.f32 %v2517_v38, %v2442_v41  ;;  %v2683_v29 = vsel %vm575_vm5, %v9468_v44, %v7292_v5  ;;  %3281 = vrot.lane.b32.xlu1 %v7391_v7, %s4931_s26  ;;  %v2471_v54 = vadd.f32 %v2464_v28, %v2384_v53  ;;  %v7559_v50 = vpop.permute.xlu0 %2826  ;;  %v9479_v1 = vld [vmem:[#allocation68_spill] sm:$0xff]  ;;  %v9480_v41 = vld [vmem:[#allocation83_spill] sm:$0xff] }
 0x41b   :  { %v2493_v8 = vsel %vm329_vm2, %v7203_v26, %v9469_v23  ;;  %v2604_v0 = vadd.f32 %v2596_v55, %v2523_v18  ;;  %v2684_v10 = vsel %vm575_vm5, %v7292_v5, %v9470_v48  ;;  %v2540_v34 = vsel %vm411_vm3, %v9472_v25, %v9471_v57  ;;  %v7570_v14 = vpop.permute.xlu1 %2849  ;;  %v9483_v18 = vld [vmem:[#allocation74_spill] sm:$0xff] }
 0x41c   :  { %v2605_v52 = vadd.f32 %v2597_v40, %v2524_v31  ;;  %v2598_v7 = vsel %vm493_vm4, %v7250_v42, %v9473_v45  ;;  %v2770_v26 = vsel %vm657_vm6, %v9475_v11, %v9474_v3  ;;  %9476 = vst [vmem:[#allocation115_spill] sm:$0xff] %v7570_v14  ;;  %v2499_v32 = vadd.f32 %v2492_v24, %v2412_v33  ;;  %v9484_v31 = vld [vmem:[#allocation75_spill] sm:$0xff] }
 0x41d   :  { %v2525_v5 = vadd.f32 %v7217_v37, %v2443_v56  ;;  %v2691_v53 = vadd.f32 %v2683_v29, %v2604_v0  ;;  %v2771_v39 = vsel %vm657_vm6, %v9474_v3, %v9477_v9  ;;  %3307 = vrot.lane.b32.xlu0 %v9478_v21, %s4932_s28  ;;  %v2500_v2 = vadd.f32 %v2493_v8, %v2413_v16  ;;  %v9481_v37 = vld [vmem:[#allocation103_spill] sm:$0xff]  ;;  %v9482_v56 = vld [vmem:[#allocation73_spill] sm:$0xff]  ;;  %v9485_v0 = vld [vmem:[#allocation102_spill] sm:$0xff] }
 0x41e   :  { %v2541_v42 = vsel %vm411_vm3, %v9471_v57, %v9479_v1  ;;  %v2692_v38 = vadd.f32 %v2684_v10, %v2605_v52  ;;  %v2685_v33 = vsel %vm575_vm5, %v9470_v48, %v9480_v41  ;;  %3309 = vrot.lane.b32.xlu1 %v9481_v37, %s4932_s28  ;;  %v2547_v28 = vadd.f32 %v2540_v34, %v2470_v62  ;;  %v2852_v16 = vpop.permute.xlu0 %2851  ;;  %v9487_v3 = vld [vmem:[#allocation70_spill] sm:$0xff]  ;;  %v9491_v37 = vld [vmem:[#allocation76_spill] sm:$0xff] }
 0x41f   :  { %v2606_v55 = vadd.f32 %v2598_v7, %v2525_v5  ;;  %v2625_v40 = vsel %vm493_vm4, %v9483_v18, %v9482_v56  ;;  %v2778_v24 = vadd.f32 %v2770_v26, %v2691_v53  ;;  %v2626_v29 = vsel %vm493_vm4, %v9482_v56, %v9484_v31  ;;  %v2854_v62 = vpop.permute.xlu1 %2853  ;;  %v9486_v7 = vld [vmem:[#allocation69_spill] sm:$0xff]  ;;  %v9488_v53 = vld [vmem:[#allocation86_spill] sm:$0xff] }
 0x420   :  { %v2779_v8 = vadd.f32 %v2771_v39, %v2692_v38  ;;  %v2772_v48 = vsel %vm657_vm6, %v9477_v9, %v9485_v0  ;;  %v2857_v10 = vsel %vm739_vm7, %v7570_v14, %v2852_v16  ;;  %v2548_v57 = vadd.f32 %v2541_v42, %v2471_v54  ;;  %v9489_v39 = vld [vmem:[#allocation84_spill] sm:$0xff]  ;;  %v9490_v42 = vld [vmem:[#allocation85_spill] sm:$0xff] }
 0x421   :  { %v2693_v34 = vadd.f32 %v2685_v33, %v2606_v55  ;;  %v2865_v52 = vadd.f32 %v2857_v10, %v2778_v24  ;;  %v2858_v45 = vsel %vm739_vm7, %v2852_v16, %v2854_v62  ;;  %3311 = vrot.lane.b32.xlu0 %v7403_v13, %s4932_s28  ;;  %v2564_v26 = vsel %vm411_vm3, %v9487_v3, %v9486_v7  ;;  %v9492_v55 = vld [vmem:[#allocation104_spill] sm:$0xff]  ;;  %v9496_v10 = vld [vmem:[#allocation71_spill] sm:$0xff] }
 0x422   :  { %v2633_v5 = vadd.f32 %v2625_v40, %v2547_v28  ;;  %v2712_v9 = vsel %vm575_vm5, %v9489_v39, %v9488_v53  ;;  %v2866_v21 = vadd.f32 %v2858_v45, %v2779_v8  ;;  %3313 = vrot.lane.b32.xlu1 %v3302_v51, %s4932_s28  ;;  %v2634_v54 = vadd.f32 %v2626_v29, %v2548_v57  ;;  %v2856_v33 = vpop.permute.xlu0 %2855  ;;  %v9494_v24 = vld [vmem:[#allocation112_spill] sm:$0xff]  ;;  %v9500_v45 = vld [vmem:[#allocation78_spill] sm:$0xff] }
 0x423   :  { %v2713_v38 = vsel %vm575_vm5, %v9488_v53, %v9490_v42  ;;  %v2780_v41 = vadd.f32 %v2772_v48, %v2693_v34  ;;  %v7611_v13 = vadd.f32 %v7448_v35, %v2865_v52  ;;  %v2627_v28 = vsel %vm493_vm4, %v9484_v31, %v9491_v37  ;;  %v7620_v40 = vpop.permute.xlu1 %2878  ;;  %v9495_v31 = vld [vmem:[#allocation105_spill] sm:$0xff]  ;;  %v9497_v34 = vld [vmem:[#allocation87_spill] sm:$0xff] }
 0x424   :  { %v2799_v56 = vsel %vm657_vm6, %v9492_v55, %v7460_v27  ;;  %v2859_v51 = vsel %vm739_vm7, %v2854_v62, %v2856_v33  ;;  %9493 = vst [vmem:[#allocation116_spill] sm:$0xff] %v7620_v40  ;;  %v7623_v16 = vadd.f32 %v9494_v24, %v2866_v21  ;;  %v2549_v29 = vadd.f32 %v9479_v1, %v2472_v15  ;;  %v9498_v15 = vld [vmem:[#allocation107_spill] sm:$0xff]  ;;  %v9499_v1 = vld [vmem:[#allocation77_spill] sm:$0xff] }
 0x425   :  { %v2720_v8 = vadd.f32 %v2712_v9, %v2633_v5  ;;  %v2800_v35 = vsel %vm657_vm6, %v7460_v27, %v7477_v49  ;;  %v2867_v0 = vadd.f32 %v2859_v51, %v2780_v41  ;;  %3336 = vrot.lane.b32.xlu0 %v9495_v31, %s4932_s28  ;;  %v2571_v48 = vadd.f32 %v2564_v26, %v2499_v32  ;;  %v9501_v26 = vld [vmem:[#allocation106_spill] sm:$0xff]  ;;  %v9502_v9 = vld [vmem:[#allocation79_spill] sm:$0xff]  ;;  %v9503_v51 = vld [vmem:[#allocation108_spill] sm:$0xff] }
 0x426   :  { %v2565_v62 = vsel %vm411_vm3, %v9486_v7, %v9496_v10  ;;  %v2721_v57 = vadd.f32 %v2713_v38, %v2634_v54  ;;  %v2714_v52 = vsel %vm575_vm5, %v9490_v42, %v9497_v34  ;;  %3338 = vrot.lane.b32.xlu1 %v9498_v15, %s4932_s28  ;;  %v2635_v27 = vadd.f32 %v2627_v28, %v2549_v29  ;;  %v2881_v7 = vpop.permute.xlu0 %2880  ;;  %v9507_v34 = vld [vmem:[#allocation114_spill] sm:$0xff] }
 0x427   :  { %v2654_v5 = vsel %vm493_vm4, %v9500_v45, %v9499_v1  ;;  %v2807_v32 = vadd.f32 %v2799_v56, %v2720_v8  ;;  %v7645_v53 = vadd.f32 %v9501_v26, %v2867_v0  ;;  %v2655_v21 = vsel %vm493_vm4, %v9499_v1, %v9502_v9  ;;  %v2883_v41 = vpop.permute.xlu1 %2882  ;;  %v9504_v8 = vld [vmem:[#allocation90_spill] sm:$0xff]  ;;  %v9506_v0 = vld [vmem:[#allocation89_spill] sm:$0xff] }
 0x428   :  { %v2808_v54 = vadd.f32 %v2800_v35, %v2721_v57  ;;  %v2801_v42 = vsel %vm657_vm6, %v7477_v49, %v7495_v4  ;;  %v2886_v38 = vsel %vm739_vm7, %v7620_v40, %v2881_v7  ;;  %v2572_v33 = vadd.f32 %v2565_v62, %v2500_v2  ;;  %v9505_v49 = vld [vmem:[#allocation88_spill] sm:$0xff] }
 0x429   :  { %v2722_v37 = vadd.f32 %v2714_v52, %v2635_v27  ;;  %v2894_v28 = vadd.f32 %v2886_v38, %v2807_v32  ;;  %v2887_v56 = vsel %vm739_vm7, %v2881_v7, %v2883_v41  ;;  %3340 = vrot.lane.b32.xlu0 %v9503_v51, %s4932_s28  ;;  %v2501_v24 = vadd.f32 %v9469_v23, %v7520_v36  ;;  %v9508_v36 = vld [vmem:[#allocation80_spill] sm:$0xff]  ;;  %v9510_v7 = vld [vmem:[#allocation109_spill] sm:$0xff] }
 0x42a   :  { %v2662_v29 = vadd.f32 %v2654_v5, %v2571_v48  ;;  %v2741_v4 = vsel %vm575_vm5, %v9505_v49, %v9504_v8  ;;  %v2895_v35 = vadd.f32 %v2887_v56, %v2808_v54  ;;  %3342 = vrot.lane.b32.xlu1 %v7536_v46, %s4932_s28  ;;  %v2663_v2 = vadd.f32 %v2655_v21, %v2572_v33  ;;  %v2885_v57 = vpop.permute.xlu0 %2884  ;;  %v9511_v21 = vld [vmem:[#allocation93_spill] sm:$0xff]  ;;  %v9516_v56 = vld [vmem:[#allocation42_spill] sm:$0xff] }
 0x42b   :  { %v2742_v31 = vsel %vm575_vm5, %v9504_v8, %v9506_v0  ;;  %v2809_v62 = vadd.f32 %v2801_v42, %v2722_v37  ;;  %v7671_v52 = vadd.f32 %v9507_v34, %v2894_v28  ;;  %v2656_v23 = vsel %vm493_vm4, %v9502_v9, %v9508_v36  ;;  %v7680_v15 = vpop.permute.xlu1 %2907 }
 0x42c   :  { %v2828_v48 = vsel %vm657_vm6, %v7504_v6, %v7525_v63  ;;  %v2888_v46 = vsel %vm739_vm7, %v2883_v41, %v2885_v57  ;;  %9509 = vst [vmem:[#allocation118_spill] sm:$0xff] %v7680_v15  ;;  %v7683_v27 = vadd.f32 %v7468_v60, %v2895_v35  ;;  %v2573_v1 = vadd.f32 %v9496_v10, %v2501_v24  ;;  %v9513_v60 = vld [vmem:[#allocation111_spill] sm:$0xff]  ;;  %v9514_v10 = vld [vmem:[#allocation97_spill] sm:$0xff] }
 0x42d   :  { %v2749_v5 = vadd.f32 %v2741_v4, %v2662_v29  ;;  %v2829_v32 = vsel %vm657_vm6, %v7525_v63, %v7533_v17  ;;  %v2896_v26 = vadd.f32 %v2888_v46, %v2809_v62  ;;  %3365 = vrot.lane.b32.xlu0 %v9510_v7, %s4932_s28  ;;  %v2750_v9 = vadd.f32 %v2742_v31, %v2663_v2  ;;  %v9515_v63 = vld [vmem:[#allocation110_spill] sm:$0xff]  ;;  %v9517_v62 = vld [vmem:[#allocation40_spill] sm:$0xff] }
 0x42e   :  { %v2743_v54 = vsel %vm575_vm5, %v9506_v0, %v9511_v21  ;;  %v7695_v42 = vstv %s7639_s9  ;;  %3367 = vrot.lane.b32.xlu1 %v9513_v60, %s4932_s28  ;;  %v3360_v38 = vmul.f32 0.0, %v9514_v10  ;;  %v2664_v41 = vadd.f32 %v2656_v23, %v2573_v1  ;;  %v2910_v28 = vpop.permute.xlu0 %2909  ;;  %s4692_s9 = sld [smem:[#allocation12 + $0x32]] }
 0x42f   :  { %9512 = vst [vmem:[#allocation117_spill] sm:$0xff] %v7695_v42  ;;  %v2836_v33 = vadd.f32 %v2828_v48, %v2749_v5  ;;  %v7701_v37 = vadd.f32 %v9515_v63, %v2896_v26  ;;  %v3359_v51 = vmul.f32 %v9514_v10, %v9516_v56  ;;  %v2837_v24 = vadd.f32 %v2829_v32, %v2750_v9  ;;  %v2912_v4 = vpop.permute.xlu1 %2911 }
 0x430   :  { %v2830_v29 = vsel %vm657_vm6, %v7533_v17, %v7559_v50  ;;  %v2915_v8 = vsel %vm739_vm7, %v7680_v15, %v2910_v28  ;;  %v3385_v35 = vstv %s7655_s10  ;;  %v2751_v2 = vadd.f32 %v2743_v54, %v2664_v41  ;;  %s4677_s10 = sld [smem:[#allocation12 + $0x2d]] }
 0x431   :  { %v2923_v0 = vadd.f32 %v2915_v8, %v2836_v33  ;;  %v2916_v31 = vsel %vm739_vm7, %v2910_v28, %v2912_v4  ;;  %3369 = vrot.lane.b32.xlu0 %v3359_v51, %s4932_s28  ;;  %v2953_v57 = vmul.f32 %v7695_v42, %v9517_v62  ;;  %v2954_v17 = vmul.f32 %v7695_v42, %v6959_v47 }
 0x432   :  { %v2924_v34 = vadd.f32 %v2916_v31, %v2837_v24  ;;  %3371 = vrot.lane.b32.xlu1 %v3360_v38, %s4932_s28  ;;  %v2838_v50 = vadd.f32 %v2830_v29, %v2751_v2  ;;  %v2914_v36 = vpop.permute.xlu0 %2913  ;;  %v3386_v23 = vmul.f32 %v3385_v35, %v9517_v62  ;;  %v3387_v5 = vmul.f32 %v3385_v35, %v6959_v47 }
 0x433   :  { %v7719_v48 = vadd.f32 %v2953_v57, %v2923_v0  ;;  %v2917_v46 = vsel %vm739_vm7, %v2912_v4, %v2914_v36  ;;  %v7722_v1 = vpop.permute.xlu1 %2970  ;;  %v2955_v26 = vmul.f32 %v7695_v42, %v9516_v56  ;;  %v3389_v9 = vmul.f32 0.0, %v3385_v35 }
 0x434   :  { %9518 = vst [vmem:[#allocation119_spill] sm:$0xff] %v7722_v1  ;;  %v7725_v32 = vadd.f32 %v2954_v17, %v2924_v34  ;;  %v2925_v7 = vadd.f32 %v2917_v46, %v2838_v50  ;;  %v3388_v60 = vmul.f32 %v3385_v35, %v9516_v56  ;;  %v3414_v38 = vstv %s4668_s1  ;;  %s4693_s1 = sld [smem:[#allocation12 + $0x4d]] }
 0x435   :  { %3394 = vrot.lane.b32.xlu0 %v3386_v23, %s4933_s3  ;;  %v3415_v33 = vmul.f32 %v3414_v38, %v9517_v62  ;;  %v3416_v28 = vmul.f32 %v3414_v38, %v6959_v47  ;;  %v3418_v51 = vmul.f32 0.0, %v3414_v38  ;;  %v3417_v29 = vmul.f32 %v3414_v38, %v9516_v56 }
 0x436   :  { %3396 = vrot.lane.b32.xlu1 %v3387_v5, %s4933_s3  ;;  %v7731_v21 = vadd.f32 %v2955_v26, %v2925_v7  ;;  %v7733_v54 = vpop.permute.xlu0 %2972  ;;  %v3443_v4 = vstv %s4669_s12  ;;  %v3472_v36 = vstv %s4670_s4  ;;  %v3738_v30 = vstv %s4681_s23  ;;  %s4694_s12 = sld [smem:[#allocation12 + $0x18]] }
 0x437   :  { %9519 = vst [vmem:[#allocation120_spill] sm:$0xff] %v7733_v54  ;;  %v7736_v10 = vpop.permute.xlu1 %2974  ;;  %v3444_v2 = vmul.f32 %v3443_v4, %v9517_v62  ;;  %v3445_v31 = vmul.f32 %v3443_v4, %v6959_v47  ;;  %v3447_v57 = vmul.f32 0.0, %v3443_v4  ;;  %v3446_v17 = vmul.f32 %v3443_v4, %v9516_v56  ;;  %s4678_s4 = sld [smem:[#allocation12 + $0x48]] }
 0x438   :  { %v3473_v46 = vmul.f32 %v3472_v36, %v9517_v62  ;;  %v3474_v26 = vmul.f32 %v3472_v36, %v6959_v47  ;;  %v3476_v7 = vmul.f32 0.0, %v3472_v36  ;;  %v3767_v49 = vstv %s4682_s24 }
 0x439   :  { %3398 = vrot.lane.b32.xlu0 %v3388_v60, %s4933_s3  ;;  %v3475_v60 = vmul.f32 %v3472_v36, %v9516_v56  ;;  %v3530_v36 = vstv %s4672_s15  ;;  %v3796_v3 = vstv %s4683_s25  ;;  %s8554_s15 = sld [smem:[#allocation12 + $0x1a]] }
 0x43a   :  { %3400 = vrot.lane.b32.xlu1 %v3389_v9, %s4933_s3  ;;  %v7740_v41 = vpop.permute.xlu0 %2976 }
 0x43b   :  { %v7743_v63 = vpop.permute.xlu1 %2999 }
 0x43c   :  { %9520 = vst [vmem:[#allocation122_spill] sm:$0xff] %v7743_v63 }
 0x43d   :  { %3423 = vrot.lane.b32.xlu0 %v3415_v33, %s4933_s3  ;;  %v3501_v33 = vstv %s4671_s13  ;;  %s8451_s13 = sld [smem:[#allocation12 + $0x34]] }
 0x43e   :  { %3425 = vrot.lane.b32.xlu1 %v3416_v28, %s4933_s3  ;;  %v7748_v24 = vpop.permute.xlu0 %3001  ;;  %v3503_v4 = vmul.f32 %v3501_v33, %v6959_v47 }
 0x43f   :  { %9521 = vst [vmem:[#allocation121_spill] sm:$0xff] %v7748_v24  ;;  %v7751_v8 = vpop.permute.xlu1 %3003 }
 0x441   :  { %3427 = vrot.lane.b32.xlu0 %v3417_v29, %s4933_s3 }
 0x442   :  { %3429 = vrot.lane.b32.xlu1 %v3418_v51, %s4933_s3  ;;  %v7755_v35 = vpop.permute.xlu0 %3005  ;;  %v3502_v51 = vmul.f32 %v3501_v33, %v9517_v62 }
 0x443   :  { %v7758_v0 = vpop.permute.xlu1 %3028 }
 0x444   :  { %9522 = vst [vmem:[#allocation123_spill] sm:$0xff] %v7758_v0  ;;  %v3709_v0 = vstv %s4680_s21  ;;  %s4937_s21 = smov [#allocation15]  }
 0x445   :  { %3452 = vrot.lane.b32.xlu0 %v3444_v2, %s4933_s3  ;;  %v3505_v2 = vmul.f32 0.0, %v3501_v33  ;;  %s4525_s23 = sshll.u32 %s4937_s21, 4  ;;  %s4526_s23 = int_to_ptr.vmem [resolvable:$true] %s4525_s23 }
 0x446   :  { %3454 = vrot.lane.b32.xlu1 %v3445_v31, %s4933_s3  ;;  %v7763_v34 = vpop.permute.xlu0 %3030  ;;  %s4886_s24 = scalar_lea.vmem %s4526_s23, 1152  ;;  %p4891_p9 = scmp.lt.s32.totalorder %s4526_s23, %s4526_s23 }
 0x447   :  { %v7766_v50 = vpop.permute.xlu1 %3032  ;;  %p4887_p8 = scmp.ne.s32.totalorder %s4526_s23, %s4886_s24  ;;  %p4892_p10 = scmp.lt.s32.totalorder %s4886_s24, %s4886_s24 }
 0x449   :  { %3456 = vrot.lane.b32.xlu0 %v3446_v17, %s4933_s3  ;;  %p4893_p11 = por %p4892_p10, %p4891_p9 }
 0x44a   :  { %3458 = vrot.lane.b32.xlu1 %v3447_v57, %s4933_s3  ;;  %v7770_v23 = vpop.permute.xlu0 %3034  ;;  %v3504_v57 = vmul.f32 %v3501_v33, %v9516_v56  ;;  %v3534_v33 = vmul.f32 0.0, %v3530_v36 }
 0x44b   :  { %v7773_v5 = vpop.permute.xlu1 %3057  ;;  %p4894_p12 = pnand %p4893_p11, %p4887_p8 }
 0x44c   :  { %9523 = vst [vmem:[#allocation124_spill] sm:$0xff] %v7773_v5 }
 0x44d   :  { %3481 = vrot.lane.b32.xlu0 %v3473_v46, %s4934_s11 }
 0x44e   :  { %3483 = vrot.lane.b32.xlu1 %v3474_v26, %s4934_s11  ;;  %v7778_v9 = vpop.permute.xlu0 %3059  ;;  %v3531_v26 = vmul.f32 %v3530_v36, %v9517_v62 }
 0x44f   :  { %v7781_v38 = vpop.permute.xlu1 %3061 }
 0x451   :  { %3485 = vrot.lane.b32.xlu0 %v3475_v60, %s4934_s11  ;;  %v3532_v60 = vmul.f32 %v3530_v36, %v6959_v47 }
 0x452   :  { %3487 = vrot.lane.b32.xlu1 %v3476_v7, %s4934_s11  ;;  %v7785_v28 = vpop.permute.xlu0 %3063 }
 0x453   :  { %v7788_v29 = vpop.permute.xlu1 %3086 }
 0x454   :  { %9524 = vst [vmem:[#allocation126_spill] sm:$0xff] %v7788_v29 }
 0x455   :  { %3510 = vrot.lane.b32.xlu0 %v3502_v51, %s4934_s11 }
 0x456   :  { %3512 = vrot.lane.b32.xlu1 %v3503_v4, %s4934_s11  ;;  %v7793_v31 = vpop.permute.xlu0 %3088  ;;  %v3533_v4 = vmul.f32 %v3530_v36, %v9516_v56 }
 0x457   :  { %v7796_v17 = vpop.permute.xlu1 %3090 }
 0x459   :  { %3514 = vrot.lane.b32.xlu0 %v3504_v57, %s4934_s11 }
 0x45a   :  { %3516 = vrot.lane.b32.xlu1 %v3505_v2, %s4934_s11  ;;  %v7800_v46 = vpop.permute.xlu0 %3092  ;;  %v3559_v2 = vstv %s4673_s16  ;;  %s4701_s16 = sld [smem:[#allocation12 + $0x35]] }
 0x45b   :  { %v7803_v7 = vpop.permute.xlu1 %3115  ;;  %v3560_v63 = vmul.f32 %v3559_v2, %v9517_v62  ;;  %v3563_v36 = vmul.f32 0.0, %v3559_v2  ;;  %v3562_v12 = vmul.f32 %v3559_v2, %v9516_v56 }
 0x45c   :  { %9525 = vst [vmem:[#allocation125_spill] sm:$0xff] %v7803_v7 }
 0x45d   :  { %3539 = vrot.lane.b32.xlu0 %v3531_v26, %s4934_s11 }
 0x45e   :  { %3541 = vrot.lane.b32.xlu1 %v3532_v60, %s4934_s11  ;;  %v7808_v51 = vpop.permute.xlu0 %3117  ;;  %v3561_v60 = vmul.f32 %v3559_v2, %v6959_v47 }
 0x45f   :  { %v7811_v57 = vpop.permute.xlu1 %3119 }
 0x461   :  { %3543 = vrot.lane.b32.xlu0 %v3533_v4, %s4934_s11 }
 0x462   :  { %3545 = vrot.lane.b32.xlu1 %v3534_v33, %s4934_s11  ;;  %v7815_v29 = vpop.permute.xlu0 %3121  ;;  %v3588_v33 = vstv %s4674_s17  ;;  %s4707_s17 = sld [smem:[#allocation13 + $0x1]] }
 0x463   :  { %v7818_v26 = vpop.permute.xlu1 %3144  ;;  %v3589_v5 = vmul.f32 %v3588_v33, %v9517_v62  ;;  %v3592_v2 = vmul.f32 0.0, %v3588_v33  ;;  %v3591_v1 = vmul.f32 %v3588_v33, %v9516_v56 }
 0x464   :  { %9526 = vst [vmem:[#allocation127_spill] sm:$0xff] %v7818_v26 }
 0x465   :  { %3568 = vrot.lane.b32.xlu0 %v3560_v63, %s4935_s5 }
 0x466   :  { %3570 = vrot.lane.b32.xlu1 %v3561_v60, %s4935_s5  ;;  %v7823_v40 = vpop.permute.xlu0 %3146  ;;  %v3590_v60 = vmul.f32 %v3588_v33, %v6959_v47 }
 0x467   :  { %v7826_v4 = vpop.permute.xlu1 %3148 }
 0x469   :  { %3572 = vrot.lane.b32.xlu0 %v3562_v12, %s4935_s5 }
 0x46a   :  { %3574 = vrot.lane.b32.xlu1 %v3563_v36, %s4935_s5  ;;  %v7830_v26 = vpop.permute.xlu0 %3150  ;;  %v3617_v36 = vstv %s4675_s19  ;;  %s8719_s19 = sld [smem:[#allocation13 + $0x2]] }
 0x46b   :  { %v7833_v63 = vpop.permute.xlu1 %3173  ;;  %v3618_v39 = vmul.f32 %v3617_v36, %v9517_v62  ;;  %v3621_v33 = vmul.f32 0.0, %v3617_v36  ;;  %v3620_v18 = vmul.f32 %v3617_v36, %v9516_v56 }
 0x46c   :  { %9527 = vst [vmem:[#allocation128_spill] sm:$0xff] %v7833_v63 }
 0x46d   :  { %3597 = vrot.lane.b32.xlu0 %v3589_v5, %s4935_s5 }
 0x46e   :  { %3599 = vrot.lane.b32.xlu1 %v3590_v60, %s4935_s5  ;;  %v7838_v55 = vpop.permute.xlu0 %3175  ;;  %v3619_v60 = vmul.f32 %v3617_v36, %v6959_v47  ;;  %v9531_v36 = vld [vmem:[#allocation43_spill] sm:$0xff] }
 0x46f   :  { %v7841_v12 = vpop.permute.xlu1 %3177 }
 0x471   :  { %3601 = vrot.lane.b32.xlu0 %v3591_v1, %s4935_s5 }
 0x472   :  { %3603 = vrot.lane.b32.xlu1 %v3592_v2, %s4935_s5  ;;  %v7845_v63 = vpop.permute.xlu0 %3179  ;;  %v3680_v2 = vstv %s4679_s20  ;;  %s4936_s20 = smov 19  }
 0x473   :  { %v7848_v5 = vpop.permute.xlu1 %3202  ;;  %v3681_v62 = vmul.f32 0.0, %v3680_v2  ;;  %v3683_v7 = vmul.f32 %v3680_v2, %v9531_v36 }
 0x474   :  { %9528 = vst [vmem:[#allocation130_spill] sm:$0xff] %v7848_v5 }
 0x475   :  { %3626 = vrot.lane.b32.xlu0 %v3618_v39, %s4935_s5  ;;  %v9530_v39 = vld [vmem:[#allocation41_spill] sm:$0xff] }
 0x476   :  { %3628 = vrot.lane.b32.xlu1 %v3619_v60, %s4935_s5  ;;  %v7853_v14 = vpop.permute.xlu0 %3204  ;;  %v3682_v60 = vmul.f32 %v3680_v2, %v9530_v39 }
 0x477   :  { %v7856_v1 = vpop.permute.xlu1 %3206 }
 0x479   :  { %3630 = vrot.lane.b32.xlu0 %v3620_v18, %s4935_s5  ;;  %v9532_v18 = vld [vmem:[#allocation44_spill] sm:$0xff] }
 0x47a   :  { %3632 = vrot.lane.b32.xlu1 %v3621_v33, %s4935_s5  ;;  %v7860_v5 = vpop.permute.xlu0 %3208  ;;  %v3684_v25 = vmul.f32 %v3680_v2, %v9532_v18  ;;  %v3710_v33 = vmul.f32 0.0, %v3709_v0  ;;  %v3712_v2 = vmul.f32 %v3709_v0, %v9531_v36 }
 0x47b   :  { %9529 = vst [vmem:[#allocation129_spill] sm:$0xff] %v7860_v5  ;;  %v7862_v47 = vpop.permute.xlu1 %3229 }
 0x47d   :  { %3689 = vrot.lane.b32.xlu0 %v3681_v62, %s4928_s14 }
 0x47e   :  { %3691 = vrot.lane.b32.xlu1 %v3682_v60, %s4928_s14  ;;  %v7867_v56 = vpop.permute.xlu0 %3231  ;;  %v3711_v60 = vmul.f32 %v3709_v0, %v9530_v39 }
 0x47f   :  { %v7870_v11 = vpop.permute.xlu1 %3233 }
 0x481   :  { %3693 = vrot.lane.b32.xlu0 %v3683_v7, %s4928_s14  ;;  %v3713_v7 = vmul.f32 %v3709_v0, %v9532_v18  ;;  %v3741_v0 = vmul.f32 %v3738_v30, %v9531_v36 }
 0x482   :  { %3695 = vrot.lane.b32.xlu1 %v3684_v25, %s4928_s14  ;;  %v7875_v44 = vpop.permute.xlu0 %3253  ;;  %v3739_v25 = vmul.f32 0.0, %v3738_v30 }
 0x483   :  { %9533 = vst [vmem:[#allocation131_spill] sm:$0xff] %v7875_v44  ;;  %v7877_v62 = vpop.permute.xlu1 %3255  ;;  %v8006_v44 = vstv %s4694_s12 }
 0x484   :  { %9534 = vst [vmem:[#allocation132_spill] sm:$0xff] %v7877_v62  ;;  %9564 = vst [vmem:[#allocation165_spill] sm:$0xff] %v8006_v44 }
 0x485   :  { %3718 = vrot.lane.b32.xlu0 %v3710_v33, %s4928_s14 }
 0x486   :  { %3720 = vrot.lane.b32.xlu1 %v3711_v60, %s4928_s14  ;;  %v3740_v60 = vmul.f32 %v3738_v30, %v9530_v39 }
 0x487   :  { %v7882_v15 = vpop.permute.xlu0 %3257 }
 0x488   :  { %9535 = vst [vmem:[#allocation134_spill] sm:$0xff] %v7882_v15  ;;  %v7885_v42 = vpop.permute.xlu1 %3277 }
 0x489   :  { %9536 = vst [vmem:[#allocation133_spill] sm:$0xff] %v7885_v42  ;;  %3722 = vrot.lane.b32.xlu0 %v3712_v2, %s4928_s14  ;;  %v3742_v2 = vmul.f32 %v3738_v30, %v9532_v18  ;;  %v3770_v30 = vmul.f32 %v3767_v49, %v9531_v36 }
 0x48a   :  { %3724 = vrot.lane.b32.xlu1 %v3713_v7, %s4928_s14  ;;  %v3768_v7 = vmul.f32 0.0, %v3767_v49 }
 0x48b   :  { %v7890_v22 = vpop.permute.xlu0 %3279 }
 0x48c   :  { %9537 = vst [vmem:[#allocation135_spill] sm:$0xff] %v7890_v22  ;;  %v7892_v33 = vpop.permute.xlu1 %3281  ;;  %v3854_v22 = vstv %s4685_s0 }
 0x48d   :  { %9538 = vst [vmem:[#allocation136_spill] sm:$0xff] %v7892_v33  ;;  %3747 = vrot.lane.b32.xlu0 %v3739_v25, %s4928_s14 }
 0x48e   :  { %3749 = vrot.lane.b32.xlu1 %v3740_v60, %s4928_s14  ;;  %v3769_v60 = vmul.f32 %v3767_v49, %v9530_v39 }
 0x48f   :  { %v7897_v6 = vpop.permute.xlu0 %3307 }
 0x490   :  { %v7900_v19 = vpop.permute.xlu1 %3309 }
 0x491   :  { %3751 = vrot.lane.b32.xlu0 %v3741_v0, %s4928_s14  ;;  %v3771_v0 = vmul.f32 %v3767_v49, %v9532_v18  ;;  %v3799_v49 = vmul.f32 %v3796_v3, %v9531_v36 }
 0x492   :  { %3753 = vrot.lane.b32.xlu1 %v3742_v2, %s4928_s14  ;;  %s4684_s14 = sld [smem:[#allocation12 + $0x4a]]  ;;  %v3797_v2 = vmul.f32 0.0, %v3796_v3 }
 0x493   :  { %v7905_v58 = vpop.permute.xlu0 %3311 }
 0x494   :  { %9539 = vst [vmem:[#allocation138_spill] sm:$0xff] %v7905_v58  ;;  %v7907_v25 = vpop.permute.xlu1 %3313 }
 0x495   :  { %9540 = vst [vmem:[#allocation137_spill] sm:$0xff] %v7907_v25  ;;  %3776 = vrot.lane.b32.xlu0 %v3768_v7, %s4929_s18 }
 0x496   :  { %3778 = vrot.lane.b32.xlu1 %v3769_v60, %s4929_s18  ;;  %v3798_v60 = vmul.f32 %v3796_v3, %v9530_v39 }
 0x497   :  { %v7912_v45 = vpop.permute.xlu0 %3336 }
 0x498   :  { %9541 = vst [vmem:[#allocation139_spill] sm:$0xff] %v7912_v45  ;;  %v7915_v61 = vpop.permute.xlu1 %3338  ;;  %v3825_v33 = vstv %s4684_s14 }
 0x499   :  { %9542 = vst [vmem:[#allocation140_spill] sm:$0xff] %v7915_v61  ;;  %3780 = vrot.lane.b32.xlu0 %v3770_v30, %s4929_s18  ;;  %v3800_v30 = vmul.f32 %v3796_v3, %v9532_v18  ;;  %v3828_v3 = vmul.f32 %v3825_v33, %v9531_v36  ;;  %v3965_v61 = vstv %s4689_s29 }
 0x49a   :  { %3782 = vrot.lane.b32.xlu1 %v3771_v0, %s4929_s18  ;;  %v3826_v0 = vmul.f32 0.0, %v3825_v33  ;;  %v3967_v25 = vmul.f32 %v3965_v61, %v9531_v36 }
 0x49b   :  { %v7920_v43 = vpop.permute.xlu0 %3340 }
 0x49c   :  { %9543 = vst [vmem:[#allocation142_spill] sm:$0xff] %v7920_v43  ;;  %v7922_v7 = vpop.permute.xlu1 %3342  ;;  %v3883_v43 = vstv %s4686_s2 }
 0x49d   :  { %9544 = vst [vmem:[#allocation141_spill] sm:$0xff] %v7922_v7  ;;  %3805 = vrot.lane.b32.xlu0 %v3797_v2, %s4929_s18 }
 0x49e   :  { %3807 = vrot.lane.b32.xlu1 %v3798_v60, %s4929_s18  ;;  %v3827_v60 = vmul.f32 %v3825_v33, %v9530_v39 }
 0x49f   :  { %v7927_v59 = vpop.permute.xlu0 %3365 }
 0x4a0   :  { %9545 = vst [vmem:[#allocation143_spill] sm:$0xff] %v7927_v59  ;;  %v7930_v20 = vpop.permute.xlu1 %3367 }
 0x4a1   :  { %9546 = vst [vmem:[#allocation144_spill] sm:$0xff] %v7930_v20  ;;  %3809 = vrot.lane.b32.xlu0 %v3799_v49, %s4929_s18  ;;  %v3829_v49 = vmul.f32 %v3825_v33, %v9532_v18  ;;  %v3857_v33 = vmul.f32 %v3854_v22, %v9531_v36 }
 0x4a2   :  { %3811 = vrot.lane.b32.xlu1 %v3800_v30, %s4929_s18  ;;  %v3855_v30 = vmul.f32 0.0, %v3854_v22 }
 0x4a3   :  { %v7935_v42 = vpop.permute.xlu0 %3369 }
 0x4a4   :  { %9547 = vst [vmem:[#allocation146_spill] sm:$0xff] %v7935_v42  ;;  %v7937_v2 = vpop.permute.xlu1 %3371 }
 0x4a5   :  { %9548 = vst [vmem:[#allocation145_spill] sm:$0xff] %v7937_v2  ;;  %3834 = vrot.lane.b32.xlu0 %v3826_v0, %s4929_s18 }
 0x4a6   :  { %3836 = vrot.lane.b32.xlu1 %v3827_v60, %s4929_s18  ;;  %v3856_v60 = vmul.f32 %v3854_v22, %v9530_v39 }
 0x4a7   :  { %v7942_v59 = vpop.permute.xlu0 %3394 }
 0x4a8   :  { %v7945_v20 = vpop.permute.xlu1 %3396 }
 0x4a9   :  { %3838 = vrot.lane.b32.xlu0 %v3828_v3, %s4929_s18  ;;  %v3858_v3 = vmul.f32 %v3854_v22, %v9532_v18 }
 0x4aa   :  { %3840 = vrot.lane.b32.xlu1 %v3829_v49, %s4929_s18  ;;  %s4687_s18 = sld [smem:[#allocation12 + $0x4b]]  ;;  %v3884_v49 = vmul.f32 0.0, %v3883_v43 }
 0x4ab   :  { %v7950_v2 = vpop.permute.xlu0 %3398 }
 0x4ac   :  { %9549 = vst [vmem:[#allocation147_spill] sm:$0xff] %v7950_v2  ;;  %v7952_v0 = vpop.permute.xlu1 %3400  ;;  %v8004_v2 = vstv %s4693_s1 }
 0x4ad   :  { %9550 = vst [vmem:[#allocation148_spill] sm:$0xff] %v7952_v0  ;;  %3863 = vrot.lane.b32.xlu0 %v3855_v30, %s4930_s22  ;;  %v3989_v0 = vstv %s4690_s30  ;;  %9563 = vst [vmem:[#allocation166_spill] sm:$0xff] %v8004_v2 }
 0x4ae   :  { %3865 = vrot.lane.b32.xlu1 %v3856_v60, %s4930_s22  ;;  %v3885_v60 = vmul.f32 %v3883_v43, %v9530_v39  ;;  %v8020_v5 = vmul.f32 %v3989_v0, %v9530_v39  ;;  %v8023_v44 = vmul.f32 %v3989_v0, %v9531_v36 }
 0x4af   :  { %v7957_v42 = vpop.permute.xlu0 %3423 }
 0x4b0   :  { %9551 = vst [vmem:[#allocation150_spill] sm:$0xff] %v7957_v42  ;;  %v7960_v7 = vpop.permute.xlu1 %3425  ;;  %v3886_v42 = vmul.f32 %v3883_v43, %v9531_v36 }
 0x4b1   :  { %9552 = vst [vmem:[#allocation149_spill] sm:$0xff] %v7960_v7  ;;  %3867 = vrot.lane.b32.xlu0 %v3857_v33, %s4930_s22 }
 0x4b2   :  { %3869 = vrot.lane.b32.xlu1 %v3858_v3, %s4930_s22  ;;  %v3887_v3 = vmul.f32 %v3883_v43, %v9532_v18 }
 0x4b3   :  { %v7965_v45 = vpop.permute.xlu0 %3427 }
 0x4b4   :  { %9553 = vst [vmem:[#allocation151_spill] sm:$0xff] %v7965_v45  ;;  %v7967_v30 = vpop.permute.xlu1 %3429  ;;  %v3912_v45 = vstv %s4687_s18 }
 0x4b5   :  { %9554 = vst [vmem:[#allocation152_spill] sm:$0xff] %v7967_v30  ;;  %3892 = vrot.lane.b32.xlu0 %v3884_v49, %s4930_s22  ;;  %v3913_v49 = vmul.f32 0.0, %v3912_v45  ;;  %v3941_v30 = vstv %s4688_s27 }
 0x4b6   :  { %3894 = vrot.lane.b32.xlu1 %v3885_v60, %s4930_s22  ;;  %v3942_v15 = vmul.f32 %v3941_v30, %v9530_v39 }
 0x4b7   :  { %v7972_v22 = vpop.permute.xlu0 %3452 }
 0x4b8   :  { %9555 = vst [vmem:[#allocation154_spill] sm:$0xff] %v7972_v22  ;;  %v7975_v33 = vpop.permute.xlu1 %3454 }
 0x4b9   :  { %9556 = vst [vmem:[#allocation153_spill] sm:$0xff] %v7975_v33  ;;  %3896 = vrot.lane.b32.xlu0 %v3886_v42, %s4930_s22  ;;  %v3914_v33 = vmul.f32 %v3912_v45, %v9530_v39  ;;  %v3915_v42 = vmul.f32 %v3912_v45, %v9531_v36 }
 0x4ba   :  { %3898 = vrot.lane.b32.xlu1 %v3887_v3, %s4930_s22  ;;  %v3916_v3 = vmul.f32 %v3912_v45, %v9532_v18  ;;  %v8008_v45 = vstv %s4678_s4 }
 0x4bb   :  { %v7980_v60 = vpop.permute.xlu0 %3456  ;;  %9565 = vst [vmem:[#allocation159_spill] sm:$0xff] %v8008_v45  ;;  %v8026_v45 = vmul.f32 %v3989_v0, %v9532_v18 }
 0x4bc   :  { %9557 = vst [vmem:[#allocation155_spill] sm:$0xff] %v7980_v60  ;;  %v7982_v22 = vpop.permute.xlu1 %3458  ;;  %v7993_v60 = vstv %s4691_s7 }
 0x4bd   :  { %9558 = vst [vmem:[#allocation156_spill] sm:$0xff] %v7982_v22  ;;  %3921 = vrot.lane.b32.xlu0 %v3913_v49, %s4930_s22  ;;  %v7996_v22 = vstv %s4676_s8  ;;  %v7998_v49 = vstv %s4692_s9 }
 0x4be   :  { %3923 = vrot.lane.b32.xlu1 %v3914_v33, %s4930_s22  ;;  %9561 = vst [vmem:[#allocation163_spill] sm:$0xff] %v7996_v22  ;;  %v8000_v33 = vstv %s4677_s10  ;;  %v8051_v0 = vmul.f32 %v7998_v49, %v9530_v39 }
 0x4bf   :  { %v7987_v43 = vpop.permute.xlu0 %3481  ;;  %9562 = vst [vmem:[#allocation164_spill] sm:$0xff] %v8000_v33 }
 0x4c0   :  { %9559 = vst [vmem:[#allocation158_spill] sm:$0xff] %v7987_v43  ;;  %v7990_v7 = vpop.permute.xlu1 %3483  ;;  %v3944_v43 = vmul.f32 %v3941_v30, %v9532_v18  ;;  %9571 = vst [vmem:[#allocation170_spill] sm:$0xff] %v8051_v0  ;;  %v8071_v0 = vmul.f32 %v8004_v2, %v9530_v39 }
 0x4c1   :  { %9560 = vst [vmem:[#allocation157_spill] sm:$0xff] %v7990_v7  ;;  %3925 = vrot.lane.b32.xlu0 %v3915_v42, %s4930_s22  ;;  %v3943_v42 = vmul.f32 %v3941_v30, %v9531_v36  ;;  %v3966_v7 = vmul.f32 %v3965_v61, %v9530_v39  ;;  %v8031_v30 = vmul.f32 %v7993_v60, %v9530_v39 }
 0x4c2   :  { %3927 = vrot.lane.b32.xlu1 %v3916_v3, %s4930_s22  ;;  %v3968_v3 = vmul.f32 %v3965_v61, %v9532_v18  ;;  %v8039_v61 = vmul.f32 %v7993_v60, %v9532_v18  ;;  %9575 = vst [vmem:[#allocation174_spill] sm:$0xff] %v8071_v0  ;;  %v8092_v0 = vmul.f32 %v8000_v33, %v9530_v39  ;;  %s8349_s22 = sld [smem:[#allocation12 + $0x33]] }
 0x4c3   :  { %v8010_v62 = vpop.permute.xlu0 %3485 }
 0x4c4   :  { %9566 = vst [vmem:[#allocation160_spill] sm:$0xff] %v8010_v62  ;;  %v8016_v58 = vpop.permute.xlu1 %3487  ;;  %9569 = vst [vmem:[#allocation168_spill] sm:$0xff] %v8039_v61  ;;  %v8043_v62 = vmul.f32 %v7996_v22, %v9532_v18  ;;  %v8059_v61 = vmul.f32 %v7998_v49, %v9532_v18  ;;  %v3009_v18 = vsel %vm165_vm0, %v7751_v8, %v7755_v35 }
 0x4c5   :  { %9567 = vst [vmem:[#allocation162_spill] sm:$0xff] %v8016_v58  ;;  %3948 = vrot.lane.b32.xlu0 %v3942_v15, %s4931_s26  ;;  %v8035_v58 = vmul.f32 %v7993_v60, %v9531_v36  ;;  %v2979_v15 = vsel %vm165_vm0, %v7733_v54, %v7736_v10 }
 0x4c6   :  { %9570 = vst [vmem:[#allocation161_spill] sm:$0xff] %v8043_v62  ;;  %3950 = vrot.lane.b32.xlu1 %v3943_v42, %s4931_s26  ;;  %9573 = vst [vmem:[#allocation171_spill] sm:$0xff] %v8059_v61  ;;  %v2980_v62 = vsel %vm165_vm0, %v7736_v10, %v7740_v41  ;;  %v3008_v42 = vsel %vm165_vm0, %v7748_v24, %v7751_v8  ;;  %v8084_v10 = vmul.f32 %v7996_v22, %v9530_v39 }
 0x4c7   :  { %9568 = vst [vmem:[#allocation167_spill] sm:$0xff] %v8035_v58  ;;  %v8055_v58 = vmul.f32 %v7998_v49, %v9531_v36  ;;  %v8067_v54 = vpop.permute.xlu0 %3510  ;;  %v8088_v24 = vmul.f32 %v7996_v22, %v9531_v36  ;;  %v3037_v8 = vsel %vm165_vm0, %v7763_v34, %v7766_v50  ;;  %v2987_v22 = vadd.f32 %v2980_v62, %v7623_v16 }
 0x4c8   :  { %9574 = vst [vmem:[#allocation172_spill] sm:$0xff] %v8067_v54  ;;  %v8080_v61 = vpop.permute.xlu1 %3512  ;;  %v8103_v54 = vmul.f32 %v8000_v33, %v9531_v36  ;;  %v3015_v39 = vadd.f32 %v3008_v42, %v7671_v52  ;;  %v3067_v16 = vsel %vm247_vm1, %v7781_v38, %v7785_v28  ;;  %v3095_v52 = vsel %vm247_vm1, %v7793_v31, %v7796_v17 }
 0x4c9   :  { %9572 = vst [vmem:[#allocation169_spill] sm:$0xff] %v8055_v58  ;;  %v8075_v58 = vmul.f32 %v8004_v2, %v9531_v36  ;;  %v2988_v2 = vadd.f32 %v7740_v41, %v7645_v53  ;;  %3952 = vrot.lane.b32.xlu0 %v3944_v43, %s4931_s26  ;;  %v3066_v53 = vsel %vm247_vm1, %v7778_v9, %v7781_v38 }
 0x4ca   :  { %3972 = vrot.lane.b32.xlu1 %v3966_v7, %s4931_s26  ;;  %v3016_v41 = vadd.f32 %v3009_v18, %v7683_v27  ;;  %v3017_v43 = vadd.f32 %v7755_v35, %v7701_v37  ;;  %v3044_v62 = vadd.f32 %v3037_v8, %v7719_v48  ;;  %v3046_v7 = vadd.f32 %v7770_v23, %v7731_v21 }
 0x4cb   :  { %9576 = vst [vmem:[#allocation173_spill] sm:$0xff] %v8075_v58  ;;  %v2986_v58 = vadd.f32 %v2979_v15, %v7611_v13  ;;  %v3038_v13 = vsel %vm165_vm0, %v7766_v50, %v7770_v23  ;;  %v8123_v50 = vpop.permute.xlu0 %3514  ;;  %v3096_v27 = vsel %vm247_vm1, %v7796_v17, %v7800_v46  ;;  %v3124_v37 = vsel %vm247_vm1, %v7808_v51, %v7811_v57 }
 0x4cc   :  { %v8134_v35 = vpop.permute.xlu1 %3516  ;;  %v3045_v38 = vadd.f32 %v3038_v13, %v7725_v32  ;;  %v3075_v15 = vadd.f32 %v7785_v28, %v2988_v2  ;;  %v3153_v48 = vsel %vm329_vm2, %v7823_v40, %v7826_v4  ;;  %v3074_v21 = vadd.f32 %v3067_v16, %v2987_v22 }
 0x4cd   :  { %v3073_v18 = vadd.f32 %v3066_v53, %v2986_v58  ;;  %3974 = vrot.lane.b32.xlu0 %v3967_v25, %s4931_s26  ;;  %v3102_v23 = vadd.f32 %v3095_v52, %v3015_v39  ;;  %v3104_v17 = vadd.f32 %v7800_v46, %v3017_v43  ;;  %v3125_v42 = vsel %vm247_vm1, %v7811_v57, %v7815_v29 }
 0x4ce   :  { %3976 = vrot.lane.b32.xlu1 %v3968_v3, %s4931_s26  ;;  %v3103_v32 = vadd.f32 %v3096_v27, %v3016_v41  ;;  %v3131_v58 = vadd.f32 %v3124_v37, %v3044_v62  ;;  %v3235_v28 = vsel %vm411_vm3, %v7862_v47, %v7867_v56  ;;  %v8153_v25 = vmul.f32 0.0, %v7993_v60  ;;  %v9577_v62 = vld [vmem:[#allocation129_spill] sm:$0xff] }
 0x4cf   :  { %v8150_v2 = vpop.permute.xlu0 %3539  ;;  %v8156_v39 = vadd.f32 %v7815_v29, %v3046_v7  ;;  %v3160_v46 = vadd.f32 %v3153_v48, %v3073_v18  ;;  %v3154_v57 = vsel %vm329_vm2, %v7826_v4, %v7830_v26  ;;  %v3182_v22 = vsel %vm329_vm2, %v7838_v55, %v7841_v12  ;;  %v9579_v18 = vld [vmem:[#allocation137_spill] sm:$0xff] }
 0x4d0   :  { %v8164_v3 = vpop.permute.xlu1 %3541  ;;  %v3132_v8 = vadd.f32 %v3125_v42, %v3045_v38  ;;  %v3183_v60 = vsel %vm329_vm2, %v7841_v12, %v7845_v63  ;;  %v3315_v29 = vsel %vm493_vm4, %v7897_v6, %v7900_v19  ;;  %v8175_v4 = vmul.f32 0.0, %v7998_v49  ;;  %v9580_v48 = vld [vmem:[#allocation157_spill] sm:$0xff]  ;;  %v9583_v42 = vld [vmem:[#allocation131_spill] sm:$0xff] }
 0x4d1   :  { %3996 = vrot.lane.b32.xlu0 %v8020_v5, %s4931_s26  ;;  %v3162_v13 = vadd.f32 %v7830_v26, %v3075_v15  ;;  %v3211_v53 = vsel %vm329_vm2, %v7853_v14, %v7856_v1  ;;  %v3242_v41 = vadd.f32 %v3235_v28, %v3160_v46  ;;  %v3236_v12 = vsel %vm411_vm3, %v7867_v56, %v7870_v11  ;;  %v9578_v56 = vld [vmem:[#allocation138_spill] sm:$0xff] }
 0x4d2   :  { %3998 = vrot.lane.b32.xlu1 %v8023_v44, %s4931_s26  ;;  %v3161_v43 = vadd.f32 %v3154_v57, %v3074_v21  ;;  %v3189_v16 = vadd.f32 %v3182_v22, %v3102_v23  ;;  %v3191_v5 = vadd.f32 %v7845_v63, %v3104_v17  ;;  %v3402_v26 = vsel %vm575_vm5, %v7942_v59, %v7945_v20  ;;  %v9581_v21 = vld [vmem:[#allocation158_spill] sm:$0xff]  ;;  %v9582_v17 = vld [vmem:[#allocation132_spill] sm:$0xff] }
 0x4d3   :  { %v8190_v49 = vpop.permute.xlu0 %3543  ;;  %v3190_v52 = vadd.f32 %v3183_v60, %v3103_v32  ;;  %v3212_v7 = vsel %vm329_vm2, %v7856_v1, %v9577_v62  ;;  %v3323_v27 = vadd.f32 %v3315_v29, %v3242_v41  ;;  %v3316_v44 = vsel %vm493_vm4, %v7900_v19, %v9578_v56  ;;  %v9585_v57 = vld [vmem:[#allocation134_spill] sm:$0xff]  ;;  %v9586_v60 = vld [vmem:[#allocation148_spill] sm:$0xff]  ;;  %v9588_v41 = vld [vmem:[#allocation139_spill] sm:$0xff] }
 0x4d4   :  { %v8198_v37 = vpop.permute.xlu1 %3545  ;;  %v3218_v38 = vadd.f32 %v3211_v53, %v3131_v58  ;;  %v3243_v63 = vadd.f32 %v3236_v12, %v3161_v43  ;;  %v3317_v15 = vsel %vm493_vm4, %v9578_v56, %v9579_v18  ;;  %v3489_v23 = vsel %vm657_vm6, %v9581_v21, %v9580_v48  ;;  %v9584_v58 = vld [vmem:[#allocation147_spill] sm:$0xff]  ;;  %v9587_v53 = vld [vmem:[#allocation140_spill] sm:$0xff] }
 0x4d5   :  { %4000 = vrot.lane.b32.xlu0 %v8026_v45, %s4931_s26  ;;  %v3244_v1 = vadd.f32 %v7870_v11, %v3162_v13  ;;  %v3259_v19 = vsel %vm411_vm3, %v9583_v42, %v9582_v17  ;;  %v3410_v32 = vadd.f32 %v3402_v26, %v3323_v27  ;;  %v3403_v28 = vsel %vm575_vm5, %v7945_v20, %v9584_v58  ;;  %v9589_v43 = vld [vmem:[#allocation160_spill] sm:$0xff]  ;;  %v9590_v27 = vld [vmem:[#allocation162_spill] sm:$0xff]  ;;  %s4696_s26 = sld [smem:[#allocation12 + $0x4e]] }
 0x4d6   :  { %4026 = vrot.lane.b32.xlu1 %v8031_v30, %s4932_s28  ;;  %v3219_v46 = vadd.f32 %v3212_v7, %v3132_v8  ;;  %v3260_v22 = vsel %vm411_vm3, %v9582_v17, %v9585_v57  ;;  %v3324_v45 = vadd.f32 %v3316_v44, %v3243_v63  ;;  %v3404_v11 = vsel %vm575_vm5, %v9584_v58, %v9586_v60  ;;  %v9591_v63 = vld [vmem:[#allocation167_spill] sm:$0xff]  ;;  %v9593_v17 = vld [vmem:[#allocation142_spill] sm:$0xff] }
 0x4d7   :  { %v8223_v29 = vpop.permute.xlu0 %3568  ;;  %v3325_v13 = vadd.f32 %v3317_v15, %v3244_v1  ;;  %v3344_v20 = vsel %vm493_vm4, %v9588_v41, %v9587_v53  ;;  %v3497_v12 = vadd.f32 %v3489_v23, %v3410_v32  ;;  %v3490_v30 = vsel %vm657_vm6, %v9580_v48, %v9589_v43  ;;  %v9592_v48 = vld [vmem:[#allocation168_spill] sm:$0xff]  ;;  %v9594_v32 = vld [vmem:[#allocation149_spill] sm:$0xff]  ;;  %v9595_v58 = vld [vmem:[#allocation150_spill] sm:$0xff] }
 0x4d8   :  { %v3571_v8 = vpop.permute.xlu1 %3570  ;;  %v3266_v26 = vadd.f32 %v3259_v19, %v3189_v16  ;;  %v3411_v7 = vadd.f32 %v3403_v28, %v3324_v45  ;;  %v3491_v56 = vsel %vm657_vm6, %v9589_v43, %v9590_v27  ;;  %v3267_v18 = vadd.f32 %v3260_v22, %v3190_v52  ;;  %v9596_v43 = vld [vmem:[#allocation141_spill] sm:$0xff]  ;;  %v9600_v27 = vld [vmem:[#allocation136_spill] sm:$0xff] }
 0x4d9   :  { %v3576_v44 = vsel %vm739_vm7, %v8223_v29, %v3571_v8  ;;  %4028 = vrot.lane.b32.xlu0 %v9591_v63, %s4932_s28  ;;  %v3268_v15 = vadd.f32 %v9585_v57, %v3191_v5  ;;  %v3412_v23 = vadd.f32 %v3404_v11, %v3325_v13  ;;  %v3345_v19 = vsel %vm493_vm4, %v9587_v53, %v9593_v17  ;;  %v9597_v13 = vld [vmem:[#allocation135_spill] sm:$0xff] }
 0x4da   :  { %v3584_v1 = vadd.f32 %v3576_v44, %v3497_v12  ;;  %4030 = vrot.lane.b32.xlu1 %v9592_v48, %s4932_s28  ;;  %v3352_v16 = vadd.f32 %v3344_v20, %v3266_v26  ;;  %v3431_v28 = vsel %vm575_vm5, %v9595_v58, %v9594_v32  ;;  %v3498_v45 = vadd.f32 %v3490_v30, %v3411_v7  ;;  %v9598_v20 = vld [vmem:[#allocation133_spill] sm:$0xff]  ;;  %v9599_v12 = vld [vmem:[#allocation172_spill] sm:$0xff] }
 0x4db   :  { %v3573_v60 = vpop.permute.xlu0 %3572  ;;  %v3346_v5 = vsel %vm493_vm4, %v9593_v17, %v9596_v43  ;;  %v3499_v52 = vadd.f32 %v3491_v56, %v3412_v23  ;;  %v3283_v53 = vsel %vm411_vm3, %v9598_v20, %v9597_v13  ;;  %v3518_v30 = vsel %vm657_vm6, %v9599_v12, %v8080_v61  ;;  %v9601_v56 = vld [vmem:[#allocation151_spill] sm:$0xff]  ;;  %v9602_v23 = vld [vmem:[#allocation170_spill] sm:$0xff]  ;;  %v9603_v17 = vld [vmem:[#allocation152_spill] sm:$0xff] }
 0x4dc   :  { %v3577_v57 = vsel %vm739_vm7, %v3571_v8, %v3573_v60  ;;  %v3575_v22 = vpop.permute.xlu1 %3574  ;;  %v8252_v11 = vadd.f32 %v8084_v10, %v3584_v1  ;;  %v3284_v8 = vsel %vm411_vm3, %v9597_v13, %v9600_v27  ;;  %v3439_v10 = vadd.f32 %v3431_v28, %v3352_v16  ;;  %v9605_v16 = vld [vmem:[#allocation144_spill] sm:$0xff]  ;;  %v9606_v28 = vld [vmem:[#allocation143_spill] sm:$0xff]  ;;  %v9608_v13 = vld [vmem:[#allocation169_spill] sm:$0xff] }
 0x4dd   :  { %v3585_v26 = vadd.f32 %v3577_v57, %v3498_v45  ;;  %v3578_v7 = vsel %vm739_vm7, %v3573_v60, %v3575_v22  ;;  %4032 = vrot.lane.b32.xlu0 %v8153_v25, %s4932_s28  ;;  %v3432_v44 = vsel %vm575_vm5, %v9594_v32, %v9601_v56  ;;  %v3353_v1 = vadd.f32 %v3345_v19, %v3267_v18  ;;  %v9607_v18 = vld [vmem:[#allocation161_spill] sm:$0xff] }
 0x4de   :  { %v3586_v63 = vadd.f32 %v3578_v7, %v3499_v52  ;;  %4055 = vrot.lane.b32.xlu1 %v9602_v23, %s4932_s28  ;;  %v3354_v48 = vadd.f32 %v3346_v5, %v3268_v15  ;;  %v3433_v45 = vsel %vm575_vm5, %v9601_v56, %v9603_v17  ;;  %v3373_v43 = vsel %vm493_vm4, %v9606_v28, %v9605_v16  ;;  %v9609_v7 = vld [vmem:[#allocation171_spill] sm:$0xff] }
 0x4df   :  { %v8274_v25 = vpop.permute.xlu0 %3597  ;;  %v8277_v60 = vadd.f32 %v8088_v24, %v3585_v26  ;;  %v3526_v32 = vadd.f32 %v3518_v30, %v3439_v10  ;;  %v3519_v52 = vsel %vm657_vm6, %v8080_v61, %v8123_v50  ;;  %v3290_v5 = vadd.f32 %v3283_v53, %v3218_v38  ;;  %v9610_v38 = vld [vmem:[#allocation44_spill] sm:$0xff] }
 0x4e0   :  { %9604 = vst [vmem:[#allocation175_spill] sm:$0xff] %v8274_v25  ;;  %v8286_v15 = vadd.f32 %v9607_v18, %v3586_v63  ;;  %v3600_v19 = vpop.permute.xlu1 %3599  ;;  %v3440_v57 = vadd.f32 %v3432_v44, %v3353_v1  ;;  %v3520_v24 = vsel %vm657_vm6, %v8123_v50, %v8134_v35  ;;  %v3220_v30 = vadd.f32 %v9577_v62, %v8156_v39  ;;  %v9611_v50 = vld [vmem:[#allocation153_spill] sm:$0xff]  ;;  %v9612_v35 = vld [vmem:[#allocation154_spill] sm:$0xff] }
 0x4e1   :  { %v3605_v22 = vsel %vm739_vm7, %v8274_v25, %v3600_v19  ;;  %4057 = vrot.lane.b32.xlu0 %v9608_v13, %s4932_s28  ;;  %v3441_v61 = vadd.f32 %v3433_v45, %v3354_v48  ;;  %v3664_v53 = vmul.f32 %v8000_v33, %v9610_v38  ;;  %v3291_v10 = vadd.f32 %v3284_v8, %v3219_v46  ;;  %v9613_v1 = vld [vmem:[#allocation146_spill] sm:$0xff]  ;;  %v9648_v25 = vld [vmem:[#allocation60_spill] sm:$0xff]  ;;  %v9649_v33 = vld [vmem:[#allocation59_spill] sm:$0xff] }
 0x4e2   :  { %v3613_v26 = vadd.f32 %v3605_v22, %v3526_v32  ;;  %4059 = vrot.lane.b32.xlu1 %v9609_v7, %s4932_s28  ;;  %v3381_v56 = vadd.f32 %v3373_v43, %v3290_v5  ;;  %v3460_v44 = vsel %vm575_vm5, %v9612_v35, %v9611_v50  ;;  %v3527_v63 = vadd.f32 %v3519_v52, %v3440_v57  ;;  %v9614_v32 = vld [vmem:[#allocation145_spill] sm:$0xff]  ;;  %v9616_v57 = vld [vmem:[#allocation174_spill] sm:$0xff]  ;;  %v9617_v22 = vld [vmem:[#allocation156_spill] sm:$0xff] }
 0x4e3   :  { %v3602_v23 = vpop.permute.xlu0 %3601  ;;  %v3374_v39 = vsel %vm493_vm4, %v9605_v16, %v9613_v1  ;;  %v3528_v62 = vadd.f32 %v3520_v24, %v3441_v61  ;;  %v3375_v46 = vsel %vm493_vm4, %v9613_v1, %v9614_v32  ;;  %v3547_v8 = vsel %vm657_vm6, %v8150_v2, %v8164_v3 }
 0x4e4   :  { %v3606_v48 = vsel %vm739_vm7, %v3600_v19, %v3602_v23  ;;  %v3604_v17 = vpop.permute.xlu1 %3603  ;;  %v8309_v45 = vadd.f32 %v8092_v0, %v3613_v26  ;;  %v3292_v16 = vadd.f32 %v9600_v27, %v3220_v30  ;;  %v3468_v18 = vadd.f32 %v3460_v44, %v3381_v56  ;;  %v9615_v19 = vld [vmem:[#allocation155_spill] sm:$0xff] }
 0x4e5   :  { %v3614_v43 = vadd.f32 %v3606_v48, %v3527_v63  ;;  %v3607_v52 = vsel %vm739_vm7, %v3602_v23, %v3604_v17  ;;  %4061 = vrot.lane.b32.xlu0 %v8175_v4, %s4932_s28  ;;  %v3461_v0 = vsel %vm575_vm5, %v9611_v50, %v9615_v19  ;;  %v3382_v24 = vadd.f32 %v3374_v39, %v3291_v10  ;;  %v9618_v4 = vld [vmem:[#allocation166_spill] sm:$0xff] }
 0x4e6   :  { %v3615_v5 = vadd.f32 %v3607_v52, %v3528_v62  ;;  %4084 = vrot.lane.b32.xlu1 %v9616_v57, %s4932_s28  ;;  %v3462_v13 = vsel %vm575_vm5, %v9615_v19, %v9617_v22  ;;  %v4078_v26 = vmul.f32 %v9618_v4, %v9610_v38  ;;  %v3383_v30 = vadd.f32 %v3375_v46, %v3292_v16  ;;  %v9621_v62 = vld [vmem:[#allocation159_spill] sm:$0xff]  ;;  %v9622_v17 = vld [vmem:[#allocation94_spill] sm:$0xff]  ;;  %v9623_v52 = vld [vmem:[#allocation165_spill] sm:$0xff] }
 0x4e7   :  { %v8329_v61 = vpop.permute.xlu0 %3626  ;;  %v8334_v27 = vadd.f32 %v8103_v54, %v3614_v43  ;;  %v3555_v7 = vadd.f32 %v3547_v8, %v3468_v18  ;;  %v3548_v56 = vsel %vm657_vm6, %v8164_v3, %v8190_v49  ;;  %v3469_v44 = vadd.f32 %v3461_v0, %v3382_v24  ;;  %v9619_v54 = vld [vmem:[#allocation173_spill] sm:$0xff]  ;;  %v9625_v0 = vld [vmem:[#allocation50_spill] sm:$0xff] }
 0x4e8   :  { %v3629_v50 = vpop.permute.xlu1 %3628  ;;  %v8339_v10 = vadd.f32 %v3664_v53, %v3615_v5  ;;  %v3549_v63 = vsel %vm657_vm6, %v8190_v49, %v8198_v37  ;;  %v4079_v1 = vmul.f32 0.0, %v9618_v4  ;;  %v3470_v39 = vadd.f32 %v3462_v13, %v3383_v30  ;;  %v9620_v53 = vld [vmem:[#allocation41_spill] sm:$0xff]  ;;  %v9627_v30 = vld [vmem:[#allocation55_spill] sm:$0xff] }
 0x4e9   :  { %v3634_v23 = vsel %vm739_vm7, %v8329_v61, %v3629_v50  ;;  %4086 = vrot.lane.b32.xlu0 %v9619_v54, %s4932_s28  ;;  %v3672_v48 = vmul.f32 %v9621_v62, %v9620_v53  ;;  %v2233_v32 = vmul.f32 0.0, %v9622_v17  ;;  %v3556_v49 = vadd.f32 %v3548_v56, %v3469_v44  ;;  %v9624_v19 = vld [vmem:[#allocation49_spill] sm:$0xff] }
 0x4ea   :  { %v3642_v3 = vadd.f32 %v3634_v23, %v3555_v7  ;;  %4088 = vrot.lane.b32.xlu1 %v4078_v26, %s4932_s28  ;;  %v3557_v46 = vadd.f32 %v3549_v63, %v3470_v39  ;;  %v4105_v16 = vmul.f32 %v9623_v52, %v9620_v53  ;;  %v2317_v5 = vsel %vm165_vm0, %v9625_v0, %v9624_v19  ;;  %v9626_v26 = vld [vmem:[#allocation56_spill] sm:$0xff]  ;;  %v9628_v39 = vld [vmem:[#allocation61_spill] sm:$0xff] }
 0x4eb   :  { %v3631_v37 = vpop.permute.xlu0 %3630  ;;  %v3673_v22 = vmul.f32 %v9621_v62, %v9531_v36  ;;  %v3674_v4 = vmul.f32 %v9621_v62, %v9610_v38  ;;  %v2404_v7 = vsel %vm247_vm1, %v9627_v30, %v9626_v26  ;;  %v2324_v63 = vadd.f32 %v2317_v5, %v2233_v32  ;;  %v9636_v30 = vld [vmem:[#allocation92_spill] sm:$0xff] }
 0x4ec   :  { %v3635_v8 = vsel %vm739_vm7, %v3629_v50, %v3631_v37  ;;  %v3633_v43 = vpop.permute.xlu1 %3632  ;;  %v8358_v18 = vadd.f32 %v3672_v48, %v3642_v3  ;;  %v4106_v50 = vmul.f32 %v9623_v52, %v9531_v36  ;;  %v4107_v54 = vmul.f32 %v9623_v52, %v9610_v38  ;;  %v9629_v3 = vld [vmem:[#allocation62_spill] sm:$0xff] }
 0x4ed   :  { %v3643_v57 = vadd.f32 %v3635_v8, %v3556_v49  ;;  %v3636_v24 = vsel %vm739_vm7, %v3631_v37, %v3633_v43  ;;  %4090 = vrot.lane.b32.xlu0 %v4079_v1, %s4932_s28  ;;  %v2491_v48 = vsel %vm329_vm2, %v9629_v3, %v9628_v39  ;;  %v4108_v17 = vmul.f32 0.0, %v9623_v52  ;;  %v9630_v37 = vld [vmem:[#allocation91_spill] sm:$0xff]  ;;  %v9631_v8 = vld [vmem:[#allocation45_spill] sm:$0xff]  ;;  %v9632_v43 = vld [vmem:[#allocation46_spill] sm:$0xff]  ;;  %s8421_s28 = sld [smem:[#allocation12 + $0x19]] }
 0x4ee   :  { %v3644_v13 = vadd.f32 %v3636_v24, %v3557_v46  ;;  %4113 = vrot.lane.b32.xlu1 %v4105_v16, %s4933_s3  ;;  %v4133_v49 = vstv %s8349_s22  ;;  %v2213_v46 = vmul.f32 0.0, %v9630_v37  ;;  %v2411_v32 = vadd.f32 %v2404_v7, %v2324_v63  ;;  %v9633_v24 = vld [vmem:[#allocation52_spill] sm:$0xff]  ;;  %v9634_v52 = vld [vmem:[#allocation51_spill] sm:$0xff]  ;;  %v9638_v63 = vld [vmem:[#allocation58_spill] sm:$0xff] }
 0x4ef   :  { %v8373_v56 = vpop.permute.xlu0 %3689  ;;  %v8377_v44 = vadd.f32 %v3673_v22, %v3643_v57  ;;  %v2259_v16 = vsel %vm165_vm0, %v9632_v43, %v9631_v8  ;;  %v4134_v57 = vmul.f32 %v4133_v49, %v9620_v53  ;;  %v2346_v22 = vsel %vm247_vm1, %v9634_v52, %v9633_v24  ;;  %v9641_v37 = vld [vmem:[#allocation47_spill] sm:$0xff]  ;;  %v9643_v24 = vld [vmem:[#allocation53_spill] sm:$0xff]  ;;  %v9644_v52 = vld [vmem:[#allocation54_spill] sm:$0xff] }
 0x4f0   :  { %v8379_v23 = vpop.permute.xlu1 %3691  ;;  %v8383_v1 = vadd.f32 %v3674_v4, %v3644_v13  ;;  %v2498_v0 = vadd.f32 %v2491_v48, %v2411_v32  ;;  %v2266_v13 = vadd.f32 %v2259_v16, %v2213_v46  ;;  %v9635_v4 = vld [vmem:[#allocation70_spill] sm:$0xff]  ;;  %v2223_v7 = vmul.f32 0.0, %v9636_v30  ;;  %v9640_v48 = vld [vmem:[#allocation48_spill] sm:$0xff] }
 0x4f1   :  { %4115 = vrot.lane.b32.xlu0 %v4106_v50, %s4933_s3  ;;  %v9637_v50 = vld [vmem:[#allocation57_spill] sm:$0xff]  ;;  %v4135_v3 = vmul.f32 %v4133_v49, %v9531_v36  ;;  %v2288_v32 = vsel %vm165_vm0, %v9641_v37, %v9640_v48  ;;  %v9642_v46 = vld [vmem:[#allocation78_spill] sm:$0xff]  ;;  %v4136_v16 = vmul.f32 %v4133_v49, %v9610_v38 }
 0x4f2   :  { %4117 = vrot.lane.b32.xlu1 %v4107_v54, %s4933_s3  ;;  %v2570_v26 = vadd.f32 %v9635_v4, %v2498_v0  ;;  %v2433_v54 = vsel %vm329_vm2, %v9638_v63, %v9637_v50  ;;  %v4137_v0 = vmul.f32 0.0, %v4133_v49  ;;  %v2375_v4 = vsel %vm247_vm1, %v9644_v52, %v9643_v24  ;;  %v9645_v50 = vld [vmem:[#allocation88_spill] sm:$0xff]  ;;  %v9647_v37 = vld [vmem:[#allocation113_spill] sm:$0xff]  ;;  %v9652_v52 = vld [vmem:[#allocation118_spill] sm:$0xff] }
 0x4f3   :  { %v8396_v19 = vpop.permute.xlu0 %3693  ;;  %v2462_v24 = vsel %vm329_vm2, %v9649_v33, %v9648_v25 }
 0x4f4   :  { %v8398_v5 = vpop.permute.xlu1 %3695  ;;  %v2661_v8 = vadd.f32 %v9642_v46, %v2570_v26  ;;  %v9646_v26 = vld [vmem:[#allocation64_spill] sm:$0xff] }
 0x4f5   :  { %4119 = vrot.lane.b32.xlu0 %v4108_v17, %s4933_s3  ;;  %v2353_v17 = vadd.f32 %v2346_v22, %v2266_v13  ;;  %v2295_v22 = vadd.f32 %v2288_v32, %v2223_v7  ;;  %v9650_v32 = vld [vmem:[#allocation72_spill] sm:$0xff] }
 0x4f6   :  { %4142 = vrot.lane.b32.xlu1 %v4134_v57, %s4933_s3  ;;  %v4162_v57 = vstv %s4696_s26  ;;  %v2748_v63 = vadd.f32 %v9645_v50, %v2661_v8  ;;  %v9651_v8 = vld [vmem:[#allocation117_spill] sm:$0xff] }
 0x4f7   :  { %v8411_v39 = vpop.permute.xlu0 %3718  ;;  %v2440_v30 = vadd.f32 %v2433_v54, %v2353_v17  ;;  %v4163_v49 = vmul.f32 %v4162_v57, %v9620_v53  ;;  %v4164_v25 = vmul.f32 %v4162_v57, %v9531_v36 }
 0x4f8   :  { %9639 = vst [vmem:[#allocation176_spill] sm:$0xff] %v8411_v39  ;;  %v8418_v43 = vpop.permute.xlu1 %3720  ;;  %v2835_v46 = vadd.f32 %v9647_v37, %v2748_v63  ;;  %v4165_v63 = vmul.f32 %v4162_v57, %v9610_v38  ;;  %v4166_v37 = vmul.f32 0.0, %v4162_v57 }
 0x4f9   :  { %4144 = vrot.lane.b32.xlu0 %v4135_v3, %s4933_s3  ;;  %v2522_v48 = vadd.f32 %v9646_v26, %v2440_v30  ;;  %v2382_v3 = vadd.f32 %v2375_v4, %v2295_v22  ;;  %v4191_v22 = vstv %s8421_s28  ;;  %v9654_v26 = vld [vmem:[#allocation123_spill] sm:$0xff] }
 0x4fa   :  { %4146 = vrot.lane.b32.xlu1 %v4136_v16, %s4933_s3  ;;  %v2952_v16 = vmul.f32 0.0, %v9651_v8  ;;  %v2922_v30 = vadd.f32 %v9652_v52, %v2835_v46  ;;  %v9655_v46 = vld [vmem:[#allocation66_spill] sm:$0xff]  ;;  %v9658_v8 = vld [vmem:[#allocation125_spill] sm:$0xff] }
 0x4fb   :  { %v8429_v13 = vpop.permute.xlu0 %3722  ;;  %v2603_v17 = vadd.f32 %v9650_v32, %v2522_v48  ;;  %v3036_v48 = vsel %vm165_vm0, %v9654_v26, %v7763_v34  ;;  %v9657_v32 = vld [vmem:[#allocation96_spill] sm:$0xff]  ;;  %v3123_v52 = vsel %vm247_vm1, %v9658_v8, %v7808_v51  ;;  %v4220_v8 = vstv %s8451_s13 }
 0x4fc   :  { %v3725_v39 = vpop.permute.xlu1 %3724 }
 0x4fd   :  { %v3728_v54 = vsel %vm165_vm0, %v8429_v13, %v3725_v39  ;;  %v8440_v7 = vadd.f32 %v3725_v39, %v8339_v10  ;;  %4148 = vrot.lane.b32.xlu0 %v4137_v0, %s4933_s3  ;;  %v2469_v10 = vadd.f32 %v2462_v24, %v2382_v3  ;;  %v9653_v39 = vld [vmem:[#allocation82_spill] sm:$0xff]  ;;  %v2956_v24 = vadd.f32 %v2952_v16, %v2922_v30 }
 0x4fe   :  { %v8447_v4 = vadd.f32 %v3728_v54, %v8334_v27  ;;  %4171 = vrot.lane.b32.xlu1 %v4163_v49, %s4933_s3  ;;  %v2690_v50 = vadd.f32 %v9653_v39, %v2603_v17  ;;  %v9656_v54 = vld [vmem:[#allocation95_spill] sm:$0xff]  ;;  %v2932_v17 = vmul.f32 0.0, %v9657_v32  ;;  %v9659_v39 = vld [vmem:[#allocation74_spill] sm:$0xff]  ;;  %v4193_v32 = vmul.f32 %v4191_v22, %v9531_v36 }
 0x4ff   :  { %v3748_v33 = vpop.permute.xlu0 %3747  ;;  %v2546_v49 = vadd.f32 %v9655_v46, %v2469_v10  ;;  %v3043_v12 = vadd.f32 %v3036_v48, %v2956_v24  ;;  %v9661_v30 = vld [vmem:[#allocation130_spill] sm:$0xff] }
 0x500   :  { %v3750_v0 = vpop.permute.xlu1 %3749  ;;  %v2777_v3 = vadd.f32 %v9656_v54, %v2690_v50  ;;  %v3210_v50 = vsel %vm329_vm2, %v9661_v30, %v7853_v14  ;;  %v9664_v14 = vld [vmem:[#allocation119_spill] sm:$0xff] }
 0x501   :  { %v8460_v27 = vsel %vm165_vm0, %v3748_v33, %v3750_v0  ;;  %4173 = vrot.lane.b32.xlu0 %v4164_v25, %s4933_s3  ;;  %v4192_v33 = vmul.f32 %v4191_v22, %v9620_v53  ;;  %v2632_v26 = vadd.f32 %v9659_v39, %v2546_v49  ;;  %v9660_v25 = vld [vmem:[#allocation115_spill] sm:$0xff]  ;;  %v9662_v49 = vld [vmem:[#allocation84_spill] sm:$0xff]  ;;  %v3130_v54 = vadd.f32 %v3123_v52, %v3043_v12 }
 0x502   :  { %4175 = vrot.lane.b32.xlu1 %v4165_v63, %s4933_s3  ;;  %v2864_v57 = vadd.f32 %v9660_v25, %v2777_v3  ;;  %v9663_v3 = vld [vmem:[#allocation120_spill] sm:$0xff]  ;;  %v3698_v12 = vsel %vm165_vm0, %v8379_v23, %v8396_v19  ;;  %v3699_v25 = vsel %vm165_vm0, %v8396_v19, %v8398_v5  ;;  %v9669_v19 = vld [vmem:[#allocation127_spill] sm:$0xff] }
 0x503   :  { %v3752_v34 = vpop.permute.xlu0 %3751  ;;  %v2719_v48 = vadd.f32 %v9662_v49, %v2632_v26  ;;  %v3217_v26 = vadd.f32 %v3210_v50, %v3130_v54  ;;  %v9666_v52 = vld [vmem:[#allocation124_spill] sm:$0xff]  ;;  %v3705_v54 = vadd.f32 %v3698_v12, %v8252_v11  ;;  %v4223_v12 = vmul.f32 %v4220_v8, %v9610_v38 }
 0x504   :  { %v3756_v10 = vsel %vm165_vm0, %v3750_v0, %v3752_v34  ;;  %v3754_v16 = vpop.permute.xlu1 %3753  ;;  %v2936_v39 = vadd.f32 %v2932_v17, %v2864_v57  ;;  %v4195_v17 = vmul.f32 0.0, %v4191_v22  ;;  %v9667_v57 = vld [vmem:[#allocation98_spill] sm:$0xff] }
 0x505   :  { %v8478_v63 = vadd.f32 %v3756_v10, %v8358_v18  ;;  %v3757_v51 = vsel %vm165_vm0, %v3752_v34, %v3754_v16  ;;  %v8482_v46 = vadd.f32 %v3754_v16, %v8383_v1  ;;  %4177 = vrot.lane.b32.xlu0 %v4166_v37, %s4933_s3  ;;  %v2978_v18 = vsel %vm165_vm0, %v9664_v14, %v9663_v3  ;;  %v9665_v34 = vld [vmem:[#allocation104_spill] sm:$0xff]  ;;  %s8510_s3 = sld [smem:[#allocation12 + $0x4f]] }
 0x506   :  { %v8487_v0 = vadd.f32 %v3757_v51, %v8377_v44  ;;  %4200 = vrot.lane.b32.xlu1 %v4192_v33, %s4934_s11  ;;  %v4194_v1 = vmul.f32 %v4191_v22, %v9610_v38  ;;  %v2806_v37 = vadd.f32 %v9665_v34, %v2719_v48  ;;  %v3065_v33 = vsel %vm247_vm1, %v9666_v52, %v7778_v9  ;;  %v9668_v51 = vld [vmem:[#allocation116_spill] sm:$0xff] }
 0x507   :  { %v3777_v24 = vpop.permute.xlu0 %3776  ;;  %v2942_v16 = vmul.f32 0.0, %v9667_v57  ;;  %v2985_v30 = vadd.f32 %v2978_v18, %v2936_v39  ;;  %v3289_v50 = vadd.f32 %v9598_v20, %v3217_v26  ;;  %v4221_v9 = vmul.f32 %v4220_v8, %v9620_v53 }
 0x508   :  { %v3779_v44 = vpop.permute.xlu1 %3778  ;;  %v2893_v49 = vadd.f32 %v9668_v51, %v2806_v37  ;;  %v3152_v48 = vsel %vm329_vm2, %v9669_v19, %v7823_v40  ;;  %v3707_v22 = vadd.f32 %v8398_v5, %v8286_v15  ;;  %v3706_v20 = vadd.f32 %v3699_v25, %v8277_v60  ;;  %v9670_v60 = vld [vmem:[#allocation121_spill] sm:$0xff] }
 0x509   :  { %v8507_v10 = vsel %vm247_vm1, %v3777_v24, %v3779_v44  ;;  %4202 = vrot.lane.b32.xlu0 %v4193_v32, %s4934_s11  ;;  %v3072_v14 = vadd.f32 %v3065_v33, %v2985_v30  ;;  %v3380_v18 = vadd.f32 %v9606_v28, %v3289_v50  ;;  %v9671_v28 = vld [vmem:[#allocation122_spill] sm:$0xff]  ;;  %v4222_v26 = vmul.f32 %v4220_v8, %v9531_v36 }
 0x50a   :  { %4204 = vrot.lane.b32.xlu1 %v4194_v1, %s4934_s11  ;;  %v3007_v5 = vsel %vm165_vm0, %v9671_v28, %v9670_v60  ;;  %v4224_v50 = vmul.f32 0.0, %v4220_v8  ;;  %v4278_v28 = vstv %s8554_s15 }
 0x50b   :  { %v3781_v3 = vpop.permute.xlu0 %3780  ;;  %v3159_v40 = vadd.f32 %v3152_v48, %v3072_v14  ;;  %v3467_v11 = vadd.f32 %v9612_v35, %v3380_v18  ;;  %v3727_v35 = vsel %vm165_vm0, %v8418_v43, %v8429_v13  ;;  %v3671_v13 = vmul.f32 0.0, %v9621_v62 }
 0x50c   :  { %v3785_v24 = vsel %vm247_vm1, %v3779_v44, %v3781_v3  ;;  %v3783_v32 = vpop.permute.xlu1 %3782  ;;  %v2946_v44 = vadd.f32 %v2942_v16, %v2893_v49  ;;  %v4249_v16 = vstv %s8510_s3  ;;  %v3734_v49 = vadd.f32 %v3727_v35, %v8309_v45 }
 0x50d   :  { %v8526_v1 = vadd.f32 %v3785_v24, %v3705_v54  ;;  %v3786_v34 = vsel %vm247_vm1, %v3781_v3, %v3783_v32  ;;  %v8529_v37 = vadd.f32 %v3783_v32, %v3707_v22  ;;  %4206 = vrot.lane.b32.xlu0 %v4195_v17, %s4934_s11  ;;  %v3241_v52 = vadd.f32 %v7862_v47, %v3159_v40  ;;  %v9672_v17 = vld [vmem:[#allocation126_spill] sm:$0xff]  ;;  %v9674_v32 = vld [vmem:[#allocation163_spill] sm:$0xff] }
 0x50e   :  { %v8533_v15 = vadd.f32 %v3786_v34, %v3706_v20  ;;  %4229 = vrot.lane.b32.xlu1 %v4221_v9, %s4934_s11  ;;  %v3554_v33 = vadd.f32 %v8150_v2, %v3467_v11  ;;  %v3094_v57 = vsel %vm247_vm1, %v9672_v17, %v7793_v31  ;;  %v3014_v47 = vadd.f32 %v3007_v5, %v2946_v44  ;;  %v9673_v31 = vld [vmem:[#allocation128_spill] sm:$0xff] }
 0x50f   :  { %v3806_v39 = vpop.permute.xlu0 %3805  ;;  %v3322_v2 = vadd.f32 %v7897_v6, %v3241_v52  ;;  %v3181_v51 = vsel %vm329_vm2, %v9673_v31, %v7838_v55  ;;  %v4250_v6 = vmul.f32 %v4249_v16, %v9620_v53  ;;  %v4251_v20 = vmul.f32 %v4249_v16, %v9531_v36 }
 0x510   :  { %v3808_v25 = vpop.permute.xlu1 %3807  ;;  %v3641_v9 = vadd.f32 %v8329_v61, %v3554_v33  ;;  %v3101_v8 = vadd.f32 %v3094_v57, %v3014_v47  ;;  %v4252_v24 = vmul.f32 %v4249_v16, %v9610_v38  ;;  %v3651_v34 = vmul.f32 0.0, %v9674_v32 }
 0x511   :  { %v8550_v30 = vsel %vm247_vm1, %v3806_v39, %v3808_v25  ;;  %4231 = vrot.lane.b32.xlu0 %v4222_v26, %s4934_s11  ;;  %v3409_v48 = vadd.f32 %v7942_v59, %v3322_v2  ;;  %v4279_v52 = vmul.f32 %v4278_v28, %v9620_v53  ;;  %v4280_v57 = vmul.f32 %v4278_v28, %v9531_v36 }
 0x512   :  { %4233 = vrot.lane.b32.xlu1 %v4223_v12, %s4934_s11  ;;  %v3188_v55 = vadd.f32 %v3181_v51, %v3101_v8  ;;  %v3675_v14 = vadd.f32 %v3671_v13, %v3641_v9  ;;  %v4281_v9 = vmul.f32 %v4278_v28, %v9610_v38  ;;  %v4307_v31 = vstv %s4701_s16 }
 0x513   :  { %v3810_v19 = vpop.permute.xlu0 %3809  ;;  %v3496_v45 = vadd.f32 %v9581_v21, %v3409_v48 }
 0x514   :  { %v3814_v54 = vsel %vm247_vm1, %v3808_v25, %v3810_v19  ;;  %v3812_v22 = vpop.permute.xlu1 %3811  ;;  %v3762_v11 = vadd.f32 %v8460_v27, %v3675_v14 }
 0x515   :  { %v8567_v61 = vadd.f32 %v3814_v54, %v3734_v49  ;;  %v3815_v62 = vsel %vm247_vm1, %v3810_v19, %v3812_v22  ;;  %v8571_v3 = vadd.f32 %v3812_v22, %v8440_v7  ;;  %4235 = vrot.lane.b32.xlu0 %v4224_v50, %s4934_s11  ;;  %v3265_v7 = vadd.f32 %v9583_v42, %v3188_v55  ;;  %v9678_v49 = vld [vmem:[#allocation176_spill] sm:$0xff] }
 0x516   :  { %v8576_v59 = vadd.f32 %v3815_v62, %v8447_v4  ;;  %4258 = vrot.lane.b32.xlu1 %v4250_v6, %s4934_s11  ;;  %v3583_v40 = vadd.f32 %v8223_v29, %v3496_v45  ;;  %v4253_v4 = vmul.f32 0.0, %v4249_v16  ;;  %v3697_v42 = vsel %vm165_vm0, %v8373_v56, %v8379_v23  ;;  %v9675_v56 = vld [vmem:[#allocation172_spill] sm:$0xff]  ;;  %v9677_v16 = vld [vmem:[#allocation175_spill] sm:$0xff] }
 0x517   :  { %v3835_v18 = vpop.permute.xlu0 %3834  ;;  %v3351_v5 = vadd.f32 %v9588_v41, %v3265_v7  ;;  %v3726_v19 = vsel %vm165_vm0, %v9678_v49, %v8418_v43  ;;  %v4308_v22 = vmul.f32 %v4307_v31, %v9620_v53  ;;  %v4310_v7 = vmul.f32 %v4307_v31, %v9610_v38 }
 0x518   :  { %v3837_v21 = vpop.permute.xlu1 %3836  ;;  %v3655_v26 = vadd.f32 %v3651_v34, %v3583_v40 }
 0x519   :  { %v3842_v60 = vsel %vm247_vm1, %v3835_v18, %v3837_v21  ;;  %4260 = vrot.lane.b32.xlu0 %v4251_v20, %s4934_s11  ;;  %v3438_v27 = vadd.f32 %v9595_v58, %v3351_v5  ;;  %v4309_v18 = vmul.f32 %v4307_v31, %v9531_v36 }
 0x51a   :  { %v8589_v39 = vadd.f32 %v3842_v60, %v3762_v11  ;;  %4262 = vrot.lane.b32.xlu1 %v4252_v24, %s4934_s11  ;;  %v3704_v25 = vadd.f32 %v3697_v42, %v3655_v26 }
 0x51b   :  { %v3839_v29 = vpop.permute.xlu0 %3838  ;;  %v3525_v23 = vadd.f32 %v9675_v56, %v3438_v27 }
 0x51c   :  { %v3843_v12 = vsel %vm247_vm1, %v3837_v21, %v3839_v29  ;;  %v3841_v44 = vpop.permute.xlu1 %3840 }
 0x51d   :  { %v8599_v33 = vadd.f32 %v3843_v12, %v8478_v63  ;;  %v3844_v41 = vsel %vm247_vm1, %v3839_v29, %v3841_v44  ;;  %v8603_v35 = vadd.f32 %v3841_v44, %v8482_v46  ;;  %4264 = vrot.lane.b32.xlu0 %v4253_v4, %s4934_s11  ;;  %v9676_v63 = vld [vmem:[#allocation164_spill] sm:$0xff]  ;;  %v3612_v47 = vadd.f32 %v9677_v16, %v3525_v23  ;;  %s4702_s11 = sld [smem:[#allocation12 + $0x50]] }
 0x51e   :  { %v8608_v58 = vadd.f32 %v3844_v41, %v8487_v0  ;;  %4287 = vrot.lane.b32.xlu1 %v4279_v52, %s4935_s5  ;;  %v3661_v50 = vmul.f32 0.0, %v9676_v63  ;;  %v3791_v46 = vadd.f32 %v8507_v10, %v3704_v25  ;;  %v4282_v0 = vmul.f32 0.0, %v4278_v28 }
 0x51f   :  { %v3864_v17 = vpop.permute.xlu0 %3863 }
 0x520   :  { %v3866_v2 = vpop.permute.xlu1 %3865  ;;  %v3665_v48 = vadd.f32 %v3661_v50, %v3612_v47 }
 0x521   :  { %v3871_v13 = vsel %vm329_vm2, %v3864_v17, %v3866_v2  ;;  %4289 = vrot.lane.b32.xlu0 %v4280_v57, %s4935_s5 }
 0x522   :  { %v3878_v51 = vadd.f32 %v3871_v13, %v3791_v46  ;;  %4291 = vrot.lane.b32.xlu1 %v4281_v9, %s4935_s5  ;;  %v3733_v45 = vadd.f32 %v3726_v19, %v3665_v48 }
 0x523   :  { %v3868_v8 = vpop.permute.xlu0 %3867  ;;  %v4336_v32 = vstv %s4702_s11 }
 0x524   :  { %v3872_v10 = vsel %vm329_vm2, %v3866_v2, %v3868_v8  ;;  %v3870_v54 = vpop.permute.xlu1 %3869  ;;  %v3820_v20 = vadd.f32 %v8550_v30, %v3733_v45  ;;  %v4337_v21 = vmul.f32 %v4336_v32, %v9620_v53  ;;  %v4338_v42 = vmul.f32 %v4336_v32, %v9531_v36 }
 0x525   :  { %v3879_v6 = vadd.f32 %v3872_v10, %v8526_v1  ;;  %v3873_v62 = vsel %vm329_vm2, %v3868_v8, %v3870_v54  ;;  %v3881_v55 = vadd.f32 %v3870_v54, %v8529_v37  ;;  %4293 = vrot.lane.b32.xlu0 %v4282_v0, %s4935_s5  ;;  %v4311_v37 = vmul.f32 0.0, %v4307_v31 }
 0x526   :  { %v3880_v14 = vadd.f32 %v3873_v62, %v8533_v15  ;;  %4316 = vrot.lane.b32.xlu1 %v4308_v22, %s4935_s5  ;;  %v4339_v27 = vmul.f32 %v4336_v32, %v9610_v38 }
 0x527   :  { %v3893_v43 = vpop.permute.xlu0 %3892 }
 0x528   :  { %v3895_v24 = vpop.permute.xlu1 %3894 }
 0x529   :  { %v3900_v1 = vsel %vm329_vm2, %v3893_v43, %v3895_v24  ;;  %4318 = vrot.lane.b32.xlu0 %v4309_v18, %s4935_s5 }
 0x52a   :  { %v3907_v34 = vadd.f32 %v3900_v1, %v3820_v20  ;;  %4320 = vrot.lane.b32.xlu1 %v4310_v7, %s4935_s5 }
 0x52b   :  { %v3897_v15 = vpop.permute.xlu0 %3896 }
 0x52c   :  { %v3901_v40 = vsel %vm329_vm2, %v3895_v24, %v3897_v15  ;;  %v3899_v11 = vpop.permute.xlu1 %3898 }
 0x52d   :  { %v3908_v30 = vadd.f32 %v3901_v40, %v8567_v61  ;;  %v3902_v60 = vsel %vm329_vm2, %v3897_v15, %v3899_v11  ;;  %v3910_v4 = vadd.f32 %v3899_v11, %v8571_v3  ;;  %4322 = vrot.lane.b32.xlu0 %v4311_v37, %s4935_s5  ;;  %v4340_v61 = vmul.f32 0.0, %v4336_v32 }
 0x52e   :  { %v3909_v28 = vadd.f32 %v3902_v60, %v8576_v59  ;;  %4345 = vrot.lane.b32.xlu1 %v4337_v21, %s4935_s5 }
 0x52f   :  { %v3922_v5 = vpop.permute.xlu0 %3921 }
 0x530   :  { %v3924_v29 = vpop.permute.xlu1 %3923 }
 0x531   :  { %v3929_v53 = vsel %vm329_vm2, %v3922_v5, %v3924_v29  ;;  %4347 = vrot.lane.b32.xlu0 %v4338_v42, %s4935_s5 }
 0x532   :  { %v3936_v26 = vadd.f32 %v3929_v53, %v8589_v39  ;;  %4349 = vrot.lane.b32.xlu1 %v4339_v27, %s4935_s5 }
 0x533   :  { %v3926_v3 = vpop.permute.xlu0 %3925 }
 0x534   :  { %v3930_v59 = vsel %vm329_vm2, %v3924_v29, %v3926_v3  ;;  %v3928_v12 = vpop.permute.xlu1 %3927 }
 0x535   :  { %v3937_v44 = vadd.f32 %v3930_v59, %v8599_v33  ;;  %v3931_v36 = vsel %vm329_vm2, %v3926_v3, %v3928_v12  ;;  %v3939_v52 = vadd.f32 %v3928_v12, %v8603_v35  ;;  %4351 = vrot.lane.b32.xlu0 %v4340_v61, %s4935_s5  ;;  %s4364_s5 = sld [smem:[#allocation13]] }
 0x536   :  { %v3938_v38 = vadd.f32 %v3931_v36, %v8608_v58 }
 0x537   :  { %v3949_v41 = vpop.permute.xlu0 %3948 }
 0x538   :  { %v3960_v56 = vadd.f32 %v3949_v41, %v3878_v51  ;;  %v3951_v23 = vpop.permute.xlu1 %3950 }
 0x539   :  { %v3954_v39 = vsel %vm411_vm3, %v3949_v41, %v3951_v23 }
 0x53a   :  { %v3961_v25 = vadd.f32 %v3954_v39, %v3879_v6 }
 0x53b   :  { %v3953_v17 = vpop.permute.xlu0 %3952 }
 0x53c   :  { %v3955_v57 = vsel %vm411_vm3, %v3951_v23, %v3953_v17  ;;  %v3963_v63 = vadd.f32 %v3953_v17, %v3881_v55  ;;  %v3973_v50 = vpop.permute.xlu1 %3972 }
 0x53d   :  { %v3962_v33 = vadd.f32 %v3955_v57, %v3880_v14  ;;  %v3984_v16 = vadd.f32 %v3973_v50, %v3907_v34 }
 0x53f   :  { %v3975_v47 = vpop.permute.xlu0 %3974 }
 0x540   :  { %v3978_v35 = vsel %vm411_vm3, %v3973_v50, %v3975_v47  ;;  %v3977_v46 = vpop.permute.xlu1 %3976 }
 0x541   :  { %v3985_v2 = vadd.f32 %v3978_v35, %v3908_v30  ;;  %v3979_v58 = vsel %vm411_vm3, %v3975_v47, %v3977_v46  ;;  %v3987_v9 = vadd.f32 %v3977_v46, %v3910_v4 }
 0x542   :  { %v3986_v13 = vadd.f32 %v3979_v58, %v3909_v28 }
 0x543   :  { %v3997_v0 = vpop.permute.xlu0 %3996 }
 0x544   :  { %v4008_v31 = vadd.f32 %v3997_v0, %v3936_v26  ;;  %v3999_v51 = vpop.permute.xlu1 %3998 }
 0x545   :  { %v4002_v49 = vsel %vm411_vm3, %v3997_v0, %v3999_v51 }
 0x546   :  { %v4009_v19 = vadd.f32 %v4002_v49, %v3937_v44 }
 0x547   :  { %v4001_v8 = vpop.permute.xlu0 %4000 }
 0x548   :  { %v4003_v48 = vsel %vm411_vm3, %v3999_v51, %v4001_v8  ;;  %v4011_v10 = vadd.f32 %v4001_v8, %v3939_v52  ;;  %v4027_v54 = vpop.permute.xlu1 %4026 }
 0x549   :  { %v4010_v22 = vadd.f32 %v4003_v48, %v3938_v38  ;;  %v4041_v6 = vadd.f32 %v4027_v54, %v3960_v56 }
 0x54b   :  { %v4029_v62 = vpop.permute.xlu0 %4028 }
 0x54c   :  { %v4034_v55 = vsel %vm493_vm4, %v4027_v54, %v4029_v62  ;;  %v4031_v45 = vpop.permute.xlu1 %4030  ;;  %v4365_v54 = vstv %s4364_s5 }
 0x54d   :  { %v4042_v14 = vadd.f32 %v4034_v55, %v3961_v25  ;;  %v4035_v43 = vsel %vm493_vm4, %v4029_v62, %v4031_v45 }
 0x54e   :  { %v8664_v18 = vadd.f32 %v4035_v43, %v3962_v33 }
 0x54f   :  { %v4033_v20 = vpop.permute.xlu0 %4032 }
 0x550   :  { %v4036_v24 = vsel %vm493_vm4, %v4031_v45, %v4033_v20  ;;  %v4056_v7 = vpop.permute.xlu1 %4055 }
 0x551   :  { %v4044_v1 = vadd.f32 %v4036_v24, %v3963_v63  ;;  %v8667_v37 = vadd.f32 %v4056_v7, %v3984_v16 }
 0x553   :  { %v4058_v32 = vpop.permute.xlu0 %4057 }
 0x554   :  { %v4063_v34 = vsel %vm493_vm4, %v4056_v7, %v4058_v32  ;;  %v4060_v15 = vpop.permute.xlu1 %4059 }
 0x555   :  { %v8670_v40 = vadd.f32 %v4063_v34, %v3985_v2  ;;  %v4064_v11 = vsel %vm493_vm4, %v4058_v32, %v4060_v15 }
 0x556   :  { %v8673_v21 = vadd.f32 %v4064_v11, %v3986_v13 }
 0x557   :  { %v4062_v30 = vpop.permute.xlu0 %4061 }
 0x558   :  { %v4065_v60 = vsel %vm493_vm4, %v4060_v15, %v4062_v30  ;;  %v4085_v4 = vpop.permute.xlu1 %4084 }
 0x559   :  { %v8676_v28 = vadd.f32 %v4065_v60, %v3987_v9  ;;  %v8678_v5 = vadd.f32 %v4085_v4, %v4008_v31 }
 0x55b   :  { %v4087_v42 = vpop.permute.xlu0 %4086 }
 0x55c   :  { %v4092_v29 = vsel %vm493_vm4, %v4085_v4, %v4087_v42  ;;  %v4089_v27 = vpop.permute.xlu1 %4088 }
 0x55d   :  { %v8681_v53 = vadd.f32 %v4092_v29, %v4009_v19  ;;  %v4093_v61 = vsel %vm493_vm4, %v4087_v42, %v4089_v27 }
 0x55e   :  { %v8684_v26 = vadd.f32 %v4093_v61, %v4010_v22 }
 0x55f   :  { %v4091_v3 = vpop.permute.xlu0 %4090 }
 0x560   :  { %v4094_v59 = vsel %vm493_vm4, %v4089_v27, %v4091_v3  ;;  %v4114_v12 = vpop.permute.xlu1 %4113  ;;  %v4417_v3 = vstv %s4707_s17 }
 0x561   :  { %v8687_v44 = vadd.f32 %v4094_v59, %v4011_v10  ;;  %v4128_v31 = vadd.f32 %v4114_v12, %v4041_v6 }
 0x563   :  { %v4116_v36 = vpop.permute.xlu0 %4115 }
 0x564   :  { %v4118_v52 = vpop.permute.xlu1 %4117  ;;  %v4121_v51 = vsel %vm575_vm5, %v4114_v12, %v4116_v36 }
 0x565   :  { %v4122_v49 = vsel %vm575_vm5, %v4116_v36, %v4118_v52  ;;  %v4129_v62 = vadd.f32 %v4121_v51, %v4042_v14 }
 0x566   :  { %v4130_v6 = vadd.f32 %v4122_v49, %v8664_v18 }
 0x567   :  { %v4120_v38 = vpop.permute.xlu0 %4119 }
 0x568   :  { %v4143_v41 = vpop.permute.xlu1 %4142  ;;  %v4123_v19 = vsel %vm575_vm5, %v4118_v52, %v4120_v38 }
 0x569   :  { %v4131_v43 = vadd.f32 %v4123_v19, %v4044_v1  ;;  %v4157_v15 = vadd.f32 %v4143_v41, %v8667_v37 }
 0x56b   :  { %v4145_v56 = vpop.permute.xlu0 %4144 }
 0x56c   :  { %v4147_v23 = vpop.permute.xlu1 %4146  ;;  %v4150_v20 = vsel %vm575_vm5, %v4143_v41, %v4145_v56 }
 0x56d   :  { %v4151_v11 = vsel %vm575_vm5, %v4145_v56, %v4147_v23  ;;  %v4158_v29 = vadd.f32 %v4150_v20, %v8670_v40 }
 0x56e   :  { %v4159_v52 = vadd.f32 %v4151_v11, %v8673_v21 }
 0x56f   :  { %v4149_v39 = vpop.permute.xlu0 %4148 }
 0x570   :  { %v8689_v25 = vpop.permute.xlu1 %4171  ;;  %v4152_v4 = vsel %vm575_vm5, %v4147_v23, %v4149_v39 }
 0x571   :  { %v4160_v38 = vadd.f32 %v4152_v4, %v8676_v28 }
 0x573   :  { %v8691_v17 = vpop.permute.xlu0 %4173 }
 0x574   :  { %v8693_v57 = vpop.permute.xlu1 %4175 }
 0x577   :  { %v8695_v63 = vpop.permute.xlu0 %4177 }
 0x578   :  { %v4201_v50 = vpop.permute.xlu1 %4200 }
 0x579   :  { %v4215_v8 = vadd.f32 %v4201_v50, %v4128_v31 }
 0x57b   :  { %v4203_v33 = vpop.permute.xlu0 %4202 }
 0x57c   :  { %v4205_v16 = vpop.permute.xlu1 %4204  ;;  %v4208_v10 = vsel %vm657_vm6, %v4201_v50, %v4203_v33 }
 0x57d   :  { %v4209_v55 = vsel %vm657_vm6, %v4203_v33, %v4205_v16  ;;  %v4216_v24 = vadd.f32 %v4208_v10, %v4129_v62 }
 0x57e   :  { %v4217_v30 = vadd.f32 %v4209_v55, %v4130_v6  ;;  %v4469_v55 = vstv %s8719_s19 }
 0x57f   :  { %v4207_v47 = vpop.permute.xlu0 %4206 }
 0x580   :  { %v4230_v35 = vpop.permute.xlu1 %4229  ;;  %v4210_v7 = vsel %vm657_vm6, %v4205_v16, %v4207_v47  ;;  %v4186_v16 = vadd.f32 %v8689_v25, %v8678_v5  ;;  %v4179_v47 = vsel %vm575_vm5, %v8689_v25, %v8691_v17 }
 0x581   :  { %v4218_v27 = vadd.f32 %v4210_v7, %v4131_v43  ;;  %v4244_v37 = vadd.f32 %v4230_v35, %v4157_v15 }
 0x583   :  { %v4232_v46 = vpop.permute.xlu0 %4231 }
 0x584   :  { %v4234_v2 = vpop.permute.xlu1 %4233  ;;  %v4237_v59 = vsel %vm657_vm6, %v4230_v35, %v4232_v46 }
 0x585   :  { %v4238_v40 = vsel %vm657_vm6, %v4232_v46, %v4234_v2  ;;  %v4245_v35 = vadd.f32 %v4237_v59, %v4158_v29  ;;  %v4180_v46 = vsel %vm575_vm5, %v8691_v17, %v8693_v57 }
 0x586   :  { %v4246_v19 = vadd.f32 %v4238_v40, %v4159_v52  ;;  %v4188_v20 = vadd.f32 %v4180_v46, %v8684_v26 }
 0x587   :  { %v4236_v58 = vpop.permute.xlu0 %4235 }
 0x588   :  { %v8697_v9 = vpop.permute.xlu1 %4258  ;;  %v4239_v28 = vsel %vm657_vm6, %v4234_v2, %v4236_v58  ;;  %v4187_v2 = vadd.f32 %v4179_v47, %v8681_v53 }
 0x589   :  { %v4247_v58 = vadd.f32 %v4239_v28, %v4160_v38 }
 0x58b   :  { %v8699_v13 = vpop.permute.xlu0 %4260 }
 0x58c   :  { %v8701_v0 = vpop.permute.xlu1 %4262  ;;  %v4266_v17 = vsel %vm657_vm6, %v8697_v9, %v8699_v13 }
 0x58f   :  { %v8706_v48 = vpop.permute.xlu0 %4264 }
 0x590   :  { %v4288_v22 = vpop.permute.xlu1 %4287  ;;  %v4268_v4 = vsel %vm657_vm6, %v8701_v0, %v8706_v48 }
 0x591   :  { %v4302_v45 = vadd.f32 %v4288_v22, %v4215_v8 }
 0x593   :  { %v4366_v32 = vadd.f32 %v4365_v54, %v4302_v45  ;;  %v4290_v34 = vpop.permute.xlu0 %4289  ;;  %v4273_v45 = vadd.f32 %v8697_v9, %v4186_v16  ;;  %v4267_v9 = vsel %vm657_vm6, %v8699_v13, %v8701_v0 }
 0x594   :  { %v4295_v14 = vsel %vm739_vm7, %v4288_v22, %v4290_v34  ;;  %v4292_v60 = vpop.permute.xlu1 %4291 }
 0x595   :  { %v4703_v42 = vmul.f32 -1.442695, %v4366_v32  ;;  %v4303_v18 = vadd.f32 %v4295_v14, %v4216_v24  ;;  %v4296_v1 = vsel %vm739_vm7, %v4290_v34, %v4292_v60  ;;  %v4181_v34 = vsel %vm575_vm5, %v8693_v57, %v8695_v63 }
 0x596   :  { %v4304_v61 = vadd.f32 %v4296_v1, %v4217_v30  ;;  %v4274_v14 = vadd.f32 %v4266_v17, %v4187_v2  ;;  %v4189_v57 = vadd.f32 %v4181_v34, %v8687_v44 }
 0x597   :  { %4737 = vpow2.f32 %v4703_v42  ;;  %v4367_v12 = vadd.f32 %v4365_v54, %v4303_v18  ;;  %v4294_v36 = vpop.permute.xlu0 %4293 }
 0x598   :  { %v4368_v41 = vadd.f32 %v4365_v54, %v4304_v61  ;;  %v4297_v56 = vsel %vm739_vm7, %v4292_v60, %v4294_v36  ;;  %v4317_v23 = vpop.permute.xlu1 %4316  ;;  %v4275_v61 = vadd.f32 %v4267_v9, %v4188_v20 }
 0x599   :  { %v4704_v39 = vmul.f32 -1.442695, %v4367_v12  ;;  %v4305_v50 = vadd.f32 %v4297_v56, %v4218_v27  ;;  %v4331_v33 = vadd.f32 %v4317_v23, %v4244_v37  ;;  %v4276_v12 = vadd.f32 %v4268_v4, %v4189_v57 }
 0x59a   :  { %v4705_v21 = vmul.f32 -1.442695, %v4368_v41 }
 0x59b   :  { %4739 = vpow2.f32 %v4704_v39  ;;  %v4369_v31 = vadd.f32 %v4365_v54, %v4305_v50  ;;  %v4418_v51 = vadd.f32 %v4417_v3, %v4331_v33  ;;  %v4319_v49 = vpop.permute.xlu0 %4318 }
 0x59c   :  { %4741 = vpow2.f32 %v4705_v21  ;;  %v4324_v5 = vsel %vm739_vm7, %v4317_v23, %v4319_v49  ;;  %v4321_v8 = vpop.permute.xlu1 %4320 }
 0x59d   :  { %v4706_v10 = vmul.f32 -1.442695, %v4369_v31  ;;  %v4708_v25 = vmul.f32 -1.442695, %v4418_v51  ;;  %v4332_v22 = vadd.f32 %v4324_v5, %v4245_v35  ;;  %v4325_v62 = vsel %vm739_vm7, %v4319_v49, %v4321_v8 }
 0x59e   :  { %v4333_v54 = vadd.f32 %v4325_v62, %v4246_v19 }
 0x59f   :  { %4743 = vpow2.f32 %v4706_v10  ;;  %v4419_v6 = vadd.f32 %v4417_v3, %v4332_v22  ;;  %v4323_v43 = vpop.permute.xlu0 %4322 }
 0x5a0   :  { %4745 = vpow2.f32 %v4708_v25  ;;  %v4420_v24 = vadd.f32 %v4417_v3, %v4333_v54  ;;  %v4326_v7 = vsel %vm739_vm7, %v4321_v8, %v4323_v43  ;;  %v4346_v32 = vpop.permute.xlu1 %4345 }
 0x5a1   :  { %v4738_v53 = vpop.eup %4737  ;;  %v4709_v15 = vmul.f32 -1.442695, %v4419_v6  ;;  %v4334_v11 = vadd.f32 %v4326_v7, %v4247_v58  ;;  %v4360_v30 = vadd.f32 %v4346_v32, %v4273_v45 }
 0x5a2   :  { %v4382_v60 = vadd.f32 1.0, %v4738_v53  ;;  %v4710_v26 = vmul.f32 -1.442695, %v4420_v24 }
 0x5a3   :  { %4747 = vpow2.f32 %v4709_v15  ;;  %v4421_v42 = vadd.f32 %v4417_v3, %v4334_v11  ;;  %v4470_v18 = vadd.f32 %v4469_v55, %v4360_v30  ;;  %v4348_v1 = vpop.permute.xlu0 %4347 }
 0x5a4   :  { %4749 = vrcp.f32 %v4382_v60  ;;  %v4353_v63 = vsel %vm739_vm7, %v4346_v32, %v4348_v1  ;;  %v4350_v29 = vpop.permute.xlu1 %4349 }
 0x5a5   :  { %v4740_v27 = vpop.eup %4739  ;;  %4751 = vpow2.f32 %v4710_v26  ;;  %v4711_v13 = vmul.f32 -1.442695, %v4421_v42  ;;  %v4361_v37 = vadd.f32 %v4353_v63, %v4274_v14  ;;  %v4713_v52 = vmul.f32 -1.442695, %v4470_v18 }
 0x5a6   :  { %v4742_v59 = vpop.eup %4741  ;;  %v4383_v36 = vadd.f32 1.0, %v4740_v27  ;;  %v4354_v0 = vsel %vm739_vm7, %v4348_v1, %v4350_v29 }
 0x5a7   :  { %v4384_v48 = vadd.f32 1.0, %v4742_v59  ;;  %4753 = vpow2.f32 %v4711_v13  ;;  %v4471_v3 = vadd.f32 %v4469_v55, %v4361_v37  ;;  %v4362_v38 = vadd.f32 %v4354_v0, %v4275_v61  ;;  %v4352_v44 = vpop.permute.xlu0 %4351 }
 0x5a8   :  { %4755 = vrcp.f32 %v4383_v36  ;;  %v4355_v41 = vsel %vm739_vm7, %v4350_v29, %v4352_v44 }
 0x5a9   :  { %v4744_v56 = vpop.eup %4743  ;;  %4757 = vrcp.f32 %v4384_v48  ;;  %v4714_v23 = vmul.f32 -1.442695, %v4471_v3  ;;  %v4472_v40 = vadd.f32 %v4469_v55, %v4362_v38  ;;  %v4363_v39 = vadd.f32 %v4355_v41, %v4276_v12 }
 0x5aa   :  { %v4746_v50 = vpop.eup %4745  ;;  %v4385_v33 = vadd.f32 1.0, %v4744_v56  ;;  %4759 = vpow2.f32 %v4713_v52 }
 0x5ab   :  { %v4434_v16 = vadd.f32 1.0, %v4746_v50  ;;  %4761 = vpow2.f32 %v4714_v23  ;;  %v4715_v47 = vmul.f32 -1.442695, %v4472_v40  ;;  %v4473_v35 = vadd.f32 %v4469_v55, %v4363_v39 }
 0x5ac   :  { %4763 = vrcp.f32 %v4385_v33 }
 0x5ad   :  { %v4748_v21 = vpop.eup %4747  ;;  %4765 = vrcp.f32 %v4434_v16  ;;  %v4716_v28 = vmul.f32 -1.442695, %v4473_v35 }
 0x5ae   :  { %v4750_v31 = vpop.eup %4749  ;;  %v4435_v51 = vadd.f32 1.0, %v4748_v21  ;;  %4767 = vpow2.f32 %v4715_v47 }
 0x5af   :  { %v4752_v49 = vpop.eup %4751  ;;  %4769 = vpow2.f32 %v4716_v28  ;;  %4398 = vrot.lane.b32.xlu1 %v4750_v31, %s4936_s20 }
 0x5b0   :  { %4771 = vrcp.f32 %v4435_v51  ;;  %v4436_v46 = vadd.f32 1.0, %v4752_v49 }
 0x5b1   :  { %v4754_v19 = vpop.eup %4753 }
 0x5b2   :  { %v4756_v5 = vpop.eup %4755  ;;  %4773 = vrcp.f32 %v4436_v46  ;;  %v4437_v8 = vadd.f32 1.0, %v4754_v19 }
 0x5b3   :  { %v4758_v10 = vpop.eup %4757  ;;  %4400 = vrot.lane.b32.xlu0 %v4756_v5, %s4936_s20 }
 0x5b4   :  { %v4760_v25 = vpop.eup %4759  ;;  %4775 = vrcp.f32 %v4437_v8  ;;  %4402 = vrot.lane.b32.xlu1 %v4758_v10, %s4936_s20 }
 0x5b5   :  { %v4762_v22 = vpop.eup %4761  ;;  %v4486_v62 = vadd.f32 1.0, %v4760_v25 }
 0x5b6   :  { %v4764_v2 = vpop.eup %4763  ;;  %v4487_v58 = vadd.f32 1.0, %v4762_v22 }
 0x5b7   :  { %v4766_v54 = vpop.eup %4765  ;;  %4777 = vrcp.f32 %v4486_v62  ;;  %4404 = vrot.lane.b32.xlu0 %v4764_v2, %s4936_s20 }
 0x5b8   :  { %v4768_v55 = vpop.eup %4767  ;;  %4779 = vrcp.f32 %v4487_v58  ;;  %4450 = vrot.lane.b32.xlu1 %v4766_v54, %s4936_s20 }
 0x5b9   :  { %v4770_v45 = vpop.eup %4769  ;;  %v4488_v17 = vadd.f32 1.0, %v4768_v55 }
 0x5ba   :  { %v4772_v6 = vpop.eup %4771  ;;  %v4489_v43 = vadd.f32 1.0, %v4770_v45 }
 0x5bb   :  { %4781 = vrcp.f32 %v4488_v17  ;;  %4452 = vrot.lane.b32.xlu0 %v4772_v6, %s4936_s20 }
 0x5bc   :  { %v4774_v20 = vpop.eup %4773  ;;  %4783 = vrcp.f32 %v4489_v43 }
 0x5bd   :  { %4454 = vrot.lane.b32.xlu1 %v4774_v20, %s4936_s20 }
 0x5be   :  { %v4776_v24 = vpop.eup %4775 }
 0x5bf   :  { %4456 = vrot.lane.b32.xlu0 %v4776_v24, %s4936_s20 }
 0x5c1   :  { %v4778_v7 = vpop.eup %4777 }
 0x5c2   :  { %v4780_v32 = vpop.eup %4779  ;;  %4502 = vrot.lane.b32.xlu1 %v4778_v7, %s4936_s20 }
 0x5c3   :  { %4504 = vrot.lane.b32.xlu0 %v4780_v32, %s4936_s20 }
 0x5c5   :  { %v4782_v53 = vpop.eup %4781 }
 0x5c6   :  { %v4784_v34 = vpop.eup %4783  ;;  %4506 = vrot.lane.b32.xlu1 %v4782_v53, %s4936_s20 }
 0x5c7   :  { %4508 = vrot.lane.b32.xlu0 %v4784_v34, %s4936_s20 }
 0x621   :  { %v4399_v15 = vpop.permute.xlu1 %4398 }
 0x625   :  { %v4401_v11 = vpop.permute.xlu0 %4400 }
 0x626   :  { %v4403_v30 = vpop.permute.xlu1 %4402  ;;  %v4407_v14 = vsel %vm4406_vm8, %v4399_v15, %v4401_v11 }
 0x627   :  { %v4408_v9 = vsel %vm4406_vm8, %v4401_v11, %v4403_v30  ;;  %4413 = vst [vmem:[#allocation15] sm:$0xff] %v4407_v14 }
 0x628   :  { %4414 = vst [vmem:[#allocation15 + $0x8] sm:$0xff] %v4408_v9 }
 0x629   :  { %v4405_v60 = vpop.permute.xlu0 %4404 }
 0x62a   :  { %v4451_v26 = vpop.permute.xlu1 %4450  ;;  %v4409_v4 = vsel %vm4406_vm8, %v4403_v30, %v4405_v60 }
 0x62b   :  { %4415 = vst [vmem:[#allocation15 + $0x10] sm:$0xff] %v4409_v4 }
 0x62d   :  { %v4453_v42 = vpop.permute.xlu0 %4452 }
 0x62e   :  { %v4458_v18 = vsel %vm4406_vm8, %v4451_v26, %v4453_v42 }
 0x62f   :  { %v4455_v1 = vpop.permute.xlu1 %4454  ;;  %4465 = vst [vmem:[#allocation15 + $0x18] sm:$0xff] %v4458_v18 }
 0x630   :  { %v4459_v57 = vsel %vm4406_vm8, %v4453_v42, %v4455_v1 }
 0x631   :  { %4466 = vst [vmem:[#allocation15 + $0x20] sm:$0xff] %v4459_v57  ;;  %v4457_v63 = vpop.permute.xlu0 %4456 }
 0x632   :  { %v4460_v29 = vsel %vm4406_vm8, %v4455_v1, %v4457_v63 }
 0x633   :  { %4467 = vst [vmem:[#allocation15 + $0x28] sm:$0xff] %v4460_v29 }
 0x634   :  { %v4503_v27 = vpop.permute.xlu1 %4502 }
 0x635   :  { %v4505_v61 = vpop.permute.xlu0 %4504 }
 0x636   :  { %v4510_v13 = vsel %vm4406_vm8, %v4503_v27, %v4505_v61 }
 0x637   :  { %4517 = vst [vmem:[#allocation15 + $0x30] sm:$0xff] %v4510_v13 }
 0x638   :  { %v4507_v37 = vpop.permute.xlu1 %4506 }
 0x639   :  { %v4511_v59 = vsel %vm4406_vm8, %v4505_v61, %v4507_v37  ;;  %v4509_v12 = vpop.permute.xlu0 %4508 }
 0x63a   :  { %4518 = vst [vmem:[#allocation15 + $0x38] sm:$0xff] %v4511_v59  ;;  %v4512_v36 = vsel %vm4406_vm8, %v4507_v37, %v4509_v12 }
 0x63b   :  { %4519 = vst [vmem:[#allocation15 + $0x40] sm:$0xff] %v4512_v36 }
 0x63c   :  { %4897 = shalt.err (!%p4894_p12)
}
 0x63d   :  { %s4898_s0 = scalar_lea.hbm %s8797_s6, 1152 }
 0x63e   :  { %p4899_p13 = scmp.ne.s32.totalorder %s8797_s6, %s4898_s0  ;;  %p4902_p0 = scmp.lt.u32.totalorder %s4898_s0, %s8797_s6 }
 0x640   :  { %p4904_p1 = pnand %p4902_p0, %p4899_p13 }
 0x642   :  { %4907 = shalt.err (!%p4904_p1)
}
 0x643   :  { %s4938_s30 = smov 384   ;;  %s4939_s7 = smov 24  }
 0x644   :  { %4531 = dma.vmem_to_hbm [thread:$0]  %s4526_s23, 1152, %s8797_s6, [#allocation5], %s4938_s30, %s4938_s30, %s4939_s7  }
 0x645   :  { %4918 = dma.done.wait [#allocation5], 1152  }
 0x646   :  { %4919 = vsyncadd [#allocation5], 4294966144 }
 0x647   :  { %4535 = vsyncpa [#allocation4], 1 }
 0x648   :  { %4536 = vsyncpa [#allocation8], 1 }
 0x649   :  { %4537 = vsyncpa [#allocation5], 1 }
 0x64a   :  { %4538 = vsyncpa [#allocation6], 1 }
 0x64b   :  { %4539 = vsyncpa [#allocation11], 1 }
 0x64c   :  { %4540 = vsyncpa [#allocation14], 1 }

</bundles_post_ra>
